<compile_context>
chip_gen: v5e
topology: v5e:2x2
jax: 0.10.0
libtpu: 0.0.40
codegen_flags: <defaults>
</compile_context>

<pallas_src>
import functools

import numpy as np

import jax
import jax.numpy as jnp
from jax.experimental import pallas as pl
from jax.experimental.pallas import tpu as pltpu


_STREAMED = ("fk_cv_m", "up1_m", "upc_m", "fin_m")   # big, late-use weights -> manual DMA

_PARAM_ORDER = (
    "fc_w", "fc_b",
    "fk_ct_m", "fk_ct_b", "fk_bn0_g", "fk_bn0_b",
    "fk_cv_m", "fk_cv_b", "fk_bn1_g", "fk_bn1_b",
    "up0_m", "up0_b", "up0_bn_g", "up0_bn_b",
    "up1_m", "up1_b", "up1_bn_g", "up1_bn_b",
    "upc_m", "upc_b", "upc_bn_g", "upc_bn_b",
    "fin_m", "fin_b",
    "r_s16_c2z", "rt_s16_c2z", "r_s16_cz", "rt_s16_cz", "r_s4_cz", "rt_s4_cz",
)


# --------------------------------------------------------------------------
# In-kernel helpers
# --------------------------------------------------------------------------
def _bn(y, r_ref, rt_ref, g_t_ref, b_t_ref, n, act, eps):
    """Training-mode BatchNorm + activation on a (B, C*S) channel-major tile.

    ONE MXU dot reduces the stacked [sum ; sum-of-squares] rows per channel,
    ONE MXU dot broadcasts [mean ; E[x^2]] back to the tiled layout.
    r_ref : (C*S, C) 0/1 bf16,  rt_ref : (C, C*S) 0/1 bf16.
    gamma/beta are pre-tiled to (1, C*S) f32 at fold time (exact).
    """
    f32 = jnp.float32
    inv_n = 1.0 / float(n)
    s1 = jnp.sum(y, axis=0, keepdims=True)                         # (1, C*S)
    s2 = jnp.sum(y * y, axis=0, keepdims=True)                     # (1, C*S)
    s12 = jnp.concatenate([s1, s2], axis=0)                        # (2, C*S)
    stats_c = jnp.dot(s12.astype(jnp.bfloat16), r_ref[...],
                      preferred_element_type=f32) * inv_n          # (2, C) = [mean; E[x^2]]
    stats_t = jnp.dot(stats_c.astype(jnp.bfloat16), rt_ref[...],
                      preferred_element_type=f32)                  # (2, C*S) broadcast back
    mean_t = stats_t[0:1]
    var_t = jnp.maximum(stats_t[1:2] - mean_t * mean_t, 0.0)       # clamp f32 cancellation
    scale_t = g_t_ref[...] * jax.lax.rsqrt(var_t + eps)
    out = (y - mean_t) * scale_t + b_t_ref[...]
    if act == "relu":
        out = jnp.maximum(out, 0.0)
    elif act == "swish":
        out = out * jax.nn.sigmoid(out)
    return out


def _l2fm_kernel(*refs, z, batch, eps):
    (mixw_ref, x_ref,
     fc_w, fc_b,
     fk_ct_m, fk_ct_b, fk_bn0_g, fk_bn0_b,
     fk_cv_hbm, fk_cv_b, fk_bn1_g, fk_bn1_b,
     up0_m, up0_b, up0_bn_g, up0_bn_b,
     up1_hbm, up1_b, up1_bn_g, up1_bn_b,
     upc_hbm, upc_b, upc_bn_g, upc_bn_b,
     fin_hbm, fin_b,
     r_s16_c2z, rt_s16_c2z, r_s16_cz, rt_s16_cz, r_s4_cz, rt_s4_cz,
     o_ref,
     fk_cv_buf, up1_buf, upc_buf, fin_buf, dma_sems) = refs

    # --- stream late-use weight matrices HBM->VMEM, overlapped with early compute ---
    cp_fkcv = pltpu.make_async_copy(fk_cv_hbm, fk_cv_buf, dma_sems.at[0]); cp_fkcv.start()
    cp_up1 = pltpu.make_async_copy(up1_hbm, up1_buf, dma_sems.at[1]); cp_up1.start()
    cp_upc = pltpu.make_async_copy(upc_hbm, upc_buf, dma_sems.at[2]); cp_upc.start()
    cp_fin = pltpu.make_async_copy(fin_hbm, fin_buf, dma_sems.at[3]); cp_fin.start()

    def mm(a, w, b_ref):
        # bf16 MXU operands, f32 accumulate + f32 bias.
        y = jnp.dot(a.astype(w.dtype), w, preferred_element_type=jnp.float32)
        return y + b_ref[...]

    x = x_ref[...]
    sz = z * 16                                            # channels * 4x4

    # ---------------- fused FC (both branches in ONE matmul) ----------------
    fc = mm(x, fc_w[...], fc_b)                            # (B, 2Z)
    xf = fc[:, :z]                                         # FullK-branch latent
    xu = fc[:, z:]                                         # Up-branch latent

    # ---------------- FullK branch ----------------
    h = mm(xf, fk_ct_m[...], fk_ct_b)                      # (B, 2Z*16)  ConvT 1x1 -> 4x4
    h = _bn(h, r_s16_c2z, rt_s16_c2z, fk_bn0_g, fk_bn0_b, batch * 16, "none", eps)
    h = h[:, :sz] * jax.nn.sigmoid(h[:, sz:])              # GLU over channel halves (dim=1)
    cp_fkcv.wait()
    h = mm(h, fk_cv_buf[...], fk_cv_b)                     # (B, Z*16)   Conv3x3 as 1 matmul
    fullk = _bn(h, r_s16_cz, rt_s16_cz, fk_bn1_g, fk_bn1_b, batch * 16, "swish", eps)

    # ---------------- Up branch ----------------
    g = mm(xu, up0_m[...], up0_b)                          # (B, Z*4)    up2x+conv3x3 fused
    g = _bn(g, r_s4_cz, rt_s4_cz, up0_bn_g, up0_bn_b, batch * 4, "relu", eps)
    cp_up1.wait()
    g = mm(g, up1_buf[...], up1_b)                         # (B, Z*16)   up2x+conv3x3 fused
    g = _bn(g, r_s16_cz, rt_s16_cz, up1_bn_g, up1_bn_b, batch * 16, "relu", eps)
    cp_upc.wait()
    g = mm(g, upc_buf[...], upc_b)                         # (B, Z*16)   Conv3x3
    up = _bn(g, r_s16_cz, rt_s16_cz, upc_bn_g, upc_bn_b, batch * 16, "swish", eps)

    # -------- learned hybrid mix (scalars from SMEM) + final ConvBlock(none/none) --------
    mixed = fullk * mixw_ref[0] + up * mixw_ref[1]
    cp_fin.wait()
    o_ref[...] = mm(mixed, fin_buf[...], fin_b)            # (B, Z*16), lane-dense store


# --------------------------------------------------------------------------
# Parameter folding (ONCE at init): conv -> matmul matrices, gains, tiling
# --------------------------------------------------------------------------
def _conv3x3_tap_map(h_in, w_in, upsample):
    """0/1 map T[kh, kw, p_in, p_out] for a 3x3 / stride-1 / pad-1 conv,
    optionally preceded by a folded-in 2x nearest-neighbour upsample."""
    h_out, w_out = (2 * h_in, 2 * w_in) if upsample else (h_in, w_in)
    t = np.zeros((3, 3, h_in * w_in, h_out * w_out), np.float32)
    for kh in range(3):
        for kw in range(3):
            for ho in range(h_out):
                for wo in range(w_out):
                    hi, wi = ho + kh - 1, wo + kw - 1
                    if not (0 <= hi < h_out and 0 <= wi < w_out):
                        continue                       # zero padding
                    if upsample:
                        hi, wi = hi // 2, wi // 2      # nearest-neighbour source
                    t[kh, kw, hi * w_in + wi, ho * w_out + wo] = 1.0
    return t


def fold_params(raw, z):
    f32, bf16 = jnp.float32, jnp.bfloat16
    t44 = _conv3x3_tap_map(4, 4, upsample=False)       # 4x4 -> 4x4
    t12 = _conv3x3_tap_map(1, 1, upsample=True)        # 1x1 -> 2x2 (upsample folded)
    t24 = _conv3x3_tap_map(2, 2, upsample=True)        # 2x2 -> 4x4 (upsample folded)

    def conv_mat(w_oihw, taps):
        co, ci = w_oihw.shape[0], w_oihw.shape[1]
        s_in, s_out = taps.shape[2], taps.shape[3]
        m = jnp.einsum("oikl,klpq->ipoq", w_oihw.astype(f32), jnp.asarray(taps))
        return m.reshape(ci * s_in, co * s_out).astype(bf16)

    def tile(v, s):                                    # channel-major (c*S + p), exact f32
        return jnp.repeat(v, s).reshape(1, -1).astype(f32)

    def rmats(s, c):                                   # per-channel reduce / broadcast (bf16 exact 0/1)
        r = np.kron(np.eye(c, dtype=np.float32), np.ones((s, 1), np.float32))
        return (jnp.asarray(r, dtype=bf16),
                jnp.asarray(np.ascontiguousarray(r.T), dtype=bf16))

    def fc_fold(w_oi, lr_mult=1.0):                    # StyleGAN FC gain + transpose
        gain = float(lr_mult / np.sqrt(w_oi.shape[1]))
        return (w_oi * gain).T.astype(bf16)

    r16_2z, rt16_2z = rmats(16, 2 * z)
    r16_z, rt16_z = rmats(16, z)
    r4_z, rt4_z = rmats(4, z)

    return {
        "mix_w": jnp.stack([raw["fullk_weight"], raw["up_weight"]]).astype(f32),
        # Fused FC of both branches: (Z, 2Z); first Z cols = FullK, last Z = Up.
        "fc_w": jnp.concatenate([fc_fold(raw["fk_fc_w"]), fc_fold(raw["up_fc_w"])], axis=1),
        "fc_b": jnp.concatenate([raw["fk_fc_b"], raw["up_fc_b"]]).reshape(1, 2 * z).astype(f32),
        # FullK branch
        "fk_ct_m": raw["fk_ct_w"].reshape(z, 2 * z * 16).astype(bf16),  # (ci, co*16+kh*4+kw)
        "fk_ct_b": tile(raw["fk_ct_b"], 16),
        "fk_bn0_g": tile(raw["fk_bn0_g"], 16), "fk_bn0_b": tile(raw["fk_bn0_b"], 16),
        "fk_cv_m": conv_mat(raw["fk_cv_w"], t44), "fk_cv_b": tile(raw["fk_cv_b"], 16),
        "fk_bn1_g": tile(raw["fk_bn1_g"], 16), "fk_bn1_b": tile(raw["fk_bn1_b"], 16),
        # Up branch
        "up0_m": conv_mat(raw["up0_cv_w"], t12), "up0_b": tile(raw["up0_cv_b"], 4),
        "up0_bn_g": tile(raw["up0_bn_g"], 4), "up0_bn_b": tile(raw["up0_bn_b"], 4),
        "up1_m": conv_mat(raw["up1_cv_w"], t24), "up1_b": tile(raw["up1_cv_b"], 16),
        "up1_bn_g": tile(raw["up1_bn_g"], 16), "up1_bn_b": tile(raw["up1_bn_b"], 16),
        "upc_m": conv_mat(raw["up_cv_w"], t44), "upc_b": tile(raw["up_cv_b"], 16),
        "upc_bn_g": tile(raw["up_bn_g"], 16), "upc_bn_b": tile(raw["up_bn_b"], 16),
        # Final ConvBlock (norm=none, actv=none)
        "fin_m": conv_mat(raw["fin_cv_w"], t44), "fin_b": tile(raw["fin_cv_b"], 16),
        # BN channel reduce / broadcast helper matrices (0/1, exact in bf16)
        "r_s16_c2z": r16_2z, "rt_s16_c2z": rt16_2z,
        "r_s16_cz": r16_z, "rt_s16_cz": rt16_z,
        "r_s4_cz": r4_z, "rt_s4_cz": rt4_z,
    }


# --------------------------------------------------------------------------
# Forward wrapper: one pallas_call, output reshaped to NCHW on the host
# --------------------------------------------------------------------------
def learned_hybrid_forward(x, params):
    """x: (B, Z) latent.  Returns NCHW (B, Z, 4, 4)."""
    B, Z = x.shape
    vmem = pl.BlockSpec(memory_space=pltpu.MemorySpace.VMEM)
    smem = pl.BlockSpec(memory_space=pltpu.MemorySpace.SMEM)
    hbm = pl.BlockSpec(memory_space=pl.ANY)               # streamed weights stay in HBM

    args = [params[k] for k in _PARAM_ORDER]
    in_specs = [smem, vmem] + [hbm if k in _STREAMED else vmem for k in _PARAM_ORDER]

    scratch_shapes = [pltpu.VMEM(tuple(params[k].shape), params[k].dtype) for k in _STREAMED]
    scratch_shapes.append(pltpu.SemaphoreType.DMA((len(_STREAMED),)))

    nbytes = lambda a: int(a.size) * a.dtype.itemsize
    param_bytes = sum(nbytes(params[k]) for k in _PARAM_ORDER) + nbytes(params["mix_w"])
    streamed_bytes = sum(nbytes(params[k]) for k in _STREAMED)
    out_bytes = B * Z * 16 * 4
    # Resident VMEM = non-streamed params + scratch copies of streamed params + activations.
    vmem_limit = int(min(max(2 * (param_bytes + streamed_bytes) + (8 << 20), 32 << 20), 64 << 20))

    mm_keys = ("fc_w", "fk_ct_m", "fk_cv_m", "up0_m", "up1_m", "upc_m", "fin_m")
    flops = sum(2 * B * params[k].shape[0] * params[k].shape[1] for k in mm_keys)
    for rk, rtk in (("r_s16_c2z", "rt_s16_c2z"), ("r_s16_cz", "rt_s16_cz"),
                    ("r_s4_cz", "rt_s4_cz")):
        flops += 2 * 2 * params[rk].shape[0] * params[rk].shape[1]
        flops += 2 * 2 * params[rtk].shape[0] * params[rtk].shape[1]
    cost = pl.CostEstimate(flops=int(flops),
                           transcendentals=int(6 * B * Z * 16),
                           bytes_accessed=int(param_bytes + nbytes(x) + out_bytes))

    out = pl.pallas_call(
        functools.partial(_l2fm_kernel, z=Z, batch=B, eps=1e-5),
        out_shape=jax.ShapeDtypeStruct((B, Z * 16), jnp.float32),
        in_specs=in_specs,
        out_specs=vmem,
        scratch_shapes=scratch_shapes,
        compiler_params=pltpu.CompilerParams(vmem_limit_bytes=vmem_limit),
        cost_estimate=cost,
    )(params["mix_w"], x, *args)
    # Channel-major columns (c*16 + h*4 + w): a plain reshape IS the NCHW layout.
    return out.reshape(B, Z, 4, 4)


# --------------------------------------------------------------------------
# Raw (PyTorch-layout) parameters + pure-JAX reference (for a sanity check)
# --------------------------------------------------------------------------
def init_raw_params(key, z):
    ks = jax.random.split(key, 8)

    def n(k, shape, scale=0.1):
        return (scale * jax.random.normal(k, shape)).astype(jnp.float32)

    zeros = lambda c: jnp.zeros((c,), jnp.float32)
    ones = lambda c: jnp.ones((c,), jnp.float32)
    return {
        # FullK branch: FC -> ConvTranspose(4x4) -> BN -> GLU -> Conv3x3 -> BN(swish)
        "fk_fc_w": n(ks[0], (z, z), 1.0), "fk_fc_b": zeros(z),
        "fk_ct_w": n(ks[1], (z, 2 * z, 4, 4)), "fk_ct_b": zeros(2 * z),
        "fk_bn0_g": ones(2 * z), "fk_bn0_b": zeros(2 * z),
        "fk_cv_w": n(ks[2], (z, z, 3, 3)), "fk_cv_b": zeros(z),
        "fk_bn1_g": ones(z), "fk_bn1_b": zeros(z),
        # Up branch: FC -> [Up2x -> Conv3x3 -> BN(relu)] x2 -> Conv3x3 -> BN(swish)
        "up_fc_w": n(ks[3], (z, z), 1.0), "up_fc_b": zeros(z),
        "up0_cv_w": n(ks[4], (z, z, 3, 3)), "up0_cv_b": zeros(z),
        "up0_bn_g": ones(z), "up0_bn_b": zeros(z),
        "up1_cv_w": n(ks[5], (z, z, 3, 3)), "up1_cv_b": zeros(z),
        "up1_bn_g": ones(z), "up1_bn_b": zeros(z),
        "up_cv_w": n(ks[6], (z, z, 3, 3)), "up_bn_g": ones(z), "up_bn_b": zeros(z),
        "up_cv_b": zeros(z),
        # Learned hybrid mix weights + final ConvBlock (norm=none, actv=none)
        "fullk_weight": jnp.float32(1.0), "up_weight": jnp.float32(1.0),
        "fin_cv_w": n(ks[7], (z, z, 3, 3)), "fin_cv_b": zeros(z),
    }


def reference_forward(x, raw, eps=1e-5):
    """Straightforward NCHW JAX port of the PyTorch module (train-mode BN)."""
    def fc(v, w, b):
        gain = 1.0 / np.sqrt(w.shape[1])
        return v @ (w * gain).T + b

    def bn(v, g, b):
        mean = jnp.mean(v, axis=(0, 2, 3), keepdims=True)
        var = jnp.mean((v - mean) ** 2, axis=(0, 2, 3), keepdims=True)
        return (v - mean) * jax.lax.rsqrt(var + eps) * g.reshape(1, -1, 1, 1) + b.reshape(1, -1, 1, 1)

    def conv3(v, w, b):
        y = jax.lax.conv_general_dilated(v, w, (1, 1), ((1, 1), (1, 1)),
                                         dimension_numbers=("NCHW", "OIHW", "NCHW"))
        return y + b.reshape(1, -1, 1, 1)

    def convt4(v, w, b):          # ConvTranspose2d(z, 2z, k=4) applied to a 1x1 map
        return jnp.einsum("bi,iohw->bohw", v[:, :, 0, 0], w) + b.reshape(1, -1, 1, 1)

    up2 = lambda v: jnp.repeat(jnp.repeat(v, 2, axis=2), 2, axis=3)
    swish = lambda v: v * jax.nn.sigmoid(v)

    h = fc(x, raw["fk_fc_w"], raw["fk_fc_b"])[:, :, None, None]
    h = convt4(h, raw["fk_ct_w"], raw["fk_ct_b"])
    h = bn(h, raw["fk_bn0_g"], raw["fk_bn0_b"])
    c = h.shape[1] // 2
    h = h[:, :c] * jax.nn.sigmoid(h[:, c:])                       # GLU(dim=1)
    h = conv3(h, raw["fk_cv_w"], raw["fk_cv_b"])
    fullk = swish(bn(h, raw["fk_bn1_g"], raw["fk_bn1_b"]))

    g = fc(x, raw["up_fc_w"], raw["up_fc_b"])[:, :, None, None]
    g = conv3(up2(g), raw["up0_cv_w"], raw["up0_cv_b"])
    g = jnp.maximum(bn(g, raw["up0_bn_g"], raw["up0_bn_b"]), 0.0)
    g = conv3(up2(g), raw["up1_cv_w"], raw["up1_cv_b"])
    g = jnp.maximum(bn(g, raw["up1_bn_g"], raw["up1_bn_b"]), 0.0)
    g = conv3(g, raw["up_cv_w"], raw["up_cv_b"])
    up = swish(bn(g, raw["up_bn_g"], raw["up_bn_b"]))

    mixed = fullk * raw["fullk_weight"] + up * raw["up_weight"]
    return conv3(mixed, raw["fin_cv_w"], raw["fin_cv_b"])


if __name__ == "__main__":
    Z, B = 32, 2
    key = jax.random.PRNGKey(0)
    kx, kp = jax.random.split(key)
    x = jax.random.normal(kx, (B, Z), dtype=jnp.float32)

    raw = init_raw_params(kp, Z)
    params = fold_params(raw, Z)     # one-time fold: gains, transposes, conv->matmul, BN helpers

    fwd = jax.jit(learned_hybrid_forward)
    out = jax.block_until_ready(fwd(x, params))

    assert out.shape == (B, Z, 4, 4), out.shape
    assert bool(jnp.all(jnp.isfinite(out)))

    # Loose structural sanity check against a plain-JAX NCHW reference
    # (generous tolerance: kernel uses bf16 MXU operands / bf16 BN-stat reduce).
    ref = jax.block_until_ready(reference_forward(x, raw))
    max_ref = float(jnp.max(jnp.abs(ref)))
    max_diff = float(jnp.max(jnp.abs(out - ref)))
    assert max_diff <= 0.05 * max_ref + 0.05, (max_diff, max_ref)

    print("KERNEL_OK")
</pallas_src>

<mosaic_0001>
module attributes {stable_mosaic.version = 11 : i64} {
  func.func @_l2fm_kernel(%arg0: memref<2xf32, #tpu.memory_space<smem>>, %arg1: memref<2x32xf32, #tpu.memory_space<vmem>>, %arg2: memref<32x64xbf16, #tpu.memory_space<vmem>>, %arg3: memref<1x64xf32, #tpu.memory_space<vmem>>, %arg4: memref<32x1024xbf16, #tpu.memory_space<vmem>>, %arg5: memref<1x1024xf32, #tpu.memory_space<vmem>>, %arg6: memref<1x1024xf32, #tpu.memory_space<vmem>>, %arg7: memref<1x1024xf32, #tpu.memory_space<vmem>>, %arg8: memref<512x512xbf16, #tpu.memory_space<any>>, %arg9: memref<1x512xf32, #tpu.memory_space<vmem>>, %arg10: memref<1x512xf32, #tpu.memory_space<vmem>>, %arg11: memref<1x512xf32, #tpu.memory_space<vmem>>, %arg12: memref<32x128xbf16, #tpu.memory_space<vmem>>, %arg13: memref<1x128xf32, #tpu.memory_space<vmem>>, %arg14: memref<1x128xf32, #tpu.memory_space<vmem>>, %arg15: memref<1x128xf32, #tpu.memory_space<vmem>>, %arg16: memref<128x512xbf16, #tpu.memory_space<any>>, %arg17: memref<1x512xf32, #tpu.memory_space<vmem>>, %arg18: memref<1x512xf32, #tpu.memory_space<vmem>>, %arg19: memref<1x512xf32, #tpu.memory_space<vmem>>, %arg20: memref<512x512xbf16, #tpu.memory_space<any>>, %arg21: memref<1x512xf32, #tpu.memory_space<vmem>>, %arg22: memref<1x512xf32, #tpu.memory_space<vmem>>, %arg23: memref<1x512xf32, #tpu.memory_space<vmem>>, %arg24: memref<512x512xbf16, #tpu.memory_space<any>>, %arg25: memref<1x512xf32, #tpu.memory_space<vmem>>, %arg26: memref<1024x64xbf16, #tpu.memory_space<vmem>>, %arg27: memref<64x1024xbf16, #tpu.memory_space<vmem>>, %arg28: memref<512x32xbf16, #tpu.memory_space<vmem>>, %arg29: memref<32x512xbf16, #tpu.memory_space<vmem>>, %arg30: memref<128x32xbf16, #tpu.memory_space<vmem>>, %arg31: memref<32x128xbf16, #tpu.memory_space<vmem>>, %arg32: memref<2x512xf32, #tpu.memory_space<vmem>>, %arg33: memref<512x512xbf16, #tpu.memory_space<vmem>>, %arg34: memref<128x512xbf16, #tpu.memory_space<vmem>>, %arg35: memref<512x512xbf16, #tpu.memory_space<vmem>>, %arg36: memref<512x512xbf16, #tpu.memory_space<vmem>>, %arg37: memref<4x!tpu.dma_semaphore, #tpu.memory_space<semaphore_mem>>) attributes {dimension_semantics = [], scalar_prefetch = 0 : i64, scratch_operands = 5 : i64, tpu.core_type = #tpu.core_type<tc>} {
    %c0_i32 = arith.constant 0 : i32
    %0 = tpu.memref_slice %arg37[%c0_i32] : memref<4x!tpu.dma_semaphore, #tpu.memory_space<semaphore_mem>> -> memref<1x!tpu.dma_semaphore, #tpu.memory_space<semaphore_mem>>
    %1 = tpu.memref_squeeze %0 : memref<1x!tpu.dma_semaphore, #tpu.memory_space<semaphore_mem>> -> memref<!tpu.dma_semaphore, #tpu.memory_space<semaphore_mem>>
    tpu.enqueue_dma source(%arg8 : memref<512x512xbf16, #tpu.memory_space<any>>) target(%arg33 : memref<512x512xbf16, #tpu.memory_space<vmem>>) target_semaphore(%1 : memref<!tpu.dma_semaphore, #tpu.memory_space<semaphore_mem>>)
    %c1_i32 = arith.constant 1 : i32
    %2 = tpu.memref_slice %arg37[%c1_i32] : memref<4x!tpu.dma_semaphore, #tpu.memory_space<semaphore_mem>> -> memref<1x!tpu.dma_semaphore, #tpu.memory_space<semaphore_mem>>
    %3 = tpu.memref_squeeze %2 : memref<1x!tpu.dma_semaphore, #tpu.memory_space<semaphore_mem>> -> memref<!tpu.dma_semaphore, #tpu.memory_space<semaphore_mem>>
    tpu.enqueue_dma source(%arg16 : memref<128x512xbf16, #tpu.memory_space<any>>) target(%arg34 : memref<128x512xbf16, #tpu.memory_space<vmem>>) target_semaphore(%3 : memref<!tpu.dma_semaphore, #tpu.memory_space<semaphore_mem>>)
    %c2_i32 = arith.constant 2 : i32
    %4 = tpu.memref_slice %arg37[%c2_i32] : memref<4x!tpu.dma_semaphore, #tpu.memory_space<semaphore_mem>> -> memref<1x!tpu.dma_semaphore, #tpu.memory_space<semaphore_mem>>
    %5 = tpu.memref_squeeze %4 : memref<1x!tpu.dma_semaphore, #tpu.memory_space<semaphore_mem>> -> memref<!tpu.dma_semaphore, #tpu.memory_space<semaphore_mem>>
    tpu.enqueue_dma source(%arg20 : memref<512x512xbf16, #tpu.memory_space<any>>) target(%arg35 : memref<512x512xbf16, #tpu.memory_space<vmem>>) target_semaphore(%5 : memref<!tpu.dma_semaphore, #tpu.memory_space<semaphore_mem>>)
    %c3_i32 = arith.constant 3 : i32
    %6 = tpu.memref_slice %arg37[%c3_i32] : memref<4x!tpu.dma_semaphore, #tpu.memory_space<semaphore_mem>> -> memref<1x!tpu.dma_semaphore, #tpu.memory_space<semaphore_mem>>
    %7 = tpu.memref_squeeze %6 : memref<1x!tpu.dma_semaphore, #tpu.memory_space<semaphore_mem>> -> memref<!tpu.dma_semaphore, #tpu.memory_space<semaphore_mem>>
    tpu.enqueue_dma source(%arg24 : memref<512x512xbf16, #tpu.memory_space<any>>) target(%arg36 : memref<512x512xbf16, #tpu.memory_space<vmem>>) target_semaphore(%7 : memref<!tpu.dma_semaphore, #tpu.memory_space<semaphore_mem>>)
    %c0 = arith.constant 0 : index
    %c0_0 = arith.constant 0 : index
    %8 = vector.load %arg1[%c0, %c0_0] : memref<2x32xf32, #tpu.memory_space<vmem>>, vector<2x32xf32>
    %c0_1 = arith.constant 0 : index
    %c0_2 = arith.constant 0 : index
    %9 = vector.load %arg2[%c0_1, %c0_2] : memref<32x64xbf16, #tpu.memory_space<vmem>>, vector<32x64xbf16>
    %10 = arith.truncf %8 : vector<2x32xf32> to vector<2x32xbf16>
    %cst = arith.constant dense<0.000000e+00> : vector<2x64xf32>
    %11 = tpu.matmul %10, %9, %cst {dimension_numbers = #tpu.dot_dimension_numbers<[1], [0], [0], [1], [0, 0, 1, 1], [], []>} : vector<2x32xbf16>, vector<32x64xbf16>, vector<2x64xf32> -> vector<2x64xf32>
    %c0_3 = arith.constant 0 : index
    %c0_4 = arith.constant 0 : index
    %12 = vector.load %arg3[%c0_3, %c0_4] : memref<1x64xf32, #tpu.memory_space<vmem>>, vector<1x64xf32>
    %13 = vector.broadcast %12 : vector<1x64xf32> to vector<2x64xf32>
    %14 = arith.addf %11, %13 : vector<2x64xf32>
    %15 = vector.extract_strided_slice %14 {offsets = [0, 0], sizes = [2, 32], strides = [1, 1]} : vector<2x64xf32> to vector<2x32xf32>
    %16 = vector.extract_strided_slice %14 {offsets = [0, 32], sizes = [2, 32], strides = [1, 1]} : vector<2x64xf32> to vector<2x32xf32>
    %c0_5 = arith.constant 0 : index
    %c0_6 = arith.constant 0 : index
    %17 = vector.load %arg4[%c0_5, %c0_6] : memref<32x1024xbf16, #tpu.memory_space<vmem>>, vector<32x1024xbf16>
    %18 = arith.truncf %15 : vector<2x32xf32> to vector<2x32xbf16>
    %cst_7 = arith.constant dense<0.000000e+00> : vector<2x1024xf32>
    %19 = tpu.matmul %18, %17, %cst_7 {dimension_numbers = #tpu.dot_dimension_numbers<[1], [0], [0], [1], [0, 0, 1, 1], [], []>} : vector<2x32xbf16>, vector<32x1024xbf16>, vector<2x1024xf32> -> vector<2x1024xf32>
    %c0_8 = arith.constant 0 : index
    %c0_9 = arith.constant 0 : index
    %20 = vector.load %arg5[%c0_8, %c0_9] : memref<1x1024xf32, #tpu.memory_space<vmem>>, vector<1x1024xf32>
    %21 = vector.broadcast %20 : vector<1x1024xf32> to vector<2x1024xf32>
    %22 = arith.addf %19, %21 : vector<2x1024xf32>
    %cst_10 = arith.constant dense<0.000000e+00> : vector<1024xf32>
    %23 = vector.multi_reduction <add>, %22, %cst_10 [0] : vector<2x1024xf32> to vector<1024xf32>
    %24 = vector.shape_cast %23 : vector<1024xf32> to vector<1x1024xf32>
    %25 = arith.mulf %22, %22 : vector<2x1024xf32>
    %cst_11 = arith.constant dense<0.000000e+00> : vector<1024xf32>
    %26 = vector.multi_reduction <add>, %25, %cst_11 [0] : vector<2x1024xf32> to vector<1024xf32>
    %27 = vector.shape_cast %26 : vector<1024xf32> to vector<1x1024xf32>
    %28 = tpu.concatenate %24, %27 in 0 : vector<1x1024xf32>, vector<1x1024xf32> -> vector<2x1024xf32>
    %29 = arith.truncf %28 : vector<2x1024xf32> to vector<2x1024xbf16>
    %c0_12 = arith.constant 0 : index
    %c0_13 = arith.constant 0 : index
    %30 = vector.load %arg26[%c0_12, %c0_13] : memref<1024x64xbf16, #tpu.memory_space<vmem>>, vector<1024x64xbf16>
    %cst_14 = arith.constant dense<0.000000e+00> : vector<2x64xf32>
    %31 = tpu.matmul %29, %30, %cst_14 {dimension_numbers = #tpu.dot_dimension_numbers<[1], [0], [0], [1], [0, 0, 1, 1], [], []>} : vector<2x1024xbf16>, vector<1024x64xbf16>, vector<2x64xf32> -> vector<2x64xf32>
    %cst_15 = arith.constant 3.125000e-02 : f32
    %32 = vector.broadcast %cst_15 : f32 to vector<2x64xf32>
    %33 = arith.mulf %31, %32 : vector<2x64xf32>
    %34 = arith.truncf %33 : vector<2x64xf32> to vector<2x64xbf16>
    %c0_16 = arith.constant 0 : index
    %c0_17 = arith.constant 0 : index
    %35 = vector.load %arg27[%c0_16, %c0_17] : memref<64x1024xbf16, #tpu.memory_space<vmem>>, vector<64x1024xbf16>
    %cst_18 = arith.constant dense<0.000000e+00> : vector<2x1024xf32>
    %36 = tpu.matmul %34, %35, %cst_18 {dimension_numbers = #tpu.dot_dimension_numbers<[1], [0], [0], [1], [0, 0, 1, 1], [], []>} : vector<2x64xbf16>, vector<64x1024xbf16>, vector<2x1024xf32> -> vector<2x1024xf32>
    %37 = vector.extract_strided_slice %36 {offsets = [0, 0], sizes = [1, 1024], strides = [1, 1]} : vector<2x1024xf32> to vector<1x1024xf32>
    %38 = vector.extract_strided_slice %36 {offsets = [1, 0], sizes = [1, 1024], strides = [1, 1]} : vector<2x1024xf32> to vector<1x1024xf32>
    %39 = arith.mulf %37, %37 : vector<1x1024xf32>
    %40 = arith.subf %38, %39 : vector<1x1024xf32>
    %cst_19 = arith.constant 0.000000e+00 : f32
    %41 = vector.broadcast %cst_19 : f32 to vector<1x1024xf32>
    %42 = arith.maximumf %40, %41 : vector<1x1024xf32>
    %c0_20 = arith.constant 0 : index
    %c0_21 = arith.constant 0 : index
    %43 = vector.load %arg6[%c0_20, %c0_21] : memref<1x1024xf32, #tpu.memory_space<vmem>>, vector<1x1024xf32>
    %cst_22 = arith.constant 9.99999974E-6 : f32
    %44 = vector.broadcast %cst_22 : f32 to vector<1x1024xf32>
    %45 = arith.addf %42, %44 : vector<1x1024xf32>
    %46 = math.rsqrt %45 : vector<1x1024xf32>
    %47 = arith.mulf %43, %46 : vector<1x1024xf32>
    %48 = vector.broadcast %37 : vector<1x1024xf32> to vector<2x1024xf32>
    %49 = arith.subf %22, %48 : vector<2x1024xf32>
    %50 = vector.broadcast %47 : vector<1x1024xf32> to vector<2x1024xf32>
    %51 = arith.mulf %49, %50 : vector<2x1024xf32>
    %c0_23 = arith.constant 0 : index
    %c0_24 = arith.constant 0 : index
    %52 = vector.load %arg7[%c0_23, %c0_24] : memref<1x1024xf32, #tpu.memory_space<vmem>>, vector<1x1024xf32>
    %53 = vector.broadcast %52 : vector<1x1024xf32> to vector<2x1024xf32>
    %54 = arith.addf %51, %53 : vector<2x1024xf32>
    %55 = vector.extract_strided_slice %54 {offsets = [0, 0], sizes = [2, 512], strides = [1, 1]} : vector<2x1024xf32> to vector<2x512xf32>
    %56 = vector.extract_strided_slice %54 {offsets = [0, 512], sizes = [2, 512], strides = [1, 1]} : vector<2x1024xf32> to vector<2x512xf32>
    %57 = arith.negf %56 : vector<2x512xf32>
    %58 = math.exp %57 : vector<2x512xf32>
    %cst_25 = arith.constant 1.000000e+00 : f32
    %59 = vector.broadcast %cst_25 : f32 to vector<2x512xf32>
    %60 = arith.addf %59, %58 : vector<2x512xf32>
    %61 = arith.divf %59, %60 : vector<2x512xf32>
    %62 = arith.mulf %55, %61 : vector<2x512xf32>
    %c0_i32_26 = arith.constant 0 : i32
    %63 = tpu.memref_slice %arg37[%c0_i32_26] : memref<4x!tpu.dma_semaphore, #tpu.memory_space<semaphore_mem>> -> memref<1x!tpu.dma_semaphore, #tpu.memory_space<semaphore_mem>>
    %64 = tpu.memref_squeeze %63 : memref<1x!tpu.dma_semaphore, #tpu.memory_space<semaphore_mem>> -> memref<!tpu.dma_semaphore, #tpu.memory_space<semaphore_mem>>
    tpu.wait_dma2 semaphore(%64 : memref<!tpu.dma_semaphore, #tpu.memory_space<semaphore_mem>>) src(%arg8 : memref<512x512xbf16, #tpu.memory_space<any>>) dst(%arg33 : memref<512x512xbf16, #tpu.memory_space<vmem>>)
    %c0_27 = arith.constant 0 : index
    %c0_28 = arith.constant 0 : index
    %65 = vector.load %arg33[%c0_27, %c0_28] : memref<512x512xbf16, #tpu.memory_space<vmem>>, vector<512x512xbf16>
    %66 = arith.truncf %62 : vector<2x512xf32> to vector<2x512xbf16>
    %cst_29 = arith.constant dense<0.000000e+00> : vector<2x512xf32>
    %67 = tpu.matmul %66, %65, %cst_29 {dimension_numbers = #tpu.dot_dimension_numbers<[1], [0], [0], [1], [0, 0, 1, 1], [], []>} : vector<2x512xbf16>, vector<512x512xbf16>, vector<2x512xf32> -> vector<2x512xf32>
    %c0_30 = arith.constant 0 : index
    %c0_31 = arith.constant 0 : index
    %68 = vector.load %arg9[%c0_30, %c0_31] : memref<1x512xf32, #tpu.memory_space<vmem>>, vector<1x512xf32>
    %69 = vector.broadcast %68 : vector<1x512xf32> to vector<2x512xf32>
    %70 = arith.addf %67, %69 : vector<2x512xf32>
    %cst_32 = arith.constant dense<0.000000e+00> : vector<512xf32>
    %71 = vector.multi_reduction <add>, %70, %cst_32 [0] : vector<2x512xf32> to vector<512xf32>
    %72 = vector.shape_cast %71 : vector<512xf32> to vector<1x512xf32>
    %73 = arith.mulf %70, %70 : vector<2x512xf32>
    %cst_33 = arith.constant dense<0.000000e+00> : vector<512xf32>
    %74 = vector.multi_reduction <add>, %73, %cst_33 [0] : vector<2x512xf32> to vector<512xf32>
    %75 = vector.shape_cast %74 : vector<512xf32> to vector<1x512xf32>
    %76 = tpu.concatenate %72, %75 in 0 : vector<1x512xf32>, vector<1x512xf32> -> vector<2x512xf32>
    %77 = arith.truncf %76 : vector<2x512xf32> to vector<2x512xbf16>
    %c0_34 = arith.constant 0 : index
    %c0_35 = arith.constant 0 : index
    %78 = vector.load %arg28[%c0_34, %c0_35] : memref<512x32xbf16, #tpu.memory_space<vmem>>, vector<512x32xbf16>
    %cst_36 = arith.constant dense<0.000000e+00> : vector<2x32xf32>
    %79 = tpu.matmul %77, %78, %cst_36 {dimension_numbers = #tpu.dot_dimension_numbers<[1], [0], [0], [1], [0, 0, 1, 1], [], []>} : vector<2x512xbf16>, vector<512x32xbf16>, vector<2x32xf32> -> vector<2x32xf32>
    %cst_37 = arith.constant 3.125000e-02 : f32
    %80 = vector.broadcast %cst_37 : f32 to vector<2x32xf32>
    %81 = arith.mulf %79, %80 : vector<2x32xf32>
    %82 = arith.truncf %81 : vector<2x32xf32> to vector<2x32xbf16>
    %c0_38 = arith.constant 0 : index
    %c0_39 = arith.constant 0 : index
    %83 = vector.load %arg29[%c0_38, %c0_39] : memref<32x512xbf16, #tpu.memory_space<vmem>>, vector<32x512xbf16>
    %cst_40 = arith.constant dense<0.000000e+00> : vector<2x512xf32>
    %84 = tpu.matmul %82, %83, %cst_40 {dimension_numbers = #tpu.dot_dimension_numbers<[1], [0], [0], [1], [0, 0, 1, 1], [], []>} : vector<2x32xbf16>, vector<32x512xbf16>, vector<2x512xf32> -> vector<2x512xf32>
    %85 = vector.extract_strided_slice %84 {offsets = [0, 0], sizes = [1, 512], strides = [1, 1]} : vector<2x512xf32> to vector<1x512xf32>
    %86 = vector.extract_strided_slice %84 {offsets = [1, 0], sizes = [1, 512], strides = [1, 1]} : vector<2x512xf32> to vector<1x512xf32>
    %87 = arith.mulf %85, %85 : vector<1x512xf32>
    %88 = arith.subf %86, %87 : vector<1x512xf32>
    %cst_41 = arith.constant 0.000000e+00 : f32
    %89 = vector.broadcast %cst_41 : f32 to vector<1x512xf32>
    %90 = arith.maximumf %88, %89 : vector<1x512xf32>
    %c0_42 = arith.constant 0 : index
    %c0_43 = arith.constant 0 : index
    %91 = vector.load %arg10[%c0_42, %c0_43] : memref<1x512xf32, #tpu.memory_space<vmem>>, vector<1x512xf32>
    %cst_44 = arith.constant 9.99999974E-6 : f32
    %92 = vector.broadcast %cst_44 : f32 to vector<1x512xf32>
    %93 = arith.addf %90, %92 : vector<1x512xf32>
    %94 = math.rsqrt %93 : vector<1x512xf32>
    %95 = arith.mulf %91, %94 : vector<1x512xf32>
    %96 = vector.broadcast %85 : vector<1x512xf32> to vector<2x512xf32>
    %97 = arith.subf %70, %96 : vector<2x512xf32>
    %98 = vector.broadcast %95 : vector<1x512xf32> to vector<2x512xf32>
    %99 = arith.mulf %97, %98 : vector<2x512xf32>
    %c0_45 = arith.constant 0 : index
    %c0_46 = arith.constant 0 : index
    %100 = vector.load %arg11[%c0_45, %c0_46] : memref<1x512xf32, #tpu.memory_space<vmem>>, vector<1x512xf32>
    %101 = vector.broadcast %100 : vector<1x512xf32> to vector<2x512xf32>
    %102 = arith.addf %99, %101 : vector<2x512xf32>
    %103 = arith.negf %102 : vector<2x512xf32>
    %104 = math.exp %103 : vector<2x512xf32>
    %cst_47 = arith.constant 1.000000e+00 : f32
    %105 = vector.broadcast %cst_47 : f32 to vector<2x512xf32>
    %106 = arith.addf %105, %104 : vector<2x512xf32>
    %107 = arith.divf %105, %106 : vector<2x512xf32>
    %108 = arith.mulf %102, %107 : vector<2x512xf32>
    %c0_48 = arith.constant 0 : index
    %c0_49 = arith.constant 0 : index
    %109 = vector.load %arg12[%c0_48, %c0_49] : memref<32x128xbf16, #tpu.memory_space<vmem>>, vector<32x128xbf16>
    %110 = arith.truncf %16 : vector<2x32xf32> to vector<2x32xbf16>
    %cst_50 = arith.constant dense<0.000000e+00> : vector<2x128xf32>
    %111 = tpu.matmul %110, %109, %cst_50 {dimension_numbers = #tpu.dot_dimension_numbers<[1], [0], [0], [1], [0, 0, 1, 1], [], []>} : vector<2x32xbf16>, vector<32x128xbf16>, vector<2x128xf32> -> vector<2x128xf32>
    %c0_51 = arith.constant 0 : index
    %c0_52 = arith.constant 0 : index
    %112 = vector.load %arg13[%c0_51, %c0_52] : memref<1x128xf32, #tpu.memory_space<vmem>>, vector<1x128xf32>
    %113 = vector.broadcast %112 : vector<1x128xf32> to vector<2x128xf32>
    %114 = arith.addf %111, %113 : vector<2x128xf32>
    %cst_53 = arith.constant dense<0.000000e+00> : vector<128xf32>
    %115 = vector.multi_reduction <add>, %114, %cst_53 [0] : vector<2x128xf32> to vector<128xf32>
    %116 = vector.shape_cast %115 : vector<128xf32> to vector<1x128xf32>
    %117 = arith.mulf %114, %114 : vector<2x128xf32>
    %cst_54 = arith.constant dense<0.000000e+00> : vector<128xf32>
    %118 = vector.multi_reduction <add>, %117, %cst_54 [0] : vector<2x128xf32> to vector<128xf32>
    %119 = vector.shape_cast %118 : vector<128xf32> to vector<1x128xf32>
    %120 = tpu.concatenate %116, %119 in 0 : vector<1x128xf32>, vector<1x128xf32> -> vector<2x128xf32>
    %121 = arith.truncf %120 : vector<2x128xf32> to vector<2x128xbf16>
    %c0_55 = arith.constant 0 : index
    %c0_56 = arith.constant 0 : index
    %122 = vector.load %arg30[%c0_55, %c0_56] : memref<128x32xbf16, #tpu.memory_space<vmem>>, vector<128x32xbf16>
    %cst_57 = arith.constant dense<0.000000e+00> : vector<2x32xf32>
    %123 = tpu.matmul %121, %122, %cst_57 {dimension_numbers = #tpu.dot_dimension_numbers<[1], [0], [0], [1], [0, 0, 1, 1], [], []>} : vector<2x128xbf16>, vector<128x32xbf16>, vector<2x32xf32> -> vector<2x32xf32>
    %cst_58 = arith.constant 1.250000e-01 : f32
    %124 = vector.broadcast %cst_58 : f32 to vector<2x32xf32>
    %125 = arith.mulf %123, %124 : vector<2x32xf32>
    %126 = arith.truncf %125 : vector<2x32xf32> to vector<2x32xbf16>
    %c0_59 = arith.constant 0 : index
    %c0_60 = arith.constant 0 : index
    %127 = vector.load %arg31[%c0_59, %c0_60] : memref<32x128xbf16, #tpu.memory_space<vmem>>, vector<32x128xbf16>
    %cst_61 = arith.constant dense<0.000000e+00> : vector<2x128xf32>
    %128 = tpu.matmul %126, %127, %cst_61 {dimension_numbers = #tpu.dot_dimension_numbers<[1], [0], [0], [1], [0, 0, 1, 1], [], []>} : vector<2x32xbf16>, vector<32x128xbf16>, vector<2x128xf32> -> vector<2x128xf32>
    %129 = vector.extract_strided_slice %128 {offsets = [0, 0], sizes = [1, 128], strides = [1, 1]} : vector<2x128xf32> to vector<1x128xf32>
    %130 = vector.extract_strided_slice %128 {offsets = [1, 0], sizes = [1, 128], strides = [1, 1]} : vector<2x128xf32> to vector<1x128xf32>
    %131 = arith.mulf %129, %129 : vector<1x128xf32>
    %132 = arith.subf %130, %131 : vector<1x128xf32>
    %cst_62 = arith.constant 0.000000e+00 : f32
    %133 = vector.broadcast %cst_62 : f32 to vector<1x128xf32>
    %134 = arith.maximumf %132, %133 : vector<1x128xf32>
    %c0_63 = arith.constant 0 : index
    %c0_64 = arith.constant 0 : index
    %135 = vector.load %arg14[%c0_63, %c0_64] : memref<1x128xf32, #tpu.memory_space<vmem>>, vector<1x128xf32>
    %cst_65 = arith.constant 9.99999974E-6 : f32
    %136 = vector.broadcast %cst_65 : f32 to vector<1x128xf32>
    %137 = arith.addf %134, %136 : vector<1x128xf32>
    %138 = math.rsqrt %137 : vector<1x128xf32>
    %139 = arith.mulf %135, %138 : vector<1x128xf32>
    %140 = vector.broadcast %129 : vector<1x128xf32> to vector<2x128xf32>
    %141 = arith.subf %114, %140 : vector<2x128xf32>
    %142 = vector.broadcast %139 : vector<1x128xf32> to vector<2x128xf32>
    %143 = arith.mulf %141, %142 : vector<2x128xf32>
    %c0_66 = arith.constant 0 : index
    %c0_67 = arith.constant 0 : index
    %144 = vector.load %arg15[%c0_66, %c0_67] : memref<1x128xf32, #tpu.memory_space<vmem>>, vector<1x128xf32>
    %145 = vector.broadcast %144 : vector<1x128xf32> to vector<2x128xf32>
    %146 = arith.addf %143, %145 : vector<2x128xf32>
    %cst_68 = arith.constant 0.000000e+00 : f32
    %147 = vector.broadcast %cst_68 : f32 to vector<2x128xf32>
    %148 = arith.maximumf %146, %147 : vector<2x128xf32>
    %c1_i32_69 = arith.constant 1 : i32
    %149 = tpu.memref_slice %arg37[%c1_i32_69] : memref<4x!tpu.dma_semaphore, #tpu.memory_space<semaphore_mem>> -> memref<1x!tpu.dma_semaphore, #tpu.memory_space<semaphore_mem>>
    %150 = tpu.memref_squeeze %149 : memref<1x!tpu.dma_semaphore, #tpu.memory_space<semaphore_mem>> -> memref<!tpu.dma_semaphore, #tpu.memory_space<semaphore_mem>>
    tpu.wait_dma2 semaphore(%150 : memref<!tpu.dma_semaphore, #tpu.memory_space<semaphore_mem>>) src(%arg16 : memref<128x512xbf16, #tpu.memory_space<any>>) dst(%arg34 : memref<128x512xbf16, #tpu.memory_space<vmem>>)
    %c0_70 = arith.constant 0 : index
    %c0_71 = arith.constant 0 : index
    %151 = vector.load %arg34[%c0_70, %c0_71] : memref<128x512xbf16, #tpu.memory_space<vmem>>, vector<128x512xbf16>
    %152 = arith.truncf %148 : vector<2x128xf32> to vector<2x128xbf16>
    %cst_72 = arith.constant dense<0.000000e+00> : vector<2x512xf32>
    %153 = tpu.matmul %152, %151, %cst_72 {dimension_numbers = #tpu.dot_dimension_numbers<[1], [0], [0], [1], [0, 0, 1, 1], [], []>} : vector<2x128xbf16>, vector<128x512xbf16>, vector<2x512xf32> -> vector<2x512xf32>
    %c0_73 = arith.constant 0 : index
    %c0_74 = arith.constant 0 : index
    %154 = vector.load %arg17[%c0_73, %c0_74] : memref<1x512xf32, #tpu.memory_space<vmem>>, vector<1x512xf32>
    %155 = vector.broadcast %154 : vector<1x512xf32> to vector<2x512xf32>
    %156 = arith.addf %153, %155 : vector<2x512xf32>
    %cst_75 = arith.constant dense<0.000000e+00> : vector<512xf32>
    %157 = vector.multi_reduction <add>, %156, %cst_75 [0] : vector<2x512xf32> to vector<512xf32>
    %158 = vector.shape_cast %157 : vector<512xf32> to vector<1x512xf32>
    %159 = arith.mulf %156, %156 : vector<2x512xf32>
    %cst_76 = arith.constant dense<0.000000e+00> : vector<512xf32>
    %160 = vector.multi_reduction <add>, %159, %cst_76 [0] : vector<2x512xf32> to vector<512xf32>
    %161 = vector.shape_cast %160 : vector<512xf32> to vector<1x512xf32>
    %162 = tpu.concatenate %158, %161 in 0 : vector<1x512xf32>, vector<1x512xf32> -> vector<2x512xf32>
    %163 = arith.truncf %162 : vector<2x512xf32> to vector<2x512xbf16>
    %c0_77 = arith.constant 0 : index
    %c0_78 = arith.constant 0 : index
    %164 = vector.load %arg28[%c0_77, %c0_78] : memref<512x32xbf16, #tpu.memory_space<vmem>>, vector<512x32xbf16>
    %cst_79 = arith.constant dense<0.000000e+00> : vector<2x32xf32>
    %165 = tpu.matmul %163, %164, %cst_79 {dimension_numbers = #tpu.dot_dimension_numbers<[1], [0], [0], [1], [0, 0, 1, 1], [], []>} : vector<2x512xbf16>, vector<512x32xbf16>, vector<2x32xf32> -> vector<2x32xf32>
    %cst_80 = arith.constant 3.125000e-02 : f32
    %166 = vector.broadcast %cst_80 : f32 to vector<2x32xf32>
    %167 = arith.mulf %165, %166 : vector<2x32xf32>
    %168 = arith.truncf %167 : vector<2x32xf32> to vector<2x32xbf16>
    %c0_81 = arith.constant 0 : index
    %c0_82 = arith.constant 0 : index
    %169 = vector.load %arg29[%c0_81, %c0_82] : memref<32x512xbf16, #tpu.memory_space<vmem>>, vector<32x512xbf16>
    %cst_83 = arith.constant dense<0.000000e+00> : vector<2x512xf32>
    %170 = tpu.matmul %168, %169, %cst_83 {dimension_numbers = #tpu.dot_dimension_numbers<[1], [0], [0], [1], [0, 0, 1, 1], [], []>} : vector<2x32xbf16>, vector<32x512xbf16>, vector<2x512xf32> -> vector<2x512xf32>
    %171 = vector.extract_strided_slice %170 {offsets = [0, 0], sizes = [1, 512], strides = [1, 1]} : vector<2x512xf32> to vector<1x512xf32>
    %172 = vector.extract_strided_slice %170 {offsets = [1, 0], sizes = [1, 512], strides = [1, 1]} : vector<2x512xf32> to vector<1x512xf32>
    %173 = arith.mulf %171, %171 : vector<1x512xf32>
    %174 = arith.subf %172, %173 : vector<1x512xf32>
    %cst_84 = arith.constant 0.000000e+00 : f32
    %175 = vector.broadcast %cst_84 : f32 to vector<1x512xf32>
    %176 = arith.maximumf %174, %175 : vector<1x512xf32>
    %c0_85 = arith.constant 0 : index
    %c0_86 = arith.constant 0 : index
    %177 = vector.load %arg18[%c0_85, %c0_86] : memref<1x512xf32, #tpu.memory_space<vmem>>, vector<1x512xf32>
    %cst_87 = arith.constant 9.99999974E-6 : f32
    %178 = vector.broadcast %cst_87 : f32 to vector<1x512xf32>
    %179 = arith.addf %176, %178 : vector<1x512xf32>
    %180 = math.rsqrt %179 : vector<1x512xf32>
    %181 = arith.mulf %177, %180 : vector<1x512xf32>
    %182 = vector.broadcast %171 : vector<1x512xf32> to vector<2x512xf32>
    %183 = arith.subf %156, %182 : vector<2x512xf32>
    %184 = vector.broadcast %181 : vector<1x512xf32> to vector<2x512xf32>
    %185 = arith.mulf %183, %184 : vector<2x512xf32>
    %c0_88 = arith.constant 0 : index
    %c0_89 = arith.constant 0 : index
    %186 = vector.load %arg19[%c0_88, %c0_89] : memref<1x512xf32, #tpu.memory_space<vmem>>, vector<1x512xf32>
    %187 = vector.broadcast %186 : vector<1x512xf32> to vector<2x512xf32>
    %188 = arith.addf %185, %187 : vector<2x512xf32>
    %cst_90 = arith.constant 0.000000e+00 : f32
    %189 = vector.broadcast %cst_90 : f32 to vector<2x512xf32>
    %190 = arith.maximumf %188, %189 : vector<2x512xf32>
    %c2_i32_91 = arith.constant 2 : i32
    %191 = tpu.memref_slice %arg37[%c2_i32_91] : memref<4x!tpu.dma_semaphore, #tpu.memory_space<semaphore_mem>> -> memref<1x!tpu.dma_semaphore, #tpu.memory_space<semaphore_mem>>
    %192 = tpu.memref_squeeze %191 : memref<1x!tpu.dma_semaphore, #tpu.memory_space<semaphore_mem>> -> memref<!tpu.dma_semaphore, #tpu.memory_space<semaphore_mem>>
    tpu.wait_dma2 semaphore(%192 : memref<!tpu.dma_semaphore, #tpu.memory_space<semaphore_mem>>) src(%arg20 : memref<512x512xbf16, #tpu.memory_space<any>>) dst(%arg35 : memref<512x512xbf16, #tpu.memory_space<vmem>>)
    %c0_92 = arith.constant 0 : index
    %c0_93 = arith.constant 0 : index
    %193 = vector.load %arg35[%c0_92, %c0_93] : memref<512x512xbf16, #tpu.memory_space<vmem>>, vector<512x512xbf16>
    %194 = arith.truncf %190 : vector<2x512xf32> to vector<2x512xbf16>
    %cst_94 = arith.constant dense<0.000000e+00> : vector<2x512xf32>
    %195 = tpu.matmul %194, %193, %cst_94 {dimension_numbers = #tpu.dot_dimension_numbers<[1], [0], [0], [1], [0, 0, 1, 1], [], []>} : vector<2x512xbf16>, vector<512x512xbf16>, vector<2x512xf32> -> vector<2x512xf32>
    %c0_95 = arith.constant 0 : index
    %c0_96 = arith.constant 0 : index
    %196 = vector.load %arg21[%c0_95, %c0_96] : memref<1x512xf32, #tpu.memory_space<vmem>>, vector<1x512xf32>
    %197 = vector.broadcast %196 : vector<1x512xf32> to vector<2x512xf32>
    %198 = arith.addf %195, %197 : vector<2x512xf32>
    %cst_97 = arith.constant dense<0.000000e+00> : vector<512xf32>
    %199 = vector.multi_reduction <add>, %198, %cst_97 [0] : vector<2x512xf32> to vector<512xf32>
    %200 = vector.shape_cast %199 : vector<512xf32> to vector<1x512xf32>
    %201 = arith.mulf %198, %198 : vector<2x512xf32>
    %cst_98 = arith.constant dense<0.000000e+00> : vector<512xf32>
    %202 = vector.multi_reduction <add>, %201, %cst_98 [0] : vector<2x512xf32> to vector<512xf32>
    %203 = vector.shape_cast %202 : vector<512xf32> to vector<1x512xf32>
    %204 = tpu.concatenate %200, %203 in 0 : vector<1x512xf32>, vector<1x512xf32> -> vector<2x512xf32>
    %205 = arith.truncf %204 : vector<2x512xf32> to vector<2x512xbf16>
    %c0_99 = arith.constant 0 : index
    %c0_100 = arith.constant 0 : index
    %206 = vector.load %arg28[%c0_99, %c0_100] : memref<512x32xbf16, #tpu.memory_space<vmem>>, vector<512x32xbf16>
    %cst_101 = arith.constant dense<0.000000e+00> : vector<2x32xf32>
    %207 = tpu.matmul %205, %206, %cst_101 {dimension_numbers = #tpu.dot_dimension_numbers<[1], [0], [0], [1], [0, 0, 1, 1], [], []>} : vector<2x512xbf16>, vector<512x32xbf16>, vector<2x32xf32> -> vector<2x32xf32>
    %cst_102 = arith.constant 3.125000e-02 : f32
    %208 = vector.broadcast %cst_102 : f32 to vector<2x32xf32>
    %209 = arith.mulf %207, %208 : vector<2x32xf32>
    %210 = arith.truncf %209 : vector<2x32xf32> to vector<2x32xbf16>
    %c0_103 = arith.constant 0 : index
    %c0_104 = arith.constant 0 : index
    %211 = vector.load %arg29[%c0_103, %c0_104] : memref<32x512xbf16, #tpu.memory_space<vmem>>, vector<32x512xbf16>
    %cst_105 = arith.constant dense<0.000000e+00> : vector<2x512xf32>
    %212 = tpu.matmul %210, %211, %cst_105 {dimension_numbers = #tpu.dot_dimension_numbers<[1], [0], [0], [1], [0, 0, 1, 1], [], []>} : vector<2x32xbf16>, vector<32x512xbf16>, vector<2x512xf32> -> vector<2x512xf32>
    %213 = vector.extract_strided_slice %212 {offsets = [0, 0], sizes = [1, 512], strides = [1, 1]} : vector<2x512xf32> to vector<1x512xf32>
    %214 = vector.extract_strided_slice %212 {offsets = [1, 0], sizes = [1, 512], strides = [1, 1]} : vector<2x512xf32> to vector<1x512xf32>
    %215 = arith.mulf %213, %213 : vector<1x512xf32>
    %216 = arith.subf %214, %215 : vector<1x512xf32>
    %cst_106 = arith.constant 0.000000e+00 : f32
    %217 = vector.broadcast %cst_106 : f32 to vector<1x512xf32>
    %218 = arith.maximumf %216, %217 : vector<1x512xf32>
    %c0_107 = arith.constant 0 : index
    %c0_108 = arith.constant 0 : index
    %219 = vector.load %arg22[%c0_107, %c0_108] : memref<1x512xf32, #tpu.memory_space<vmem>>, vector<1x512xf32>
    %cst_109 = arith.constant 9.99999974E-6 : f32
    %220 = vector.broadcast %cst_109 : f32 to vector<1x512xf32>
    %221 = arith.addf %218, %220 : vector<1x512xf32>
    %222 = math.rsqrt %221 : vector<1x512xf32>
    %223 = arith.mulf %219, %222 : vector<1x512xf32>
    %224 = vector.broadcast %213 : vector<1x512xf32> to vector<2x512xf32>
    %225 = arith.subf %198, %224 : vector<2x512xf32>
    %226 = vector.broadcast %223 : vector<1x512xf32> to vector<2x512xf32>
    %227 = arith.mulf %225, %226 : vector<2x512xf32>
    %c0_110 = arith.constant 0 : index
    %c0_111 = arith.constant 0 : index
    %228 = vector.load %arg23[%c0_110, %c0_111] : memref<1x512xf32, #tpu.memory_space<vmem>>, vector<1x512xf32>
    %229 = vector.broadcast %228 : vector<1x512xf32> to vector<2x512xf32>
    %230 = arith.addf %227, %229 : vector<2x512xf32>
    %231 = arith.negf %230 : vector<2x512xf32>
    %232 = math.exp %231 : vector<2x512xf32>
    %cst_112 = arith.constant 1.000000e+00 : f32
    %233 = vector.broadcast %cst_112 : f32 to vector<2x512xf32>
    %234 = arith.addf %233, %232 : vector<2x512xf32>
    %235 = arith.divf %233, %234 : vector<2x512xf32>
    %236 = arith.mulf %230, %235 : vector<2x512xf32>
    %c0_113 = arith.constant 0 : index
    %237 = memref.load %arg0[%c0_113] : memref<2xf32, #tpu.memory_space<smem>>
    %238 = vector.broadcast %237 : f32 to vector<2x512xf32>
    %239 = arith.mulf %108, %238 : vector<2x512xf32>
    %c1 = arith.constant 1 : index
    %240 = memref.load %arg0[%c1] : memref<2xf32, #tpu.memory_space<smem>>
    %241 = vector.broadcast %240 : f32 to vector<2x512xf32>
    %242 = arith.mulf %236, %241 : vector<2x512xf32>
    %243 = arith.addf %239, %242 : vector<2x512xf32>
    %c3_i32_114 = arith.constant 3 : i32
    %244 = tpu.memref_slice %arg37[%c3_i32_114] : memref<4x!tpu.dma_semaphore, #tpu.memory_space<semaphore_mem>> -> memref<1x!tpu.dma_semaphore, #tpu.memory_space<semaphore_mem>>
    %245 = tpu.memref_squeeze %244 : memref<1x!tpu.dma_semaphore, #tpu.memory_space<semaphore_mem>> -> memref<!tpu.dma_semaphore, #tpu.memory_space<semaphore_mem>>
    tpu.wait_dma2 semaphore(%245 : memref<!tpu.dma_semaphore, #tpu.memory_space<semaphore_mem>>) src(%arg24 : memref<512x512xbf16, #tpu.memory_space<any>>) dst(%arg36 : memref<512x512xbf16, #tpu.memory_space<vmem>>)
    %c0_115 = arith.constant 0 : index
    %c0_116 = arith.constant 0 : index
    %246 = vector.load %arg36[%c0_115, %c0_116] : memref<512x512xbf16, #tpu.memory_space<vmem>>, vector<512x512xbf16>
    %247 = arith.truncf %243 : vector<2x512xf32> to vector<2x512xbf16>
    %cst_117 = arith.constant dense<0.000000e+00> : vector<2x512xf32>
    %248 = tpu.matmul %247, %246, %cst_117 {dimension_numbers = #tpu.dot_dimension_numbers<[1], [0], [0], [1], [0, 0, 1, 1], [], []>} : vector<2x512xbf16>, vector<512x512xbf16>, vector<2x512xf32> -> vector<2x512xf32>
    %c0_118 = arith.constant 0 : index
    %c0_119 = arith.constant 0 : index
    %249 = vector.load %arg25[%c0_118, %c0_119] : memref<1x512xf32, #tpu.memory_space<vmem>>, vector<1x512xf32>
    %250 = vector.broadcast %249 : vector<1x512xf32> to vector<2x512xf32>
    %251 = arith.addf %248, %250 : vector<2x512xf32>
    %c0_120 = arith.constant 0 : index
    %c0_121 = arith.constant 0 : index
    %252 = vector.load %arg32[%c0_120, %c0_121] : memref<2x512xf32, #tpu.memory_space<vmem>>, vector<2x512xf32>
    tpu.vector_store %arg32[%c0_120, %c0_121], %251 {strides = array<i32>} : memref<2x512xf32, #tpu.memory_space<vmem>>, vector<2x512xf32>,
    return
  }
}

</mosaic_0001>

<bundles_post_ra>
// kernel: learned_hybrid_forward.1
= control target key start
LH: loop header
LB: loop body
LE: loop exit
PB: predicated region body
PF: predicated region fallthrough
CT: control target
= control target key end

     0   :  { %s11846_s6 = smov 1   ;;  %s11847_s10 = smov 2   ;;  %s13168_s0 = inlined_call_operand.smem [shape: u32[33], index: -1, kind: input, shape index: {}] }
   0x1   :  { %s11914_s5 = sld [smem:[%s13168_s0]]   ;;  %s11848_s14 = smov 3  }
   0x2   :  { %s11919_s9 = sld [smem:[%s13168_s0 + %s11846_s6]]   ;;  %s11849_s18 = smov 4  }
   0x3   :  { %s11924_s13 = sld [smem:[%s13168_s0 + %s11847_s10]]   ;;  %s11850_s22 = smov 5  }
   0x4   :  { %s11929_s17 = sld [smem:[%s13168_s0 + %s11848_s14]]   ;;  %s11851_s26 = smov 6  }
   0x5   :  { %s11934_s21 = sld [smem:[%s13168_s0 + %s11849_s18]]   ;;  %s11852_s30 = smov 7  }
   0x6   :  { %s11939_s25 = sld [smem:[%s13168_s0 + %s11850_s22]]   ;;  %s11853_s4 = smov 8  }
   0x7   :  { %s11944_s29 = sld [smem:[%s13168_s0 + %s11851_s26]]   ;;  %s11854_s10 = smov 9  }
   0x8   :  { %s11949_s3 = sld [smem:[%s13168_s0 + %s11852_s30]]   ;;  %s11855_s15 = smov 10  }
   0x9   :  { %13180 = sst [smem:[#allocation58_spill]] %s11924_s13  ;;  %s11856_s20 = smov 11  }
   0xa   :  { %s11954_s8 = sld [smem:[%s13168_s0 + %s11853_s4]]   ;;  %s11857_s26 = smov 12  }
   0xb   :  { %13181 = sst [smem:[#allocation59_spill]] %s11934_s21  ;;  %s11858_s1 = smov 13  }
   0xc   :  { %13182 = sst [smem:[#allocation60_spill]] %s11939_s25  ;;  %s11859_s7 = smov 14  }
   0xd   :  { %s11959_s14 = sld [smem:[%s13168_s0 + %s11854_s10]]   ;;  %s11861_s22 = smov 16  }
   0xe   :  { %s11964_s19 = sld [smem:[%s13168_s0 + %s11855_s15]]   ;;  %s11860_s15 = smov 15  }
   0xf   :  { %s11969_s24 = sld [smem:[%s13168_s0 + %s11856_s20]]   ;;  %s11862_s28 = smov 17  }
  0x10   :  { %13183 = sst [smem:[#allocation61_spill]] %s11954_s8 }
  0x11   :  { %s11974_s30 = sld [smem:[%s13168_s0 + %s11857_s26]]  }
  0x12   :  { %s11979_s6 = sld [smem:[%s13168_s0 + %s11858_s1]]  }
  0x13   :  { %s11984_s12 = sld [smem:[%s13168_s0 + %s11859_s7]]   ;;  %s11863_s7 = smov 18  }
  0x14   :  { %s11989_s20 = sld [smem:[%s13168_s0 + %s11860_s15]]   ;;  %s11864_s15 = smov 19  }
  0x15   :  { %s11994_s27 = sld [smem:[%s13168_s0 + %s11861_s22]]   ;;  %s11865_s22 = smov 20  }
  0x16   :  { %s11999_s4 = sld [smem:[%s13168_s0 + %s11862_s28]]   ;;  %s11866_s28 = smov 21  }
  0x17   :  { %s12004_s25 = sld [smem:[%s13168_s0 + %s11863_s7]]   ;;  %s11867_s7 = smov 22  }
  0x18   :  { %s12009_s21 = sld [smem:[%s13168_s0 + %s11864_s15]]   ;;  %s11868_s15 = smov 23  }
  0x19   :  { %s12029_s13 = sld [smem:[%s13168_s0 + %s11868_s15]]   ;;  %s11872_s15 = smov 27  }
  0x1a   :  { %s12049_s8 = sld [smem:[%s13168_s0 + %s11872_s15]]   ;;  %s11876_s15 = smov 31  }
  0x1b   :  { %13184 = sst [smem:[#allocation62_spill]] %s11994_s27 }
  0x1c   :  { %13185 = sst [smem:[#allocation63_spill]] %s11999_s4 }
  0x1d   :  { %13186 = sst [smem:[#allocation64_spill]] %s12004_s25 }
  0x1e   :  { %s12014_s27 = sld [smem:[%s13168_s0 + %s11865_s22]]   ;;  %s11869_s22 = smov 24  }
  0x1f   :  { %s12019_s4 = sld [smem:[%s13168_s0 + %s11866_s28]]   ;;  %s11870_s28 = smov 25  }
  0x20   :  { %s12024_s25 = sld [smem:[%s13168_s0 + %s11867_s7]]   ;;  %s11871_s7 = smov 26  }
  0x21   :  { %13190 = sst [smem:[#allocation68_spill]] %s12029_s13 }
  0x22   :  { %13193 = sst [smem:[#allocation71_spill]] %s12049_s8 }
  0x23   :  { %s12069_s8 = sld [smem:[%s13168_s0 + %s11876_s15]]  }
  0x24   :  { %13187 = sst [smem:[#allocation65_spill]] %s12014_s27 }
  0x25   :  { %13188 = sst [smem:[#allocation66_spill]] %s12019_s4 }
  0x26   :  { %13189 = sst [smem:[#allocation67_spill]] %s12024_s25 }
  0x27   :  { %s12034_s27 = sld [smem:[%s13168_s0 + %s11869_s22]]   ;;  %s11873_s22 = smov 28  }
  0x28   :  { %s12039_s4 = sld [smem:[%s13168_s0 + %s11870_s28]]   ;;  %s11874_s28 = smov 29  }
  0x29   :  { %s12044_s25 = sld [smem:[%s13168_s0 + %s11871_s7]]   ;;  %s11875_s7 = smov 30  }
  0x2a   :  { %s12059_s13 = sld [smem:[%s13168_s0 + %s11874_s28]]  }
  0x2d   :  { %13191 = sst [smem:[#allocation69_spill]] %s12034_s27 }
  0x2e   :  { %s12054_s27 = sld [smem:[%s13168_s0 + %s11873_s22]]   ;;  %s11877_s22 = smov 32  }
  0x2f   :  { %13192 = sst [smem:[#allocation70_spill]] %s12044_s25 }
  0x30   :  { %s12064_s25 = sld [smem:[%s13168_s0 + %s11875_s7]]  }
  0x34   :  { %13194 = sst [smem:[#allocation72_spill]] %s12054_s27 }
  0x35   :  { %s12074_s27 = sld [smem:[%s13168_s0 + %s11877_s22]]  }
  0x36   :  { %70 = vsyncpa [#allocation9], 0 }
  0x37   :  { %71 = vsyncpa [#allocation8], 0 }
  0x38   :  { %72 = vsyncpa [#allocation12], 0 }
  0x39   :  { %73 = vsyncpa [#allocation15], 0 }
  0x3a   :  { %74 = vsyncpa [#allocation18], 0 }
  0x3b   :  { %75 = vsyncpa [#allocation21], 0 }
  0x3c   :  { %76 = vsyncpa [#allocation24], 0 }
  0x3d   :  { %77 = vsyncpa [#allocation27], 0 }
  0x3e   :  { %78 = vsyncpa [#allocation30], 0  ;;  %s107_s28 = sshll.u32 %s11929_s17, 4  ;;  %s108_s28 = int_to_ptr.hbm [resolvable:$true] %s107_s28 }
  0x3f   :  { %79 = vsyncpa [#allocation33], 0  ;;  %s11878_s1 = smov [#allocation11]   ;;  %s133_s0 = sshll.u32 %s11949_s3, 4  ;;  %s134_s0 = int_to_ptr.hbm [resolvable:$true] %s133_s0 }
  0x40   :  { %s109_s2 = sshll.u32 %s11878_s1, 4  ;;  %s11326_s7 = sshra.s32 %s108_s28, 4  ;;  %s110_s2 = int_to_ptr.vmem [resolvable:$true] %s109_s2  ;;  %s11327_s7 = int_to_ptr.hbm [resolvable:$true] %s11326_s7 }
  0x41   :  { %s11328_s10 = scalar_lea.hbm %s11327_s7, 1  ;;  %s11330_s11 = scalar_lea.hbm %s11929_s17, 1 }
  0x42   :  { %p11329_p0 = scmp.ne.s32.totalorder %s11327_s7, %s11328_s10  ;;  %p11331_p1 = scmp.lt.s32.totalorder %s11327_s7, %s11929_s17 }
  0x43   :  { %p11332_p2 = scmp.lt.s32.totalorder %s11330_s11, %s11328_s10 }
  0x45   :  { %p11333_p3 = por %p11332_p2, %p11331_p1 }
  0x47   :  { %p11334_p4 = pnand %p11333_p3, %p11329_p0 }
  0x49   :  { %11337 = shalt.err (!%p11334_p4)
}
  0x4a   :  { %112 = dma.hbm_to_vmem [thread:$0]  %s108_s28, 16, %s110_s2, [#allocation12]  }
  0x4b   :  { %s11879_s15 = smov [#allocation14]   ;;  %s155_s18 = sshll.u32 %s11964_s19, 4  ;;  %s156_s18 = int_to_ptr.hbm [resolvable:$true] %s155_s18 }
  0x4c   :  { %s135_s16 = sshll.u32 %s11879_s15, 4  ;;  %s11350_s22 = sshra.s32 %s134_s0, 4  ;;  %s136_s16 = int_to_ptr.vmem [resolvable:$true] %s135_s16  ;;  %s11351_s22 = int_to_ptr.hbm [resolvable:$true] %s11350_s22 }
  0x4d   :  { %s11352_s23 = scalar_lea.hbm %s11351_s22, 8  ;;  %s11354_s26 = scalar_lea.hbm %s11949_s3, 8 }
  0x4e   :  { %p11353_p5 = scmp.ne.s32.totalorder %s11351_s22, %s11352_s23  ;;  %p11355_p6 = scmp.lt.s32.totalorder %s11351_s22, %s11949_s3 }
  0x4f   :  { %p11356_p7 = scmp.lt.s32.totalorder %s11354_s26, %s11352_s23 }
  0x51   :  { %p11357_p8 = por %p11356_p7, %p11355_p6 }
  0x53   :  { %p11358_p9 = pnand %p11357_p8, %p11353_p5 }
  0x55   :  { %11361 = shalt.err (!%p11358_p9)
}
  0x56   :  { %138 = dma.hbm_to_vmem [thread:$0]  %s134_s0, 128, %s136_s16, [#allocation15]  }
  0x57   :  { %s176_s17 = sshll.u32 %s11974_s30, 4  ;;  %s11880_s28 = smov [#allocation17]   ;;  %s12084_s17 = int_to_ptr.hbm [resolvable:$true] %s176_s17 }
  0x58   :  { %s157_s1 = sshll.u32 %s11880_s28, 4  ;;  %s11374_s2 = sshra.s32 %s156_s18, 4  ;;  %s158_s1 = int_to_ptr.vmem [resolvable:$true] %s157_s1  ;;  %s11375_s2 = int_to_ptr.hbm [resolvable:$true] %s11374_s2 }
  0x59   :  { %s11376_s7 = scalar_lea.hbm %s11375_s2, 4  ;;  %s11378_s10 = scalar_lea.hbm %s11964_s19, 4 }
  0x5a   :  { %p11377_p10 = scmp.ne.s32.totalorder %s11375_s2, %s11376_s7  ;;  %p11379_p11 = scmp.lt.s32.totalorder %s11375_s2, %s11964_s19 }
  0x5b   :  { %p11380_p12 = scmp.lt.s32.totalorder %s11378_s10, %s11376_s7 }
  0x5d   :  { %p11381_p13 = por %p11380_p12, %p11379_p11 }
  0x5f   :  { %p11382_p0 = pnand %p11381_p13, %p11377_p10 }
  0x61   :  { %11385 = shalt.err (!%p11382_p0)
}
  0x62   :  { %160 = dma.hbm_to_vmem [thread:$0]  %s156_s18, 64, %s158_s1, [#allocation18]  }
  0x63   :  { %s11881_s3 = smov [#allocation20]   ;;  %s11398_s11 = sshra.s32 %s12084_s17, 4  ;;  %s11399_s11 = int_to_ptr.hbm [resolvable:$true] %s11398_s11 }
  0x64   :  { %s178_s0 = sshll.u32 %s11881_s3, 4  ;;  %s11400_s15 = scalar_lea.hbm %s11399_s11, 16  ;;  %s179_s0 = int_to_ptr.vmem [resolvable:$true] %s178_s0 }
  0x65   :  { %p11401_p1 = scmp.ne.s32.totalorder %s11399_s11, %s11400_s15  ;;  %s11402_s16 = scalar_lea.hbm %s11974_s30, 16 }
  0x66   :  { %p11403_p2 = scmp.lt.s32.totalorder %s11399_s11, %s11974_s30  ;;  %p11404_p3 = scmp.lt.s32.totalorder %s11402_s16, %s11400_s15 }
  0x68   :  { %p11405_p4 = por %p11404_p3, %p11403_p2 }
  0x6a   :  { %p11406_p5 = pnand %p11405_p4, %p11401_p1 }
  0x6c   :  { %11409 = shalt.err (!%p11406_p5)
}
  0x6d   :  { %s11882_s19 = smov 64   ;;  %s11883_s18 = smov 4  }
  0x6e   :  { %184 = dma.hbm_to_vmem [thread:$0]  %s12084_s17, 256, %s179_s0, [#allocation21], %s11882_s19, %s11882_s19, %s11883_s18  }
  0x6f   :  { %s201_s22 = sshll.u32 %s11984_s12, 4  ;;  %s11884_s23 = smov [#allocation23]   ;;  %s202_s22 = int_to_ptr.hbm [resolvable:$true] %s201_s22 }
  0x70   :  { %s203_s26 = sshll.u32 %s11884_s23, 4  ;;  %s227_s30 = sshll.u32 %s12009_s21, 4  ;;  %s204_s26 = int_to_ptr.vmem [resolvable:$true] %s203_s26  ;;  %s228_s30 = int_to_ptr.hbm [resolvable:$true] %s227_s30 }
  0x71   :  { %s11422_s28 = sshra.s32 %s202_s22, 4  ;;  %s11426_s2 = scalar_lea.hbm %s11984_s12, 1  ;;  %s11423_s28 = int_to_ptr.hbm [resolvable:$true] %s11422_s28 }
  0x72   :  { %s11424_s1 = scalar_lea.hbm %s11423_s28, 1  ;;  %p11427_p7 = scmp.lt.s32.totalorder %s11423_s28, %s11984_s12 }
  0x73   :  { %p11425_p6 = scmp.ne.s32.totalorder %s11423_s28, %s11424_s1  ;;  %p11428_p8 = scmp.lt.s32.totalorder %s11426_s2, %s11424_s1 }
  0x75   :  { %p11429_p9 = por %p11428_p8, %p11427_p7 }
  0x77   :  { %p11430_p10 = pnand %p11429_p9, %p11425_p6 }
  0x79   :  { %11433 = shalt.err (!%p11430_p10)
}
  0x7a   :  { %206 = dma.hbm_to_vmem [thread:$0]  %s202_s22, 16, %s204_s26, [#allocation24]  }
  0x7b   :  { %s11885_s17 = smov [#allocation26]   ;;  %s253_s10 = sshll.u32 %s12039_s4, 4  ;;  %s254_s10 = int_to_ptr.hbm [resolvable:$true] %s253_s10 }
  0x7c   :  { %s229_s7 = sshll.u32 %s11885_s17, 4  ;;  %s11446_s3 = sshra.s32 %s228_s30, 4  ;;  %s230_s7 = int_to_ptr.vmem [resolvable:$true] %s229_s7  ;;  %s11447_s3 = int_to_ptr.hbm [resolvable:$true] %s11446_s3 }
  0x7d   :  { %s11448_s0 = scalar_lea.hbm %s11447_s3, 4  ;;  %s11450_s11 = scalar_lea.hbm %s12009_s21, 4 }
  0x7e   :  { %p11449_p11 = scmp.ne.s32.totalorder %s11447_s3, %s11448_s0  ;;  %p11451_p12 = scmp.lt.s32.totalorder %s11447_s3, %s12009_s21 }
  0x7f   :  { %p11452_p13 = scmp.lt.s32.totalorder %s11450_s11, %s11448_s0 }
  0x81   :  { %p11453_p0 = por %p11452_p13, %p11451_p12 }
  0x83   :  { %p11454_p1 = pnand %p11453_p0, %p11449_p11 }
  0x85   :  { %11457 = shalt.err (!%p11454_p1)
}
  0x86   :  { %232 = dma.hbm_to_vmem [thread:$0]  %s228_s30, 64, %s230_s7, [#allocation27]  }
  0x87   :  { %s280_s12 = sshll.u32 %s12059_s13, 4  ;;  %s11886_s15 = smov [#allocation29]   ;;  %s12103_s12 = int_to_ptr.hbm [resolvable:$true] %s280_s12 }
  0x88   :  { %s255_s16 = sshll.u32 %s11886_s15, 4  ;;  %s11470_s22 = sshra.s32 %s254_s10, 4  ;;  %s256_s16 = int_to_ptr.vmem [resolvable:$true] %s255_s16  ;;  %s11471_s22 = int_to_ptr.hbm [resolvable:$true] %s11470_s22 }
  0x89   :  { %s11472_s23 = scalar_lea.hbm %s11471_s22, 4  ;;  %s11474_s26 = scalar_lea.hbm %s12039_s4, 4 }
  0x8a   :  { %p11473_p2 = scmp.ne.s32.totalorder %s11471_s22, %s11472_s23  ;;  %p11475_p3 = scmp.lt.s32.totalorder %s11471_s22, %s12039_s4 }
  0x8b   :  { %p11476_p4 = scmp.lt.s32.totalorder %s11474_s26, %s11472_s23 }
  0x8d   :  { %p11477_p5 = por %p11476_p4, %p11475_p3 }
  0x8f   :  { %p11478_p6 = pnand %p11477_p5, %p11473_p2 }
  0x91   :  { %11481 = shalt.err (!%p11478_p6)
}
  0x92   :  { %258 = dma.hbm_to_vmem [thread:$0]  %s254_s10, 64, %s256_s16, [#allocation30]  }
  0x93   :  { %s11887_s21 = smov [#allocation32]   ;;  %s11494_s28 = sshra.s32 %s12103_s12, 4  ;;  %s11495_s28 = int_to_ptr.hbm [resolvable:$true] %s11494_s28 }
  0x94   :  { %s282_s30 = sshll.u32 %s11887_s21, 4  ;;  %s11496_s1 = scalar_lea.hbm %s11495_s28, 64  ;;  %s283_s30 = int_to_ptr.vmem [resolvable:$true] %s282_s30 }
  0x95   :  { %p11497_p7 = scmp.ne.s32.totalorder %s11495_s28, %s11496_s1  ;;  %s11498_s2 = scalar_lea.hbm %s12059_s13, 64 }
  0x96   :  { %p11499_p8 = scmp.lt.s32.totalorder %s11495_s28, %s12059_s13  ;;  %p11500_p9 = scmp.lt.s32.totalorder %s11498_s2, %s11496_s1 }
  0x98   :  { %p11501_p10 = por %p11500_p9, %p11499_p8 }
  0x9a   :  { %p11502_p11 = pnand %p11501_p10, %p11497_p7 }
  0x9c   :  { %11505 = shalt.err (!%p11502_p11)
}
  0x9d   :  { %s11888_s4 = smov 256   ;;  %s11889_s17 = smov 16  }
  0x9e   :  { %288 = dma.hbm_to_vmem [thread:$0]  %s12103_s12, 1024, %s283_s30, [#allocation33], %s11888_s4, %s11888_s4, %s11889_s17  }
  0x9f   :  { %s85_s7 = sshll.u32 %s11914_s5, 4  ;;  %s94_s10 = sshll.u32 %s11919_s9, 4  ;;  %s86_s7 = int_to_ptr.hbm [resolvable:$true] %s85_s7  ;;  %s95_s10 = int_to_ptr.hbm [resolvable:$true] %s94_s10 }
  0xa0   :  { %s11518_s3 = sshra.s32 %s86_s7, 4  ;;  %s11522_s13 = scalar_lea.hbm %s11914_s5, 1  ;;  %s11519_s3 = int_to_ptr.hbm [resolvable:$true] %s11518_s3 }
  0xa1   :  { %s11520_s0 = scalar_lea.hbm %s11519_s3, 1  ;;  %p11523_p13 = scmp.lt.s32.totalorder %s11519_s3, %s11914_s5 }
  0xa2   :  { %p11521_p12 = scmp.ne.s32.totalorder %s11519_s3, %s11520_s0  ;;  %p11524_p0 = scmp.lt.s32.totalorder %s11522_s13, %s11520_s0 }
  0xa4   :  { %p11525_p1 = por %p11524_p0, %p11523_p13 }
  0xa6   :  { %p11526_p2 = pnand %p11525_p1, %p11521_p12 }
  0xa8   :  { %11529 = shalt.err (!%p11526_p2)
}
  0xa9   :  { %s11890_s11 = smov [#allocation7]   ;;  %s11891_s12 = smov [#allocation10]  }
  0xaa   :  { %88 = dma.hbm_to_smem %s86_s7, 16, %s11890_s11, [#allocation9]  }
  0xab   :  { %s96_s15 = sshll.u32 %s11891_s12, 4  ;;  %s122_s16 = sshll.u32 %s11944_s29, 4  ;;  %s97_s15 = int_to_ptr.vmem [resolvable:$true] %s96_s15  ;;  %s123_s16 = int_to_ptr.hbm [resolvable:$true] %s122_s16 }
  0xac   :  { %s11530_s22 = sshra.s32 %s95_s10, 4  ;;  %s11534_s5 = scalar_lea.hbm %s11919_s9, 2  ;;  %s11531_s22 = int_to_ptr.hbm [resolvable:$true] %s11530_s22 }
  0xad   :  { %s11532_s23 = scalar_lea.hbm %s11531_s22, 2  ;;  %p11535_p4 = scmp.lt.s32.totalorder %s11531_s22, %s11919_s9 }
  0xae   :  { %p11533_p3 = scmp.ne.s32.totalorder %s11531_s22, %s11532_s23  ;;  %p11536_p5 = scmp.lt.s32.totalorder %s11534_s5, %s11532_s23 }
  0xb0   :  { %p11537_p6 = por %p11536_p5, %p11535_p4 }
  0xb2   :  { %p11538_p7 = pnand %p11537_p6, %p11533_p3 }
  0xb4   :  { %11541 = shalt.err (!%p11538_p7)
}
  0xb5   :  { %99 = dma.hbm_to_vmem [thread:$0]  %s95_s10, 32, %s97_s15, [#allocation8]  }
  0xb6   :  { %s144_s26 = sshll.u32 %s11959_s14, 4  ;;  %s11892_s21 = smov [#allocation13]   ;;  %s145_s26 = int_to_ptr.hbm [resolvable:$true] %s144_s26 }
  0xb7   :  { %s124_s30 = sshll.u32 %s11892_s21, 4  ;;  %s11554_s28 = sshra.s32 %s123_s16, 4  ;;  %s125_s30 = int_to_ptr.vmem [resolvable:$true] %s124_s30  ;;  %s11555_s28 = int_to_ptr.hbm [resolvable:$true] %s11554_s28 }
  0xb8   :  { %s11556_s1 = scalar_lea.hbm %s11555_s28, 8  ;;  %s11558_s2 = scalar_lea.hbm %s11944_s29, 8 }
  0xb9   :  { %p11557_p8 = scmp.ne.s32.totalorder %s11555_s28, %s11556_s1  ;;  %p11559_p9 = scmp.lt.s32.totalorder %s11555_s28, %s11944_s29 }
  0xba   :  { %p11560_p10 = scmp.lt.s32.totalorder %s11558_s2, %s11556_s1 }
  0xbc   :  { %p11561_p11 = por %p11560_p10, %p11559_p9 }
  0xbe   :  { %p11562_p12 = pnand %p11561_p11, %p11557_p8 }
  0xc0   :  { %11565 = shalt.err (!%p11562_p12)
}
  0xc1   :  { %127 = dma.hbm_to_vmem [thread:$0]  %s123_s16, 128, %s125_s30, [#allocation12]  }
  0xc2   :  { %s11893_s9 = smov [#allocation16]   ;;  %s166_s17 = sshll.u32 %s11969_s24, 4  ;;  %s167_s17 = int_to_ptr.hbm [resolvable:$true] %s166_s17 }
  0xc3   :  { %s146_s4 = sshll.u32 %s11893_s9, 4  ;;  %s11578_s7 = sshra.s32 %s145_s26, 4  ;;  %s147_s4 = int_to_ptr.vmem [resolvable:$true] %s146_s4  ;;  %s11579_s7 = int_to_ptr.hbm [resolvable:$true] %s11578_s7 }
  0xc4   :  { %s11580_s10 = scalar_lea.hbm %s11579_s7, 4  ;;  %s11582_s3 = scalar_lea.hbm %s11959_s14, 4 }
  0xc5   :  { %p11581_p13 = scmp.ne.s32.totalorder %s11579_s7, %s11580_s10  ;;  %p11583_p0 = scmp.lt.s32.totalorder %s11579_s7, %s11959_s14 }
  0xc6   :  { %p11584_p1 = scmp.lt.s32.totalorder %s11582_s3, %s11580_s10 }
  0xc8   :  { %p11585_p2 = por %p11584_p1, %p11583_p0 }
  0xca   :  { %p11586_p3 = pnand %p11585_p2, %p11581_p13 }
  0xcc   :  { %11589 = shalt.err (!%p11586_p3)
}
  0xcd   :  { %149 = dma.hbm_to_vmem [thread:$0]  %s145_s26, 64, %s147_s4, [#allocation15]  }
  0xce   :  { %s190_s29 = sshll.u32 %s11979_s6, 4  ;;  %s11894_s0 = smov [#allocation19]   ;;  %s191_s29 = int_to_ptr.hbm [resolvable:$true] %s190_s29 }
  0xcf   :  { %s168_s13 = sshll.u32 %s11894_s0, 4  ;;  %s11602_s11 = sshra.s32 %s167_s17, 4  ;;  %s169_s13 = int_to_ptr.vmem [resolvable:$true] %s168_s13  ;;  %s11603_s11 = int_to_ptr.hbm [resolvable:$true] %s11602_s11 }
  0xd0   :  { %s11604_s12 = scalar_lea.hbm %s11603_s11, 4  ;;  %s11606_s15 = scalar_lea.hbm %s11969_s24, 4 }
  0xd1   :  { %p11605_p4 = scmp.ne.s32.totalorder %s11603_s11, %s11604_s12  ;;  %p11607_p5 = scmp.lt.s32.totalorder %s11603_s11, %s11969_s24 }
  0xd2   :  { %p11608_p6 = scmp.lt.s32.totalorder %s11606_s15, %s11604_s12 }
  0xd4   :  { %p11609_p7 = por %p11608_p6, %p11607_p5 }
  0xd6   :  { %p11610_p8 = pnand %p11609_p7, %p11605_p4 }
  0xd8   :  { %11613 = shalt.err (!%p11610_p8)
}
  0xd9   :  { %171 = dma.hbm_to_vmem [thread:$0]  %s167_s17, 64, %s169_s13, [#allocation18]  }
  0xda   :  { %s11895_s14 = smov [#allocation22]   ;;  %s212_s22 = sshll.u32 %s11989_s20, 4  ;;  %s213_s22 = int_to_ptr.hbm [resolvable:$true] %s212_s22 }
  0xdb   :  { %s192_s16 = sshll.u32 %s11895_s14, 4  ;;  %s11626_s23 = sshra.s32 %s191_s29, 4  ;;  %s193_s16 = int_to_ptr.vmem [resolvable:$true] %s192_s16  ;;  %s11627_s23 = int_to_ptr.hbm [resolvable:$true] %s11626_s23 }
  0xdc   :  { %s11628_s5 = scalar_lea.hbm %s11627_s23, 1  ;;  %s11630_s26 = scalar_lea.hbm %s11979_s6, 1 }
  0xdd   :  { %p11629_p9 = scmp.ne.s32.totalorder %s11627_s23, %s11628_s5  ;;  %p11631_p10 = scmp.lt.s32.totalorder %s11627_s23, %s11979_s6 }
  0xde   :  { %p11632_p11 = scmp.lt.s32.totalorder %s11630_s26, %s11628_s5 }
  0xe0   :  { %p11633_p12 = por %p11632_p11, %p11631_p10 }
  0xe2   :  { %p11634_p13 = pnand %p11633_p12, %p11629_p9 }
  0xe4   :  { %11637 = shalt.err (!%p11634_p13)
}
  0xe5   :  { %195 = dma.hbm_to_vmem [thread:$0]  %s191_s29, 16, %s193_s16, [#allocation21]  }
  0xe6   :  { %s13195_s24 = sld [smem:[#allocation68_spill]]  ;;  %s11896_s30 = smov [#allocation25]  }
  0xe7   :  { %s214_s28 = sshll.u32 %s11896_s30, 4  ;;  %s11650_s1 = sshra.s32 %s213_s22, 4  ;;  %s215_s28 = int_to_ptr.vmem [resolvable:$true] %s214_s28  ;;  %s11651_s1 = int_to_ptr.hbm [resolvable:$true] %s11650_s1 }
  0xe8   :  { %s11652_s2 = scalar_lea.hbm %s11651_s1, 1  ;;  %s11654_s9 = scalar_lea.hbm %s11989_s20, 1 }
  0xe9   :  { %p11653_p0 = scmp.ne.s32.totalorder %s11651_s1, %s11652_s2  ;;  %p11655_p1 = scmp.lt.s32.totalorder %s11651_s1, %s11989_s20 }
  0xea   :  { %p11656_p2 = scmp.lt.s32.totalorder %s11654_s9, %s11652_s2 }
  0xec   :  { %s242_s21 = sshll.u32 %s13195_s24, 4  ;;  %p11657_p3 = por %p11656_p2, %p11655_p1  ;;  %s243_s21 = int_to_ptr.hbm [resolvable:$true] %s242_s21 }
  0xee   :  { %p11658_p4 = pnand %p11657_p3, %p11653_p0 }
  0xf0   :  { %11661 = shalt.err (!%p11658_p4)
}
  0xf1   :  { %217 = dma.hbm_to_vmem [thread:$0]  %s213_s22, 16, %s215_s28, [#allocation24]  }
  0xf2   :  { %s13196_s6 = sld [smem:[#allocation71_spill]]  ;;  %s11897_s4 = smov [#allocation28]  }
  0xf3   :  { %s244_s17 = sshll.u32 %s11897_s4, 4  ;;  %s11674_s10 = sshra.s32 %s243_s21, 4  ;;  %s245_s17 = int_to_ptr.vmem [resolvable:$true] %s244_s17  ;;  %s11675_s10 = int_to_ptr.hbm [resolvable:$true] %s11674_s10 }
  0xf4   :  { %s11676_s3 = scalar_lea.hbm %s11675_s10, 4  ;;  %s11678_s29 = scalar_lea.hbm %s13195_s24, 4 }
  0xf5   :  { %p11677_p5 = scmp.ne.s32.totalorder %s11675_s10, %s11676_s3  ;;  %p11679_p6 = scmp.lt.s32.totalorder %s11675_s10, %s13195_s24 }
  0xf6   :  { %p11680_p7 = scmp.lt.s32.totalorder %s11678_s29, %s11676_s3 }
  0xf8   :  { %s265_s7 = sshll.u32 %s13196_s6, 4  ;;  %p11681_p8 = por %p11680_p7, %p11679_p6  ;;  %s12134_s7 = int_to_ptr.hbm [resolvable:$true] %s265_s7 }
  0xfa   :  { %p11682_p9 = pnand %p11681_p8, %p11677_p5 }
  0xfc   :  { %11685 = shalt.err (!%p11682_p9)
}
  0xfd   :  { %247 = dma.hbm_to_vmem [thread:$0]  %s243_s21, 64, %s245_s17, [#allocation27]  }
  0xfe   :  { %s11898_s20 = smov [#allocation31]   ;;  %s295_s13 = sshll.u32 %s12069_s8, 4  ;;  %s296_s13 = int_to_ptr.hbm [resolvable:$true] %s295_s13 }
  0xff   :  { %s267_s0 = sshll.u32 %s11898_s20, 4  ;;  %s11698_s11 = sshra.s32 %s12134_s7, 4  ;;  %s268_s0 = int_to_ptr.vmem [resolvable:$true] %s267_s0  ;;  %s11699_s11 = int_to_ptr.hbm [resolvable:$true] %s11698_s11 }
 0x100   :  { %s11700_s12 = scalar_lea.hbm %s11699_s11, 256  ;;  %s11702_s15 = scalar_lea.hbm %s13196_s6, 256 }
 0x101   :  { %p11701_p10 = scmp.ne.s32.totalorder %s11699_s11, %s11700_s12  ;;  %p11703_p11 = scmp.lt.s32.totalorder %s11699_s11, %s13196_s6 }
 0x102   :  { %p11704_p12 = scmp.lt.s32.totalorder %s11702_s15, %s11700_s12 }
 0x104   :  { %p11705_p13 = por %p11704_p12, %p11703_p11 }
 0x106   :  { %p11706_p0 = pnand %p11705_p13, %p11701_p10 }
 0x108   :  { %11709 = shalt.err (!%p11706_p0)
}
 0x109   :  { %s11899_s14 = smov 512   ;;  %s11900_s16 = smov 32  }
 0x10a   :  { %273 = dma.hbm_to_vmem [thread:$0]  %s12134_s7, 4096, %s268_s0, [#allocation30], %s11899_s14, %s11899_s14, %s11900_s16  }
 0x10b   :  { %s11901_s22 = smov [#allocation34]   ;;  %s11722_s5 = sshra.s32 %s296_s13, 4  ;;  %s11723_s5 = int_to_ptr.hbm [resolvable:$true] %s11722_s5 }
 0x10c   :  { %s297_s23 = sshll.u32 %s11901_s22, 4  ;;  %s11724_s26 = scalar_lea.hbm %s11723_s5, 16  ;;  %s298_s23 = int_to_ptr.vmem [resolvable:$true] %s297_s23 }
 0x10d   :  { %p11725_p1 = scmp.ne.s32.totalorder %s11723_s5, %s11724_s26  ;;  %s11726_s24 = scalar_lea.hbm %s12069_s8, 16 }
 0x10e   :  { %p11727_p2 = scmp.lt.s32.totalorder %s11723_s5, %s12069_s8  ;;  %p11728_p3 = scmp.lt.s32.totalorder %s11726_s24, %s11724_s26 }
 0x110   :  { %p11729_p4 = por %p11728_p3, %p11727_p2 }
 0x112   :  { %p11730_p5 = pnand %p11729_p4, %p11725_p1 }
 0x114   :  { %11733 = shalt.err (!%p11730_p5)
}
 0x115   :  { %303 = dma.hbm_to_vmem [thread:$0]  %s296_s13, 256, %s298_s23, [#allocation33], %s11882_s19, %s11882_s19, %s11883_s18  }
 0x116   :  { %11818 = dma.done.wait [#allocation9], 16  }
 0x117   :  { %11819 = vsyncadd [#allocation9], 4294967280 }
 0x118   :  { %11820 = dma.done.wait [#allocation8], 32  }
 0x119   :  { %11821 = vsyncadd [#allocation8], 4294967264 }
 0x11a   :  { %11822 = dma.done.wait [#allocation12], 144  }
 0x11b   :  { %11823 = vsyncadd [#allocation12], 4294967152 }
 0x11c   :  { %11824 = dma.done.wait [#allocation15], 192  }
 0x11d   :  { %11825 = vsyncadd [#allocation15], 4294967104 }
 0x11e   :  { %11826 = dma.done.wait [#allocation18], 128  }
 0x11f   :  { %11827 = vsyncadd [#allocation18], 4294967168 }
 0x120   :  { %11828 = dma.done.wait [#allocation21], 272  }
 0x121   :  { %11829 = vsyncadd [#allocation21], 4294967024 }
 0x122   :  { %11830 = dma.done.wait [#allocation24], 32  }
 0x123   :  { %11831 = vsyncadd [#allocation24], 4294967264 }
 0x124   :  { %11832 = dma.done.wait [#allocation27], 128  }
 0x125   :  { %11833 = vsyncadd [#allocation27], 4294967168 }
 0x126   :  { %11834 = dma.done.wait [#allocation30], 4160  }
 0x127   :  { %11835 = vsyncadd [#allocation30], 4294963136 }
 0x128   :  { %11836 = dma.done.wait [#allocation33], 1280  }
 0x129   :  { %11837 = vsyncadd [#allocation33], 4294966016 }
 0x12a   :  { %376 = sfence }
 0x12b   :  { %s13197_s8 = sld [smem:[#allocation61_spill]] }
 0x12c   :  { %s13198_s19 = sld [smem:[#allocation58_spill]] }
 0x12d   :  { %s13199_s18 = sld [smem:[#allocation59_spill]] }
 0x131   :  { %v388_v0 = vld [vmem:[%s13197_s8] sm:$0xff]  ;;  %v390_v1 = vld [vmem:[%s13197_s8 + $0x8] sm:$0xff]  ;;  %v392_v2 = vld [vmem:[%s13197_s8 + $0x10] sm:$0xff] }
 0x132   :  { %389 = vst [vmem:[#allocation2] sm:$0xff] %v388_v0  ;;  %v394_v3 = vld [vmem:[%s13197_s8 + $0x18] sm:$0xff]  ;;  %v396_v4 = vld [vmem:[%s13197_s8 + $0x20] sm:$0xff]  ;;  %v398_v5 = vld [vmem:[%s13197_s8 + $0x28] sm:$0xff] }
 0x133   :  { %391 = vst [vmem:[#allocation2 + $0x8] sm:$0xff] %v390_v1  ;;  %v400_v6 = vld [vmem:[%s13197_s8 + $0x30] sm:$0xff]  ;;  %v402_v7 = vld [vmem:[%s13197_s8 + $0x38] sm:$0xff]  ;;  %v404_v8 = vld [vmem:[%s13197_s8 + $0x40] sm:$0xff] }
 0x134   :  { %393 = vst [vmem:[#allocation2 + $0x10] sm:$0xff] %v392_v2  ;;  %v406_v9 = vld [vmem:[%s13197_s8 + $0x48] sm:$0xff]  ;;  %v408_v10 = vld [vmem:[%s13197_s8 + $0x50] sm:$0xff]  ;;  %v410_v11 = vld [vmem:[%s13197_s8 + $0x58] sm:$0xff] }
 0x135   :  { %395 = vst [vmem:[#allocation2 + $0x18] sm:$0xff] %v394_v3  ;;  %v412_v12 = vld [vmem:[%s13197_s8 + $0x60] sm:$0xff]  ;;  %v414_v13 = vld [vmem:[%s13197_s8 + $0x68] sm:$0xff]  ;;  %v416_v14 = vld [vmem:[%s13197_s8 + $0x70] sm:$0xff] }
 0x136   :  { %397 = vst [vmem:[#allocation2 + $0x20] sm:$0xff] %v396_v4  ;;  %v418_v15 = vld [vmem:[%s13197_s8 + $0x78] sm:$0xff]  ;;  %v420_v16 = vld [vmem:[%s13197_s8 + $0x80] sm:$0xff]  ;;  %v422_v17 = vld [vmem:[%s13197_s8 + $0x88] sm:$0xff] }
 0x137   :  { %399 = vst [vmem:[#allocation2 + $0x28] sm:$0xff] %v398_v5  ;;  %v424_v18 = vld [vmem:[%s13197_s8 + $0x90] sm:$0xff]  ;;  %v426_v19 = vld [vmem:[%s13197_s8 + $0x98] sm:$0xff]  ;;  %v428_v20 = vld [vmem:[%s13197_s8 + $0xa0] sm:$0xff] }
 0x138   :  { %401 = vst [vmem:[#allocation2 + $0x30] sm:$0xff] %v400_v6  ;;  %v430_v21 = vld [vmem:[%s13197_s8 + $0xa8] sm:$0xff]  ;;  %v432_v22 = vld [vmem:[%s13197_s8 + $0xb0] sm:$0xff]  ;;  %v434_v23 = vld [vmem:[%s13197_s8 + $0xb8] sm:$0xff] }
 0x139   :  { %403 = vst [vmem:[#allocation2 + $0x38] sm:$0xff] %v402_v7  ;;  %v436_v24 = vld [vmem:[%s13197_s8 + $0xc0] sm:$0xff]  ;;  %v438_v25 = vld [vmem:[%s13197_s8 + $0xc8] sm:$0xff]  ;;  %v440_v26 = vld [vmem:[%s13197_s8 + $0xd0] sm:$0xff] }
 0x13a   :  { %405 = vst [vmem:[#allocation2 + $0x40] sm:$0xff] %v404_v8  ;;  %v442_v27 = vld [vmem:[%s13197_s8 + $0xd8] sm:$0xff]  ;;  %v444_v28 = vld [vmem:[%s13197_s8 + $0xe0] sm:$0xff]  ;;  %v446_v29 = vld [vmem:[%s13197_s8 + $0xe8] sm:$0xff] }
 0x13b   :  { %407 = vst [vmem:[#allocation2 + $0x48] sm:$0xff] %v406_v9  ;;  %v448_v30 = vld [vmem:[%s13197_s8 + $0xf0] sm:$0xff]  ;;  %v450_v31 = vld [vmem:[%s13197_s8 + $0xf8] sm:$0xff]  ;;  %v452_v32 = vld [vmem:[%s13197_s8 + $0x100] sm:$0xff] }
 0x13c   :  { %409 = vst [vmem:[#allocation2 + $0x50] sm:$0xff] %v408_v10  ;;  %v454_v33 = vld [vmem:[%s13197_s8 + $0x108] sm:$0xff]  ;;  %v456_v34 = vld [vmem:[%s13197_s8 + $0x110] sm:$0xff]  ;;  %v458_v35 = vld [vmem:[%s13197_s8 + $0x118] sm:$0xff] }
 0x13d   :  { %411 = vst [vmem:[#allocation2 + $0x58] sm:$0xff] %v410_v11  ;;  %v460_v36 = vld [vmem:[%s13197_s8 + $0x120] sm:$0xff]  ;;  %v462_v37 = vld [vmem:[%s13197_s8 + $0x128] sm:$0xff]  ;;  %v464_v38 = vld [vmem:[%s13197_s8 + $0x130] sm:$0xff] }
 0x13e   :  { %413 = vst [vmem:[#allocation2 + $0x60] sm:$0xff] %v412_v12  ;;  %v466_v39 = vld [vmem:[%s13197_s8 + $0x138] sm:$0xff]  ;;  %v468_v40 = vld [vmem:[%s13197_s8 + $0x140] sm:$0xff]  ;;  %v470_v41 = vld [vmem:[%s13197_s8 + $0x148] sm:$0xff] }
 0x13f   :  { %415 = vst [vmem:[#allocation2 + $0x68] sm:$0xff] %v414_v13  ;;  %v472_v42 = vld [vmem:[%s13197_s8 + $0x150] sm:$0xff]  ;;  %v474_v43 = vld [vmem:[%s13197_s8 + $0x158] sm:$0xff]  ;;  %v476_v44 = vld [vmem:[%s13197_s8 + $0x160] sm:$0xff] }
 0x140   :  { %417 = vst [vmem:[#allocation2 + $0x70] sm:$0xff] %v416_v14  ;;  %v478_v45 = vld [vmem:[%s13197_s8 + $0x168] sm:$0xff]  ;;  %v480_v46 = vld [vmem:[%s13197_s8 + $0x170] sm:$0xff]  ;;  %v482_v47 = vld [vmem:[%s13197_s8 + $0x178] sm:$0xff] }
 0x141   :  { %419 = vst [vmem:[#allocation2 + $0x78] sm:$0xff] %v418_v15  ;;  %v484_v48 = vld [vmem:[%s13197_s8 + $0x180] sm:$0xff]  ;;  %v486_v49 = vld [vmem:[%s13197_s8 + $0x188] sm:$0xff]  ;;  %v488_v50 = vld [vmem:[%s13197_s8 + $0x190] sm:$0xff] }
 0x142   :  { %421 = vst [vmem:[#allocation2 + $0x80] sm:$0xff] %v420_v16  ;;  %v490_v51 = vld [vmem:[%s13197_s8 + $0x198] sm:$0xff]  ;;  %v492_v52 = vld [vmem:[%s13197_s8 + $0x1a0] sm:$0xff]  ;;  %v494_v53 = vld [vmem:[%s13197_s8 + $0x1a8] sm:$0xff] }
 0x143   :  { %423 = vst [vmem:[#allocation2 + $0x88] sm:$0xff] %v422_v17  ;;  %v496_v54 = vld [vmem:[%s13197_s8 + $0x1b0] sm:$0xff]  ;;  %v498_v55 = vld [vmem:[%s13197_s8 + $0x1b8] sm:$0xff]  ;;  %v500_v56 = vld [vmem:[%s13197_s8 + $0x1c0] sm:$0xff] }
 0x144   :  { %425 = vst [vmem:[#allocation2 + $0x90] sm:$0xff] %v424_v18  ;;  %v502_v57 = vld [vmem:[%s13197_s8 + $0x1c8] sm:$0xff]  ;;  %v504_v58 = vld [vmem:[%s13197_s8 + $0x1d0] sm:$0xff]  ;;  %v506_v59 = vld [vmem:[%s13197_s8 + $0x1d8] sm:$0xff] }
 0x145   :  { %427 = vst [vmem:[#allocation2 + $0x98] sm:$0xff] %v426_v19  ;;  %v508_v60 = vld [vmem:[%s13197_s8 + $0x1e0] sm:$0xff]  ;;  %v510_v61 = vld [vmem:[%s13197_s8 + $0x1e8] sm:$0xff]  ;;  %v512_v62 = vld [vmem:[%s13197_s8 + $0x1f0] sm:$0xff] }
 0x146   :  { %429 = vst [vmem:[#allocation2 + $0xa0] sm:$0xff] %v428_v20  ;;  %v514_v63 = vld [vmem:[%s13197_s8 + $0x1f8] sm:$0xff]  ;;  %v516_v0 = vld [vmem:[%s13197_s8 + $0x200] sm:$0xff]  ;;  %v518_v1 = vld [vmem:[%s13197_s8 + $0x208] sm:$0xff] }
 0x147   :  { %431 = vst [vmem:[#allocation2 + $0xa8] sm:$0xff] %v430_v21  ;;  %v520_v2 = vld [vmem:[%s13197_s8 + $0x210] sm:$0xff]  ;;  %v522_v3 = vld [vmem:[%s13197_s8 + $0x218] sm:$0xff]  ;;  %v524_v4 = vld [vmem:[%s13197_s8 + $0x220] sm:$0xff] }
 0x148   :  { %433 = vst [vmem:[#allocation2 + $0xb0] sm:$0xff] %v432_v22  ;;  %v526_v5 = vld [vmem:[%s13197_s8 + $0x228] sm:$0xff]  ;;  %v528_v6 = vld [vmem:[%s13197_s8 + $0x230] sm:$0xff]  ;;  %v530_v7 = vld [vmem:[%s13197_s8 + $0x238] sm:$0xff] }
 0x149   :  { %435 = vst [vmem:[#allocation2 + $0xb8] sm:$0xff] %v434_v23  ;;  %v532_v8 = vld [vmem:[%s13197_s8 + $0x240] sm:$0xff]  ;;  %v534_v9 = vld [vmem:[%s13197_s8 + $0x248] sm:$0xff]  ;;  %v536_v10 = vld [vmem:[%s13197_s8 + $0x250] sm:$0xff] }
 0x14a   :  { %437 = vst [vmem:[#allocation2 + $0xc0] sm:$0xff] %v436_v24  ;;  %v538_v11 = vld [vmem:[%s13197_s8 + $0x258] sm:$0xff]  ;;  %v540_v12 = vld [vmem:[%s13197_s8 + $0x260] sm:$0xff]  ;;  %v542_v13 = vld [vmem:[%s13197_s8 + $0x268] sm:$0xff] }
 0x14b   :  { %439 = vst [vmem:[#allocation2 + $0xc8] sm:$0xff] %v438_v25  ;;  %v544_v14 = vld [vmem:[%s13197_s8 + $0x270] sm:$0xff]  ;;  %v546_v15 = vld [vmem:[%s13197_s8 + $0x278] sm:$0xff]  ;;  %v548_v16 = vld [vmem:[%s13197_s8 + $0x280] sm:$0xff] }
 0x14c   :  { %441 = vst [vmem:[#allocation2 + $0xd0] sm:$0xff] %v440_v26  ;;  %v550_v17 = vld [vmem:[%s13197_s8 + $0x288] sm:$0xff]  ;;  %v552_v18 = vld [vmem:[%s13197_s8 + $0x290] sm:$0xff]  ;;  %v554_v19 = vld [vmem:[%s13197_s8 + $0x298] sm:$0xff] }
 0x14d   :  { %443 = vst [vmem:[#allocation2 + $0xd8] sm:$0xff] %v442_v27  ;;  %v556_v20 = vld [vmem:[%s13197_s8 + $0x2a0] sm:$0xff]  ;;  %v558_v21 = vld [vmem:[%s13197_s8 + $0x2a8] sm:$0xff]  ;;  %v560_v22 = vld [vmem:[%s13197_s8 + $0x2b0] sm:$0xff] }
 0x14e   :  { %445 = vst [vmem:[#allocation2 + $0xe0] sm:$0xff] %v444_v28  ;;  %v562_v23 = vld [vmem:[%s13197_s8 + $0x2b8] sm:$0xff]  ;;  %v564_v24 = vld [vmem:[%s13197_s8 + $0x2c0] sm:$0xff]  ;;  %v566_v25 = vld [vmem:[%s13197_s8 + $0x2c8] sm:$0xff] }
 0x14f   :  { %447 = vst [vmem:[#allocation2 + $0xe8] sm:$0xff] %v446_v29  ;;  %v568_v26 = vld [vmem:[%s13197_s8 + $0x2d0] sm:$0xff]  ;;  %v570_v27 = vld [vmem:[%s13197_s8 + $0x2d8] sm:$0xff]  ;;  %v572_v28 = vld [vmem:[%s13197_s8 + $0x2e0] sm:$0xff] }
 0x150   :  { %449 = vst [vmem:[#allocation2 + $0xf0] sm:$0xff] %v448_v30  ;;  %v574_v29 = vld [vmem:[%s13197_s8 + $0x2e8] sm:$0xff]  ;;  %v576_v30 = vld [vmem:[%s13197_s8 + $0x2f0] sm:$0xff] }
 0x151   :  { %451 = vst [vmem:[#allocation2 + $0xf8] sm:$0xff] %v450_v31  ;;  %v578_v31 = vld [vmem:[%s13197_s8 + $0x2f8] sm:$0xff] }
 0x152   :  { %453 = vst [vmem:[#allocation2 + $0x100] sm:$0xff] %v452_v32  ;;  %v580_v32 = vld [vmem:[%s13197_s8 + $0x300] sm:$0xff] }
 0x153   :  { %455 = vst [vmem:[#allocation2 + $0x108] sm:$0xff] %v454_v33  ;;  %v582_v33 = vld [vmem:[%s13197_s8 + $0x308] sm:$0xff] }
 0x154   :  { %457 = vst [vmem:[#allocation2 + $0x110] sm:$0xff] %v456_v34  ;;  %v584_v34 = vld [vmem:[%s13197_s8 + $0x310] sm:$0xff] }
 0x155   :  { %459 = vst [vmem:[#allocation2 + $0x118] sm:$0xff] %v458_v35  ;;  %v586_v35 = vld [vmem:[%s13197_s8 + $0x318] sm:$0xff] }
 0x156   :  { %461 = vst [vmem:[#allocation2 + $0x120] sm:$0xff] %v460_v36  ;;  %v588_v36 = vld [vmem:[%s13197_s8 + $0x320] sm:$0xff] }
 0x157   :  { %463 = vst [vmem:[#allocation2 + $0x128] sm:$0xff] %v462_v37  ;;  %v590_v37 = vld [vmem:[%s13197_s8 + $0x328] sm:$0xff] }
 0x158   :  { %465 = vst [vmem:[#allocation2 + $0x130] sm:$0xff] %v464_v38  ;;  %v592_v38 = vld [vmem:[%s13197_s8 + $0x330] sm:$0xff] }
 0x159   :  { %467 = vst [vmem:[#allocation2 + $0x138] sm:$0xff] %v466_v39  ;;  %v594_v39 = vld [vmem:[%s13197_s8 + $0x338] sm:$0xff] }
 0x15a   :  { %469 = vst [vmem:[#allocation2 + $0x140] sm:$0xff] %v468_v40  ;;  %v596_v40 = vld [vmem:[%s13197_s8 + $0x340] sm:$0xff] }
 0x15b   :  { %471 = vst [vmem:[#allocation2 + $0x148] sm:$0xff] %v470_v41  ;;  %v598_v41 = vld [vmem:[%s13197_s8 + $0x348] sm:$0xff] }
 0x15c   :  { %473 = vst [vmem:[#allocation2 + $0x150] sm:$0xff] %v472_v42  ;;  %v600_v42 = vld [vmem:[%s13197_s8 + $0x350] sm:$0xff] }
 0x15d   :  { %475 = vst [vmem:[#allocation2 + $0x158] sm:$0xff] %v474_v43  ;;  %v602_v43 = vld [vmem:[%s13197_s8 + $0x358] sm:$0xff] }
 0x15e   :  { %477 = vst [vmem:[#allocation2 + $0x160] sm:$0xff] %v476_v44  ;;  %v604_v44 = vld [vmem:[%s13197_s8 + $0x360] sm:$0xff] }
 0x15f   :  { %479 = vst [vmem:[#allocation2 + $0x168] sm:$0xff] %v478_v45  ;;  %v606_v45 = vld [vmem:[%s13197_s8 + $0x368] sm:$0xff] }
 0x160   :  { %481 = vst [vmem:[#allocation2 + $0x170] sm:$0xff] %v480_v46  ;;  %v608_v46 = vld [vmem:[%s13197_s8 + $0x370] sm:$0xff] }
 0x161   :  { %483 = vst [vmem:[#allocation2 + $0x178] sm:$0xff] %v482_v47  ;;  %v610_v47 = vld [vmem:[%s13197_s8 + $0x378] sm:$0xff] }
 0x162   :  { %485 = vst [vmem:[#allocation2 + $0x180] sm:$0xff] %v484_v48  ;;  %v612_v48 = vld [vmem:[%s13197_s8 + $0x380] sm:$0xff] }
 0x163   :  { %487 = vst [vmem:[#allocation2 + $0x188] sm:$0xff] %v486_v49  ;;  %v614_v49 = vld [vmem:[%s13197_s8 + $0x388] sm:$0xff] }
 0x164   :  { %489 = vst [vmem:[#allocation2 + $0x190] sm:$0xff] %v488_v50  ;;  %v616_v50 = vld [vmem:[%s13197_s8 + $0x390] sm:$0xff] }
 0x165   :  { %491 = vst [vmem:[#allocation2 + $0x198] sm:$0xff] %v490_v51  ;;  %v618_v51 = vld [vmem:[%s13197_s8 + $0x398] sm:$0xff] }
 0x166   :  { %493 = vst [vmem:[#allocation2 + $0x1a0] sm:$0xff] %v492_v52  ;;  %v620_v52 = vld [vmem:[%s13197_s8 + $0x3a0] sm:$0xff] }
 0x167   :  { %495 = vst [vmem:[#allocation2 + $0x1a8] sm:$0xff] %v494_v53  ;;  %v622_v53 = vld [vmem:[%s13197_s8 + $0x3a8] sm:$0xff] }
 0x168   :  { %497 = vst [vmem:[#allocation2 + $0x1b0] sm:$0xff] %v496_v54  ;;  %v624_v54 = vld [vmem:[%s13197_s8 + $0x3b0] sm:$0xff] }
 0x169   :  { %499 = vst [vmem:[#allocation2 + $0x1b8] sm:$0xff] %v498_v55  ;;  %v626_v55 = vld [vmem:[%s13197_s8 + $0x3b8] sm:$0xff] }
 0x16a   :  { %501 = vst [vmem:[#allocation2 + $0x1c0] sm:$0xff] %v500_v56  ;;  %v628_v56 = vld [vmem:[%s13197_s8 + $0x3c0] sm:$0xff] }
 0x16b   :  { %503 = vst [vmem:[#allocation2 + $0x1c8] sm:$0xff] %v502_v57  ;;  %v630_v57 = vld [vmem:[%s13197_s8 + $0x3c8] sm:$0xff] }
 0x16c   :  { %505 = vst [vmem:[#allocation2 + $0x1d0] sm:$0xff] %v504_v58  ;;  %v632_v58 = vld [vmem:[%s13197_s8 + $0x3d0] sm:$0xff] }
 0x16d   :  { %507 = vst [vmem:[#allocation2 + $0x1d8] sm:$0xff] %v506_v59  ;;  %v634_v59 = vld [vmem:[%s13197_s8 + $0x3d8] sm:$0xff] }
 0x16e   :  { %509 = vst [vmem:[#allocation2 + $0x1e0] sm:$0xff] %v508_v60  ;;  %v636_v60 = vld [vmem:[%s13197_s8 + $0x3e0] sm:$0xff] }
 0x16f   :  { %511 = vst [vmem:[#allocation2 + $0x1e8] sm:$0xff] %v510_v61  ;;  %v638_v61 = vld [vmem:[%s13197_s8 + $0x3e8] sm:$0xff] }
 0x170   :  { %513 = vst [vmem:[#allocation2 + $0x1f0] sm:$0xff] %v512_v62  ;;  %v640_v62 = vld [vmem:[%s13197_s8 + $0x3f0] sm:$0xff] }
 0x171   :  { %515 = vst [vmem:[#allocation2 + $0x1f8] sm:$0xff] %v514_v63  ;;  %v642_v63 = vld [vmem:[%s13197_s8 + $0x3f8] sm:$0xff] }
 0x172   :  { %517 = vst [vmem:[#allocation2 + $0x200] sm:$0xff] %v516_v0  ;;  %v10512_v0 = vld [vmem:[%s13198_s19 + $0x8] sm:$0xff] }
 0x173   :  { %519 = vst [vmem:[#allocation2 + $0x208] sm:$0xff] %v518_v1  ;;  %v10511_v1 = vld [vmem:[%s13198_s19] sm:$0xff]  ;;  %724 = vmatpush.bf16.msra.mxu0 %v10512_v0 }
 0x174   :  { %521 = vst [vmem:[#allocation2 + $0x210] sm:$0xff] %v520_v2  ;;  %v692_v2 = vld [vmem:[#allocation10] sm:$0x3] }
 0x175   :  { %523 = vst [vmem:[#allocation2 + $0x218] sm:$0xff] %v522_v3  ;;  %v7858_v3 = vld [vmem:[%s13199_s18 + $0x40] sm:$0xf] }
 0x176   :  { %525 = vst [vmem:[#allocation2 + $0x220] sm:$0xff] %v524_v4  ;;  %v10525_v4 = vld [vmem:[%s13199_s18 + $0x5c] sm:$0xf0] }
 0x177   :  { %527 = vst [vmem:[#allocation2 + $0x228] sm:$0xff] %v526_v5  ;;  %v10521_v5 = vld [vmem:[%s13199_s18 + $0x44] sm:$0xf] }
 0x178   :  { %529 = vst [vmem:[#allocation2 + $0x230] sm:$0xff] %v528_v6  ;;  %v7859_v6 = vor.u32 %v10525_v4, %v7858_v3 }
 0x179   :  { %531 = vst [vmem:[#allocation2 + $0x238] sm:$0xff] %v530_v7  ;;  %v7860_v7 = vld [vmem:[%s13199_s18 + $0x60] sm:$0xf0] }
 0x17a   :  { %533 = vst [vmem:[#allocation2 + $0x240] sm:$0xff] %v532_v8  ;;  %v7866_v8 = vld [vmem:[%s13199_s18 + $0x48] sm:$0xf]  ;;  %855 = vmatpush.bf16.msra.mxu1 %v7859_v6 }
 0x17b   :  { %535 = vst [vmem:[#allocation2 + $0x248] sm:$0xff] %v534_v9  ;;  %v10526_v9 = vld [vmem:[%s13199_s18 + $0x64] sm:$0xf0] }
 0x17c   :  { %537 = vst [vmem:[#allocation2 + $0x250] sm:$0xff] %v536_v10  ;;  %v7863_v10 = vor.u32 %v10521_v5, %v7860_v7 }
 0x17d   :  { %539 = vst [vmem:[#allocation2 + $0x258] sm:$0xff] %v538_v11  ;;  %v7867_v11 = vor.u32 %v10526_v9, %v7866_v8 }
 0x17e   :  { %541 = vst [vmem:[#allocation2 + $0x260] sm:$0xff] %v540_v12  ;;  %v10522_v12 = vld [vmem:[%s13199_s18 + $0x4c] sm:$0xf] }
 0x17f   :  { %543 = vst [vmem:[#allocation2 + $0x268] sm:$0xff] %v542_v13  ;;  %v7868_v13 = vld [vmem:[%s13199_s18 + $0x68] sm:$0xf0] }
 0x180   :  { %545 = vst [vmem:[#allocation2 + $0x270] sm:$0xff] %v544_v14  ;;  %v7871_v14 = vor.u32 %v10522_v12, %v7868_v13 }
 0x181   :  { %547 = vst [vmem:[#allocation2 + $0x278] sm:$0xff] %v546_v15 }
 0x182   :  { %549 = vst [vmem:[#allocation2 + $0x280] sm:$0xff] %v548_v16 }
 0x183   :  { %551 = vst [vmem:[#allocation2 + $0x288] sm:$0xff] %v550_v17 }
 0x184   :  { %553 = vst [vmem:[#allocation2 + $0x290] sm:$0xff] %v552_v18 }
 0x185   :  { %555 = vst [vmem:[#allocation2 + $0x298] sm:$0xff] %v554_v19 }
 0x186   :  { %557 = vst [vmem:[#allocation2 + $0x2a0] sm:$0xff] %v556_v20 }
 0x187   :  { %559 = vst [vmem:[#allocation2 + $0x2a8] sm:$0xff] %v558_v21 }
 0x188   :  { %561 = vst [vmem:[#allocation2 + $0x2b0] sm:$0xff] %v560_v22 }
 0x189   :  { %563 = vst [vmem:[#allocation2 + $0x2b8] sm:$0xff] %v562_v23 }
 0x18a   :  { %565 = vst [vmem:[#allocation2 + $0x2c0] sm:$0xff] %v564_v24 }
 0x18b   :  { %567 = vst [vmem:[#allocation2 + $0x2c8] sm:$0xff] %v566_v25 }
 0x18c   :  { %569 = vst [vmem:[#allocation2 + $0x2d0] sm:$0xff] %v568_v26 }
 0x18d   :  { %571 = vst [vmem:[#allocation2 + $0x2d8] sm:$0xff] %v570_v27 }
 0x18e   :  { %573 = vst [vmem:[#allocation2 + $0x2e0] sm:$0xff] %v572_v28 }
 0x18f   :  { %575 = vst [vmem:[#allocation2 + $0x2e8] sm:$0xff] %v574_v29 }
 0x190   :  { %577 = vst [vmem:[#allocation2 + $0x2f0] sm:$0xff] %v576_v30 }
 0x191   :  { %579 = vst [vmem:[#allocation2 + $0x2f8] sm:$0xff] %v578_v31 }
 0x192   :  { %581 = vst [vmem:[#allocation2 + $0x300] sm:$0xff] %v580_v32 }
 0x193   :  { %583 = vst [vmem:[#allocation2 + $0x308] sm:$0xff] %v582_v33 }
 0x194   :  { %585 = vst [vmem:[#allocation2 + $0x310] sm:$0xff] %v584_v34 }
 0x195   :  { %587 = vst [vmem:[#allocation2 + $0x318] sm:$0xff] %v586_v35 }
 0x196   :  { %589 = vst [vmem:[#allocation2 + $0x320] sm:$0xff] %v588_v36 }
 0x197   :  { %591 = vst [vmem:[#allocation2 + $0x328] sm:$0xff] %v590_v37 }
 0x198   :  { %593 = vst [vmem:[#allocation2 + $0x330] sm:$0xff] %v592_v38 }
 0x199   :  { %595 = vst [vmem:[#allocation2 + $0x338] sm:$0xff] %v594_v39 }
 0x19a   :  { %597 = vst [vmem:[#allocation2 + $0x340] sm:$0xff] %v596_v40 }
 0x19b   :  { %599 = vst [vmem:[#allocation2 + $0x348] sm:$0xff] %v598_v41 }
 0x19c   :  { %601 = vst [vmem:[#allocation2 + $0x350] sm:$0xff] %v600_v42 }
 0x19d   :  { %603 = vst [vmem:[#allocation2 + $0x358] sm:$0xff] %v602_v43 }
 0x19e   :  { %605 = vst [vmem:[#allocation2 + $0x360] sm:$0xff] %v604_v44 }
 0x19f   :  { %607 = vst [vmem:[#allocation2 + $0x368] sm:$0xff] %v606_v45 }
 0x1a0   :  { %609 = vst [vmem:[#allocation2 + $0x370] sm:$0xff] %v608_v46 }
 0x1a1   :  { %611 = vst [vmem:[#allocation2 + $0x378] sm:$0xff] %v610_v47 }
 0x1a2   :  { %613 = vst [vmem:[#allocation2 + $0x380] sm:$0xff] %v612_v48 }
 0x1a3   :  { %615 = vst [vmem:[#allocation2 + $0x388] sm:$0xff] %v614_v49 }
 0x1a4   :  { %617 = vst [vmem:[#allocation2 + $0x390] sm:$0xff] %v616_v50 }
 0x1a5   :  { %619 = vst [vmem:[#allocation2 + $0x398] sm:$0xff] %v618_v51 }
 0x1a6   :  { %621 = vst [vmem:[#allocation2 + $0x3a0] sm:$0xff] %v620_v52 }
 0x1a7   :  { %623 = vst [vmem:[#allocation2 + $0x3a8] sm:$0xff] %v622_v53 }
 0x1a8   :  { %625 = vst [vmem:[#allocation2 + $0x3b0] sm:$0xff] %v624_v54 }
 0x1a9   :  { %627 = vst [vmem:[#allocation2 + $0x3b8] sm:$0xff] %v626_v55 }
 0x1aa   :  { %629 = vst [vmem:[#allocation2 + $0x3c0] sm:$0xff] %v628_v56 }
 0x1ab   :  { %631 = vst [vmem:[#allocation2 + $0x3c8] sm:$0xff] %v630_v57 }
 0x1ac   :  { %633 = vst [vmem:[#allocation2 + $0x3d0] sm:$0xff] %v632_v58 }
 0x1ad   :  { %635 = vst [vmem:[#allocation2 + $0x3d8] sm:$0xff] %v634_v59 }
 0x1ae   :  { %637 = vst [vmem:[#allocation2 + $0x3e0] sm:$0xff] %v636_v60 }
 0x1af   :  { %639 = vst [vmem:[#allocation2 + $0x3e8] sm:$0xff] %v638_v61 }
 0x1b0   :  { %641 = vst [vmem:[#allocation2 + $0x3f0] sm:$0xff] %v640_v62 }
 0x1b1   :  { %643 = vst [vmem:[#allocation2 + $0x3f8] sm:$0xff] %v642_v63 }
 0x1b2   :  { %649 = vsyncadd [#allocation6], 16384  ;;  %v697_v15 = vpack.c.bf16 %v692_v2, %v692_v2  ;;  %868 = vmatpush.bf16.msra.mxu2 %v7863_v10  ;;  %881 = vmatpush.bf16.msra.mxu3 %v7867_v11  ;;  %vm714_vm0 = vcmask 261120   ;;  %v7826_v16 = vld [vmem:[%s13199_s18] sm:$0xf]  ;;  %s13200_s21 = sld [smem:[#allocation70_spill]] }
 0x1b3   :  { %725 = vmatpush.bf16.msra.mxu0 %v10511_v1  ;;  %v10517_v17 = vld [vmem:[%s13199_s18 + $0x1c] sm:$0xf0]  ;;  %v10513_v18 = vld [vmem:[%s13199_s18 + $0x4] sm:$0xf]  ;;  %v7834_v21 = vld [vmem:[%s13199_s18 + $0x8] sm:$0xf] }
 0x1b4   :  { %v7827_v19 = vor.u32 %v10517_v17, %v7826_v16  ;;  %v7828_v20 = vld [vmem:[%s13199_s18 + $0x20] sm:$0xf0]  ;;  %v10518_v22 = vld [vmem:[%s13199_s18 + $0x24] sm:$0xf0]  ;;  %v10514_v25 = vld [vmem:[%s13199_s18 + $0xc] sm:$0xf] }
 0x1b5   :  { %v7831_v23 = vor.u32 %v10513_v18, %v7828_v20  ;;  %v7835_v24 = vor.u32 %v10518_v22, %v7834_v21  ;;  %v7836_v26 = vld [vmem:[%s13199_s18 + $0x28] sm:$0xf0]  ;;  %v10523_v28 = vld [vmem:[%s13199_s18 + $0x54] sm:$0xf]  ;;  %v7882_v30 = vld [vmem:[%s13199_s18 + $0x58] sm:$0xf] }
 0x1b6   :  { %7823 = vmatmul.msk.bf16.vlgmr.msra.gmra.mxu0 %vm714_vm0, %v697_v15  ;;  %856 = vmatpush.bf16.msra.mxu1 %v7827_v19  ;;  %v7839_v27 = vor.u32 %v10514_v25, %v7836_v26  ;;  %v7876_v29 = vld [vmem:[%s13199_s18 + $0x70] sm:$0xf0]  ;;  %v10528_v32 = vld [vmem:[%s13199_s18 + $0x74] sm:$0xf0]  ;;  %v7874_v36 = vld [vmem:[%s13199_s18 + $0x50] sm:$0xf] }
 0x1b7   :  { %894 = vmatpush.bf16.msrb.mxu0 %v7871_v14  ;;  %869 = vmatpush.bf16.msra.mxu2 %v7831_v23  ;;  %v7879_v31 = vor.u32 %v10523_v28, %v7876_v29  ;;  %v7883_v33 = vor.u32 %v10528_v32, %v7882_v30  ;;  %v10515_v34 = vld [vmem:[%s13199_s18 + $0x14] sm:$0xf]  ;;  %v10527_v38 = vld [vmem:[%s13199_s18 + $0x6c] sm:$0xf0]  ;;  %v10524_v39 = vld [vmem:[%s13199_s18 + $0x5c] sm:$0xf] }
 0x1b8   :  { %882 = vmatpush.bf16.msra.mxu3 %v7835_v24  ;;  %v7844_v35 = vld [vmem:[%s13199_s18 + $0x30] sm:$0xf0]  ;;  %v7884_v40 = vld [vmem:[%s13199_s18 + $0x78] sm:$0xf0]  ;;  %v7875_v41 = vor.u32 %v10527_v38, %v7874_v36  ;;  %v7850_v43 = vld [vmem:[%s13199_s18 + $0x18] sm:$0xf] }
 0x1b9   :  { %v7847_v37 = vor.u32 %v10515_v34, %v7844_v35  ;;  %v7887_v42 = vor.u32 %v10524_v39, %v7884_v40  ;;  %v10520_v44 = vld [vmem:[%s13199_s18 + $0x34] sm:$0xf0]  ;;  %v7842_v45 = vld [vmem:[%s13199_s18 + $0x10] sm:$0xf]  ;;  %v10516_v48 = vld [vmem:[%s13199_s18 + $0x1c] sm:$0xf] }
 0x1ba   :  { %v7851_v46 = vor.u32 %v10520_v44, %v7850_v43  ;;  %v10519_v47 = vld [vmem:[%s13199_s18 + $0x2c] sm:$0xf0]  ;;  %v7852_v49 = vld [vmem:[%s13199_s18 + $0x38] sm:$0xf0]  ;;  %907 = vmatpush.bf16.msrb.mxu1 %v7875_v41  ;;  %v11233_v52 = vld [vmem:[#allocation11] ss:$0 sm:$0xff] }
 0x1bb   :  { %895 = vmatpush.bf16.msrb.mxu0 %v7839_v27  ;;  %920 = vmatpush.bf16.msrb.mxu2 %v7879_v31  ;;  %v7843_v50 = vor.u32 %v10519_v47, %v7842_v45  ;;  %v7855_v51 = vor.u32 %v10516_v48, %v7852_v49  ;;  %v10536_v56 = vld [vmem:[%s13200_s21 + $0x38] sm:$0xff]  ;;  %v10535_v60 = vld [vmem:[%s13200_s21 + $0x30] sm:$0xff]  ;;  %v10534_v1 = vld [vmem:[%s13200_s21 + $0x28] sm:$0xff]  ;;  %s13201_s30 = sld [smem:[#allocation60_spill]]  ;;  %vm953_vm1 = vcmask 1041408   ;;  %vm13179_vm2 = vcmask 1040384  }
 0x1bc   :  { %933 = vmatpush.bf16.msrb.mxu3 %v7883_v33  ;;  %v10560_v57 = vld [vmem:[%s13200_s21 + $0xf8] sm:$0xff]  ;;  %v10559_v61 = vld [vmem:[%s13200_s21 + $0xf0] sm:$0xff]  ;;  %v10558_v2 = vld [vmem:[%s13200_s21 + $0xe8] sm:$0xff]  ;;  %s13202_s28 = sld [smem:[#allocation62_spill]]  ;;  %vm1901_vm3 = vcmask 523264   ;;  %s11902_s2 = smov [#allocation3]  }
 0x1bd   :  { %v10544_v58 = vld [vmem:[%s13200_s21 + $0x78] sm:$0xff]  ;;  %v10543_v63 = vld [vmem:[%s13200_s21 + $0x70] sm:$0xff]  ;;  %v10542_v3 = vld [vmem:[%s13200_s21 + $0x68] sm:$0xff]  ;;  %s660_s9 = sshll.u32 %s11902_s2, 4  ;;  %s661_s9 = int_to_ptr.vmem [resolvable:$true] %s660_s9 }
 0x1be   :  { %908 = vmatpush.bf16.msrb.mxu1 %v7843_v50  ;;  %v10552_v59 = vld [vmem:[%s13200_s21 + $0xb8] sm:$0xff]  ;;  %v10551_v0 = vld [vmem:[%s13200_s21 + $0xb0] sm:$0xff]  ;;  %v10550_v4 = vld [vmem:[%s13200_s21 + $0xa8] sm:$0xff] }
 0x1bf   :  { %946 = vmatpush.bf16.msra.mxu0 %v7887_v42  ;;  %921 = vmatpush.bf16.msrb.mxu2 %v7847_v37  ;;  %v10533_v5 = vld [vmem:[%s13200_s21 + $0x20] sm:$0xff]  ;;  %v10532_v9 = vld [vmem:[%s13200_s21 + $0x18] sm:$0xff]  ;;  %v10531_v13 = vld [vmem:[%s13200_s21 + $0x10] sm:$0xff] }
 0x1c0   :  { %934 = vmatpush.bf16.msrb.mxu3 %v7851_v46  ;;  %v10557_v6 = vld [vmem:[%s13200_s21 + $0xe0] sm:$0xff]  ;;  %v10556_v10 = vld [vmem:[%s13200_s21 + $0xd8] sm:$0xff]  ;;  %v10555_v14 = vld [vmem:[%s13200_s21 + $0xd0] sm:$0xff] }
 0x1c1   :  { %v10541_v7 = vld [vmem:[%s13200_s21 + $0x60] sm:$0xff]  ;;  %v10540_v11 = vld [vmem:[%s13200_s21 + $0x58] sm:$0xff]  ;;  %v10530_v15 = vld [vmem:[%s13200_s21 + $0x8] sm:$0xff] }
 0x1c2   :  { %v10549_v8 = vld [vmem:[%s13200_s21 + $0xa0] sm:$0xff]  ;;  %v10548_v12 = vld [vmem:[%s13200_s21 + $0x98] sm:$0xff]  ;;  %v10554_v16 = vld [vmem:[%s13200_s21 + $0xc8] sm:$0xff]  ;;  %s658_s1 = sshll.u32 %s13202_s28, 4  ;;  %s11750_s17 = scalar_lea.hbm %s13202_s28, 256  ;;  %s659_s1 = int_to_ptr.hbm [resolvable:$true] %s658_s1 }
 0x1c3   :  { %947 = vmatpush.bf16.msra.mxu0 %v7855_v51  ;;  %v10539_v17 = vld [vmem:[%s13200_s21 + $0x50] sm:$0xff]  ;;  %v10529_v19 = vld [vmem:[%s13200_s21] sm:$0xff]  ;;  %v10568_v21 = vld [vmem:[%s13200_s21 + $0x138] sm:$0xff]  ;;  %s11746_s6 = sshra.s32 %s659_s1, 4  ;;  %s11747_s6 = int_to_ptr.hbm [resolvable:$true] %s11746_s6 }
 0x1c4   :  { %v10547_v18 = vld [vmem:[%s13200_s21 + $0x90] sm:$0xff]  ;;  %v10553_v20 = vld [vmem:[%s13200_s21 + $0xc0] sm:$0xff]  ;;  %v10592_v22 = vld [vmem:[%s13200_s21 + $0x1f8] sm:$0xff]  ;;  %s11748_s4 = scalar_lea.hbm %s11747_s6, 256  ;;  %p11751_p7 = scmp.lt.s32.totalorder %s11747_s6, %s13202_s28 }
 0x1c5   :  { %v10538_v23 = vld [vmem:[%s13200_s21 + $0x48] sm:$0xff]  ;;  %v10567_v25 = vld [vmem:[%s13200_s21 + $0x130] sm:$0xff]  ;;  %v10537_v27 = vld [vmem:[%s13200_s21 + $0x40] sm:$0xff]  ;;  %p11749_p6 = scmp.ne.s32.totalorder %s11747_s6, %s11748_s4  ;;  %p11752_p8 = scmp.lt.s32.totalorder %s11750_s17, %s11748_s4 }
 0x1c6   :  { %v10546_v24 = vld [vmem:[%s13200_s21 + $0x88] sm:$0xff]  ;;  %v10591_v26 = vld [vmem:[%s13200_s21 + $0x1f0] sm:$0xff]  ;;  %v10545_v28 = vld [vmem:[%s13200_s21 + $0x80] sm:$0xff] }
 0x1c7   :  { %v10576_v29 = vld [vmem:[%s13200_s21 + $0x178] sm:$0xff]  ;;  %v10566_v31 = vld [vmem:[%s13200_s21 + $0x128] sm:$0xff]  ;;  %v10575_v33 = vld [vmem:[%s13200_s21 + $0x170] sm:$0xff]  ;;  %p11753_p9 = por %p11752_p8, %p11751_p7 }
 0x1c8   :  { %v10584_v30 = vld [vmem:[%s13200_s21 + $0x1b8] sm:$0xff]  ;;  %v10590_v32 = vld [vmem:[%s13200_s21 + $0x1e8] sm:$0xff]  ;;  %v10583_v34 = vld [vmem:[%s13200_s21 + $0x1b0] sm:$0xff] }
 0x1c9   :  { %v10565_v35 = vld [vmem:[%s13200_s21 + $0x120] sm:$0xff]  ;;  %v10574_v37 = vld [vmem:[%s13200_s21 + $0x168] sm:$0xff]  ;;  %v10564_v40 = vld [vmem:[%s13200_s21 + $0x118] sm:$0xff]  ;;  %p11754_p10 = pnand %p11753_p9, %p11749_p6 }
 0x1ca   :  { %v10589_v36 = vld [vmem:[%s13200_s21 + $0x1e0] sm:$0xff]  ;;  %v10582_v38 = vld [vmem:[%s13200_s21 + $0x1a8] sm:$0xff]  ;;  %v10588_v41 = vld [vmem:[%s13200_s21 + $0x1d8] sm:$0xff] }
 0x1cb   :  { %v12376_v39 = vld [vmem:[%s13201_s30] sm:$0xff]  ;;  %v10563_v46 = vld [vmem:[%s13200_s21 + $0x110] sm:$0xff] }
 0x1cc   :  { %v10573_v42 = vld [vmem:[%s13200_s21 + $0x160] sm:$0xff]  ;;  %v750_v44 = vperm.slane %v12376_v39, 0  ;;  %v753_v45 = vperm.slane %v12376_v39, 3  ;;  %v10587_v47 = vld [vmem:[%s13200_s21 + $0x1d0] sm:$0xff] }
 0x1cd   :  { %v10581_v43 = vld [vmem:[%s13200_s21 + $0x1a0] sm:$0xff] }
 0x233   :  { %v727_v53 = vpop.f32.mrf.mxu0 }
 0x234   :  { %v728_v54 = vadd.f32 %v11233_v52, %v727_v53 }
 0x236   :  { %v12311_v55 = vpack.c.bf16 %v728_v54, %v728_v54  ;;  %v751_v54 = vperm.slane %v12376_v39, 1 }
 0x238   :  { %7888 = vmatmul.msk.bf16.vlgmr.msra.gmra.mxu1 %vm714_vm0, %v12311_v55  ;;  %7889 = vmatmul.msk.bf16.vlgmr.msra.gmra.mxu2 %vm714_vm0, %v12311_v55 }
 0x239   :  { %7890 = vmatmul.msk.bf16.vlgmr.msra.gmra.mxu3 %vm714_vm0, %v12311_v55  ;;  %7891 = vmatmul.msk.bf16.vlgmr.msrb.gmra.mxu0 %vm714_vm0, %v12311_v55 }
 0x23a   :  { %1603 = vmatpush.bf16.msra.mxu1 %v10536_v56  ;;  %1642 = vmatpush.bf16.msrb.mxu0 %v10560_v57 }
 0x23b   :  { %v729_v62 = vpop.f32.mrf.mxu0  ;;  %1616 = vmatpush.bf16.msra.mxu2 %v10544_v58  ;;  %1629 = vmatpush.bf16.msra.mxu3 %v10552_v59  ;;  %v752_v59 = vperm.slane %v12376_v39, 2 }
 0x23c   :  { %v10572_v62 = vld [vmem:[%s13200_s21 + $0x158] sm:$0xff] }
 0x23e   :  { %1604 = vmatpush.bf16.msra.mxu1 %v10535_v60  ;;  %1643 = vmatpush.bf16.msrb.mxu0 %v10559_v61 }
 0x23f   :  { %1617 = vmatpush.bf16.msra.mxu2 %v10543_v63  ;;  %1630 = vmatpush.bf16.msra.mxu3 %v10551_v0  ;;  %v10580_v63 = vld [vmem:[%s13200_s21 + $0x198] sm:$0xff] }
 0x242   :  { %1605 = vmatpush.bf16.msra.mxu1 %v10534_v1  ;;  %1644 = vmatpush.bf16.msrb.mxu0 %v10558_v2 }
 0x243   :  { %1618 = vmatpush.bf16.msra.mxu2 %v10542_v3  ;;  %1631 = vmatpush.bf16.msra.mxu3 %v10550_v4 }
 0x246   :  { %1606 = vmatpush.bf16.msra.mxu1 %v10533_v5  ;;  %1645 = vmatpush.bf16.msrb.mxu0 %v10557_v6 }
 0x247   :  { %1619 = vmatpush.bf16.msra.mxu2 %v10541_v7  ;;  %1632 = vmatpush.bf16.msra.mxu3 %v10549_v8  ;;  %v754_v8 = vperm.slane %v12376_v39, 4 }
 0x248   :  { %7892 = vmatmul.msk.bf16.vlgmr.msrb.gmra.mxu1 %vm714_vm0, %v12311_v55  ;;  %7893 = vmatmul.msk.bf16.vlgmr.msrb.gmra.mxu2 %vm714_vm0, %v12311_v55 }
 0x249   :  { %7894 = vmatmul.msk.bf16.vlgmr.msrb.gmra.mxu3 %vm714_vm0, %v12311_v55  ;;  %7895 = vmatmul.msk.bf16.vlgmr.msra.gmra.mxu0 %vm714_vm0, %v12311_v55 }
 0x24a   :  { %1607 = vmatpush.bf16.msra.mxu1 %v10532_v9  ;;  %1646 = vmatpush.bf16.msrb.mxu0 %v10556_v10  ;;  %v10562_v9 = vld [vmem:[%s13200_s21 + $0x108] sm:$0xff] }
 0x24b   :  { %1620 = vmatpush.bf16.msra.mxu2 %v10540_v11  ;;  %1633 = vmatpush.bf16.msra.mxu3 %v10548_v12  ;;  %v10586_v10 = vld [vmem:[%s13200_s21 + $0x1c8] sm:$0xff] }
 0x24e   :  { %1608 = vmatpush.bf16.msra.mxu1 %v10531_v13  ;;  %1647 = vmatpush.bf16.msrb.mxu0 %v10555_v14 }
 0x24f   :  { %1621 = vmatpush.bf16.msra.mxu2 %v10539_v17  ;;  %1634 = vmatpush.bf16.msra.mxu3 %v10547_v18 }
 0x252   :  { %1609 = vmatpush.bf16.msra.mxu1 %v10530_v15  ;;  %1648 = vmatpush.bf16.msrb.mxu0 %v10554_v16  ;;  %v757_v15 = vperm.slane %v12376_v39, 7 }
 0x253   :  { %1622 = vmatpush.bf16.msra.mxu2 %v10538_v23  ;;  %1635 = vmatpush.bf16.msra.mxu3 %v10546_v24 }
 0x256   :  { %1610 = vmatpush.bf16.msra.mxu1 %v10529_v19  ;;  %1649 = vmatpush.bf16.msrb.mxu0 %v10553_v20 }
 0x257   :  { %1623 = vmatpush.bf16.msra.mxu2 %v10537_v27  ;;  %1636 = vmatpush.bf16.msra.mxu3 %v10545_v28  ;;  %v10561_v27 = vld [vmem:[%s13200_s21 + $0x100] sm:$0xff] }
 0x258   :  { %v10585_v28 = vld [vmem:[%s13200_s21 + $0x1c0] sm:$0xff] }
 0x25a   :  { %1655 = vmatpush.bf16.msrb.mxu1 %v10568_v21  ;;  %1694 = vmatpush.bf16.msra.mxu0 %v10592_v22  ;;  %v10571_v21 = vld [vmem:[%s13200_s21 + $0x150] sm:$0xff] }
 0x25b   :  { %1668 = vmatpush.bf16.msrb.mxu2 %v10576_v29  ;;  %1681 = vmatpush.bf16.msrb.mxu3 %v10584_v30  ;;  %v10579_v22 = vld [vmem:[%s13200_s21 + $0x190] sm:$0xff] }
 0x25e   :  { %1656 = vmatpush.bf16.msrb.mxu1 %v10567_v25  ;;  %1695 = vmatpush.bf16.msra.mxu0 %v10591_v26 }
 0x25f   :  { %1669 = vmatpush.bf16.msrb.mxu2 %v10575_v33  ;;  %1682 = vmatpush.bf16.msrb.mxu3 %v10583_v34  ;;  %v10570_v33 = vld [vmem:[%s13200_s21 + $0x148] sm:$0xff] }
 0x260   :  { %v10578_v34 = vld [vmem:[%s13200_s21 + $0x188] sm:$0xff] }
 0x262   :  { %1657 = vmatpush.bf16.msrb.mxu1 %v10566_v31  ;;  %1696 = vmatpush.bf16.msra.mxu0 %v10590_v32 }
 0x263   :  { %1670 = vmatpush.bf16.msrb.mxu2 %v10574_v37  ;;  %1683 = vmatpush.bf16.msrb.mxu3 %v10582_v38 }
 0x266   :  { %1658 = vmatpush.bf16.msrb.mxu1 %v10565_v35  ;;  %1697 = vmatpush.bf16.msra.mxu0 %v10589_v36 }
 0x267   :  { %1671 = vmatpush.bf16.msrb.mxu2 %v10573_v42  ;;  %1684 = vmatpush.bf16.msrb.mxu3 %v10581_v43 }
 0x26a   :  { %1659 = vmatpush.bf16.msrb.mxu1 %v10564_v40  ;;  %1698 = vmatpush.bf16.msra.mxu0 %v10588_v41 }
 0x26b   :  { %1672 = vmatpush.bf16.msrb.mxu2 %v10572_v62  ;;  %1685 = vmatpush.bf16.msrb.mxu3 %v10580_v63 }
 0x26e   :  { %1660 = vmatpush.bf16.msrb.mxu1 %v10563_v46  ;;  %1699 = vmatpush.bf16.msra.mxu0 %v10587_v47 }
 0x26f   :  { %1673 = vmatpush.bf16.msrb.mxu2 %v10571_v21  ;;  %1686 = vmatpush.bf16.msrb.mxu3 %v10579_v22 }
 0x272   :  { %1661 = vmatpush.bf16.msrb.mxu1 %v10562_v9  ;;  %1700 = vmatpush.bf16.msra.mxu0 %v10586_v10 }
 0x273   :  { %1674 = vmatpush.bf16.msrb.mxu2 %v10570_v33  ;;  %1687 = vmatpush.bf16.msrb.mxu3 %v10578_v34 }
 0x276   :  { %1662 = vmatpush.bf16.msrb.mxu1 %v10561_v27  ;;  %1701 = vmatpush.bf16.msra.mxu0 %v10585_v28 }
 0x2b5   :  { %v858_v48 = vpop.f32.mrf.mxu1 }
 0x2b6   :  { %v12386_v49 = vadd.f32 %v858_v48, %v750_v44  ;;  %v897_v50 = vpop.f32.mrf.mxu0  ;;  %v755_v48 = vperm.slane %v12376_v39, 5 }
 0x2b7   :  { %v12388_v51 = vadd.f32 %v897_v50, %v753_v45 }
 0x2b8   :  { %v954_v52 = vsel %vm953_vm1, %v12386_v49, 0.0  ;;  %v1010_v53 = vmul.f32 %v12386_v49, %v12386_v49 }
 0x2b9   :  { %v955_v56 = vrot.slane %v954_v52, 4  ;;  %v975_v57 = vsel %vm953_vm1, %v12388_v51, 0.0  ;;  %v1013_v58 = vmul.f32 %v12388_v51, %v12388_v51 }
 0x2ba   :  { %v1018_v60 = vsel %vm953_vm1, %v1010_v53, 0.0  ;;  %v976_v61 = vrot.slane %v975_v57, 4 }
 0x2bb   :  { %v956_v0 = vadd.f32 %v955_v56, %v954_v52  ;;  %v1019_v1 = vrot.slane %v1018_v60, 4  ;;  %v1039_v2 = vsel %vm953_vm1, %v1013_v58, 0.0  ;;  %v871_v3 = vpop.f32.mrf.mxu2  ;;  %v756_v56 = vperm.slane %v12376_v39, 6  ;;  %v10577_v58 = vld [vmem:[%s13200_s21 + $0x180] sm:$0xff] }
 0x2bc   :  { %v977_v4 = vadd.f32 %v976_v61, %v975_v57  ;;  %v1040_v5 = vrot.slane %v1039_v2, 4  ;;  %v12404_v6 = vadd.f32 %v871_v3, %v751_v54  ;;  %v884_v7 = vpop.f32.mrf.mxu3  ;;  %v10569_v57 = vld [vmem:[%s13200_s21 + $0x140] sm:$0xff]  ;;  %1688 = vmatpush.bf16.msrb.mxu3 %v10577_v58 }
 0x2bd   :  { %v957_v11 = vrot.slane %v956_v0, 2  ;;  %v1020_v12 = vadd.f32 %v1019_v1, %v1018_v60  ;;  %v12409_v13 = vadd.f32 %v884_v7, %v752_v59  ;;  %v860_v14 = vpop.f32.mrf.mxu1  ;;  %1675 = vmatpush.bf16.msrb.mxu2 %v10569_v57 }
 0x2be   :  { %v978_v16 = vrot.slane %v977_v4, 2  ;;  %v1041_v17 = vadd.f32 %v1040_v5, %v1039_v2  ;;  %v961_v18 = vsel %vm953_vm1, %v12404_v6, 0.0  ;;  %v1011_v19 = vmul.f32 %v12404_v6, %v12404_v6  ;;  %v899_v20 = vpop.f32.mrf.mxu0 }
 0x2bf   :  { %v958_v23 = vadd.f32 %v957_v11, %v956_v0  ;;  %v1021_v24 = vrot.slane %v1020_v12, 2  ;;  %v962_v25 = vrot.slane %v961_v18, 4  ;;  %v968_v26 = vsel %vm953_vm1, %v12409_v13, 0.0 }
 0x2c0   :  { %v979_v29 = vadd.f32 %v978_v16, %v977_v4  ;;  %v1042_v30 = vrot.slane %v1041_v17, 2  ;;  %v1025_v31 = vsel %vm953_vm1, %v1011_v19, 0.0  ;;  %v969_v32 = vrot.slane %v968_v26, 4 }
 0x2c1   :  { %v959_v35 = vrot.slane %v958_v23, 1  ;;  %v1022_v36 = vadd.f32 %v1021_v24, %v1020_v12  ;;  %v963_v37 = vadd.f32 %v962_v25, %v961_v18  ;;  %v1026_v38 = vrot.slane %v1025_v31, 4 }
 0x2c2   :  { %v980_v40 = vrot.slane %v979_v29, 1  ;;  %v1043_v41 = vadd.f32 %v1042_v30, %v1041_v17  ;;  %v970_v42 = vadd.f32 %v969_v32, %v968_v26  ;;  %v1012_v43 = vmul.f32 %v12409_v13, %v12409_v13 }
 0x2c3   :  { %v1023_v44 = vrot.slane %v1022_v36, 1  ;;  %v964_v45 = vrot.slane %v963_v37, 2  ;;  %v1027_v46 = vadd.f32 %v1026_v38, %v1025_v31  ;;  %v873_v47 = vpop.f32.mrf.mxu2  ;;  %v960_v0 = vadd.f32 %v959_v35, %v958_v23 }
 0x2c4   :  { %v1044_v50 = vrot.slane %v1043_v41, 1  ;;  %v971_v52 = vrot.slane %v970_v42, 2  ;;  %v1032_v53 = vsel %vm953_vm1, %v1012_v43, 0.0  ;;  %v886_v54 = vpop.f32.mrf.mxu3  ;;  %v981_v1 = vadd.f32 %v980_v40, %v979_v29 }
 0x2c5   :  { %v1024_v59 = vadd.f32 %v1023_v44, %v1022_v36  ;;  %v965_v60 = vadd.f32 %v964_v45, %v963_v37  ;;  %v1028_v61 = vrot.slane %v1027_v46, 2  ;;  %v1033_v62 = vrot.slane %v1032_v53, 4  ;;  %v910_v63 = vpop.f32.mrf.mxu1 }
 0x2c6   :  { %v972_v2 = vadd.f32 %v971_v52, %v970_v42  ;;  %v12434_v3 = vadd.f32 %v910_v63, %v754_v8  ;;  %v949_v4 = vpop.f32.mrf.mxu0  ;;  %v1045_v11 = vadd.f32 %v1044_v50, %v1043_v41 }
 0x2c7   :  { %v966_v5 = vrot.slane %v965_v60, 1  ;;  %v1029_v7 = vadd.f32 %v1028_v61, %v1027_v46  ;;  %v1034_v9 = vadd.f32 %v1033_v62, %v1032_v53  ;;  %v12436_v10 = vadd.f32 %v949_v4, %v757_v15 }
 0x2c8   :  { %v973_v12 = vrot.slane %v972_v2, 1  ;;  %v982_v14 = vsel %vm953_vm1, %v12434_v3, 0.0  ;;  %v1014_v16 = vmul.f32 %v12434_v3, %v12434_v3  ;;  %v1075_v18 = vsel %vm13179_vm2, %v960_v0, %v1024_v59 }
 0x2c9   :  { %v1030_v17 = vrot.slane %v1029_v7, 1  ;;  %v1035_v39 = vrot.slane %v1034_v9, 2  ;;  %v983_v8 = vrot.slane %v982_v14, 4  ;;  %v967_v19 = vadd.f32 %v966_v5, %v965_v60 }
 0x2ca   :  { %v1046_v20 = vsel %vm953_vm1, %v1014_v16, 0.0  ;;  %v1003_v15 = vsel %vm953_vm1, %v12436_v10, 0.0  ;;  %v1017_v21 = vmul.f32 %v12436_v10, %v12436_v10  ;;  %v12448_v22 = vadd.f32 %v973_v12, %v972_v2 }
 0x2cb   :  { %v1036_v23 = vadd.f32 %v1035_v39, %v1034_v9  ;;  %v984_v24 = vadd.f32 %v983_v8, %v982_v14  ;;  %v1047_v25 = vrot.slane %v1046_v20, 4  ;;  %v923_v26 = vpop.f32.mrf.mxu2  ;;  %v1004_v27 = vrot.slane %v1003_v15, 4 }
 0x2cc   :  { %v1067_v28 = vsel %vm953_vm1, %v1017_v21, 0.0  ;;  %v1083_v29 = vpack.c.bf16 %v1075_v18, %v1075_v18  ;;  %v1078_v30 = vsel %vm13179_vm2, %v981_v1, %v1045_v11  ;;  %v936_v31 = vpop.f32.mrf.mxu3  ;;  %v1031_v32 = vadd.f32 %v1030_v17, %v1029_v7 }
 0x2cd   :  { %v985_v33 = vrot.slane %v984_v24, 2  ;;  %v1048_v34 = vadd.f32 %v1047_v25, %v1046_v20  ;;  %v1068_v35 = vrot.slane %v1067_v28, 4  ;;  %v912_v36 = vpop.f32.mrf.mxu1  ;;  %v1005_v37 = vadd.f32 %v1004_v27, %v1003_v15 }
 0x2ce   :  { %1611 = vmatmul.bf16.vlgmr.msra.gmra.mxu1 %v1083_v29  ;;  %v1086_v38 = vpack.c.bf16 %v1078_v30, %v1078_v30  ;;  %v12452_v40 = vadd.f32 %v923_v26, %v755_v48  ;;  %v12454_v41 = vadd.f32 %v936_v31, %v756_v56  ;;  %v951_v42 = vpop.f32.mrf.mxu0  ;;  %v1037_v43 = vrot.slane %v1036_v23, 1 }
 0x2cf   :  { %v986_v44 = vadd.f32 %v985_v33, %v984_v24  ;;  %v1049_v45 = vrot.slane %v1048_v34, 2  ;;  %v1069_v46 = vadd.f32 %v1068_v35, %v1067_v28  ;;  %v1006_v47 = vrot.slane %v1005_v37, 2 }
 0x2d0   :  { %1650 = vmatmul.bf16.vlgmr.msrb.gmra.mxu0 %v1086_v38  ;;  %v989_v50 = vsel %vm953_vm1, %v12452_v40, 0.0  ;;  %v1015_v52 = vmul.f32 %v12452_v40, %v12452_v40  ;;  %v996_v53 = vsel %vm953_vm1, %v12454_v41, 0.0  ;;  %v1016_v61 = vmul.f32 %v12454_v41, %v12454_v41 }
 0x2d1   :  { %v987_v48 = vrot.slane %v986_v44, 1  ;;  %v1050_v54 = vadd.f32 %v1049_v45, %v1048_v34  ;;  %v1070_v56 = vrot.slane %v1069_v46, 2  ;;  %v990_v57 = vrot.slane %v989_v50, 4 }
 0x2d2   :  { %v1007_v58 = vadd.f32 %v1006_v47, %v1005_v37  ;;  %v1053_v59 = vsel %vm953_vm1, %v1015_v52, 0.0  ;;  %v997_v60 = vrot.slane %v996_v53, 4  ;;  %v1038_v62 = vadd.f32 %v1037_v43, %v1036_v23 }
 0x2d3   :  { %v1051_v63 = vrot.slane %v1050_v54, 1  ;;  %v1071_v0 = vadd.f32 %v1070_v56, %v1069_v46  ;;  %v991_v1 = vadd.f32 %v990_v57, %v989_v50  ;;  %v925_v2 = vpop.f32.mrf.mxu2  ;;  %v1054_v5 = vrot.slane %v1053_v59, 4  ;;  %v10622_v57 = vld [vmem:[#allocation31 + $0xe4] sm:$0xf0] }
 0x2d4   :  { %v1008_v4 = vrot.slane %v1007_v58, 1  ;;  %v998_v7 = vadd.f32 %v997_v60, %v996_v53  ;;  %v1060_v9 = vsel %vm953_vm1, %v1016_v61, 0.0  ;;  %v938_v11 = vpop.f32.mrf.mxu3  ;;  %v988_v39 = vadd.f32 %v987_v48, %v986_v44  ;;  %v10617_v53 = vld [vmem:[#allocation31 + $0xc4] sm:$0xf] }
 0x2d5   :  { %v1052_v12 = vadd.f32 %v1051_v63, %v1050_v54  ;;  %v1072_v14 = vrot.slane %v1071_v0, 1  ;;  %v992_v16 = vrot.slane %v991_v1, 2  ;;  %v1061_v17 = vrot.slane %v1060_v9, 4  ;;  %v8252_v48 = vld [vmem:[#allocation31 + $0xe0] sm:$0xf0] }
 0x2d6   :  { %v1055_v8 = vadd.f32 %v1054_v5, %v1053_v59  ;;  %v999_v18 = vrot.slane %v998_v7, 2  ;;  %v1076_v20 = vsel %vm13179_vm2, %v967_v19, %v1031_v32  ;;  %v1009_v15 = vadd.f32 %v1008_v4, %v1007_v58  ;;  %v8258_v54 = vld [vmem:[#allocation31 + $0xc8] sm:$0xf]  ;;  %v8250_v58 = vld [vmem:[#allocation31 + $0xc0] sm:$0xf] }
 0x2d7   :  { %v1073_v21 = vadd.f32 %v1072_v14, %v1071_v0  ;;  %v1062_v23 = vadd.f32 %v1061_v17, %v1060_v9  ;;  %v1084_v24 = vpack.c.bf16 %v1076_v20, %v1076_v20  ;;  %v993_v25 = vadd.f32 %v992_v16, %v991_v1  ;;  %v10621_v59 = vld [vmem:[#allocation31 + $0xdc] sm:$0xf0]  ;;  %v8260_v63 = vld [vmem:[#allocation31 + $0xe8] sm:$0xf0]  ;;  %v10609_v0 = vld [vmem:[#allocation31 + $0x84] sm:$0xf] }
 0x2d8   :  { %v1056_v26 = vrot.slane %v1055_v8, 2  ;;  %v1077_v27 = vsel %vm13179_vm2, %v12448_v22, %v1038_v62  ;;  %v1079_v28 = vsel %vm13179_vm2, %v988_v39, %v1052_v12  ;;  %v1000_v33 = vadd.f32 %v999_v18, %v998_v7  ;;  %v10618_v62 = vld [vmem:[#allocation31 + $0xcc] sm:$0xf]  ;;  %v8220_v2 = vld [vmem:[#allocation31 + $0xa0] sm:$0xf0] }
 0x2d9   :  { %v1063_v29 = vrot.slane %v1062_v23, 2  ;;  %1624 = vmatmul.bf16.vlgmr.msra.gmra.mxu2 %v1084_v24  ;;  %v1085_v30 = vpack.c.bf16 %v1077_v27, %v1077_v27  ;;  %v1087_v34 = vpack.c.bf16 %v1079_v28, %v1079_v28  ;;  %v1082_v35 = vsel %vm13179_vm2, %v1009_v15, %v1073_v21  ;;  %v8226_v4 = vld [vmem:[#allocation31 + $0x88] sm:$0xf]  ;;  %v8218_v12 = vld [vmem:[#allocation31 + $0x80] sm:$0xf] }
 0x2da   :  { %v1057_v31 = vadd.f32 %v1056_v26, %v1055_v8  ;;  %v994_v32 = vrot.slane %v993_v25, 1  ;;  %v1090_v37 = vpack.c.bf16 %v1082_v35, %v1082_v35  ;;  %v1001_v43 = vrot.slane %v1000_v33, 1  ;;  %v10614_v5 = vld [vmem:[#allocation31 + $0xa4] sm:$0xf0]  ;;  %v10613_v14 = vld [vmem:[#allocation31 + $0x9c] sm:$0xf0] }
 0x2db   :  { %v1064_v19 = vadd.f32 %v1063_v29, %v1062_v23  ;;  %1637 = vmatmul.bf16.vlgmr.msra.gmra.mxu3 %v1085_v30  ;;  %v8255_v56 = vor.u32 %v10617_v53, %v8252_v48  ;;  %v8259_v60 = vor.u32 %v10622_v57, %v8258_v54  ;;  %v8251_v61 = vor.u32 %v10621_v59, %v8250_v58  ;;  %v10610_v16 = vld [vmem:[#allocation31 + $0x8c] sm:$0xf]  ;;  %v10601_v20 = vld [vmem:[#allocation31 + $0x44] sm:$0xf]  ;;  %v8194_v21 = vld [vmem:[#allocation31 + $0x48] sm:$0xf] }
 0x2dc   :  { %v1058_v36 = vrot.slane %v1057_v31, 1  ;;  %v995_v22 = vadd.f32 %v994_v32, %v993_v25  ;;  %v1002_v45 = vadd.f32 %v1001_v43, %v1000_v33  ;;  %v8263_v1 = vor.u32 %v10618_v62, %v8260_v63  ;;  %v8228_v39 = vld [vmem:[#allocation31 + $0xa8] sm:$0xf0]  ;;  %v8188_v15 = vld [vmem:[#allocation31 + $0x60] sm:$0xf0] }
 0x2dd   :  { %v1065_v38 = vrot.slane %v1064_v19, 1  ;;  %1922 = vmatpush.bf16.msra.mxu2 %v8255_v56  ;;  %1935 = vmatpush.bf16.msra.mxu3 %v8259_v60  ;;  %v8223_v7 = vor.u32 %v10609_v0, %v8220_v2  ;;  %v8227_v9 = vor.u32 %v10614_v5, %v8226_v4  ;;  %v8219_v17 = vor.u32 %v10613_v14, %v8218_v12  ;;  %v10606_v24 = vld [vmem:[#allocation31 + $0x64] sm:$0xf0]  ;;  %v8186_v25 = vld [vmem:[#allocation31 + $0x40] sm:$0xf] }
 0x2de   :  { %v1059_v42 = vadd.f32 %v1058_v36, %v1057_v31  ;;  %1663 = vmatmul.bf16.vlgmr.msrb.gmra.mxu1 %v1087_v34  ;;  %1948 = vmatpush.bf16.msrb.mxu0 %v8263_v1  ;;  %v8231_v18 = vor.u32 %v10610_v16, %v8228_v39  ;;  %v8191_v23 = vor.u32 %v10601_v20, %v8188_v15  ;;  %v10605_v26 = vld [vmem:[#allocation31 + $0x5c] sm:$0xf0]  ;;  %v10602_v29 = vld [vmem:[#allocation31 + $0x4c] sm:$0xf]  ;;  %v10593_v34 = vld [vmem:[#allocation31 + $0x4] sm:$0xf] }
 0x2df   :  { %v1066_v44 = vadd.f32 %v1065_v38, %v1064_v19  ;;  %1909 = vmatpush.bf16.msra.mxu1 %v8251_v61  ;;  %v8195_v27 = vor.u32 %v10606_v24, %v8194_v21  ;;  %v8187_v28 = vor.u32 %v10605_v26, %v8186_v25  ;;  %v8196_v30 = vld [vmem:[#allocation31 + $0x68] sm:$0xf0]  ;;  %v8156_v35 = vld [vmem:[#allocation31 + $0x20] sm:$0xf0]  ;;  %v8162_v19 = vld [vmem:[#allocation31 + $0x8] sm:$0xf] }
 0x2e0   :  { %1702 = vmatmul.bf16.vlgmr.msra.gmra.mxu0 %v1090_v37  ;;  %v1080_v46 = vsel %vm13179_vm2, %v995_v22, %v1059_v42  ;;  %v8199_v31 = vor.u32 %v10602_v29, %v8196_v30  ;;  %v8159_v32 = vor.u32 %v10593_v34, %v8156_v35  ;;  %v10598_v36 = vld [vmem:[#allocation31 + $0x24] sm:$0xf0]  ;;  %v8154_v37 = vld [vmem:[#allocation31] sm:$0xf]  ;;  %v10624_v48 = vld [vmem:[#allocation31 + $0xf4] sm:$0xf0] }
 0x2e1   :  { %v1081_v47 = vsel %vm13179_vm2, %v1002_v45, %v1066_v44  ;;  %v1088_v50 = vpack.c.bf16 %v1080_v46, %v1080_v46  ;;  %1923 = vmatpush.bf16.msra.mxu2 %v8223_v7  ;;  %1936 = vmatpush.bf16.msra.mxu3 %v8227_v9  ;;  %v10597_v38 = vld [vmem:[#allocation31 + $0x1c] sm:$0xf0]  ;;  %v8163_v43 = vor.u32 %v10598_v36, %v8162_v19  ;;  %v10594_v44 = vld [vmem:[#allocation31 + $0xc] sm:$0xf]  ;;  %v8266_v54 = vld [vmem:[#allocation31 + $0xd0] sm:$0xf] }
 0x2e2   :  { %v1089_v52 = vpack.c.bf16 %v1081_v47, %v1081_v47  ;;  %1949 = vmatpush.bf16.msrb.mxu0 %v8231_v18  ;;  %v8155_v22 = vor.u32 %v10597_v38, %v8154_v37  ;;  %v8164_v45 = vld [vmem:[#allocation31 + $0x28] sm:$0xf0]  ;;  %v10619_v47 = vld [vmem:[#allocation31 + $0xd4] sm:$0xf]  ;;  %v10623_v56 = vld [vmem:[#allocation31 + $0xec] sm:$0xf0] }
 0x2e3   :  { %1910 = vmatpush.bf16.msra.mxu1 %v8219_v17  ;;  %v8167_v46 = vor.u32 %v10594_v44, %v8164_v45  ;;  %v8267_v58 = vor.u32 %v10623_v56, %v8266_v54  ;;  %v10620_v59 = vld [vmem:[#allocation31 + $0xdc] sm:$0xf]  ;;  %v10611_v61 = vld [vmem:[#allocation31 + $0x94] sm:$0xf]  ;;  %v8242_v0 = vld [vmem:[#allocation31 + $0x98] sm:$0xf] }
 0x2e4   :  { %v8276_v60 = vld [vmem:[#allocation31 + $0xf8] sm:$0xf0]  ;;  %v8236_v63 = vld [vmem:[#allocation31 + $0xb0] sm:$0xf0]  ;;  %v10616_v1 = vld [vmem:[#allocation31 + $0xb4] sm:$0xf0] }
 0x2e5   :  { %1924 = vmatpush.bf16.msra.mxu2 %v8191_v23  ;;  %1937 = vmatpush.bf16.msra.mxu3 %v8195_v27  ;;  %v8279_v62 = vor.u32 %v10620_v59, %v8276_v60  ;;  %v8239_v4 = vor.u32 %v10611_v61, %v8236_v63  ;;  %v8243_v5 = vor.u32 %v10616_v1, %v8242_v0  ;;  %v8234_v7 = vld [vmem:[#allocation31 + $0x90] sm:$0xf]  ;;  %v10612_v12 = vld [vmem:[#allocation31 + $0x9c] sm:$0xf]  ;;  %v10603_v39 = vld [vmem:[#allocation31 + $0x54] sm:$0xf] }
 0x2e6   :  { %1950 = vmatpush.bf16.msrb.mxu0 %v8199_v31  ;;  %v10615_v9 = vld [vmem:[#allocation31 + $0xac] sm:$0xf0]  ;;  %v8244_v17 = vld [vmem:[#allocation31 + $0xb8] sm:$0xf0]  ;;  %v8204_v18 = vld [vmem:[#allocation31 + $0x70] sm:$0xf0] }
 0x2e7   :  { %1911 = vmatpush.bf16.msra.mxu1 %v8187_v28  ;;  %v8235_v16 = vor.u32 %v10615_v9, %v8234_v7  ;;  %v8247_v15 = vor.u32 %v10612_v12, %v8244_v17  ;;  %v8210_v21 = vld [vmem:[#allocation31 + $0x58] sm:$0xf]  ;;  %v8202_v24 = vld [vmem:[#allocation31 + $0x50] sm:$0xf]  ;;  %v8207_v26 = vor.u32 %v10603_v39, %v8204_v18  ;;  %v10604_v28 = vld [vmem:[#allocation31 + $0x5c] sm:$0xf] }
 0x2e8   :  { %v10608_v23 = vld [vmem:[#allocation31 + $0x74] sm:$0xf0]  ;;  %v10607_v27 = vld [vmem:[#allocation31 + $0x6c] sm:$0xf0]  ;;  %v8212_v29 = vld [vmem:[#allocation31 + $0x78] sm:$0xf0] }
 0x2e9   :  { %1676 = vmatmul.bf16.vlgmr.msrb.gmra.mxu2 %v1088_v50  ;;  %1938 = vmatpush.bf16.msra.mxu3 %v8163_v43  ;;  %v8268_v50 = vld [vmem:[#allocation31 + $0xf0] sm:$0xf0]  ;;  %v8211_v31 = vor.u32 %v10608_v23, %v8210_v21  ;;  %v8178_v19 = vld [vmem:[#allocation31 + $0x18] sm:$0xf]  ;;  %v8170_v37 = vld [vmem:[#allocation31 + $0x10] sm:$0xf] }
 0x2ea   :  { %1925 = vmatpush.bf16.msra.mxu2 %v8159_v32  ;;  %1951 = vmatpush.bf16.msrb.mxu0 %v8167_v46  ;;  %v8271_v53 = vor.u32 %v10619_v47, %v8268_v50  ;;  %v10595_v34 = vld [vmem:[#allocation31 + $0x14] sm:$0xf]  ;;  %v8215_v32 = vor.u32 %v10604_v28, %v8212_v29  ;;  %v10600_v36 = vld [vmem:[#allocation31 + $0x34] sm:$0xf0]  ;;  %v10599_v38 = vld [vmem:[#allocation31 + $0x2c] sm:$0xf0] }
 0x2eb   :  { %1689 = vmatmul.bf16.vlgmr.msrb.gmra.mxu3 %v1089_v52  ;;  %1912 = vmatpush.bf16.msra.mxu1 %v8155_v22  ;;  %v8274_v52 = vld [vmem:[#allocation31 + $0xd8] sm:$0xf]  ;;  %v8172_v35 = vld [vmem:[#allocation31 + $0x30] sm:$0xf0]  ;;  %v8180_v43 = vld [vmem:[#allocation31 + $0x38] sm:$0xf0]  ;;  %v8171_v46 = vor.u32 %v10599_v38, %v8170_v37 }
 0x2ec   :  { %v8275_v57 = vor.u32 %v10624_v48, %v8274_v52  ;;  %v8175_v22 = vor.u32 %v10595_v34, %v8172_v35 }
 0x2ee   :  { %1974 = vmatpush.bf16.msrb.mxu2 %v8271_v53  ;;  %1987 = vmatpush.bf16.msrb.mxu3 %v8275_v57 }
 0x2ef   :  { %1961 = vmatpush.bf16.msrb.mxu1 %v8267_v58  ;;  %2000 = vmatpush.bf16.msra.mxu0 %v8279_v62 }
 0x2f2   :  { %1975 = vmatpush.bf16.msrb.mxu2 %v8239_v4  ;;  %1988 = vmatpush.bf16.msrb.mxu3 %v8243_v5 }
 0x2f3   :  { %1962 = vmatpush.bf16.msrb.mxu1 %v8235_v16  ;;  %2001 = vmatpush.bf16.msra.mxu0 %v8247_v15 }
 0x2f6   :  { %1976 = vmatpush.bf16.msrb.mxu2 %v8207_v26  ;;  %1989 = vmatpush.bf16.msrb.mxu3 %v8211_v31 }
 0x2f7   :  { %2002 = vmatpush.bf16.msra.mxu0 %v8215_v32 }
 0x2fa   :  { %1977 = vmatpush.bf16.msrb.mxu2 %v8175_v22 }
 0x34b   :  { %v12473_v11 = vpop.f32.mrf.mxu1 }
 0x34d   :  { %v12475_v8 = vpop.f32.mrf.mxu0 }
 0x353   :  { %v1614_v33 = vpop.f32.mrf.mxu1 }
 0x354   :  { %v8203_v33 = vor.u32 %v10607_v27, %v8202_v24 }
 0x355   :  { %v1653_v42 = vpop.f32.mrf.mxu0 }
 0x356   :  { %v10596_v42 = vld [vmem:[#allocation31 + $0x1c] sm:$0xf]  ;;  %1963 = vmatpush.bf16.msrb.mxu1 %v8203_v33 }
 0x357   :  { %v8183_v50 = vor.u32 %v10596_v42, %v8180_v43 }
 0x359   :  { %2003 = vmatpush.bf16.msra.mxu0 %v8183_v50 }
 0x35a   :  { %1964 = vmatpush.bf16.msrb.mxu1 %v8171_v46 }
 0x35b   :  { %v1664_v2 = vpop.f32.mrf.mxu1 }
 0x35c   :  { %v1625_v14 = vpop.f32.mrf.mxu2 }
 0x35d   :  { %v1703_v20 = vpop.f32.mrf.mxu0  ;;  %v1626_v30 = vadd.f32 %v1625_v14, %v12473_v11  ;;  %v8179_v11 = vor.u32 %v10600_v36, %v8178_v19 }
 0x35e   :  { %v1638_v25 = vpop.f32.mrf.mxu3 }
 0x35f   :  { %v1639_v44 = vadd.f32 %v1638_v25, %v1626_v30  ;;  %1990 = vmatpush.bf16.msrb.mxu3 %v8179_v11 }
 0x361   :  { %v1652_v48 = vadd.f32 %v12475_v8, %v1639_v44 }
 0x363   :  { %v1666_v45 = vpop.f32.mrf.mxu1  ;;  %v1665_v54 = vadd.f32 %v1664_v2, %v1652_v48 }
 0x364   :  { %v1627_v47 = vpop.f32.mrf.mxu2 }
 0x365   :  { %v1705_v52 = vpop.f32.mrf.mxu0 }
 0x366   :  { %v1640_v53 = vpop.f32.mrf.mxu3 }
 0x36c   :  { %v1677_v56 = vpop.f32.mrf.mxu2 }
 0x36d   :  { %v1678_v57 = vadd.f32 %v1677_v56, %v1665_v54 }
 0x36e   :  { %v1690_v58 = vpop.f32.mrf.mxu3 }
 0x36f   :  { %v1691_v59 = vadd.f32 %v1690_v58, %v1678_v57 }
 0x371   :  { %v1704_v60 = vadd.f32 %v1703_v20, %v1691_v59 }
 0x373   :  { %v1707_v61 = vmul.f32 0.03125, %v1704_v60 }
 0x374   :  { %v1679_v62 = vpop.f32.mrf.mxu2 }
 0x375   :  { %v1708_v63 = vpack.c.bf16 %v1707_v61, %v1707_v61 }
 0x376   :  { %v1692_v0 = vpop.f32.mrf.mxu3 }
 0x377   :  { %8280 = vmatmul.msk.bf16.vlgmr.msra.gmra.mxu1 %vm1901_vm3, %v1708_v63  ;;  %8281 = vmatmul.msk.bf16.vlgmr.msra.gmra.mxu2 %vm1901_vm3, %v1708_v63 }
 0x378   :  { %8282 = vmatmul.msk.bf16.vlgmr.msra.gmra.mxu3 %vm1901_vm3, %v1708_v63  ;;  %8283 = vmatmul.msk.bf16.vlgmr.msrb.gmra.mxu0 %vm1901_vm3, %v1708_v63 }
 0x387   :  { %8284 = vmatmul.msk.bf16.vlgmr.msrb.gmra.mxu1 %vm1901_vm3, %v1708_v63  ;;  %8285 = vmatmul.msk.bf16.vlgmr.msrb.gmra.mxu2 %vm1901_vm3, %v1708_v63 }
 0x388   :  { %8286 = vmatmul.msk.bf16.vlgmr.msrb.gmra.mxu3 %vm1901_vm3, %v1708_v63  ;;  %8287 = vmatmul.msk.bf16.vlgmr.msra.gmra.mxu0 %vm1901_vm3, %v1708_v63 }
 0x389   :  { %11757 = shalt.err (!%p11754_p10)  }
 0x38a   :  { %663 = dma.hbm_to_vmem [thread:$0]  %s659_s1, 4096, %s661_s9, [#allocation6 + $0x1] }
 0x38b   :  { %s13203_s7 = sld [smem:[#allocation65_spill]]  ;;  %s11903_s29 = smov [#allocation4]  }
 0x38c   :  { %s13204_s10 = sld [smem:[#allocation69_spill]]  ;;  %s674_s20 = sshll.u32 %s11903_s29, 4  ;;  %s675_s20 = int_to_ptr.vmem [resolvable:$true] %s674_s20 }
 0x391   :  { %s672_s3 = sshll.u32 %s13203_s7, 4  ;;  %s11774_s12 = scalar_lea.hbm %s13203_s7, 1024  ;;  %s673_s3 = int_to_ptr.hbm [resolvable:$true] %s672_s3 }
 0x392   :  { %s686_s0 = sshll.u32 %s13204_s10, 4  ;;  %s11770_s13 = sshra.s32 %s673_s3, 4  ;;  %s11771_s13 = int_to_ptr.hbm [resolvable:$true] %s11770_s13  ;;  %s687_s0 = int_to_ptr.hbm [resolvable:$true] %s686_s0 }
 0x393   :  { %s11772_s11 = scalar_lea.hbm %s11771_s13, 1024  ;;  %p11775_p12 = scmp.lt.s32.totalorder %s11771_s13, %s13203_s7 }
 0x394   :  { %p11773_p11 = scmp.ne.s32.totalorder %s11771_s13, %s11772_s11  ;;  %p11776_p13 = scmp.lt.s32.totalorder %s11774_s12, %s11772_s11 }
 0x396   :  { %p11777_p0 = por %p11776_p13, %p11775_p12 }
 0x398   :  { %p11778_p1 = pnand %p11777_p0, %p11773_p11 }
 0x39a   :  { %11781 = shalt.err (!%p11778_p1)  }
 0x39b   :  { %677 = dma.hbm_to_vmem [thread:$0]  %s673_s3, 16384, %s675_s20, [#allocation6 + $0x2] }
 0x39c   :  { %s11904_s15 = smov [#allocation5]   ;;  %s11794_s16 = sshra.s32 %s687_s0, 4  ;;  %s11795_s16 = int_to_ptr.hbm [resolvable:$true] %s11794_s16 }
 0x39d   :  { %s688_s14 = sshll.u32 %s11904_s15, 4  ;;  %s11796_s22 = scalar_lea.hbm %s11795_s16, 1024  ;;  %s689_s14 = int_to_ptr.vmem [resolvable:$true] %s688_s14 }
 0x39e   :  { %p11797_p2 = scmp.ne.s32.totalorder %s11795_s16, %s11796_s22  ;;  %s11798_s23 = scalar_lea.hbm %s13204_s10, 1024 }
 0x39f   :  { %p11799_p3 = scmp.lt.s32.totalorder %s11795_s16, %s13204_s10  ;;  %p11800_p4 = scmp.lt.s32.totalorder %s11798_s23, %s11796_s22 }
 0x3a1   :  { %p11801_p5 = por %p11800_p4, %p11799_p3 }
 0x3a3   :  { %p11802_p6 = pnand %p11801_p5, %p11797_p2 }
 0x3a5   :  { %11805 = shalt.err (!%p11802_p6)  }
 0x3a6   :  { %691 = dma.hbm_to_vmem [thread:$0]  %s687_s0, 16384, %s689_s14, [#allocation6 + $0x3] }
 0x3f4   :  { %v12488_v8 = vpop.f32.mrf.mxu1 }
 0x3f5   :  { %v2009_v1 = vmul.f32 %v12488_v8, %v12488_v8  ;;  %v12492_v2 = vpop.f32.mrf.mxu0 }
 0x3f6   :  { %v2012_v4 = vmul.f32 %v12492_v2, %v12492_v2 }
 0x3f7   :  { %v2025_v5 = vrot.slane %v2009_v1, 7 }
 0x3f8   :  { %v2028_v7 = vrot.slane %v2012_v4, 7 }
 0x3f9   :  { %v2041_v9 = vsub.f32 %v12488_v8, %v2025_v5 }
 0x3fa   :  { %v2044_v12 = vsub.f32 %v12492_v2, %v2028_v7  ;;  %v12498_v14 = vpop.f32.mrf.mxu2 }
 0x3fb   :  { %v2049_v16 = vmax.f32 %v2041_v9, 0.0  ;;  %v2010_v17 = vmul.f32 %v12498_v14, %v12498_v14  ;;  %v12502_v39 = vpop.f32.mrf.mxu3 }
 0x3fc   :  { %v2052_v18 = vmax.f32 %v2044_v12, 0.0  ;;  %v2011_v20 = vmul.f32 %v12502_v39, %v12502_v39  ;;  %v1916_v15 = vpop.f32.mrf.mxu1 }
 0x3fd   :  { %v2058_v21 = vadd.f32 1e-05, %v2049_v16  ;;  %v2026_v23 = vrot.slane %v2010_v17, 7  ;;  %v1955_v24 = vpop.f32.mrf.mxu0 }
 0x3fe   :  { %v2061_v25 = vadd.f32 1e-05, %v2052_v18  ;;  %v2027_v26 = vrot.slane %v2011_v20, 7 }
 0x3ff   :  { %11234 = vrsqrt.f32 %v2058_v21  ;;  %v2042_v27 = vsub.f32 %v12498_v14, %v2026_v23  ;;  %vm2072_vm4 = vweird.f32 %v2058_v21 }
 0x400   :  { %11236 = vrsqrt.f32 %v2061_v25  ;;  %v2043_v28 = vsub.f32 %v12502_v39, %v2027_v26  ;;  %vm2102_vm8 = vweird.f32 %v2061_v25 }
 0x401   :  { %v2050_v29 = vmax.f32 %v2042_v27, 0.0 }
 0x402   :  { %v2051_v30 = vmax.f32 %v2043_v28, 0.0  ;;  %v1929_v31 = vpop.f32.mrf.mxu2 }
 0x403   :  { %v12508_v33 = vadd.f32 1e-05, %v2050_v29  ;;  %v1942_v34 = vpop.f32.mrf.mxu3 }
 0x404   :  { %v12510_v35 = vadd.f32 1e-05, %v2051_v30  ;;  %v12512_v19 = vpop.f32.mrf.mxu1 }
 0x405   :  { %v11235_v32 = vpop.eup %11234  ;;  %11238 = vrsqrt.f32 %v12508_v33  ;;  %v2013_v36 = vmul.f32 %v12512_v19, %v12512_v19  ;;  %v12517_v37 = vpop.f32.mrf.mxu0  ;;  %vm2082_vm12 = vweird.f32 %v12508_v33 }
 0x406   :  { %v11237_v38 = vpop.eup %11236  ;;  %v2067_v42 = vmul.f32 %v11235_v32, %v2058_v21  ;;  %11240 = vrsqrt.f32 %v12510_v35  ;;  %v2016_v45 = vmul.f32 %v12517_v37, %v12517_v37  ;;  %vm2073_vm5 = vweird.f32 %v11235_v32 }
 0x407   :  { %v2097_v43 = vmul.f32 %v11237_v38, %v2061_v25  ;;  %v2029_v22 = vrot.slane %v2013_v36, 7  ;;  %vm2103_vm6 = vweird.f32 %v11237_v38  ;;  %vm2074_vm7 = vmor %vm2072_vm4, %vm2073_vm5  ;;  %vm2092_vm14 = vweird.f32 %v12510_v35 }
 0x408   :  { %v2068_v44 = vmul.f32 %v11235_v32, %v2067_v42  ;;  %v2032_v50 = vrot.slane %v2016_v45, 7  ;;  %vm2104_vm9 = vmor %vm2102_vm8, %vm2103_vm6 }
 0x409   :  { %v2098_v11 = vmul.f32 %v11237_v38, %v2097_v43  ;;  %v2045_v46 = vsub.f32 %v12512_v19, %v2029_v22 }
 0x40a   :  { %v2069_v47 = vmul.f32 0.5, %v2068_v44  ;;  %v12523_v52 = vpop.f32.mrf.mxu2  ;;  %v2048_v61 = vsub.f32 %v12517_v37, %v2032_v50 }
 0x40b   :  { %v11239_v53 = vpop.eup %11238  ;;  %v2099_v48 = vmul.f32 0.5, %v2098_v11  ;;  %v2053_v54 = vmax.f32 %v2045_v46, 0.0  ;;  %v2014_v56 = vmul.f32 %v12523_v52, %v12523_v52  ;;  %v12527_v57 = vpop.f32.mrf.mxu3 }
 0x40c   :  { %v11241_v58 = vpop.eup %11240  ;;  %v2070_v59 = vsub.f32 1.5, %v2069_v47  ;;  %v2077_v60 = vmul.f32 %v11239_v53, %v12508_v33  ;;  %v1968_v62 = vpop.f32.mrf.mxu1  ;;  %v2056_v9 = vmax.f32 %v2048_v61, 0.0  ;;  %v2015_v27 = vmul.f32 %v12527_v57, %v12527_v57 }
 0x40d   :  { %v2100_v63 = vsub.f32 1.5, %v2099_v48  ;;  %v2087_v0 = vmul.f32 %v11241_v58, %v12510_v35  ;;  %v2062_v1 = vadd.f32 1e-05, %v2053_v54  ;;  %v2007_v4 = vpop.f32.mrf.mxu0  ;;  %v2030_v12 = vrot.slane %v2014_v56, 7 }
 0x40e   :  { %v2071_v5 = vmul.f32 %v11235_v32, %v2070_v59  ;;  %v2078_v7 = vmul.f32 %v11239_v53, %v2077_v60  ;;  %v2065_v15 = vadd.f32 1e-05, %v2056_v9  ;;  %vm2083_vm10 = vweird.f32 %v11239_v53 }
 0x40f   :  { %v2101_v16 = vmul.f32 %v11237_v38, %v2100_v63  ;;  %v2088_v17 = vmul.f32 %v11241_v58, %v2087_v0  ;;  %11242 = vrsqrt.f32 %v2062_v1  ;;  %v2046_v23 = vsub.f32 %v12523_v52, %v2030_v12  ;;  %vm2084_vm13 = vmor %vm2082_vm12, %vm2083_vm10 }
 0x410   :  { %v2075_v18 = vsel %vm2074_vm7, %v11235_v32, %v2071_v5  ;;  %v2079_v20 = vmul.f32 0.5, %v2078_v7  ;;  %11244 = vrsqrt.f32 %v2065_v15  ;;  %vm2093_vm11 = vweird.f32 %v11241_v58 }
 0x411   :  { %2154 = vst [vmem:[#allocation1] sm:$0xff] %v2075_v18  ;;  %v2105_v24 = vsel %vm2104_vm9, %v11237_v38, %v2101_v16  ;;  %v2089_v26 = vmul.f32 0.5, %v2088_v17  ;;  %v2054_v21 = vmax.f32 %v2046_v23, 0.0  ;;  %v2031_v30 = vrot.slane %v2015_v27, 7  ;;  %vm2094_vm15 = vmor %vm2092_vm14, %vm2093_vm11 }
 0x412   :  { %2157 = vst [vmem:[#allocation1 + $0x1b] sm:$0xff] %v2105_v24  ;;  %v2080_v28 = vsub.f32 1.5, %v2079_v20  ;;  %v1981_v25 = vpop.f32.mrf.mxu2  ;;  %vm2112_vm4 = vweird.f32 %v2062_v1  ;;  %vm2142_vm7 = vweird.f32 %v2065_v15  ;;  %v2173_v23 = vperm.slane %v12517_v37, 0 }
 0x413   :  { %v2090_v29 = vsub.f32 1.5, %v2089_v26  ;;  %v1994_v31 = vpop.f32.mrf.mxu3  ;;  %v2063_v32 = vadd.f32 1e-05, %v2054_v21  ;;  %v2047_v42 = vsub.f32 %v12527_v57, %v2031_v30  ;;  %v2171_v24 = vperm.slane %v12523_v52, 0  ;;  %v2057_v26 = vld [vmem:[#allocation13] sm:$0xff]  ;;  %v12543_v21 = vld [vmem:[#allocation14] sm:$0xff] }
 0x414   :  { %v2081_v34 = vmul.f32 %v11239_v53, %v2080_v28  ;;  %v2172_v27 = vperm.slane %v12527_v57, 0  ;;  %v2181_v30 = vsub.f32 %v12436_v10, %v2173_v23  ;;  %v2213_v37 = vperm.slane %v12543_v21, 4 }
 0x415   :  { %v11243_v36 = vpop.eup %11242  ;;  %v2091_v38 = vmul.f32 %v11241_v58, %v2090_v29  ;;  %11246 = vrsqrt.f32 %v2063_v32  ;;  %v2055_v45 = vmax.f32 %v2047_v42, 0.0  ;;  %vm2122_vm10 = vweird.f32 %v2063_v32 }
 0x416   :  { %v2085_v43 = vsel %vm2084_vm13, %v11239_v53, %v2081_v34  ;;  %v2107_v22 = vmul.f32 %v11243_v36, %v2062_v1  ;;  %v11245_v11 = vpop.eup %11244  ;;  %vm2113_vm3 = vweird.f32 %v11243_v36  ;;  %v2179_v31 = vsub.f32 %v12452_v40, %v2171_v24 }
 0x417   :  { %2155 = vst [vmem:[#allocation1 + $0x9] sm:$0xff] %v2085_v43  ;;  %v2095_v44 = vsel %vm2094_vm15, %v11241_v58, %v2091_v38  ;;  %v2137_v47 = vmul.f32 %v11245_v11, %v2065_v15  ;;  %v2064_v33 = vadd.f32 1e-05, %v2055_v45  ;;  %vm2114_vm5 = vmor %vm2112_vm4, %vm2113_vm3  ;;  %vm2143_vm6 = vweird.f32 %v11245_v11 }
 0x418   :  { %2156 = vst [vmem:[#allocation1 + $0x12] sm:$0xff] %v2095_v44  ;;  %v2108_v46 = vmul.f32 %v11243_v36, %v2107_v22  ;;  %vm2144_vm8 = vmor %vm2142_vm7, %vm2143_vm6  ;;  %v2170_v15 = vperm.slane %v12512_v19, 0  ;;  %v2180_v19 = vsub.f32 %v12454_v41, %v2172_v27  ;;  %v2214_v52 = vperm.slane %v12543_v21, 5 }
 0x419   :  { %v2138_v48 = vmul.f32 %v11245_v11, %v2137_v47  ;;  %11248 = vrsqrt.f32 %v2064_v33  ;;  %vm2132_vm13 = vweird.f32 %v2064_v33  ;;  %v2215_v34 = vperm.slane %v12543_v21, 6 }
 0x41a   :  { %v2109_v50 = vmul.f32 0.5, %v2108_v46  ;;  %v2178_v29 = vsub.f32 %v12434_v3, %v2170_v15  ;;  %v2216_v57 = vperm.slane %v12543_v21, 7  ;;  %v2212_v15 = vperm.slane %v12543_v21, 3 }
 0x41b   :  { %v11247_v54 = vpop.eup %11246  ;;  %v2139_v35 = vmul.f32 0.5, %v2138_v48 }
 0x41c   :  { %v2110_v56 = vsub.f32 1.5, %v2109_v50  ;;  %v2117_v59 = vmul.f32 %v11247_v54, %v2063_v32  ;;  %vm2123_vm9 = vweird.f32 %v11247_v54  ;;  %v2166_v50 = vperm.slane %v12488_v8, 0 }
 0x41d   :  { %v2140_v60 = vsub.f32 1.5, %v2139_v35  ;;  %vm2124_vm11 = vmor %vm2122_vm10, %vm2123_vm9  ;;  %v2169_v8 = vperm.slane %v12492_v2, 0 }
 0x41e   :  { %v2111_v53 = vmul.f32 %v11243_v36, %v2110_v56  ;;  %v2118_v58 = vmul.f32 %v11247_v54, %v2117_v59  ;;  %v2168_v56 = vperm.slane %v12502_v39, 0 }
 0x41f   :  { %v11249_v62 = vpop.eup %11248  ;;  %v2141_v63 = vmul.f32 %v11245_v11, %v2140_v60 }
 0x420   :  { %v2115_v61 = vsel %vm2114_vm5, %v11243_v36, %v2111_v53  ;;  %v2119_v0 = vmul.f32 0.5, %v2118_v58  ;;  %v2127_v4 = vmul.f32 %v11249_v62, %v2064_v33  ;;  %vm2133_vm12 = vweird.f32 %v11249_v62 }
 0x421   :  { %2158 = vst [vmem:[#allocation1 + $0x24] sm:$0xff] %v2115_v61  ;;  %v2145_v5 = vsel %vm2144_vm8, %v11245_v11, %v2141_v63  ;;  %vm2134_vm14 = vmor %vm2132_vm13, %vm2133_vm12  ;;  %v2176_v39 = vsub.f32 %v12409_v13, %v2168_v56 }
 0x422   :  { %v2120_v7 = vsub.f32 1.5, %v2119_v0  ;;  %2161 = vst [vmem:[#allocation1 + $0x3f] sm:$0xff] %v2145_v5  ;;  %v2128_v9 = vmul.f32 %v11249_v62, %v2127_v4  ;;  %v2174_v0 = vsub.f32 %v12386_v49, %v2166_v50 }
 0x424   :  { %v2121_v12 = vmul.f32 %v11247_v54, %v2120_v7  ;;  %v2129_v1 = vmul.f32 0.5, %v2128_v9 }
 0x426   :  { %v2125_v16 = vsel %vm2124_vm11, %v11247_v54, %v2121_v12  ;;  %v2130_v17 = vsub.f32 1.5, %v2129_v1  ;;  %v2167_v54 = vperm.slane %v12498_v14, 0  ;;  %v2209_v12 = vperm.slane %v12543_v21, 0 }
 0x427   :  { %2159 = vst [vmem:[#allocation1 + $0x2d] sm:$0xff] %v2125_v16  ;;  %v2210_v1 = vperm.slane %v12543_v21, 1  ;;  %v2211_v16 = vperm.slane %v12543_v21, 2 }
 0x428   :  { %v2131_v18 = vmul.f32 %v11249_v62, %v2130_v17  ;;  %v2175_v14 = vsub.f32 %v12404_v6, %v2167_v54  ;;  %v2177_v6 = vsub.f32 %v12388_v51, %v2169_v8 }
 0x42a   :  { %v2135_v20 = vsel %vm2134_vm14, %v11249_v62, %v2131_v18 }
 0x42b   :  { %2160 = vst [vmem:[#allocation1 + $0x36] sm:$0xff] %v2135_v20 }
 0x432   :  { %v2163_v28 = vld [vmem:[#allocation1 + $0x1] ss:$9 sm:$0xff] }
 0x433   :  { %v12545_v25 = vmul.f32 %v2163_v28, %v2057_v26 }
 0x435   :  { %v2187_v32 = vperm.slane %v12545_v25, 4  ;;  %v2188_v36 = vperm.slane %v12545_v25, 5  ;;  %v2189_v3 = vperm.slane %v12545_v25, 6  ;;  %v2190_v10 = vperm.slane %v12545_v25, 7 }
 0x436   :  { %v2183_v59 = vperm.slane %v12545_v25, 0  ;;  %v2184_v58 = vperm.slane %v12545_v25, 1  ;;  %v2185_v61 = vperm.slane %v12545_v25, 2  ;;  %v2186_v7 = vperm.slane %v12545_v25, 3 }
 0x437   :  { %v2203_v38 = vmul.f32 %v2187_v32, %v2178_v29  ;;  %v2204_v40 = vmul.f32 %v2188_v36, %v2179_v31  ;;  %v2205_v42 = vmul.f32 %v2189_v3, %v2180_v19  ;;  %v2206_v41 = vmul.f32 %v2190_v10, %v2181_v30 }
 0x438   :  { %v2199_v9 = vmul.f32 %v2183_v59, %v2174_v0  ;;  %v2200_v49 = vmul.f32 %v2184_v58, %v2175_v14  ;;  %v2201_v2 = vmul.f32 %v2185_v61, %v2176_v39  ;;  %v2202_v20 = vmul.f32 %v2186_v7, %v2177_v6 }
 0x439   :  { %v2229_v43 = vadd.f32 %v2213_v37, %v2203_v38  ;;  %v2230_v22 = vadd.f32 %v2214_v52, %v2204_v40  ;;  %v2231_v44 = vadd.f32 %v2215_v34, %v2205_v42  ;;  %v2232_v45 = vadd.f32 %v2216_v57, %v2206_v41 }
 0x43a   :  { %v2225_v23 = vadd.f32 %v2209_v12, %v2199_v9  ;;  %v2226_v26 = vadd.f32 %v2210_v1, %v2200_v49  ;;  %v2227_v27 = vadd.f32 %v2211_v16, %v2201_v2 }
 0x43b   :  { %v8288_v11 = vmul.f32 -1.442695, %v2229_v43  ;;  %v8289_v46 = vmul.f32 -1.442695, %v2230_v22  ;;  %v8290_v47 = vmul.f32 -1.442695, %v2231_v44 }
 0x43c   :  { %v8291_v33 = vmul.f32 -1.442695, %v2232_v45 }
 0x43d   :  { %11250 = vpow2.f32 %v8288_v11 }
 0x43e   :  { %11252 = vpow2.f32 %v8289_v46 }
 0x43f   :  { %11254 = vpow2.f32 %v8290_v47 }
 0x440   :  { %11256 = vpow2.f32 %v8291_v33 }
 0x443   :  { %v11251_v48 = vpop.eup %11250 }
 0x444   :  { %v11253_v35 = vpop.eup %11252  ;;  %v2245_v53 = vadd.f32 1.0, %v11251_v48 }
 0x445   :  { %v11255_v60 = vpop.eup %11254  ;;  %v12565_v62 = vadd.f32 1.0, %v11253_v35 }
 0x446   :  { %v11257_v63 = vpop.eup %11256  ;;  %v12569_v4 = vadd.f32 1.0, %v11255_v60  ;;  %11258 = vrcp.f32 %v2245_v53  ;;  %v2258_v13 = vand.u32 2147483647, %v2245_v53  ;;  %v2260_v17 = vand.u32 2147483648, %v2245_v53 }
 0x447   :  { %v12573_v5 = vadd.f32 1.0, %v11257_v63  ;;  %11260 = vrcp.f32 %v12565_v62  ;;  %vm2254_vm15 = vweird.f32 %v2245_v53  ;;  %vm2269_vm3 = vweird.f32 %v12565_v62 }
 0x448   :  { %11262 = vrcp.f32 %v12569_v4  ;;  %v2273_v51 = vand.u32 2147483647, %v12565_v62  ;;  %v2275_v30 = vand.u32 2147483648, %v12565_v62  ;;  %vm12588_vm4 = vcmp.eq.f32.partialorder %v2258_v13, 8.507059e+37 }
 0x449   :  { %11264 = vrcp.f32 %v12573_v5  ;;  %v2261_v21 = vor.u32 1.1754944e-38, %v2260_v17  ;;  %vm2284_vm5 = vweird.f32 %v12569_v4  ;;  %v2288_v57 = vand.u32 2147483647, %v12569_v4 }
 0x44a   :  { %v2290_v32 = vand.u32 2147483648, %v12569_v4  ;;  %vm12597_vm8 = vcmp.eq.f32.partialorder %v2273_v51, 8.507059e+37  ;;  %v2276_v42 = vor.u32 1.1754944e-38, %v2275_v30  ;;  %vm2299_vm11 = vweird.f32 %v12573_v5 }
 0x44b   :  { %v2303_v45 = vand.u32 2147483647, %v12573_v5  ;;  %v2305_v11 = vand.u32 2147483648, %v12573_v5 }
 0x44c   :  { %v11259_v18 = vpop.eup %11258  ;;  %v2291_v54 = vor.u32 1.1754944e-38, %v2290_v32 }
 0x44d   :  { %v11261_v24 = vpop.eup %11260  ;;  %v2250_v28 = vmul.f32 %v11259_v18, %v2245_v53  ;;  %vm2255_vm6 = vweird.f32 %v11259_v18  ;;  %v2306_v58 = vor.u32 1.1754944e-38, %v2305_v11 }
 0x44e   :  { %v11263_v25 = vpop.eup %11262  ;;  %v2265_v29 = vmul.f32 %v11261_v24, %v12565_v62  ;;  %vm2270_vm7 = vweird.f32 %v11261_v24  ;;  %vm2256_vm10 = vmor %vm2254_vm15, %vm2255_vm6  ;;  %vm2289_vm15 = vcmp.eq.f32.partialorder %v2288_v57, 8.507059e+37  ;;  %v2228_v62 = vadd.f32 %v2212_v15, %v2202_v20 }
 0x44f   :  { %v2251_v31 = vsub.f32 1.0, %v2250_v28  ;;  %v2280_v37 = vmul.f32 %v11263_v25, %v12569_v4  ;;  %v11265_v52 = vpop.eup %11264  ;;  %vm2285_vm9 = vweird.f32 %v11263_v25  ;;  %vm2271_vm12 = vmor %vm2269_vm3, %vm2270_vm7 }
 0x450   :  { %v2266_v34 = vsub.f32 1.0, %v2265_v29  ;;  %v2295_v10 = vmul.f32 %v11265_v52, %v12573_v5  ;;  %vm2300_vm13 = vweird.f32 %v11265_v52  ;;  %vm2286_vm14 = vmor %vm2284_vm5, %vm2285_vm9 }
 0x451   :  { %v2252_v36 = vmul.f32 %v11259_v18, %v2251_v31  ;;  %v2281_v3 = vsub.f32 1.0, %v2280_v37  ;;  %vm2301_vm3 = vmor %vm2299_vm11, %vm2300_vm13 }
 0x452   :  { %v2267_v38 = vmul.f32 %v11261_v24, %v2266_v34  ;;  %v2296_v22 = vsub.f32 1.0, %v2295_v10 }
 0x453   :  { %v2253_v41 = vadd.f32 %v11259_v18, %v2252_v36  ;;  %v2282_v43 = vmul.f32 %v11263_v25, %v2281_v3 }
 0x454   :  { %v2268_v44 = vadd.f32 %v11261_v24, %v2267_v38  ;;  %v2297_v33 = vmul.f32 %v11265_v52, %v2296_v22 }
 0x455   :  { %v2257_v46 = vsel %vm2256_vm10, %v11259_v18, %v2253_v41  ;;  %v2283_v47 = vadd.f32 %v11263_v25, %v2282_v43 }
 0x456   :  { %v2262_v50 = vsel %vm12588_vm4, %v2261_v21, %v2257_v46  ;;  %v2272_v48 = vsel %vm2271_vm12, %v11261_v24, %v2268_v44  ;;  %v2298_v59 = vadd.f32 %v11265_v52, %v2297_v33  ;;  %vm2304_vm4 = vcmp.eq.f32.partialorder %v2303_v45, 8.507059e+37 }
 0x457   :  { %v2277_v56 = vsel %vm12597_vm8, %v2276_v42, %v2272_v48  ;;  %v2287_v35 = vsel %vm2286_vm14, %v11263_v25, %v2283_v47  ;;  %v12613_v53 = vmul.f32 %v2262_v50, %v2225_v23 }
 0x458   :  { %v2292_v60 = vsel %vm2289_vm15, %v2291_v54, %v2287_v35  ;;  %v12617_v61 = vmul.f32 %v2277_v56, %v2226_v26  ;;  %v2302_v63 = vsel %vm2301_vm3, %v11265_v52, %v2298_v59 }
 0x459   :  { %v12619_v0 = vmul.f32 %v2292_v60, %v2227_v27  ;;  %v2307_v8 = vsel %vm2304_vm4, %v2306_v58, %v2302_v63 }
 0x45a   :  { %v12621_v4 = vmul.f32 %v2307_v8, %v2228_v62 }
 0x45b   :  { %11838 = dma.done.wait [#allocation6], 16384 }
 0x45c   :  { %11839 = vsyncadd [#allocation6], 4294950912  ;;  %v8406_v14 = vld [vmem:[#allocation2 + $0xe0] sm:$0xf]  ;;  %v10655_v39 = vld [vmem:[#allocation2 + $0xec] sm:$0xf0] }
 0x45d   :  { %v8534_v7 = vld [vmem:[#allocation2 + $0x1e0] sm:$0xf]  ;;  %v8407_v9 = vor.u32 %v10655_v39, %v8406_v14  ;;  %v10687_v12 = vld [vmem:[#allocation2 + $0x1ec] sm:$0xf0]  ;;  %s13209_s5 = sld [smem:[#allocation72_spill]]  ;;  %s11905_s26 = smov 96  }
 0x45e   :  { %v8662_v5 = vld [vmem:[#allocation2 + $0x2e0] sm:$0xf]  ;;  %v10719_v49 = vld [vmem:[#allocation2 + $0x2ec] sm:$0xf0]  ;;  %v8535_v2 = vor.u32 %v10687_v12, %v8534_v7  ;;  %3993 = vrot.lane.b32.xlu0 %v12311_v55, %s11905_s26 }
 0x45f   :  { %v8663_v1 = vor.u32 %v10719_v49, %v8662_v5  ;;  %v8790_v16 = vld [vmem:[#allocation2 + $0x3e0] sm:$0xf]  ;;  %v10751_v6 = vld [vmem:[#allocation2 + $0x3ec] sm:$0xf0]  ;;  %3099 = vmatpush.bf16.msra.mxu1 %v8407_v9 }
 0x460   :  { %v8390_v13 = vld [vmem:[#allocation2 + $0xc0] sm:$0xf]  ;;  %v8791_v17 = vor.u32 %v10751_v6, %v8790_v16  ;;  %v10651_v18 = vld [vmem:[#allocation2 + $0xcc] sm:$0xf0]  ;;  %3112 = vmatpush.bf16.msra.mxu2 %v8535_v2 }
 0x461   :  { %v8518_v20 = vld [vmem:[#allocation2 + $0x1c0] sm:$0xf]  ;;  %v10683_v15 = vld [vmem:[#allocation2 + $0x1cc] sm:$0xf0]  ;;  %3125 = vmatpush.bf16.msra.mxu3 %v8663_v1  ;;  %v8391_v23 = vor.u32 %v10651_v18, %v8390_v13 }
 0x462   :  { %v8519_v24 = vor.u32 %v10683_v15, %v8518_v20  ;;  %v8646_v26 = vld [vmem:[#allocation2 + $0x2c0] sm:$0xf]  ;;  %v10715_v27 = vld [vmem:[#allocation2 + $0x2cc] sm:$0xf0]  ;;  %3138 = vmatpush.bf16.msrb.mxu0 %v8791_v17 }
 0x463   :  { %v8774_v28 = vld [vmem:[#allocation2 + $0x3c0] sm:$0xf]  ;;  %v8647_v25 = vor.u32 %v10715_v27, %v8646_v26  ;;  %v10747_v29 = vld [vmem:[#allocation2 + $0x3cc] sm:$0xf0]  ;;  %3100 = vmatpush.bf16.msra.mxu1 %v8391_v23 }
 0x464   :  { %v8374_v51 = vld [vmem:[#allocation2 + $0xa0] sm:$0xf]  ;;  %v10647_v30 = vld [vmem:[#allocation2 + $0xac] sm:$0xf0]  ;;  %v8775_v31 = vor.u32 %v10747_v29, %v8774_v28  ;;  %3113 = vmatpush.bf16.msra.mxu2 %v8519_v24 }
 0x465   :  { %v8502_v19 = vld [vmem:[#allocation2 + $0x1a0] sm:$0xf]  ;;  %v10679_v21 = vld [vmem:[#allocation2 + $0x1ac] sm:$0xf0]  ;;  %v8375_v52 = vor.u32 %v10647_v30, %v8374_v51  ;;  %3126 = vmatpush.bf16.msra.mxu3 %v8647_v25 }
 0x466   :  { %v8630_v37 = vld [vmem:[#allocation2 + $0x2a0] sm:$0xf]  ;;  %v10711_v34 = vld [vmem:[#allocation2 + $0x2ac] sm:$0xf0]  ;;  %v8503_v36 = vor.u32 %v10679_v21, %v8502_v19  ;;  %3139 = vmatpush.bf16.msrb.mxu0 %v8775_v31 }
 0x467   :  { %v8758_v57 = vld [vmem:[#allocation2 + $0x3a0] sm:$0xf]  ;;  %v10743_v32 = vld [vmem:[#allocation2 + $0x3ac] sm:$0xf0]  ;;  %v8631_v3 = vor.u32 %v10711_v34, %v8630_v37  ;;  %3101 = vmatpush.bf16.msra.mxu1 %v8375_v52 }
 0x468   :  { %v8358_v10 = vld [vmem:[#allocation2 + $0x80] sm:$0xf]  ;;  %v10643_v38 = vld [vmem:[#allocation2 + $0x8c] sm:$0xf0]  ;;  %v8759_v42 = vor.u32 %v10743_v32, %v8758_v57  ;;  %3114 = vmatpush.bf16.msra.mxu2 %v8503_v36  ;;  %v10653_v57 = vld [vmem:[#allocation2 + $0xe4] sm:$0xf] }
 0x469   :  { %v8486_v40 = vld [vmem:[#allocation2 + $0x180] sm:$0xf]  ;;  %v10675_v41 = vld [vmem:[#allocation2 + $0x18c] sm:$0xf0]  ;;  %v8359_v11 = vor.u32 %v10643_v38, %v8358_v10  ;;  %3127 = vmatpush.bf16.msra.mxu3 %v8631_v3  ;;  %v8408_v32 = vld [vmem:[#allocation2 + $0xf0] sm:$0xf0] }
 0x46a   :  { %v8614_v43 = vld [vmem:[#allocation2 + $0x280] sm:$0xf]  ;;  %v10707_v22 = vld [vmem:[#allocation2 + $0x28c] sm:$0xf0]  ;;  %v8487_v46 = vor.u32 %v10675_v41, %v8486_v40  ;;  %3140 = vmatpush.bf16.msrb.mxu0 %v8759_v42  ;;  %v10685_v36 = vld [vmem:[#allocation2 + $0x1e4] sm:$0xf] }
 0x46b   :  { %v8742_v44 = vld [vmem:[#allocation2 + $0x380] sm:$0xf]  ;;  %v10739_v45 = vld [vmem:[#allocation2 + $0x38c] sm:$0xf0]  ;;  %v8615_v47 = vor.u32 %v10707_v22, %v8614_v43  ;;  %3102 = vmatpush.bf16.msra.mxu1 %v8359_v11  ;;  %v8536_v3 = vld [vmem:[#allocation2 + $0x1f0] sm:$0xf0]  ;;  %v8411_v11 = vor.u32 %v10653_v57, %v8408_v32 }
 0x46c   :  { %v8342_v33 = vld [vmem:[#allocation2 + $0x60] sm:$0xf]  ;;  %v10639_v50 = vld [vmem:[#allocation2 + $0x6c] sm:$0xf0]  ;;  %v8743_v54 = vor.u32 %v10739_v45, %v8742_v44  ;;  %3115 = vmatpush.bf16.msra.mxu2 %v8487_v46  ;;  %v10717_v10 = vld [vmem:[#allocation2 + $0x2e4] sm:$0xf]  ;;  %v8539_v46 = vor.u32 %v10685_v36, %v8536_v3 }
 0x46d   :  { %v8470_v48 = vld [vmem:[#allocation2 + $0x160] sm:$0xf]  ;;  %v10671_v56 = vld [vmem:[#allocation2 + $0x16c] sm:$0xf0]  ;;  %v8343_v62 = vor.u32 %v10639_v50, %v8342_v33  ;;  %3128 = vmatpush.bf16.msra.mxu3 %v8615_v47  ;;  %v8664_v40 = vld [vmem:[#allocation2 + $0x2f0] sm:$0xf0] }
 0x46e   :  { %v8598_v35 = vld [vmem:[#allocation2 + $0x260] sm:$0xf]  ;;  %v10703_v59 = vld [vmem:[#allocation2 + $0x26c] sm:$0xf0]  ;;  %v8471_v63 = vor.u32 %v10671_v56, %v8470_v48  ;;  %3141 = vmatpush.bf16.msrb.mxu0 %v8743_v54  ;;  %v10749_v44 = vld [vmem:[#allocation2 + $0x3e4] sm:$0xf]  ;;  %v8667_v33 = vor.u32 %v10717_v10, %v8664_v40 }
 0x46f   :  { %v8726_v60 = vld [vmem:[#allocation2 + $0x360] sm:$0xf]  ;;  %v10735_v58 = vld [vmem:[#allocation2 + $0x36c] sm:$0xf0]  ;;  %v8599_v8 = vor.u32 %v10703_v59, %v8598_v35  ;;  %3103 = vmatpush.bf16.msra.mxu1 %v8343_v62  ;;  %v8792_v45 = vld [vmem:[#allocation2 + $0x3f0] sm:$0xf0] }
 0x470   :  { %v8326_v14 = vld [vmem:[#allocation2 + $0x40] sm:$0xf]  ;;  %v10635_v39 = vld [vmem:[#allocation2 + $0x4c] sm:$0xf0]  ;;  %v8727_v9 = vor.u32 %v10735_v58, %v8726_v60  ;;  %3116 = vmatpush.bf16.msra.mxu2 %v8471_v63  ;;  %v10649_v47 = vld [vmem:[#allocation2 + $0xc4] sm:$0xf]  ;;  %v8795_v35 = vor.u32 %v10749_v44, %v8792_v45  ;;  %v12625_v58 = vpack.c.bf16 %v12617_v61, %v12617_v61 }
 0x471   :  { %v8454_v7 = vld [vmem:[#allocation2 + $0x140] sm:$0xf]  ;;  %v10667_v12 = vld [vmem:[#allocation2 + $0x14c] sm:$0xf0]  ;;  %v8327_v16 = vor.u32 %v10635_v39, %v8326_v14  ;;  %3129 = vmatpush.bf16.msra.mxu3 %v8599_v8  ;;  %v8392_v48 = vld [vmem:[#allocation2 + $0xd0] sm:$0xf0]  ;;  %v12629_v8 = vpack.c.bf16 %v12619_v0, %v12619_v0  ;;  %v12633_v14 = vpack.c.bf16 %v12613_v53, %v12613_v53 }
 0x472   :  { %v8582_v5 = vld [vmem:[#allocation2 + $0x240] sm:$0xf]  ;;  %v10699_v49 = vld [vmem:[#allocation2 + $0x24c] sm:$0xf0]  ;;  %v8455_v6 = vor.u32 %v10667_v12, %v8454_v7  ;;  %3142 = vmatpush.bf16.msrb.mxu0 %v8727_v9  ;;  %v10681_v54 = vld [vmem:[#allocation2 + $0x1c4] sm:$0xf]  ;;  %v8395_v39 = vor.u32 %v10649_v47, %v8392_v48 }
 0x473   :  { %v8710_v2 = vld [vmem:[#allocation2 + $0x340] sm:$0xf]  ;;  %v10731_v1 = vld [vmem:[#allocation2 + $0x34c] sm:$0xf0]  ;;  %v8583_v13 = vor.u32 %v10699_v49, %v8582_v5  ;;  %3104 = vmatpush.bf16.msra.mxu1 %v8327_v16  ;;  %v8520_v56 = vld [vmem:[#allocation2 + $0x1d0] sm:$0xf0] }
 0x474   :  { %v8310_v17 = vld [vmem:[#allocation2 + $0x20] sm:$0xf]  ;;  %v10631_v18 = vld [vmem:[#allocation2 + $0x2c] sm:$0xf0]  ;;  %v8711_v15 = vor.u32 %v10731_v1, %v8710_v2  ;;  %3117 = vmatpush.bf16.msra.mxu2 %v8455_v6  ;;  %v10713_v59 = vld [vmem:[#allocation2 + $0x2c4] sm:$0xf]  ;;  %v8523_v7 = vor.u32 %v10681_v54, %v8520_v56  ;;  %v12637_v2 = vpack.c.bf16 %v12621_v4, %v12621_v4 }
 0x475   :  { %v8438_v20 = vld [vmem:[#allocation2 + $0x120] sm:$0xf]  ;;  %v10663_v23 = vld [vmem:[#allocation2 + $0x12c] sm:$0xf0]  ;;  %v8311_v25 = vor.u32 %v10631_v18, %v8310_v17  ;;  %3130 = vmatpush.bf16.msra.mxu3 %v8583_v13  ;;  %v8648_v60 = vld [vmem:[#allocation2 + $0x2d0] sm:$0xf0] }
 0x476   :  { %v8566_v24 = vld [vmem:[#allocation2 + $0x220] sm:$0xf]  ;;  %v10695_v26 = vld [vmem:[#allocation2 + $0x22c] sm:$0xf0]  ;;  %v8439_v30 = vor.u32 %v10663_v23, %v8438_v20  ;;  %3143 = vmatpush.bf16.msrb.mxu0 %v8711_v15  ;;  %v10745_v62 = vld [vmem:[#allocation2 + $0x3c4] sm:$0xf]  ;;  %v8651_v61 = vor.u32 %v10713_v59, %v8648_v60 }
 0x477   :  { %v8694_v27 = vld [vmem:[#allocation2 + $0x320] sm:$0xf]  ;;  %v10727_v28 = vld [vmem:[#allocation2 + $0x32c] sm:$0xf0]  ;;  %v8567_v31 = vor.u32 %v10695_v26, %v8566_v24  ;;  %3105 = vmatpush.bf16.msra.mxu1 %v8311_v25  ;;  %v8776_v63 = vld [vmem:[#allocation2 + $0x3d0] sm:$0xf0] }
 0x478   :  { %v8294_v29 = vld [vmem:[#allocation2] sm:$0xf]  ;;  %v10627_v51 = vld [vmem:[#allocation2 + $0xc] sm:$0xf0]  ;;  %v8695_v52 = vor.u32 %v10727_v28, %v8694_v27  ;;  %3118 = vmatpush.bf16.msra.mxu2 %v8439_v30  ;;  %v10645_v9 = vld [vmem:[#allocation2 + $0xa4] sm:$0xf]  ;;  %v8779_v0 = vor.u32 %v10745_v62, %v8776_v63 }
 0x479   :  { %v8422_v19 = vld [vmem:[#allocation2 + $0x100] sm:$0xf]  ;;  %v10659_v21 = vld [vmem:[#allocation2 + $0x10c] sm:$0xf0]  ;;  %v8295_v38 = vor.u32 %v10627_v51, %v8294_v29  ;;  %3131 = vmatpush.bf16.msra.mxu3 %v8567_v31  ;;  %v8376_v12 = vld [vmem:[#allocation2 + $0xb0] sm:$0xf0] }
 0x47a   :  { %v8550_v37 = vld [vmem:[#allocation2 + $0x200] sm:$0xf]  ;;  %v10691_v34 = vld [vmem:[#allocation2 + $0x20c] sm:$0xf0]  ;;  %v8423_v43 = vor.u32 %v10659_v21, %v8422_v19  ;;  %3144 = vmatpush.bf16.msrb.mxu0 %v8695_v52  ;;  %v10677_v5 = vld [vmem:[#allocation2 + $0x1a4] sm:$0xf]  ;;  %v8379_v13 = vor.u32 %v10645_v9, %v8376_v12 }
 0x47b   :  { %v8678_v42 = vld [vmem:[#allocation2 + $0x300] sm:$0xf]  ;;  %v10723_v41 = vld [vmem:[#allocation2 + $0x30c] sm:$0xf0]  ;;  %v8551_v22 = vor.u32 %v10691_v34, %v8550_v37  ;;  %3106 = vmatpush.bf16.msra.mxu1 %v8295_v38  ;;  %v8504_v49 = vld [vmem:[#allocation2 + $0x1b0] sm:$0xf0] }
 0x47c   :  { %v8679_v50 = vor.u32 %v10723_v41, %v8678_v42  ;;  %3119 = vmatpush.bf16.msra.mxu2 %v8423_v43  ;;  %v10709_v1 = vld [vmem:[#allocation2 + $0x2a4] sm:$0xf]  ;;  %v8632_v53 = vld [vmem:[#allocation2 + $0x2b0] sm:$0xf0]  ;;  %v8507_v17 = vor.u32 %v10677_v5, %v8504_v49 }
 0x47d   :  { %3132 = vmatpush.bf16.msra.mxu3 %v8551_v22  ;;  %v10741_v16 = vld [vmem:[#allocation2 + $0x3a4] sm:$0xf]  ;;  %v8760_v6 = vld [vmem:[#allocation2 + $0x3b0] sm:$0xf0]  ;;  %v8635_v4 = vor.u32 %v10709_v1, %v8632_v53 }
 0x47e   :  { %3145 = vmatpush.bf16.msrb.mxu0 %v8679_v50  ;;  %3107 = vmatmul.bf16.vlgmr.msra.gmra.mxu1 %v12633_v14  ;;  %v10641_v18 = vld [vmem:[#allocation2 + $0x84] sm:$0xf]  ;;  %v8360_v20 = vld [vmem:[#allocation2 + $0x90] sm:$0xf0]  ;;  %v8763_v24 = vor.u32 %v10741_v16, %v8760_v6  ;;  %v8414_v6 = vld [vmem:[#allocation2 + $0xe8] sm:$0xf] }
 0x47f   :  { %3151 = vmatpush.bf16.msrb.mxu1 %v8411_v11  ;;  %3120 = vmatmul.bf16.vlgmr.msra.gmra.mxu2 %v12625_v58  ;;  %v10673_v15 = vld [vmem:[#allocation2 + $0x184] sm:$0xf]  ;;  %v8488_v23 = vld [vmem:[#allocation2 + $0x190] sm:$0xf0]  ;;  %v8363_v29 = vor.u32 %v10641_v18, %v8360_v20  ;;  %v10688_v18 = vld [vmem:[#allocation2 + $0x1f4] sm:$0xf0] }
 0x480   :  { %3164 = vmatpush.bf16.msrb.mxu2 %v8539_v46  ;;  %3133 = vmatmul.bf16.vlgmr.msra.gmra.mxu3 %v12629_v8  ;;  %v10705_v26 = vld [vmem:[#allocation2 + $0x284] sm:$0xf]  ;;  %v8616_v27 = vld [vmem:[#allocation2 + $0x290] sm:$0xf0]  ;;  %v8491_v51 = vor.u32 %v10673_v15, %v8488_v23  ;;  %v10720_v20 = vld [vmem:[#allocation2 + $0x2f4] sm:$0xf0] }
 0x481   :  { %3177 = vmatpush.bf16.msrb.mxu3 %v8667_v33  ;;  %3146 = vmatmul.bf16.vlgmr.msrb.gmra.mxu0 %v12637_v2  ;;  %v10737_v28 = vld [vmem:[#allocation2 + $0x384] sm:$0xf]  ;;  %v8744_v25 = vld [vmem:[#allocation2 + $0x390] sm:$0xf0]  ;;  %v8619_v31 = vor.u32 %v10705_v26, %v8616_v27 }
 0x482   :  { %3190 = vmatpush.bf16.msra.mxu0 %v8795_v35  ;;  %v10637_v30 = vld [vmem:[#allocation2 + $0x64] sm:$0xf]  ;;  %v8344_v19 = vld [vmem:[#allocation2 + $0x70] sm:$0xf0]  ;;  %v8747_v52 = vor.u32 %v10737_v28, %v8744_v25  ;;  %v8798_v25 = vld [vmem:[#allocation2 + $0x3e8] sm:$0xf] }
 0x483   :  { %3152 = vmatpush.bf16.msrb.mxu1 %v8395_v39  ;;  %v10669_v21 = vld [vmem:[#allocation2 + $0x164] sm:$0xf]  ;;  %v8472_v37 = vld [vmem:[#allocation2 + $0x170] sm:$0xf0]  ;;  %v8347_v3 = vor.u32 %v10637_v30, %v8344_v19  ;;  %v10652_v19 = vld [vmem:[#allocation2 + $0xd4] sm:$0xf0] }
 0x484   :  { %3165 = vmatpush.bf16.msrb.mxu2 %v8523_v7  ;;  %v10701_v34 = vld [vmem:[#allocation2 + $0x264] sm:$0xf]  ;;  %v8600_v57 = vld [vmem:[#allocation2 + $0x270] sm:$0xf0]  ;;  %v8475_v10 = vor.u32 %v10669_v21, %v8472_v37  ;;  %v8526_v21 = vld [vmem:[#allocation2 + $0x1c8] sm:$0xf] }
 0x485   :  { %3178 = vmatpush.bf16.msrb.mxu3 %v8651_v61  ;;  %v10733_v32 = vld [vmem:[#allocation2 + $0x364] sm:$0xf]  ;;  %v8728_v36 = vld [vmem:[#allocation2 + $0x370] sm:$0xf0]  ;;  %v8603_v40 = vor.u32 %v10701_v34, %v8600_v57  ;;  %v8654_v34 = vld [vmem:[#allocation2 + $0x2c8] sm:$0xf] }
 0x486   :  { %3191 = vmatpush.bf16.msra.mxu0 %v8779_v0  ;;  %v10633_v38 = vld [vmem:[#allocation2 + $0x44] sm:$0xf]  ;;  %v8328_v42 = vld [vmem:[#allocation2 + $0x50] sm:$0xf0]  ;;  %v8731_v22 = vor.u32 %v10733_v32, %v8728_v36  ;;  %v10716_v57 = vld [vmem:[#allocation2 + $0x2d4] sm:$0xf0] }
 0x487   :  { %3153 = vmatpush.bf16.msrb.mxu1 %v8379_v13  ;;  %v10665_v41 = vld [vmem:[#allocation2 + $0x144] sm:$0xf]  ;;  %v8456_v43 = vld [vmem:[#allocation2 + $0x150] sm:$0xf0]  ;;  %v8331_v47 = vor.u32 %v10633_v38, %v8328_v42  ;;  %v10656_v13 = vld [vmem:[#allocation2 + $0xf4] sm:$0xf0] }
 0x488   :  { %3166 = vmatpush.bf16.msrb.mxu2 %v8507_v17  ;;  %v10697_v44 = vld [vmem:[#allocation2 + $0x244] sm:$0xf]  ;;  %v8584_v45 = vld [vmem:[#allocation2 + $0x250] sm:$0xf0]  ;;  %v8459_v33 = vor.u32 %v10665_v41, %v8456_v43  ;;  %v8542_v17 = vld [vmem:[#allocation2 + $0x1e8] sm:$0xf]  ;;  %v8415_v28 = vor.u32 %v10656_v13, %v8414_v6 }
 0x489   :  { %3179 = vmatpush.bf16.msrb.mxu3 %v8635_v4  ;;  %v10729_v11 = vld [vmem:[#allocation2 + $0x344] sm:$0xf]  ;;  %v8712_v46 = vld [vmem:[#allocation2 + $0x350] sm:$0xf0]  ;;  %v8587_v48 = vor.u32 %v10697_v44, %v8584_v45  ;;  %v8670_v4 = vld [vmem:[#allocation2 + $0x2e8] sm:$0xf] }
 0x48a   :  { %3192 = vmatpush.bf16.msra.mxu0 %v8763_v24  ;;  %v10629_v50 = vld [vmem:[#allocation2 + $0x24] sm:$0xf]  ;;  %v8312_v54 = vld [vmem:[#allocation2 + $0x30] sm:$0xf0]  ;;  %v8715_v59 = vor.u32 %v10729_v11, %v8712_v46  ;;  %v8671_v30 = vor.u32 %v10720_v20, %v8670_v4  ;;  %v8382_v42 = vld [vmem:[#allocation2 + $0xa8] sm:$0xf] }
 0x48b   :  { %3154 = vmatpush.bf16.msrb.mxu1 %v8363_v29  ;;  %v10661_v56 = vld [vmem:[#allocation2 + $0x124] sm:$0xf]  ;;  %v8440_v35 = vld [vmem:[#allocation2 + $0x130] sm:$0xf0]  ;;  %v8315_v7 = vor.u32 %v10629_v50, %v8312_v54  ;;  %v10752_v29 = vld [vmem:[#allocation2 + $0x3f4] sm:$0xf0] }
 0x48c   :  { %3167 = vmatpush.bf16.msrb.mxu2 %v8491_v51  ;;  %v10693_v60 = vld [vmem:[#allocation2 + $0x224] sm:$0xf]  ;;  %v8568_v62 = vld [vmem:[#allocation2 + $0x230] sm:$0xf0]  ;;  %v8443_v9 = vor.u32 %v10661_v56, %v8440_v35  ;;  %v8543_v51 = vor.u32 %v10688_v18, %v8542_v17  ;;  %v8799_v32 = vor.u32 %v10752_v29, %v8798_v25  ;;  %v10648_v41 = vld [vmem:[#allocation2 + $0xb4] sm:$0xf0] }
 0x48d   :  { %3180 = vmatpush.bf16.msrb.mxu3 %v8619_v31  ;;  %v10725_v63 = vld [vmem:[#allocation2 + $0x324] sm:$0xf]  ;;  %v8696_v39 = vld [vmem:[#allocation2 + $0x330] sm:$0xf0]  ;;  %v8571_v49 = vor.u32 %v10693_v60, %v8568_v62  ;;  %v8398_v31 = vld [vmem:[#allocation2 + $0xc8] sm:$0xf]  ;;  %v8383_v46 = vor.u32 %v10648_v41, %v8382_v42 }
 0x48e   :  { %3193 = vmatpush.bf16.msra.mxu0 %v8747_v52  ;;  %v10625_v61 = vld [vmem:[#allocation2 + $0x4] sm:$0xf]  ;;  %v8296_v12 = vld [vmem:[#allocation2 + $0x10] sm:$0xf0]  ;;  %v8699_v16 = vor.u32 %v10725_v63, %v8696_v39  ;;  %v10684_v52 = vld [vmem:[#allocation2 + $0x1d4] sm:$0xf0]  ;;  %v8399_v36 = vor.u32 %v10652_v19, %v8398_v31 }
 0x48f   :  { %3155 = vmatpush.bf16.msrb.mxu1 %v8347_v3  ;;  %v10657_v5 = vld [vmem:[#allocation2 + $0x104] sm:$0xf]  ;;  %v8424_v0 = vld [vmem:[#allocation2 + $0x110] sm:$0xf0]  ;;  %v8299_v15 = vor.u32 %v10625_v61, %v8296_v12  ;;  %v8782_v3 = vld [vmem:[#allocation2 + $0x3c8] sm:$0xf]  ;;  %v8527_v38 = vor.u32 %v10684_v52, %v8526_v21 }
 0x490   :  { %3168 = vmatpush.bf16.msrb.mxu2 %v8475_v10  ;;  %v10689_v1 = vld [vmem:[#allocation2 + $0x204] sm:$0xf]  ;;  %v8552_v53 = vld [vmem:[#allocation2 + $0x210] sm:$0xf0]  ;;  %v8427_v23 = vor.u32 %v10657_v5, %v8424_v0  ;;  %v10748_v10 = vld [vmem:[#allocation2 + $0x3d4] sm:$0xf0] }
 0x491   :  { %3181 = vmatpush.bf16.msrb.mxu3 %v8603_v40  ;;  %v10721_v24 = vld [vmem:[#allocation2 + $0x304] sm:$0xf]  ;;  %v8680_v26 = vld [vmem:[#allocation2 + $0x310] sm:$0xf0]  ;;  %v8555_v27 = vor.u32 %v10689_v1, %v8552_v53  ;;  %v8655_v40 = vor.u32 %v10716_v57, %v8654_v34  ;;  %v8510_v43 = vld [vmem:[#allocation2 + $0x1a8] sm:$0xf]  ;;  %v8783_v11 = vor.u32 %v10748_v10, %v8782_v3 }
 0x492   :  { %3194 = vmatpush.bf16.msra.mxu0 %v8731_v22  ;;  %v8683_v37 = vor.u32 %v10721_v24, %v8680_v26  ;;  %v10680_v22 = vld [vmem:[#allocation2 + $0x1b4] sm:$0xf0]  ;;  %v8638_v44 = vld [vmem:[#allocation2 + $0x2a8] sm:$0xf]  ;;  %v10766_v55 = vld [vmem:[%s13209_s5 + $0x68] sm:$0xff] }
 0x493   :  { %3156 = vmatpush.bf16.msrb.mxu1 %v8331_v47  ;;  %v10712_v45 = vld [vmem:[#allocation2 + $0x2b4] sm:$0xf0]  ;;  %v8766_v47 = vld [vmem:[#allocation2 + $0x3a8] sm:$0xf]  ;;  %v8511_v50 = vor.u32 %v10680_v22, %v8510_v43 }
 0x494   :  { %3169 = vmatpush.bf16.msrb.mxu2 %v8459_v33  ;;  %v10744_v33 = vld [vmem:[#allocation2 + $0x3b4] sm:$0xf0]  ;;  %v8366_v54 = vld [vmem:[#allocation2 + $0x88] sm:$0xf] }
 0x495   :  { %3182 = vmatpush.bf16.msrb.mxu3 %v8587_v48  ;;  %v8639_v48 = vor.u32 %v10712_v45, %v8638_v44  ;;  %v10644_v56 = vld [vmem:[#allocation2 + $0x94] sm:$0xf0]  ;;  %v8494_v35 = vld [vmem:[#allocation2 + $0x188] sm:$0xf]  ;;  %v8767_v63 = vor.u32 %v10744_v33, %v8766_v47  ;;  %v8416_v47 = vld [vmem:[#allocation2 + $0xf8] sm:$0xf0] }
 0x496   :  { %3195 = vmatpush.bf16.msra.mxu0 %v8715_v59  ;;  %v10676_v59 = vld [vmem:[#allocation2 + $0x194] sm:$0xf0]  ;;  %v8622_v60 = vld [vmem:[#allocation2 + $0x288] sm:$0xf]  ;;  %v8367_v39 = vor.u32 %v10644_v56, %v8366_v54  ;;  %v10718_v54 = vld [vmem:[#allocation2 + $0x2ec] sm:$0xf] }
 0x497   :  { %3157 = vmatpush.bf16.msrb.mxu1 %v8315_v7  ;;  %v10708_v62 = vld [vmem:[#allocation2 + $0x294] sm:$0xf0]  ;;  %v8750_v7 = vld [vmem:[#allocation2 + $0x388] sm:$0xf]  ;;  %v8495_v61 = vor.u32 %v10676_v59, %v8494_v35  ;;  %v8672_v35 = vld [vmem:[#allocation2 + $0x2f8] sm:$0xf0] }
 0x498   :  { %3170 = vmatpush.bf16.msrb.mxu2 %v8443_v9  ;;  %v10740_v9 = vld [vmem:[#allocation2 + $0x394] sm:$0xf0]  ;;  %v8623_v12 = vor.u32 %v10708_v62, %v8622_v60  ;;  %v8350_v5 = vld [vmem:[#allocation2 + $0x68] sm:$0xf] }
 0x499   :  { %3183 = vmatpush.bf16.msrb.mxu3 %v8571_v49  ;;  %v10640_v49 = vld [vmem:[#allocation2 + $0x74] sm:$0xf0]  ;;  %v8478_v0 = vld [vmem:[#allocation2 + $0x168] sm:$0xf]  ;;  %v8751_v6 = vor.u32 %v10740_v9, %v8750_v7  ;;  %v8800_v7 = vld [vmem:[#allocation2 + $0x3f8] sm:$0xf0] }
 0x49a   :  { %3196 = vmatpush.bf16.msra.mxu0 %v8699_v16  ;;  %v10672_v1 = vld [vmem:[#allocation2 + $0x174] sm:$0xf0]  ;;  %v8606_v53 = vld [vmem:[#allocation2 + $0x268] sm:$0xf]  ;;  %v8351_v13 = vor.u32 %v10640_v49, %v8350_v5  ;;  %v8675_v5 = vor.u32 %v10718_v54, %v8672_v35 }
 0x49b   :  { %3158 = vmatpush.bf16.msrb.mxu1 %v8299_v15  ;;  %v10704_v16 = vld [vmem:[#allocation2 + $0x274] sm:$0xf0]  ;;  %v8734_v17 = vld [vmem:[#allocation2 + $0x368] sm:$0xf]  ;;  %v8479_v4 = vor.u32 %v10672_v1, %v8478_v0  ;;  %v8400_v0 = vld [vmem:[#allocation2 + $0xd8] sm:$0xf0] }
 0x49c   :  { %3171 = vmatpush.bf16.msrb.mxu2 %v8427_v23  ;;  %v10736_v18 = vld [vmem:[#allocation2 + $0x374] sm:$0xf0]  ;;  %v8607_v20 = vor.u32 %v10704_v16, %v8606_v53  ;;  %v8334_v15 = vld [vmem:[#allocation2 + $0x48] sm:$0xf]  ;;  %v10682_v1 = vld [vmem:[#allocation2 + $0x1cc] sm:$0xf] }
 0x49d   :  { %3184 = vmatpush.bf16.msrb.mxu3 %v8555_v27  ;;  %v10636_v23 = vld [vmem:[#allocation2 + $0x54] sm:$0xf0]  ;;  %v8462_v24 = vld [vmem:[#allocation2 + $0x148] sm:$0xf]  ;;  %v8735_v25 = vor.u32 %v10736_v18, %v8734_v17  ;;  %v8528_v53 = vld [vmem:[#allocation2 + $0x1d8] sm:$0xf0] }
 0x49e   :  { %3197 = vmatpush.bf16.msra.mxu0 %v8683_v37  ;;  %3159 = vmatmul.bf16.vlgmr.msrb.gmra.mxu1 %v12633_v14  ;;  %v10668_v26 = vld [vmem:[#allocation2 + $0x154] sm:$0xf0]  ;;  %v8590_v27 = vld [vmem:[#allocation2 + $0x248] sm:$0xf]  ;;  %v8335_v29 = vor.u32 %v10636_v23, %v8334_v15  ;;  %v10746_v17 = vld [vmem:[#allocation2 + $0x3cc] sm:$0xf] }
 0x49f   :  { %3203 = vmatpush.bf16.msra.mxu1 %v8415_v28  ;;  %3172 = vmatmul.bf16.vlgmr.msrb.gmra.mxu2 %v12625_v58  ;;  %v10700_v28 = vld [vmem:[#allocation2 + $0x254] sm:$0xf0]  ;;  %v8463_v31 = vor.u32 %v10668_v26, %v8462_v24  ;;  %v8318_v21 = vld [vmem:[#allocation2 + $0x28] sm:$0xf]  ;;  %v8784_v18 = vld [vmem:[#allocation2 + $0x3d8] sm:$0xf0] }
 0x4a0   :  { %3216 = vmatpush.bf16.msra.mxu2 %v8543_v51  ;;  %3185 = vmatmul.bf16.vlgmr.msrb.gmra.mxu3 %v12629_v8  ;;  %v8718_v51 = vld [vmem:[#allocation2 + $0x348] sm:$0xf]  ;;  %v8591_v19 = vor.u32 %v10700_v28, %v8590_v27  ;;  %v10632_v37 = vld [vmem:[#allocation2 + $0x34] sm:$0xf0]  ;;  %v10646_v15 = vld [vmem:[#allocation2 + $0xac] sm:$0xf]  ;;  %v8787_v28 = vor.u32 %v10746_v17, %v8784_v18 }
 0x4a1   :  { %3229 = vmatpush.bf16.msra.mxu3 %v8671_v30  ;;  %3198 = vmatmul.bf16.vlgmr.msra.gmra.mxu0 %v12637_v2  ;;  %v10732_v30 = vld [vmem:[#allocation2 + $0x354] sm:$0xf0]  ;;  %v8446_v52 = vld [vmem:[#allocation2 + $0x128] sm:$0xf]  ;;  %v8319_v10 = vor.u32 %v10632_v37, %v8318_v21  ;;  %v8384_v24 = vld [vmem:[#allocation2 + $0xb8] sm:$0xf0] }
 0x4a2   :  { %3242 = vmatpush.bf16.msrb.mxu0 %v8799_v32  ;;  %v10664_v34 = vld [vmem:[#allocation2 + $0x134] sm:$0xf0]  ;;  %v8574_v57 = vld [vmem:[#allocation2 + $0x228] sm:$0xf]  ;;  %v10678_v26 = vld [vmem:[#allocation2 + $0x1ac] sm:$0xf] }
 0x4a3   :  { %3204 = vmatpush.bf16.msra.mxu1 %v8399_v36  ;;  %v10696_v32 = vld [vmem:[#allocation2 + $0x234] sm:$0xf0]  ;;  %v8719_v36 = vor.u32 %v10732_v30, %v8718_v51  ;;  %v8702_v3 = vld [vmem:[#allocation2 + $0x328] sm:$0xf]  ;;  %v8447_v41 = vor.u32 %v10664_v34, %v8446_v52  ;;  %v8512_v27 = vld [vmem:[#allocation2 + $0x1b8] sm:$0xf0] }
 0x4a4   :  { %3217 = vmatpush.bf16.msra.mxu2 %v8527_v38  ;;  %v10728_v38 = vld [vmem:[#allocation2 + $0x334] sm:$0xf0]  ;;  %v8575_v43 = vor.u32 %v10696_v32, %v8574_v57  ;;  %v8430_v22 = vld [vmem:[#allocation2 + $0x108] sm:$0xf]  ;;  %v10742_v51 = vld [vmem:[#allocation2 + $0x3ac] sm:$0xf] }
 0x4a5   :  { %3230 = vmatpush.bf16.msra.mxu3 %v8655_v40  ;;  %v8302_v40 = vld [vmem:[#allocation2 + $0x8] sm:$0xf]  ;;  %v10628_v42 = vld [vmem:[#allocation2 + $0x14] sm:$0xf0]  ;;  %v8703_v33 = vor.u32 %v10728_v38, %v8702_v3  ;;  %v8768_v30 = vld [vmem:[#allocation2 + $0x3b8] sm:$0xf0] }
 0x4a6   :  { %3243 = vmatpush.bf16.msrb.mxu0 %v8783_v11  ;;  %v10660_v44 = vld [vmem:[#allocation2 + $0x114] sm:$0xf0]  ;;  %v8558_v45 = vld [vmem:[#allocation2 + $0x208] sm:$0xf]  ;;  %v8303_v56 = vor.u32 %v10628_v42, %v8302_v40  ;;  %v10642_v21 = vld [vmem:[#allocation2 + $0x8c] sm:$0xf]  ;;  %v8771_v32 = vor.u32 %v10742_v51, %v8768_v30 }
 0x4a7   :  { %3205 = vmatpush.bf16.msra.mxu1 %v8383_v46  ;;  %v10692_v11 = vld [vmem:[#allocation2 + $0x214] sm:$0xf0]  ;;  %v10654_v46 = vld [vmem:[#allocation2 + $0xec] sm:$0xf]  ;;  %v8686_v59 = vld [vmem:[#allocation2 + $0x308] sm:$0xf]  ;;  %v8431_v62 = vor.u32 %v10660_v44, %v8430_v22 }
 0x4a8   :  { %3218 = vmatpush.bf16.msra.mxu2 %v8511_v50  ;;  %v10686_v50 = vld [vmem:[#allocation2 + $0x1ec] sm:$0xf]  ;;  %v10724_v60 = vld [vmem:[#allocation2 + $0x314] sm:$0xf0]  ;;  %v8419_v9 = vor.u32 %v10654_v46, %v8416_v47  ;;  %v8368_v52 = vld [vmem:[#allocation2 + $0x98] sm:$0xf0] }
 0x4a9   :  { %3231 = vmatpush.bf16.msra.mxu3 %v8639_v48  ;;  %v8544_v48 = vld [vmem:[#allocation2 + $0x1f8] sm:$0xf0]  ;;  %v8687_v49 = vor.u32 %v10724_v60, %v8686_v59  ;;  %v10674_v34 = vld [vmem:[#allocation2 + $0x18c] sm:$0xf]  ;;  %v8371_v40 = vor.u32 %v10642_v21, %v8368_v52  ;;  %v10760_v52 = vld [vmem:[%s13209_s5 + $0x38] sm:$0xff] }
 0x4aa   :  { %3244 = vmatpush.bf16.msrb.mxu0 %v8767_v63  ;;  %v8559_v63 = vor.u32 %v10692_v11, %v8558_v45  ;;  %v8496_v57 = vld [vmem:[#allocation2 + $0x198] sm:$0xf0]  ;;  %v10670_v44 = vld [vmem:[#allocation2 + $0x16c] sm:$0xf] }
 0x4ab   :  { %3206 = vmatpush.bf16.msra.mxu1 %v8367_v39  ;;  %v10750_v39 = vld [vmem:[#allocation2 + $0x3ec] sm:$0xf]  ;;  %v8624_v3 = vld [vmem:[#allocation2 + $0x298] sm:$0xf0]  ;;  %v8499_v42 = vor.u32 %v10674_v34, %v8496_v57 }
 0x4ac   :  { %3219 = vmatpush.bf16.msra.mxu2 %v8495_v61  ;;  %v8547_v61 = vor.u32 %v10686_v50, %v8544_v48  ;;  %v8803_v16 = vor.u32 %v10750_v39, %v8800_v7  ;;  %v8752_v38 = vld [vmem:[#allocation2 + $0x398] sm:$0xf0]  ;;  %v10702_v46 = vld [vmem:[#allocation2 + $0x26c] sm:$0xf] }
 0x4ad   :  { %3232 = vmatpush.bf16.msra.mxu3 %v8623_v12  ;;  %v10650_v12 = vld [vmem:[#allocation2 + $0xcc] sm:$0xf]  ;;  %v8352_v22 = vld [vmem:[#allocation2 + $0x78] sm:$0xf0] }
 0x4ae   :  { %3245 = vmatpush.bf16.msrb.mxu0 %v8751_v6  ;;  %v10714_v6 = vld [vmem:[#allocation2 + $0x2cc] sm:$0xf]  ;;  %v8480_v45 = vld [vmem:[#allocation2 + $0x178] sm:$0xf0] }
 0x4af   :  { %3207 = vmatpush.bf16.msra.mxu1 %v8351_v13  ;;  %v8656_v13 = vld [vmem:[#allocation2 + $0x2d8] sm:$0xf0]  ;;  %v8483_v54 = vor.u32 %v10670_v44, %v8480_v45  ;;  %v10666_v60 = vld [vmem:[#allocation2 + $0x14c] sm:$0xf] }
 0x4b0   :  { %3220 = vmatpush.bf16.msra.mxu2 %v8479_v4  ;;  %v8403_v4 = vor.u32 %v10650_v12, %v8400_v0  ;;  %v8659_v23 = vor.u32 %v10714_v6, %v8656_v13  ;;  %v8608_v47 = vld [vmem:[#allocation2 + $0x278] sm:$0xf0]  ;;  %v10698_v39 = vld [vmem:[#allocation2 + $0x24c] sm:$0xf] }
 0x4b1   :  { %3233 = vmatpush.bf16.msra.mxu3 %v8607_v20  ;;  %v8531_v20 = vor.u32 %v10682_v1, %v8528_v53  ;;  %v8736_v50 = vld [vmem:[#allocation2 + $0x378] sm:$0xf0]  ;;  %v8611_v35 = vor.u32 %v10702_v46, %v8608_v47  ;;  %v10662_v53 = vld [vmem:[#allocation2 + $0x12c] sm:$0xf] }
 0x4b2   :  { %3246 = vmatpush.bf16.msrb.mxu0 %v8735_v25  ;;  %v10710_v25 = vld [vmem:[#allocation2 + $0x2ac] sm:$0xf]  ;;  %v8336_v59 = vld [vmem:[#allocation2 + $0x58] sm:$0xf0] }
 0x4b3   :  { %3208 = vmatpush.bf16.msra.mxu1 %v8335_v29  ;;  %v8640_v29 = vld [vmem:[#allocation2 + $0x2b8] sm:$0xf0]  ;;  %v10694_v13 = vld [vmem:[#allocation2 + $0x22c] sm:$0xf] }
 0x4b4   :  { %3221 = vmatpush.bf16.msra.mxu2 %v8463_v31  ;;  %v8387_v31 = vor.u32 %v10646_v15, %v8384_v24  ;;  %v8643_v37 = vor.u32 %v10710_v25, %v8640_v29  ;;  %v8592_v7 = vld [vmem:[#allocation2 + $0x258] sm:$0xf0]  ;;  %v10726_v18 = vld [vmem:[#allocation2 + $0x32c] sm:$0xf] }
 0x4b5   :  { %3234 = vmatpush.bf16.msra.mxu3 %v8591_v19  ;;  %v8515_v19 = vor.u32 %v10678_v26, %v8512_v27  ;;  %v8595_v0 = vor.u32 %v10698_v39, %v8592_v7  ;;  %v8320_v1 = vld [vmem:[#allocation2 + $0x38] sm:$0xf0]  ;;  %v10658_v27 = vld [vmem:[#allocation2 + $0x10c] sm:$0xf] }
 0x4b6   :  { %3247 = vmatpush.bf16.msrb.mxu0 %v8719_v36  ;;  %v10706_v36 = vld [vmem:[#allocation2 + $0x28c] sm:$0xf]  ;;  %v8576_v17 = vld [vmem:[#allocation2 + $0x238] sm:$0xf0] }
 0x4b7   :  { %3209 = vmatpush.bf16.msra.mxu1 %v8319_v10  ;;  %v10738_v10 = vld [vmem:[#allocation2 + $0x38c] sm:$0xf]  ;;  %v8579_v24 = vor.u32 %v10694_v13, %v8576_v17  ;;  %v8304_v26 = vld [vmem:[#allocation2 + $0x18] sm:$0xf0] }
 0x4b8   :  { %3222 = vmatpush.bf16.msra.mxu2 %v8447_v41  ;;  %v10638_v41 = vld [vmem:[#allocation2 + $0x6c] sm:$0xf]  ;;  %v8755_v11 = vor.u32 %v10738_v10, %v8752_v38  ;;  %v8560_v51 = vld [vmem:[#allocation2 + $0x218] sm:$0xf0] }
 0x4b9   :  { %3235 = vmatpush.bf16.msra.mxu3 %v8575_v43  ;;  %v8627_v43 = vor.u32 %v10706_v36, %v8624_v3  ;;  %v8355_v48 = vor.u32 %v10638_v41, %v8352_v22  ;;  %v10690_v29 = vld [vmem:[#allocation2 + $0x20c] sm:$0xf]  ;;  %v10757_v36 = vld [vmem:[%s13209_s5 + $0x20] sm:$0xff]  ;;  %v10768_v3 = vld [vmem:[%s13209_s5 + $0x78] sm:$0xff] }
 0x4ba   :  { %3248 = vmatpush.bf16.msrb.mxu0 %v8703_v33  ;;  %v10734_v33 = vld [vmem:[#allocation2 + $0x36c] sm:$0xf]  ;;  %v10754_v41 = vld [vmem:[%s13209_s5 + $0x8] sm:$0xff]  ;;  %v10753_v45 = vld [vmem:[%s13209_s5] sm:$0xff] }
 0x4bb   :  { %3210 = vmatpush.bf16.msra.mxu1 %v8303_v56  ;;  %v10634_v56 = vld [vmem:[#allocation2 + $0x4c] sm:$0xf]  ;;  %v10765_v47 = vld [vmem:[%s13209_s5 + $0x60] sm:$0xff] }
 0x4bc   :  { %3223 = vmatpush.bf16.msra.mxu2 %v8431_v62  ;;  %v8464_v62 = vld [vmem:[#allocation2 + $0x158] sm:$0xf0]  ;;  %v8339_v12 = vor.u32 %v10634_v56, %v8336_v59  ;;  %v10722_v30 = vld [vmem:[#allocation2 + $0x30c] sm:$0xf]  ;;  %v10764_v56 = vld [vmem:[%s13209_s5 + $0x58] sm:$0xff] }
 0x4bd   :  { %3236 = vmatpush.bf16.msra.mxu3 %v8559_v63  ;;  %v8739_v63 = vor.u32 %v10734_v33, %v8736_v50  ;;  %v10759_v57 = vld [vmem:[%s13209_s5 + $0x30] sm:$0xff] }
 0x4be   :  { %3249 = vmatpush.bf16.msrb.mxu0 %v8687_v49  ;;  %3211 = vmatmul.bf16.vlgmr.msra.gmra.mxu1 %v12633_v14  ;;  %v10630_v49 = vld [vmem:[#allocation2 + $0x2c] sm:$0xf] }
 0x4bf   :  { %3255 = vmatpush.bf16.msrb.mxu1 %v8419_v9  ;;  %3224 = vmatmul.bf16.vlgmr.msra.gmra.mxu2 %v12625_v58  ;;  %v10730_v9 = vld [vmem:[#allocation2 + $0x34c] sm:$0xf] }
 0x4c0   :  { %3268 = vmatpush.bf16.msrb.mxu2 %v8547_v61  ;;  %3237 = vmatmul.bf16.vlgmr.msra.gmra.mxu3 %v12629_v8  ;;  %v8720_v61 = vld [vmem:[#allocation2 + $0x358] sm:$0xf0]  ;;  %v10767_v38 = vld [vmem:[%s13209_s5 + $0x70] sm:$0xff] }
 0x4c1   :  { %3281 = vmatpush.bf16.msrb.mxu3 %v8675_v5  ;;  %3250 = vmatmul.bf16.vlgmr.msrb.gmra.mxu0 %v12637_v2  ;;  %v8467_v5 = vor.u32 %v10666_v60, %v8464_v62  ;;  %v8723_v6 = vor.u32 %v10730_v9, %v8720_v61  ;;  %v10763_v7 = vld [vmem:[%s13209_s5 + $0x50] sm:$0xff] }
 0x4c2   :  { %3294 = vmatpush.bf16.msra.mxu0 %v8803_v16  ;;  %v8448_v16 = vld [vmem:[#allocation2 + $0x138] sm:$0xf0] }
 0x4c3   :  { %3256 = vmatpush.bf16.msrb.mxu1 %v8403_v4  ;;  %v8704_v4 = vld [vmem:[#allocation2 + $0x338] sm:$0xf0]  ;;  %v8451_v15 = vor.u32 %v10662_v53, %v8448_v16 }
 0x4c4   :  { %3269 = vmatpush.bf16.msrb.mxu2 %v8531_v20  ;;  %v8323_v20 = vor.u32 %v10630_v49, %v8320_v1  ;;  %v8707_v25 = vor.u32 %v10726_v18, %v8704_v4  ;;  %v10762_v49 = vld [vmem:[%s13209_s5 + $0x48] sm:$0xff]  ;;  %v10761_v16 = vld [vmem:[%s13209_s5 + $0x40] sm:$0xff] }
 0x4c5   :  { %3282 = vmatpush.bf16.msrb.mxu3 %v8659_v23  ;;  %v10626_v23 = vld [vmem:[#allocation2 + $0xc] sm:$0xf] }
 0x4c6   :  { %3295 = vmatpush.bf16.msra.mxu0 %v8787_v28  ;;  %v8432_v28 = vld [vmem:[#allocation2 + $0x118] sm:$0xf0] }
 0x4c7   :  { %3257 = vmatpush.bf16.msrb.mxu1 %v8387_v31  ;;  %v8688_v31 = vld [vmem:[#allocation2 + $0x318] sm:$0xf0]  ;;  %v8435_v21 = vor.u32 %v10658_v27, %v8432_v28  ;;  %v10774_v27 = vld [vmem:[%s13209_s5 + $0xa8] sm:$0xff] }
 0x4c8   :  { %3270 = vmatpush.bf16.msrb.mxu2 %v8515_v19  ;;  %v8307_v19 = vor.u32 %v10626_v23, %v8304_v26  ;;  %v8691_v34 = vor.u32 %v10722_v30, %v8688_v31  ;;  %v10773_v30 = vld [vmem:[%s13209_s5 + $0xa0] sm:$0xff] }
 0x4c9   :  { %3283 = vmatpush.bf16.msrb.mxu3 %v8643_v37  ;;  %v8563_v37 = vor.u32 %v10690_v29, %v8560_v51 }
 0x4ca   :  { %3296 = vmatpush.bf16.msra.mxu0 %v8771_v32  ;;  %v10758_v32 = vld [vmem:[%s13209_s5 + $0x28] sm:$0xff] }
 0x4cb   :  { %3258 = vmatpush.bf16.msrb.mxu1 %v8371_v40 }
 0x4cc   :  { %3271 = vmatpush.bf16.msrb.mxu2 %v8499_v42 }
 0x4cd   :  { %3284 = vmatpush.bf16.msrb.mxu3 %v8627_v43 }
 0x4ce   :  { %3297 = vmatpush.bf16.msra.mxu0 %v8755_v11 }
 0x4cf   :  { %3259 = vmatpush.bf16.msrb.mxu1 %v8355_v48 }
 0x4d0   :  { %3272 = vmatpush.bf16.msrb.mxu2 %v8483_v54 }
 0x4d1   :  { %3285 = vmatpush.bf16.msrb.mxu3 %v8611_v35 }
 0x4d2   :  { %3298 = vmatpush.bf16.msra.mxu0 %v8739_v63 }
 0x4d3   :  { %3260 = vmatpush.bf16.msrb.mxu1 %v8339_v12 }
 0x4d4   :  { %3273 = vmatpush.bf16.msrb.mxu2 %v8467_v5 }
 0x4d5   :  { %3286 = vmatpush.bf16.msrb.mxu3 %v8595_v0  ;;  %v10776_v0 = vld [vmem:[%s13209_s5 + $0xb8] sm:$0xff] }
 0x4d6   :  { %3299 = vmatpush.bf16.msra.mxu0 %v8723_v6 }
 0x4d7   :  { %3261 = vmatpush.bf16.msrb.mxu1 %v8323_v20  ;;  %v10775_v20 = vld [vmem:[%s13209_s5 + $0xb0] sm:$0xff] }
 0x4d8   :  { %3274 = vmatpush.bf16.msrb.mxu2 %v8451_v15 }
 0x4d9   :  { %3287 = vmatpush.bf16.msrb.mxu3 %v8579_v24 }
 0x4da   :  { %3300 = vmatpush.bf16.msra.mxu0 %v8707_v25 }
 0x4db   :  { %3262 = vmatpush.bf16.msrb.mxu1 %v8307_v19 }
 0x4dc   :  { %3275 = vmatpush.bf16.msrb.mxu2 %v8435_v21 }
 0x4dd   :  { %3288 = vmatpush.bf16.msrb.mxu3 %v8563_v37 }
 0x4de   :  { %3301 = vmatpush.bf16.msra.mxu0 %v8691_v34  ;;  %3263 = vmatmul.bf16.vlgmr.msrb.gmra.mxu1 %v12633_v14  ;;  %v10756_v14 = vld [vmem:[%s13209_s5 + $0x18] sm:$0xff] }
 0x4df   :  { %3631 = vmatpush.bf16.msra.mxu1 %v10760_v52  ;;  %3276 = vmatmul.bf16.vlgmr.msrb.gmra.mxu2 %v12625_v58  ;;  %v12662_v58 = vld [vmem:[#allocation16] sm:$0xf] }
 0x4e0   :  { %3289 = vmatmul.bf16.vlgmr.msrb.gmra.mxu3 %v12629_v8  ;;  %3644 = vmatpush.bf16.msra.mxu2 %v10768_v3  ;;  %v10755_v8 = vld [vmem:[%s13209_s5 + $0x10] sm:$0xff]  ;;  %v2452_v15 = vperm.slane %v12662_v58, 1  ;;  %v10772_v34 = vld [vmem:[%s13209_s5 + $0x98] sm:$0xff] }
 0x4e1   :  { %3302 = vmatmul.bf16.vlgmr.msra.gmra.mxu0 %v12637_v2  ;;  %v2451_v2 = vperm.slane %v12662_v58, 0  ;;  %3657 = vmatpush.bf16.msra.mxu3 %v10776_v0 }
 0x4e3   :  { %3632 = vmatpush.bf16.msra.mxu1 %v10759_v57 }
 0x4e4   :  { %3645 = vmatpush.bf16.msra.mxu2 %v10767_v38 }
 0x4e5   :  { %3658 = vmatpush.bf16.msra.mxu3 %v10775_v20 }
 0x4e7   :  { %3633 = vmatpush.bf16.msra.mxu1 %v10758_v32 }
 0x4e8   :  { %3646 = vmatpush.bf16.msra.mxu2 %v10766_v55 }
 0x4e9   :  { %3659 = vmatpush.bf16.msra.mxu3 %v10774_v27 }
 0x4eb   :  { %3634 = vmatpush.bf16.msra.mxu1 %v10757_v36 }
 0x4ec   :  { %3647 = vmatpush.bf16.msra.mxu2 %v10765_v47 }
 0x4ed   :  { %3660 = vmatpush.bf16.msra.mxu3 %v10773_v30 }
 0x4ef   :  { %3635 = vmatpush.bf16.msra.mxu1 %v10756_v14 }
 0x4f0   :  { %3648 = vmatpush.bf16.msra.mxu2 %v10764_v56 }
 0x4f1   :  { %3661 = vmatpush.bf16.msra.mxu3 %v10772_v34 }
 0x4f3   :  { %3636 = vmatpush.bf16.msra.mxu1 %v10755_v8 }
 0x4f4   :  { %3649 = vmatpush.bf16.msra.mxu2 %v10763_v7  ;;  %v10781_v7 = vld [vmem:[%s13209_s5 + $0xe0] sm:$0xff] }
 0x4f7   :  { %3637 = vmatpush.bf16.msra.mxu1 %v10754_v41  ;;  %v10770_v41 = vld [vmem:[%s13209_s5 + $0x88] sm:$0xff] }
 0x4f8   :  { %3650 = vmatpush.bf16.msra.mxu2 %v10762_v49  ;;  %v10780_v49 = vld [vmem:[%s13209_s5 + $0xd8] sm:$0xff] }
 0x4fb   :  { %v3108_v10 = vpop.f32.mrf.mxu1  ;;  %3638 = vmatpush.bf16.msra.mxu1 %v10753_v45 }
 0x4fc   :  { %v3109_v40 = vadd.f32 %v3108_v10, %v2451_v2  ;;  %3651 = vmatpush.bf16.msra.mxu2 %v10761_v16  ;;  %v10771_v2 = vld [vmem:[%s13209_s5 + $0x90] sm:$0xff] }
 0x4fd   :  { %3662 = vmatpush.bf16.msra.mxu3 %v10771_v2 }
 0x4fe   :  { %v3147_v42 = vpop.f32.mrf.mxu0 }
 0x501   :  { %3663 = vmatpush.bf16.msra.mxu3 %v10770_v41 }
 0x502   :  { %v3121_v43 = vpop.f32.mrf.mxu2 }
 0x503   :  { %v3122_v22 = vadd.f32 %v3121_v43, %v3109_v40  ;;  %v3134_v44 = vpop.f32.mrf.mxu3  ;;  %v3110_v46 = vpop.f32.mrf.mxu1 }
 0x504   :  { %v10784_v46 = vld [vmem:[%s13209_s5 + $0xf8] sm:$0xff] }
 0x505   :  { %v3135_v11 = vadd.f32 %v3134_v44, %v3122_v22  ;;  %v10769_v22 = vld [vmem:[%s13209_s5 + $0x80] sm:$0xff]  ;;  %3670 = vmatpush.bf16.msrb.mxu0 %v10784_v46 }
 0x506   :  { %v3149_v50 = vpop.f32.mrf.mxu0  ;;  %3664 = vmatpush.bf16.msra.mxu3 %v10769_v22 }
 0x507   :  { %v12671_v33 = vadd.f32 %v3147_v42, %v3135_v11 }
 0x509   :  { %v3307_v48 = vsel %vm953_vm1, %v12671_v33, 0.0  ;;  %v3335_v54 = vmul.f32 %v12671_v33, %v12671_v33 }
 0x50a   :  { %v3308_v35 = vrot.slane %v3307_v48, 4  ;;  %v3123_v59 = vpop.f32.mrf.mxu2 }
 0x50b   :  { %v3339_v60 = vsel %vm953_vm1, %v3335_v54, 0.0  ;;  %v3136_v62 = vpop.f32.mrf.mxu3  ;;  %v10783_v54 = vld [vmem:[%s13209_s5 + $0xf0] sm:$0xff] }
 0x50c   :  { %v3309_v63 = vadd.f32 %v3308_v35, %v3307_v48  ;;  %v3340_v39 = vrot.slane %v3339_v60, 4  ;;  %v2453_v48 = vperm.slane %v12662_v58, 2  ;;  %3671 = vmatpush.bf16.msrb.mxu0 %v10783_v54 }
 0x50e   :  { %v3310_v9 = vrot.slane %v3309_v63, 2  ;;  %v3341_v61 = vadd.f32 %v3340_v39, %v3339_v60  ;;  %v10782_v60 = vld [vmem:[%s13209_s5 + $0xe8] sm:$0xff] }
 0x510   :  { %v3311_v12 = vadd.f32 %v3310_v9, %v3309_v63  ;;  %v3342_v5 = vrot.slane %v3341_v61, 2  ;;  %3672 = vmatpush.bf16.msrb.mxu0 %v10782_v60 }
 0x512   :  { %v3312_v1 = vrot.slane %v3311_v12, 1  ;;  %v3343_v53 = vadd.f32 %v3342_v5, %v3341_v61 }
 0x514   :  { %v3344_v6 = vrot.slane %v3343_v53, 1  ;;  %v3313_v13 = vadd.f32 %v3312_v1, %v3311_v12  ;;  %3673 = vmatpush.bf16.msrb.mxu0 %v10781_v7  ;;  %v10791_v7 = vld [vmem:[#allocation32 + $0x2c] sm:$0xf0] }
 0x516   :  { %v3345_v17 = vadd.f32 %v3344_v6, %v3343_v53 }
 0x518   :  { %v3367_v18 = vsel %vm13179_vm2, %v3313_v13, %v3345_v17  ;;  %3674 = vmatpush.bf16.msrb.mxu0 %v10780_v49 }
 0x519   :  { %v3371_v4 = vpack.c.bf16 %v3367_v18, %v3367_v18 }
 0x51b   :  { %3639 = vmatmul.bf16.vlgmr.msra.gmra.mxu1 %v3371_v4  ;;  %v3160_v23 = vpop.f32.mrf.mxu1  ;;  %v10779_v4 = vld [vmem:[%s13209_s5 + $0xd0] sm:$0xff] }
 0x51c   :  { %v3161_v26 = vadd.f32 %v3160_v23, %v2452_v15  ;;  %3675 = vmatpush.bf16.msrb.mxu0 %v10779_v4  ;;  %v10778_v23 = vld [vmem:[%s13209_s5 + $0xc8] sm:$0xff] }
 0x51e   :  { %v3199_v24 = vpop.f32.mrf.mxu0 }
 0x520   :  { %3676 = vmatpush.bf16.msrb.mxu0 %v10778_v23  ;;  %v8936_v23 = vld [vmem:[#allocation32 + $0x10] sm:$0xf0] }
 0x522   :  { %v3173_v28 = vpop.f32.mrf.mxu2 }
 0x523   :  { %v3174_v25 = vadd.f32 %v3173_v28, %v3161_v26  ;;  %v3186_v29 = vpop.f32.mrf.mxu3  ;;  %v3162_v19 = vpop.f32.mrf.mxu1 }
 0x524   :  { %v2454_v19 = vperm.slane %v12662_v58, 3 }
 0x525   :  { %v3187_v51 = vadd.f32 %v3186_v29, %v3174_v25  ;;  %v10777_v25 = vld [vmem:[%s13209_s5 + $0xc0] sm:$0xff] }
 0x526   :  { %v3201_v21 = vpop.f32.mrf.mxu0  ;;  %3677 = vmatpush.bf16.msrb.mxu0 %v10777_v25  ;;  %v8944_v25 = vld [vmem:[#allocation32 + $0x18] sm:$0xf0] }
 0x527   :  { %v12688_v31 = vadd.f32 %v3199_v24, %v3187_v51 }
 0x529   :  { %v3314_v37 = vsel %vm953_vm1, %v12688_v31, 0.0  ;;  %v3336_v52 = vmul.f32 %v12688_v31, %v12688_v31 }
 0x52a   :  { %v3315_v57 = vrot.slane %v3314_v37, 4  ;;  %v3175_v32 = vpop.f32.mrf.mxu2 }
 0x52b   :  { %v3346_v36 = vsel %vm953_vm1, %v3336_v52, 0.0  ;;  %v3188_v3 = vpop.f32.mrf.mxu3 }
 0x52c   :  { %v3316_v14 = vadd.f32 %v3315_v57, %v3314_v37  ;;  %v3347_v8 = vrot.slane %v3346_v36, 4 }
 0x52e   :  { %v3317_v10 = vrot.slane %v3316_v14, 2  ;;  %v3348_v38 = vadd.f32 %v3347_v8, %v3346_v36 }
 0x530   :  { %v3318_v40 = vadd.f32 %v3317_v10, %v3316_v14  ;;  %v3349_v42 = vrot.slane %v3348_v38, 2 }
 0x532   :  { %v3319_v55 = vrot.slane %v3318_v40, 1  ;;  %v3350_v43 = vadd.f32 %v3349_v42, %v3348_v38 }
 0x534   :  { %v3351_v44 = vrot.slane %v3350_v43, 1  ;;  %v3320_v45 = vadd.f32 %v3319_v55, %v3318_v40 }
 0x536   :  { %v3352_v11 = vadd.f32 %v3351_v44, %v3350_v43 }
 0x538   :  { %v3368_v47 = vsel %vm13179_vm2, %v3320_v45, %v3352_v11 }
 0x539   :  { %v3372_v50 = vpack.c.bf16 %v3368_v47, %v3368_v47 }
 0x53b   :  { %3652 = vmatmul.bf16.vlgmr.msra.gmra.mxu2 %v3372_v50  ;;  %v3212_v56 = vpop.f32.mrf.mxu1 }
 0x53c   :  { %v3213_v35 = vadd.f32 %v3212_v56, %v2453_v48 }
 0x53e   :  { %v3251_v59 = vpop.f32.mrf.mxu0 }
 0x542   :  { %v3225_v62 = vpop.f32.mrf.mxu2 }
 0x543   :  { %v3226_v63 = vadd.f32 %v3225_v62, %v3213_v35  ;;  %v3238_v39 = vpop.f32.mrf.mxu3  ;;  %v3214_v61 = vpop.f32.mrf.mxu1 }
 0x545   :  { %v3239_v9 = vadd.f32 %v3238_v39, %v3226_v63  ;;  %v8950_v39 = vld [vmem:[#allocation32 + $0x20] sm:$0xf] }
 0x546   :  { %v3253_v5 = vpop.f32.mrf.mxu0  ;;  %v8951_v61 = vor.u32 %v10791_v7, %v8950_v39 }
 0x547   :  { %v12705_v12 = vadd.f32 %v3251_v59, %v3239_v9  ;;  %v8934_v9 = vld [vmem:[#allocation32] sm:$0xf]  ;;  %v10787_v5 = vld [vmem:[#allocation32 + $0xc] sm:$0xf0] }
 0x548   :  { %3742 = vmatpush.bf16.msrb.mxu1 %v8951_v61 }
 0x549   :  { %v3321_v0 = vsel %vm953_vm1, %v12705_v12, 0.0  ;;  %v3337_v1 = vmul.f32 %v12705_v12, %v12705_v12 }
 0x54a   :  { %v3322_v53 = vrot.slane %v3321_v0, 4  ;;  %v3227_v16 = vpop.f32.mrf.mxu2 }
 0x54b   :  { %v3353_v6 = vsel %vm953_vm1, %v3337_v1, 0.0  ;;  %v3240_v13 = vpop.f32.mrf.mxu3  ;;  %v10789_v1 = vld [vmem:[#allocation32 + $0x24] sm:$0xf]  ;;  %v8958_v16 = vld [vmem:[#allocation32 + $0x28] sm:$0xf] }
 0x54c   :  { %v3323_v17 = vadd.f32 %v3322_v53, %v3321_v0  ;;  %v3354_v18 = vrot.slane %v3353_v6, 4  ;;  %v8935_v0 = vor.u32 %v10787_v5, %v8934_v9  ;;  %v8952_v53 = vld [vmem:[#allocation32 + $0x30] sm:$0xf0]  ;;  %v10792_v13 = vld [vmem:[#allocation32 + $0x34] sm:$0xf0] }
 0x54d   :  { %v8959_v4 = vor.u32 %v10792_v13, %v8958_v16 }
 0x54e   :  { %v3324_v20 = vrot.slane %v3323_v17, 2  ;;  %v3355_v15 = vadd.f32 %v3354_v18, %v3353_v6  ;;  %3743 = vmatpush.bf16.msrb.mxu1 %v8935_v0  ;;  %v8955_v6 = vor.u32 %v10789_v1, %v8952_v53  ;;  %v8960_v18 = vld [vmem:[#allocation32 + $0x38] sm:$0xf0]  ;;  %v11266_v53 = vld [vmem:[#allocation22] ss:$0 sm:$0xff] }
 0x54f   :  { %3768 = vmatpush.bf16.msrb.mxu3 %v8959_v4 }
 0x550   :  { %v3325_v24 = vadd.f32 %v3324_v20, %v3323_v17  ;;  %v3356_v26 = vrot.slane %v3355_v15, 2  ;;  %v10790_v17 = vld [vmem:[#allocation32 + $0x2c] sm:$0xf]  ;;  %3755 = vmatpush.bf16.msrb.mxu2 %v8955_v6 }
 0x551   :  { %v8963_v20 = vor.u32 %v10790_v17, %v8960_v18 }
 0x552   :  { %v3326_v27 = vrot.slane %v3325_v24, 1  ;;  %v3357_v28 = vadd.f32 %v3356_v26, %v3355_v15  ;;  %v10785_v15 = vld [vmem:[#allocation32 + $0x4] sm:$0xf] }
 0x553   :  { %3781 = vmatpush.bf16.msra.mxu0 %v8963_v20  ;;  %v8939_v26 = vor.u32 %v10785_v15, %v8936_v23 }
 0x554   :  { %v3358_v29 = vrot.slane %v3357_v28, 1  ;;  %v3327_v51 = vadd.f32 %v3326_v27, %v3325_v24  ;;  %v8942_v24 = vld [vmem:[#allocation32 + $0x8] sm:$0xf]  ;;  %v10788_v27 = vld [vmem:[#allocation32 + $0x14] sm:$0xf0] }
 0x555   :  { %3756 = vmatpush.bf16.msrb.mxu2 %v8939_v26 }
 0x556   :  { %v3359_v30 = vadd.f32 %v3358_v29, %v3357_v28  ;;  %v10786_v28 = vld [vmem:[#allocation32 + $0xc] sm:$0xf]  ;;  %v8943_v29 = vor.u32 %v10788_v27, %v8942_v24 }
 0x558   :  { %v3369_v21 = vsel %vm13179_vm2, %v3327_v51, %v3359_v30  ;;  %v8947_v51 = vor.u32 %v10786_v28, %v8944_v25  ;;  %3769 = vmatpush.bf16.msrb.mxu3 %v8943_v29  ;;  %v10794_v30 = vld [vmem:[#allocation20 + $0x8] sm:$0xff] }
 0x559   :  { %v3373_v52 = vpack.c.bf16 %v3369_v21, %v3369_v21  ;;  %4016 = vmatpush.bf16.msra.mxu1 %v10794_v30  ;;  %v10793_v21 = vld [vmem:[#allocation20] sm:$0xff] }
 0x55a   :  { %3782 = vmatpush.bf16.msra.mxu0 %v8947_v51 }
 0x55b   :  { %v3264_v37 = vpop.f32.mrf.mxu1  ;;  %3665 = vmatmul.bf16.vlgmr.msra.gmra.mxu3 %v3373_v52 }
 0x55c   :  { %v3265_v57 = vadd.f32 %v3264_v37, %v2454_v19 }
 0x55d   :  { %4017 = vmatpush.bf16.msra.mxu1 %v10793_v21 }
 0x55e   :  { %v3303_v34 = vpop.f32.mrf.mxu0 }
 0x562   :  { %v3277_v32 = vpop.f32.mrf.mxu2 }
 0x563   :  { %v3278_v36 = vadd.f32 %v3277_v32, %v3265_v57  ;;  %v3290_v3 = vpop.f32.mrf.mxu3  ;;  %v3266_v14 = vpop.f32.mrf.mxu1 }
 0x565   :  { %v3291_v8 = vadd.f32 %v3290_v3, %v3278_v36 }
 0x566   :  { %v3305_v2 = vpop.f32.mrf.mxu0 }
 0x567   :  { %v12718_v10 = vadd.f32 %v3303_v34, %v3291_v8  ;;  %v3994_v8 = vpop.permute.xlu0 %3993  ;;  %v10802_v2 = vld [vmem:[%s12064_s25 + $0x38] sm:$0xff] }
 0x568   :  { %4104 = vmatpush.bf16.msra.mxu2 %v10802_v2 }
 0x569   :  { %v3328_v38 = vsel %vm953_vm1, %v12718_v10, 0.0  ;;  %v3338_v58 = vmul.f32 %v12718_v10, %v12718_v10 }
 0x56a   :  { %v3329_v40 = vrot.slane %v3328_v38, 4  ;;  %v3279_v42 = vpop.f32.mrf.mxu2 }
 0x56b   :  { %v3360_v41 = vsel %vm953_vm1, %v3338_v58, 0.0  ;;  %v3292_v55 = vpop.f32.mrf.mxu3  ;;  %v10800_v58 = vld [vmem:[%s12064_s25 + $0x28] sm:$0xff]  ;;  %v10798_v42 = vld [vmem:[%s12064_s25 + $0x18] sm:$0xff] }
 0x56c   :  { %v3330_v43 = vadd.f32 %v3329_v40, %v3328_v38  ;;  %v3361_v22 = vrot.slane %v3360_v41, 4  ;;  %v10801_v38 = vld [vmem:[%s12064_s25 + $0x30] sm:$0xff]  ;;  %v10799_v40 = vld [vmem:[%s12064_s25 + $0x20] sm:$0xff] }
 0x56d   :  { %4105 = vmatpush.bf16.msra.mxu2 %v10801_v38 }
 0x56e   :  { %v3331_v44 = vrot.slane %v3330_v43, 2  ;;  %v3362_v45 = vadd.f32 %v3361_v22, %v3360_v41  ;;  %v10797_v41 = vld [vmem:[%s12064_s25 + $0x10] sm:$0xff] }
 0x570   :  { %v3332_v11 = vadd.f32 %v3331_v44, %v3330_v43  ;;  %v3363_v46 = vrot.slane %v3362_v45, 2 }
 0x571   :  { %4106 = vmatpush.bf16.msra.mxu2 %v10800_v58 }
 0x572   :  { %v3364_v47 = vadd.f32 %v3363_v46, %v3362_v45  ;;  %v3333_v50 = vrot.slane %v3332_v11, 1  ;;  %v10796_v45 = vld [vmem:[%s12064_s25 + $0x8] sm:$0xff] }
 0x574   :  { %v3365_v48 = vrot.slane %v3364_v47, 1  ;;  %v3334_v54 = vadd.f32 %v3333_v50, %v3332_v11 }
 0x575   :  { %4107 = vmatpush.bf16.msra.mxu2 %v10799_v40 }
 0x576   :  { %v3366_v56 = vadd.f32 %v3365_v48, %v3364_v47 }
 0x578   :  { %v3370_v35 = vsel %vm13179_vm2, %v3334_v54, %v3366_v56  ;;  %v10795_v54 = vld [vmem:[%s12064_s25] sm:$0xff] }
 0x579   :  { %v3374_v59 = vpack.c.bf16 %v3370_v35, %v3370_v35  ;;  %4108 = vmatpush.bf16.msra.mxu2 %v10798_v42 }
 0x57b   :  { %3678 = vmatmul.bf16.vlgmr.msrb.gmra.mxu0 %v3374_v59 }
 0x57d   :  { %4109 = vmatpush.bf16.msra.mxu2 %v10797_v41 }
 0x581   :  { %4110 = vmatpush.bf16.msra.mxu2 %v10796_v45 }
 0x585   :  { %4111 = vmatpush.bf16.msra.mxu2 %v10795_v54 }
 0x598   :  { %v3640_v60 = vpop.f32.mrf.mxu1 }
 0x5a0   :  { %v3642_v62 = vpop.f32.mrf.mxu1 }
 0x5be   :  { %v3653_v63 = vpop.f32.mrf.mxu2 }
 0x5bf   :  { %v3654_v52 = vadd.f32 %v3653_v63, %v3640_v60 }
 0x5c6   :  { %v3655_v49 = vpop.f32.mrf.mxu2 }
 0x5de   :  { %v3666_v19 = vpop.f32.mrf.mxu3 }
 0x5df   :  { %v3667_v34 = vadd.f32 %v3666_v19, %v3654_v52 }
 0x5e6   :  { %v3668_v37 = vpop.f32.mrf.mxu3 }
 0x5f8   :  { %v3679_v57 = vpop.f32.mrf.mxu0 }
 0x5f9   :  { %v3680_v32 = vadd.f32 %v3679_v57, %v3667_v34 }
 0x5fb   :  { %v3683_v36 = vmul.f32 0.03125, %v3680_v32 }
 0x5fd   :  { %v3684_v3 = vpack.c.bf16 %v3683_v36, %v3683_v36 }
 0x5ff   :  { %8964 = vmatmul.msk.bf16.vlgmr.msrb.gmra.mxu1 %vm714_vm0, %v3684_v3  ;;  %8965 = vmatmul.msk.bf16.vlgmr.msrb.gmra.mxu2 %vm714_vm0, %v3684_v3 }
 0x600   :  { %8966 = vmatmul.msk.bf16.vlgmr.msrb.gmra.mxu3 %vm714_vm0, %v3684_v3  ;;  %8967 = vmatmul.msk.bf16.vlgmr.msra.gmra.mxu0 %vm714_vm0, %v3684_v3  ;;  %v3681_v14 = vpop.f32.mrf.mxu0 }
 0x60f   :  { %8980 = vmatmul.msk.bf16.vlgmr.msra.gmra.mxu1 %vm714_vm0, %v3994_v8 }
 0x67c   :  { %v12737_v55 = vpop.f32.mrf.mxu1 }
 0x67d   :  { %v3788_v43 = vmul.f32 %v12737_v55, %v12737_v55  ;;  %v12741_v22 = vpop.f32.mrf.mxu0 }
 0x67e   :  { %v3791_v44 = vmul.f32 %v12741_v22, %v12741_v22 }
 0x67f   :  { %v3796_v11 = vrot.slane %v3788_v43, 7 }
 0x680   :  { %v3799_v46 = vrot.slane %v3791_v44, 7 }
 0x681   :  { %v3804_v47 = vsub.f32 %v12737_v55, %v3796_v11 }
 0x682   :  { %v3807_v50 = vsub.f32 %v12741_v22, %v3799_v46  ;;  %v12748_v48 = vpop.f32.mrf.mxu2 }
 0x683   :  { %v3808_v56 = vmax.f32 %v3804_v47, 0.0  ;;  %v3789_v35 = vmul.f32 %v12748_v48, %v12748_v48  ;;  %v12753_v59 = vpop.f32.mrf.mxu3 }
 0x684   :  { %v3811_v60 = vmax.f32 %v3807_v50, 0.0  ;;  %v3790_v62 = vmul.f32 %v12753_v59, %v12753_v59  ;;  %v3747_v63 = vpop.f32.mrf.mxu1 }
 0x685   :  { %v3813_v39 = vadd.f32 1e-05, %v3808_v56  ;;  %v3797_v7 = vrot.slane %v3789_v35, 7  ;;  %v3786_v9 = vpop.f32.mrf.mxu0 }
 0x686   :  { %v3816_v61 = vadd.f32 1e-05, %v3811_v60  ;;  %v3798_v5 = vrot.slane %v3790_v62, 7 }
 0x687   :  { %11268 = vrsqrt.f32 %v3813_v39  ;;  %v3805_v49 = vsub.f32 %v12748_v48, %v3797_v7  ;;  %vm3823_vm7 = vweird.f32 %v3813_v39 }
 0x688   :  { %11270 = vrsqrt.f32 %v3816_v61  ;;  %v3806_v0 = vsub.f32 %v12753_v59, %v3798_v5  ;;  %vm3853_vm9 = vweird.f32 %v3816_v61 }
 0x689   :  { %v3809_v1 = vmax.f32 %v3805_v49, 0.0 }
 0x68a   :  { %v3810_v16 = vmax.f32 %v3806_v0, 0.0  ;;  %v3760_v6 = vpop.f32.mrf.mxu2  ;;  %v3869_v0 = vperm.slane %v12737_v55, 0 }
 0x68b   :  { %v3814_v13 = vadd.f32 1e-05, %v3809_v1  ;;  %v3773_v17 = vpop.f32.mrf.mxu3  ;;  %v3872_v1 = vperm.slane %v12741_v22, 0  ;;  %v3812_v6 = vld [vmem:[#allocation17] sm:$0xf] }
 0x68c   :  { %v3815_v18 = vadd.f32 1e-05, %v3810_v16  ;;  %v4019_v4 = vpop.f32.mrf.mxu1  ;;  %v3871_v16 = vperm.slane %v12753_v59, 0  ;;  %v3873_v17 = vsub.f32 %v12671_v33, %v3869_v0 }
 0x68d   :  { %v11269_v20 = vpop.eup %11268  ;;  %11272 = vrsqrt.f32 %v3814_v13  ;;  %v12759_v15 = vadd.f32 %v11266_v53, %v4019_v4  ;;  %vm3833_vm13 = vweird.f32 %v3814_v13  ;;  %v3870_v53 = vperm.slane %v12748_v48, 0 }
 0x68e   :  { %v11271_v23 = vpop.eup %11270  ;;  %v3818_v24 = vmul.f32 %v11269_v20, %v3813_v39  ;;  %11274 = vrsqrt.f32 %v3815_v18  ;;  %vm3824_vm5 = vweird.f32 %v11269_v20  ;;  %vm3843_vm15 = vweird.f32 %v3815_v18 }
 0x68f   :  { %v3848_v26 = vmul.f32 %v11271_v23, %v3816_v61  ;;  %v4023_v27 = vsel %vm953_vm1, %v12759_v15, 0.0  ;;  %v4030_v28 = vmul.f32 %v12759_v15, %v12759_v15  ;;  %vm3854_vm6 = vweird.f32 %v11271_v23  ;;  %vm3825_vm8 = vmor %vm3823_vm7, %vm3824_vm5 }
 0x690   :  { %v3819_v25 = vmul.f32 %v11269_v20, %v3818_v24  ;;  %v4024_v29 = vrot.slane %v4023_v27, 4  ;;  %vm3855_vm10 = vmor %vm3853_vm9, %vm3854_vm6  ;;  %v3876_v4 = vsub.f32 %v12718_v10, %v3872_v1  ;;  %v3875_v24 = vsub.f32 %v12705_v12, %v3871_v16 }
 0x691   :  { %v3849_v51 = vmul.f32 %v11271_v23, %v3848_v26  ;;  %v4031_v30 = vsel %vm953_vm1, %v4030_v28, 0.0 }
 0x692   :  { %v3820_v19 = vmul.f32 0.5, %v3819_v25  ;;  %v4025_v21 = vadd.f32 %v4024_v29, %v4023_v27  ;;  %v4032_v37 = vrot.slane %v4031_v30, 4 }
 0x693   :  { %v11273_v52 = vpop.eup %11272  ;;  %v3850_v34 = vmul.f32 0.5, %v3849_v51 }
 0x694   :  { %v11275_v57 = vpop.eup %11274  ;;  %v3821_v32 = vsub.f32 1.5, %v3820_v19  ;;  %v3828_v36 = vmul.f32 %v11273_v52, %v3814_v13  ;;  %v4026_v3 = vrot.slane %v4025_v21, 2  ;;  %v4021_v14 = vpop.f32.mrf.mxu1  ;;  %v4033_v38 = vadd.f32 %v4032_v37, %v4031_v30  ;;  %v3890_v13 = vld [vmem:[#allocation19] sm:$0xf] }
 0x695   :  { %v3851_v8 = vsub.f32 1.5, %v3850_v34  ;;  %v3838_v2 = vmul.f32 %v11275_v57, %v3815_v18  ;;  %vm3834_vm11 = vweird.f32 %v11273_v52  ;;  %vm3844_vm12 = vweird.f32 %v11275_v57 }
 0x696   :  { %v3822_v58 = vmul.f32 %v11269_v20, %v3821_v32  ;;  %v3829_v40 = vmul.f32 %v11273_v52, %v3828_v36  ;;  %v4027_v42 = vadd.f32 %v4026_v3, %v4025_v21  ;;  %v4034_v44 = vrot.slane %v4033_v38, 2  ;;  %vm3835_vm14 = vmor %vm3833_vm13, %vm3834_vm11  ;;  %v10803_v32 = vld [vmem:[#allocation34] sm:$0xff] }
 0x697   :  { %v3852_v41 = vmul.f32 %v11271_v23, %v3851_v8  ;;  %v3839_v43 = vmul.f32 %v11275_v57, %v3838_v2  ;;  %vm3845_vm3 = vmor %vm3843_vm15, %vm3844_vm12  ;;  %v3892_v26 = vperm.slane %v3890_v13, 0  ;;  %v3893_v55 = vperm.slane %v3890_v13, 1 }
 0x698   :  { %v3826_v45 = vsel %vm3825_vm8, %v11269_v20, %v3822_v58  ;;  %v3830_v11 = vmul.f32 0.5, %v3829_v40  ;;  %v4028_v50 = vrot.slane %v4027_v42, 1  ;;  %v4035_v54 = vadd.f32 %v4034_v44, %v4033_v38 }
 0x699   :  { %3861 = vst [vmem:[#allocation1] sm:$0xff] %v3826_v45  ;;  %v3856_v46 = vsel %vm3855_vm10, %v11271_v23, %v3852_v41  ;;  %v3840_v47 = vmul.f32 0.5, %v3839_v43  ;;  %v3874_v20 = vsub.f32 %v12688_v31, %v3870_v53  ;;  %v3894_v27 = vperm.slane %v3890_v13, 2 }
 0x69a   :  { %3864 = vst [vmem:[#allocation1 + $0x1b] sm:$0xff] %v3856_v46  ;;  %v3831_v56 = vsub.f32 1.5, %v3830_v11  ;;  %v4036_v60 = vrot.slane %v4035_v54, 1  ;;  %v4029_v39 = vadd.f32 %v4028_v50, %v4027_v42  ;;  %v3895_v22 = vperm.slane %v3890_v13, 3 }
 0x69b   :  { %v3841_v35 = vsub.f32 1.5, %v3840_v47 }
 0x69c   :  { %v3832_v62 = vmul.f32 %v11273_v52, %v3831_v56  ;;  %v4037_v7 = vadd.f32 %v4036_v60, %v4035_v54 }
 0x69d   :  { %v3842_v63 = vmul.f32 %v11275_v57, %v3841_v35 }
 0x69e   :  { %v3836_v9 = vsel %vm3835_vm14, %v11273_v52, %v3832_v62  ;;  %v4038_v5 = vsel %vm13179_vm2, %v4029_v39, %v4037_v7 }
 0x69f   :  { %3862 = vst [vmem:[#allocation1 + $0x9] sm:$0xff] %v3836_v9  ;;  %v3846_v61 = vsel %vm3845_vm3, %v11275_v57, %v3842_v63  ;;  %v4039_v49 = vpack.c.bf16 %v4038_v5, %v4038_v5  ;;  %v10804_v57 = vld [vmem:[#allocation34 + $0x8] sm:$0xff] }
 0x6a0   :  { %3863 = vst [vmem:[#allocation1 + $0x12] sm:$0xff] %v3846_v61  ;;  %4144 = vmatpush.bf16.msra.mxu3 %v10804_v57 }
 0x6a1   :  { %4112 = vmatmul.bf16.vlgmr.msra.gmra.mxu2 %v4039_v49 }
 0x6a4   :  { %4145 = vmatpush.bf16.msra.mxu3 %v10803_v32 }
 0x6a7   :  { %v3866_v18 = vld [vmem:[#allocation1 + $0x1] ss:$9 sm:$0xff] }
 0x6a8   :  { %v3868_v23 = vmul.f32 %v3866_v18, %v3812_v6 }
 0x6aa   :  { %v3878_v28 = vperm.slane %v3868_v23, 0  ;;  %v3879_v48 = vperm.slane %v3868_v23, 1  ;;  %v3880_v25 = vperm.slane %v3868_v23, 2  ;;  %v3881_v59 = vperm.slane %v3868_v23, 3 }
 0x6ac   :  { %v3886_v29 = vmul.f32 %v3878_v28, %v3873_v17  ;;  %v3887_v51 = vmul.f32 %v3879_v48, %v3874_v20  ;;  %v3888_v30 = vmul.f32 %v3880_v25, %v3875_v24  ;;  %v3889_v33 = vmul.f32 %v3881_v59, %v3876_v4 }
 0x6ae   :  { %v12775_v19 = vadd.f32 %v3892_v26, %v3886_v29  ;;  %v12777_v10 = vadd.f32 %v3893_v55, %v3887_v51  ;;  %v12779_v31 = vadd.f32 %v3894_v27, %v3888_v30  ;;  %v12781_v21 = vadd.f32 %v3895_v22, %v3889_v33 }
 0x6b0   :  { %v8968_v12 = vmul.f32 -1.442695, %v12775_v19  ;;  %v8969_v37 = vmul.f32 -1.442695, %v12777_v10  ;;  %v8970_v52 = vmul.f32 -1.442695, %v12779_v31 }
 0x6b1   :  { %v8971_v34 = vmul.f32 -1.442695, %v12781_v21 }
 0x6b2   :  { %11276 = vpow2.f32 %v8968_v12 }
 0x6b3   :  { %11278 = vpow2.f32 %v8969_v37 }
 0x6b4   :  { %11280 = vpow2.f32 %v8970_v52 }
 0x6b5   :  { %11282 = vpow2.f32 %v8971_v34 }
 0x6b8   :  { %v11277_v36 = vpop.eup %11276 }
 0x6b9   :  { %v11279_v3 = vpop.eup %11278  ;;  %v3916_v14 = vadd.f32 1.0, %v11277_v36 }
 0x6ba   :  { %v11281_v8 = vpop.eup %11280  ;;  %v3917_v2 = vadd.f32 1.0, %v11279_v3 }
 0x6bb   :  { %v11283_v38 = vpop.eup %11282  ;;  %v3918_v58 = vadd.f32 1.0, %v11281_v8  ;;  %11284 = vrcp.f32 %v3916_v14  ;;  %v3929_v42 = vand.u32 2147483647, %v3916_v14  ;;  %v3931_v41 = vand.u32 2147483648, %v3916_v14 }
 0x6bc   :  { %v3919_v40 = vadd.f32 1.0, %v11283_v38  ;;  %11286 = vrcp.f32 %v3917_v2  ;;  %vm3925_vm4 = vweird.f32 %v3916_v14  ;;  %vm3940_vm5 = vweird.f32 %v3917_v2 }
 0x6bd   :  { %11288 = vrcp.f32 %v3918_v58  ;;  %v3944_v47 = vand.u32 2147483647, %v3917_v2  ;;  %v3946_v50 = vand.u32 2147483648, %v3917_v2  ;;  %vm12787_vm6 = vcmp.eq.f32.partialorder %v3929_v42, 8.507059e+37 }
 0x6be   :  { %11290 = vrcp.f32 %v3919_v40  ;;  %v3932_v35 = vor.u32 1.1754944e-38, %v3931_v41  ;;  %vm3955_vm7 = vweird.f32 %v3918_v58  ;;  %v3959_v39 = vand.u32 2147483647, %v3918_v58  ;;  %v4157_v41 = vld [vmem:[#allocation23] sm:$0x1] }
 0x6bf   :  { %v3961_v7 = vand.u32 2147483648, %v3918_v58  ;;  %vm12791_vm10 = vcmp.eq.f32.partialorder %v3944_v47, 8.507059e+37  ;;  %v3947_v1 = vor.u32 1.1754944e-38, %v3946_v50  ;;  %vm3970_vm13 = vweird.f32 %v3919_v40  ;;  %v11267_v47 = vld [vmem:[#allocation25] ss:$0 sm:$0xff] }
 0x6c0   :  { %v3974_v17 = vand.u32 2147483647, %v3919_v40  ;;  %v3976_v18 = vand.u32 2147483648, %v3919_v40  ;;  %vm3960_vm2 = vcmp.eq.f32.partialorder %v3959_v39, 8.507059e+37 }
 0x6c1   :  { %v11285_v43 = vpop.eup %11284  ;;  %v3962_v55 = vor.u32 1.1754944e-38, %v3961_v7 }
 0x6c2   :  { %v11287_v44 = vpop.eup %11286  ;;  %v3921_v45 = vmul.f32 %v11285_v43, %v3916_v14  ;;  %vm3926_vm8 = vweird.f32 %v11285_v43  ;;  %v3977_v59 = vor.u32 1.1754944e-38, %v3976_v18 }
 0x6c3   :  { %v11289_v11 = vpop.eup %11288  ;;  %v3936_v46 = vmul.f32 %v11287_v44, %v3917_v2  ;;  %vm3941_vm9 = vweird.f32 %v11287_v44  ;;  %vm3927_vm12 = vmor %vm3925_vm4, %vm3926_vm8 }
 0x6c4   :  { %v3922_v54 = vsub.f32 1.0, %v3921_v45  ;;  %v3951_v60 = vmul.f32 %v11289_v11, %v3918_v58  ;;  %v11291_v62 = vpop.eup %11290  ;;  %vm3956_vm11 = vweird.f32 %v11289_v11  ;;  %vm3942_vm14 = vmor %vm3940_vm5, %vm3941_vm9  ;;  %vm3975_vm5 = vcmp.eq.f32.partialorder %v3974_v17, 8.507059e+37 }
 0x6c5   :  { %v3937_v63 = vsub.f32 1.0, %v3936_v46  ;;  %v3966_v5 = vmul.f32 %v11291_v62, %v3919_v40  ;;  %vm3971_vm15 = vweird.f32 %v11291_v62  ;;  %vm3957_vm3 = vmor %vm3955_vm7, %vm3956_vm11 }
 0x6c6   :  { %v3923_v9 = vmul.f32 %v11285_v43, %v3922_v54  ;;  %v3952_v61 = vsub.f32 1.0, %v3951_v60  ;;  %vm3972_vm4 = vmor %vm3970_vm13, %vm3971_vm15 }
 0x6c7   :  { %v3938_v49 = vmul.f32 %v11287_v44, %v3937_v63  ;;  %v3967_v6 = vsub.f32 1.0, %v3966_v5 }
 0x6c8   :  { %v3924_v53 = vadd.f32 %v11285_v43, %v3923_v9  ;;  %v3953_v16 = vmul.f32 %v11289_v11, %v3952_v61 }
 0x6c9   :  { %v3939_v13 = vadd.f32 %v11287_v44, %v3938_v49  ;;  %v3968_v23 = vmul.f32 %v11291_v62, %v3967_v6 }
 0x6ca   :  { %v3928_v4 = vsel %vm3927_vm12, %v11285_v43, %v3924_v53  ;;  %v3954_v20 = vadd.f32 %v11289_v11, %v3953_v16 }
 0x6cb   :  { %v3933_v24 = vsel %vm12787_vm6, %v3932_v35, %v3928_v4  ;;  %v3943_v26 = vsel %vm3942_vm14, %v11287_v44, %v3939_v13  ;;  %v3969_v28 = vadd.f32 %v11291_v62, %v3968_v23 }
 0x6cc   :  { %v3948_v27 = vsel %vm12791_vm10, %v3947_v1, %v3943_v26  ;;  %v3958_v22 = vsel %vm3957_vm3, %v11289_v11, %v3954_v20  ;;  %v12803_v48 = vmul.f32 %v3933_v24, %v12775_v19 }
 0x6cd   :  { %v3963_v25 = vsel %vm3960_vm2, %v3962_v55, %v3958_v22  ;;  %v12807_v29 = vmul.f32 %v3948_v27, %v12777_v10  ;;  %v3973_v51 = vsel %vm3972_vm4, %v11291_v62, %v3969_v28 }
 0x6ce   :  { %v12810_v30 = vmul.f32 %v3963_v25, %v12779_v31  ;;  %v3978_v33 = vsel %vm3975_vm5, %v3977_v59, %v3973_v51 }
 0x6cf   :  { %v12813_v12 = vmul.f32 %v3978_v33, %v12781_v21 }
 0x724   :  { %v4113_v37 = vpop.f32.mrf.mxu2 }
 0x725   :  { %v4117_v52 = vmul.f32 0.125, %v4113_v37 }
 0x727   :  { %v4118_v19 = vpack.c.bf16 %v4117_v52, %v4117_v52 }
 0x729   :  { %9021 = vmatmul.msk.bf16.vlgmr.msra.gmra.mxu3 %vm714_vm0, %v4118_v19 }
 0x72c   :  { %v4115_v34 = vpop.f32.mrf.mxu2 }
 0x7ac   :  { %v4147_v57 = vpop.f32.mrf.mxu3 }
 0x7ad   :  { %v4151_v32 = vmul.f32 %v4147_v57, %v4147_v57  ;;  %v4175_v43 = vperm.slane %v4147_v57, 0 }
 0x7af   :  { %v4153_v36 = vrot.slane %v4151_v32, 7  ;;  %v4176_v11 = vsub.f32 %v12759_v15, %v4175_v43 }
 0x7b1   :  { %v4155_v10 = vsub.f32 %v4147_v57, %v4153_v36 }
 0x7b3   :  { %v4156_v3 = vmax.f32 %v4155_v10, 0.0 }
 0x7b4   :  { %v4149_v14 = vpop.f32.mrf.mxu3 }
 0x7b5   :  { %v4158_v8 = vadd.f32 1e-05, %v4156_v3 }
 0x7b7   :  { %11292 = vrsqrt.f32 %v4158_v8  ;;  %vm4165_vm6 = vweird.f32 %v4158_v8 }
 0x7bd   :  { %v11293_v31 = vpop.eup %11292 }
 0x7be   :  { %v4160_v2 = vmul.f32 %v11293_v31, %v4158_v8  ;;  %vm4166_vm2 = vweird.f32 %v11293_v31 }
 0x7bf   :  { %vm4167_vm7 = vmor %vm4165_vm6, %vm4166_vm2 }
 0x7c0   :  { %v4161_v38 = vmul.f32 %v11293_v31, %v4160_v2 }
 0x7c2   :  { %v4162_v58 = vmul.f32 0.5, %v4161_v38 }
 0x7c4   :  { %v4163_v21 = vsub.f32 1.5, %v4162_v58 }
 0x7c6   :  { %v4164_v40 = vmul.f32 %v11293_v31, %v4163_v21 }
 0x7c8   :  { %v4168_v42 = vsel %vm4167_vm7, %v11293_v31, %v4164_v40 }
 0x7c9   :  { %4170 = vst [vmem:[#allocation1] sm:$0xff] %v4168_v42 }
 0x7d0   :  { %v4172_v44 = vld [vmem:[#allocation1 + $0x1] ss:$9 sm:$0xff] }
 0x7d1   :  { %v4174_v45 = vmul.f32 %v4172_v44, %v4157_v41 }
 0x7d3   :  { %v4178_v46 = vperm.slane %v4174_v45, 0 }
 0x7d5   :  { %v4180_v50 = vmul.f32 %v4178_v46, %v4176_v11 }
 0x7d7   :  { %v12817_v54 = vadd.f32 %v11267_v47, %v4180_v50 }
 0x7d9   :  { %v4186_v56 = vmax.f32 %v12817_v54, 0.0 }
 0x7da   :  { %11840 = dma.done.wait [#allocation6 + $0x1], 4096 }
 0x7db   :  { %11841 = vsyncadd [#allocation6 + $0x1], 4294963200  ;;  %v9136_v35 = vld [vmem:[#allocation3 + $0xe0] sm:$0xf]  ;;  %v10835_v60 = vld [vmem:[#allocation3 + $0xec] sm:$0xf0] }
 0x7dc   :  { %v10833_v62 = vld [vmem:[#allocation3 + $0xe4] sm:$0xf]  ;;  %v9137_v63 = vor.u32 %v10835_v60, %v9136_v35  ;;  %v9138_v39 = vld [vmem:[#allocation3 + $0xf0] sm:$0xf0]  ;;  %v9144_v7 = vld [vmem:[#allocation3 + $0xe8] sm:$0xf] }
 0x7dd   :  { %v10836_v9 = vld [vmem:[#allocation3 + $0xf4] sm:$0xf0]  ;;  %v9141_v61 = vor.u32 %v10833_v62, %v9138_v39  ;;  %v10834_v49 = vld [vmem:[#allocation3 + $0xec] sm:$0xf]  ;;  %v9146_v15 = vld [vmem:[#allocation3 + $0xf8] sm:$0xf0] }
 0x7de   :  { %v9145_v5 = vor.u32 %v10836_v9, %v9144_v7  ;;  %v9120_v0 = vld [vmem:[#allocation3 + $0xc0] sm:$0xf]  ;;  %4394 = vmatpush.bf16.msrb.mxu0 %v9137_v63  ;;  %v9149_v1 = vor.u32 %v10834_v49, %v9146_v15  ;;  %v10831_v53 = vld [vmem:[#allocation3 + $0xcc] sm:$0xf0]  ;;  %v10829_v16 = vld [vmem:[#allocation3 + $0xc4] sm:$0xf] }
 0x7df   :  { %v9122_v6 = vld [vmem:[#allocation3 + $0xd0] sm:$0xf0]  ;;  %4407 = vmatpush.bf16.msrb.mxu1 %v9141_v61  ;;  %v9121_v13 = vor.u32 %v10831_v53, %v9120_v0  ;;  %v9128_v18 = vld [vmem:[#allocation3 + $0xc8] sm:$0xf]  ;;  %v10832_v4 = vld [vmem:[#allocation3 + $0xd4] sm:$0xf0] }
 0x7e0   :  { %4420 = vmatpush.bf16.msrb.mxu3 %v9145_v5  ;;  %v9125_v17 = vor.u32 %v10829_v16, %v9122_v6  ;;  %v10830_v20 = vld [vmem:[#allocation3 + $0xcc] sm:$0xf]  ;;  %4433 = vmatpush.bf16.msrb.mxu2 %v9149_v1  ;;  %v9129_v23 = vor.u32 %v10832_v4, %v9128_v18  ;;  %v9130_v24 = vld [vmem:[#allocation3 + $0xd8] sm:$0xf0]  ;;  %v9104_v26 = vld [vmem:[#allocation3 + $0xa0] sm:$0xf] }
 0x7e1   :  { %v10827_v55 = vld [vmem:[#allocation3 + $0xac] sm:$0xf0]  ;;  %v9133_v27 = vor.u32 %v10830_v20, %v9130_v24  ;;  %v10825_v22 = vld [vmem:[#allocation3 + $0xa4] sm:$0xf]  ;;  %v9106_v28 = vld [vmem:[#allocation3 + $0xb0] sm:$0xf0] }
 0x7e2   :  { %v9112_v25 = vld [vmem:[#allocation3 + $0xa8] sm:$0xf]  ;;  %4395 = vmatpush.bf16.msrb.mxu0 %v9121_v13  ;;  %v9105_v59 = vor.u32 %v10827_v55, %v9104_v26  ;;  %v10828_v51 = vld [vmem:[#allocation3 + $0xb4] sm:$0xf0]  ;;  %v10826_v33 = vld [vmem:[#allocation3 + $0xac] sm:$0xf]  ;;  %v9109_v52 = vor.u32 %v10825_v22, %v9106_v28 }
 0x7e3   :  { %v9114_v37 = vld [vmem:[#allocation3 + $0xb8] sm:$0xf0]  ;;  %4408 = vmatpush.bf16.msrb.mxu1 %v9125_v17  ;;  %v9113_v19 = vor.u32 %v10828_v51, %v9112_v25  ;;  %v9088_v34 = vld [vmem:[#allocation3 + $0x80] sm:$0xf]  ;;  %v10823_v57 = vld [vmem:[#allocation3 + $0x8c] sm:$0xf0] }
 0x7e4   :  { %4421 = vmatpush.bf16.msrb.mxu3 %v9129_v23  ;;  %v10821_v32 = vld [vmem:[#allocation3 + $0x84] sm:$0xf]  ;;  %4434 = vmatpush.bf16.msrb.mxu2 %v9133_v27  ;;  %v9117_v36 = vor.u32 %v10826_v33, %v9114_v37  ;;  %v9090_v10 = vld [vmem:[#allocation3 + $0x90] sm:$0xf0]  ;;  %v9096_v3 = vld [vmem:[#allocation3 + $0x88] sm:$0xf]  ;;  %v9089_v2 = vor.u32 %v10823_v57, %v9088_v34 }
 0x7e5   :  { %v10824_v14 = vld [vmem:[#allocation3 + $0x94] sm:$0xf0]  ;;  %v10822_v8 = vld [vmem:[#allocation3 + $0x8c] sm:$0xf]  ;;  %v9098_v31 = vld [vmem:[#allocation3 + $0x98] sm:$0xf0]  ;;  %v9093_v38 = vor.u32 %v10821_v32, %v9090_v10  ;;  %v4223_v10 = vpack.c.bf16 %v4186_v56, %v4186_v56 }
 0x7e6   :  { %4396 = vmatpush.bf16.msrb.mxu0 %v9105_v59  ;;  %v9097_v58 = vor.u32 %v10824_v14, %v9096_v3  ;;  %v9072_v21 = vld [vmem:[#allocation3 + $0x60] sm:$0xf]  ;;  %v10819_v40 = vld [vmem:[#allocation3 + $0x6c] sm:$0xf0]  ;;  %v10817_v42 = vld [vmem:[#allocation3 + $0x64] sm:$0xf]  ;;  %v9101_v41 = vor.u32 %v10822_v8, %v9098_v31 }
 0x7e7   :  { %4409 = vmatpush.bf16.msrb.mxu1 %v9109_v52  ;;  %v9074_v43 = vld [vmem:[#allocation3 + $0x70] sm:$0xf0]  ;;  %v9080_v44 = vld [vmem:[#allocation3 + $0x68] sm:$0xf]  ;;  %v10820_v45 = vld [vmem:[#allocation3 + $0x74] sm:$0xf0]  ;;  %v9073_v47 = vor.u32 %v10819_v40, %v9072_v21 }
 0x7e8   :  { %4422 = vmatpush.bf16.msrb.mxu3 %v9113_v19  ;;  %4435 = vmatpush.bf16.msrb.mxu2 %v9117_v36  ;;  %v10818_v11 = vld [vmem:[#allocation3 + $0x6c] sm:$0xf]  ;;  %v9082_v46 = vld [vmem:[#allocation3 + $0x78] sm:$0xf0]  ;;  %v9077_v50 = vor.u32 %v10817_v42, %v9074_v43  ;;  %v9081_v35 = vor.u32 %v10820_v45, %v9080_v44  ;;  %v9056_v60 = vld [vmem:[#allocation3 + $0x40] sm:$0xf] }
 0x7e9   :  { %v10815_v62 = vld [vmem:[#allocation3 + $0x4c] sm:$0xf0]  ;;  %v10813_v63 = vld [vmem:[#allocation3 + $0x44] sm:$0xf]  ;;  %v9085_v39 = vor.u32 %v10818_v11, %v9082_v46  ;;  %v9058_v7 = vld [vmem:[#allocation3 + $0x50] sm:$0xf0] }
 0x7ea   :  { %4397 = vmatpush.bf16.msrb.mxu0 %v9089_v2  ;;  %v9064_v9 = vld [vmem:[#allocation3 + $0x48] sm:$0xf]  ;;  %v10816_v61 = vld [vmem:[#allocation3 + $0x54] sm:$0xf0]  ;;  %v10814_v5 = vld [vmem:[#allocation3 + $0x4c] sm:$0xf]  ;;  %v9057_v15 = vor.u32 %v10815_v62, %v9056_v60  ;;  %v9061_v0 = vor.u32 %v10813_v63, %v9058_v7 }
 0x7eb   :  { %4410 = vmatpush.bf16.msrb.mxu1 %v9093_v38  ;;  %v9066_v49 = vld [vmem:[#allocation3 + $0x58] sm:$0xf0]  ;;  %v9065_v1 = vor.u32 %v10816_v61, %v9064_v9  ;;  %v9040_v53 = vld [vmem:[#allocation3 + $0x20] sm:$0xf]  ;;  %v10811_v16 = vld [vmem:[#allocation3 + $0x2c] sm:$0xf0] }
 0x7ec   :  { %4423 = vmatpush.bf16.msrb.mxu3 %v9097_v58  ;;  %4436 = vmatpush.bf16.msrb.mxu2 %v9101_v41  ;;  %v10809_v6 = vld [vmem:[#allocation3 + $0x24] sm:$0xf]  ;;  %v9069_v13 = vor.u32 %v10814_v5, %v9066_v49  ;;  %v9042_v17 = vld [vmem:[#allocation3 + $0x30] sm:$0xf0]  ;;  %v9048_v18 = vld [vmem:[#allocation3 + $0x28] sm:$0xf]  ;;  %v9041_v24 = vor.u32 %v10811_v16, %v9040_v53 }
 0x7ed   :  { %v10812_v4 = vld [vmem:[#allocation3 + $0x34] sm:$0xf0]  ;;  %v10810_v20 = vld [vmem:[#allocation3 + $0x2c] sm:$0xf]  ;;  %v9050_v23 = vld [vmem:[#allocation3 + $0x38] sm:$0xf0]  ;;  %v9045_v26 = vor.u32 %v10809_v6, %v9042_v17 }
 0x7ee   :  { %4398 = vmatpush.bf16.msrb.mxu0 %v9073_v47  ;;  %v9049_v55 = vor.u32 %v10812_v4, %v9048_v18  ;;  %v9024_v27 = vld [vmem:[#allocation3] sm:$0xf]  ;;  %v10807_v22 = vld [vmem:[#allocation3 + $0xc] sm:$0xf0]  ;;  %v10805_v28 = vld [vmem:[#allocation3 + $0x4] sm:$0xf]  ;;  %v9053_v25 = vor.u32 %v10810_v20, %v9050_v23 }
 0x7ef   :  { %4411 = vmatpush.bf16.msrb.mxu1 %v9077_v50  ;;  %v9026_v59 = vld [vmem:[#allocation3 + $0x10] sm:$0xf0]  ;;  %v9032_v51 = vld [vmem:[#allocation3 + $0x8] sm:$0xf]  ;;  %v10808_v33 = vld [vmem:[#allocation3 + $0x14] sm:$0xf0]  ;;  %v9025_v19 = vor.u32 %v10807_v22, %v9024_v27 }
 0x7f0   :  { %4424 = vmatpush.bf16.msrb.mxu3 %v9081_v35  ;;  %4437 = vmatpush.bf16.msrb.mxu2 %v9085_v39  ;;  %v10806_v37 = vld [vmem:[#allocation3 + $0xc] sm:$0xf]  ;;  %v9034_v52 = vld [vmem:[#allocation3 + $0x18] sm:$0xf0]  ;;  %v9029_v34 = vor.u32 %v10805_v28, %v9026_v59  ;;  %v9033_v57 = vor.u32 %v10808_v33, %v9032_v51  ;;  %v10844_v36 = vld [vmem:[%s13209_s5 + $0x38] sm:$0xff]  ;;  %s13214_s25 = sld [smem:[#allocation63_spill]] }
 0x7f1   :  { %v9037_v32 = vor.u32 %v10806_v37, %v9034_v52  ;;  %v10852_v3 = vld [vmem:[%s13209_s5 + $0x78] sm:$0xff]  ;;  %v10843_v8 = vld [vmem:[%s13209_s5 + $0x30] sm:$0xff]  ;;  %v10842_v54 = vld [vmem:[%s13209_s5 + $0x28] sm:$0xff]  ;;  %vm13215_vm8 = vcmask 1040384   ;;  %s13219_s24 = sld [smem:[#allocation64_spill]] }
 0x7f2   :  { %4399 = vmatpush.bf16.msrb.mxu0 %v9057_v15  ;;  %v10860_v14 = vld [vmem:[%s13209_s5 + $0xb8] sm:$0xff]  ;;  %v10851_v2 = vld [vmem:[%s13209_s5 + $0x70] sm:$0xff]  ;;  %v10850_v56 = vld [vmem:[%s13209_s5 + $0x68] sm:$0xff] }
 0x7f3   :  { %4412 = vmatpush.bf16.msrb.mxu1 %v9061_v0  ;;  %v10868_v31 = vld [vmem:[%s13209_s5 + $0xf8] sm:$0xff]  ;;  %v10859_v38 = vld [vmem:[%s13209_s5 + $0xb0] sm:$0xff]  ;;  %v10841_v21 = vld [vmem:[%s13209_s5 + $0x20] sm:$0xff] }
 0x7f4   :  { %4425 = vmatpush.bf16.msrb.mxu3 %v9065_v1  ;;  %4438 = vmatpush.bf16.msrb.mxu2 %v9069_v13  ;;  %v10867_v58 = vld [vmem:[%s13209_s5 + $0xf0] sm:$0xff]  ;;  %v10849_v40 = vld [vmem:[%s13209_s5 + $0x60] sm:$0xff]  ;;  %v10858_v42 = vld [vmem:[%s13209_s5 + $0xa8] sm:$0xff] }
 0x7f5   :  { %v10866_v41 = vld [vmem:[%s13209_s5 + $0xe8] sm:$0xff]  ;;  %v10840_v43 = vld [vmem:[%s13209_s5 + $0x18] sm:$0xff]  ;;  %v10857_v45 = vld [vmem:[%s13209_s5 + $0xa0] sm:$0xff] }
 0x7f6   :  { %4400 = vmatpush.bf16.msrb.mxu0 %v9041_v24  ;;  %v10848_v44 = vld [vmem:[%s13209_s5 + $0x58] sm:$0xff]  ;;  %v10865_v11 = vld [vmem:[%s13209_s5 + $0xe0] sm:$0xff]  ;;  %v10839_v46 = vld [vmem:[%s13209_s5 + $0x10] sm:$0xff] }
 0x7f7   :  { %4413 = vmatpush.bf16.msrb.mxu1 %v9045_v26  ;;  %v10847_v47 = vld [vmem:[%s13209_s5 + $0x50] sm:$0xff]  ;;  %v10856_v50 = vld [vmem:[%s13209_s5 + $0x98] sm:$0xff]  ;;  %v10838_v60 = vld [vmem:[%s13209_s5 + $0x8] sm:$0xff] }
 0x7f8   :  { %4426 = vmatpush.bf16.msrb.mxu3 %v9049_v55  ;;  %4439 = vmatpush.bf16.msrb.mxu2 %v9053_v25  ;;  %v10864_v35 = vld [vmem:[%s13209_s5 + $0xd8] sm:$0xff]  ;;  %v10846_v62 = vld [vmem:[%s13209_s5 + $0x48] sm:$0xff]  ;;  %v10855_v63 = vld [vmem:[%s13209_s5 + $0x90] sm:$0xff] }
 0x7f9   :  { %v10863_v39 = vld [vmem:[%s13209_s5 + $0xd0] sm:$0xff]  ;;  %v10837_v7 = vld [vmem:[%s13209_s5] sm:$0xff]  ;;  %v10854_v61 = vld [vmem:[%s13209_s5 + $0x88] sm:$0xff] }
 0x7fa   :  { %4401 = vmatpush.bf16.msrb.mxu0 %v9025_v19  ;;  %v10845_v9 = vld [vmem:[%s13209_s5 + $0x40] sm:$0xff]  ;;  %v10862_v5 = vld [vmem:[%s13209_s5 + $0xc8] sm:$0xff]  ;;  %vm13216_vm9 = vmmov %vm13215_vm8 }
 0x7fb   :  { %4414 = vmatpush.bf16.msrb.mxu1 %v9029_v34  ;;  %v10853_v49 = vld [vmem:[%s13209_s5 + $0x80] sm:$0xff]  ;;  %vm13217_vm10 = vmmov %vm13215_vm8 }
 0x7fc   :  { %4427 = vmatpush.bf16.msrb.mxu3 %v9033_v57  ;;  %4440 = vmatpush.bf16.msrb.mxu2 %v9037_v32  ;;  %v10861_v15 = vld [vmem:[%s13209_s5 + $0xc0] sm:$0xff]  ;;  %vm13218_vm11 = vmmov %vm13215_vm8 }
 0x7fd   :  { %4402 = vmatmul.bf16.vlgmr.msrb.gmra.mxu0 %v4223_v10  ;;  %v4224_v0 = vld [vmem:[%s13214_s25] sm:$0xf] }
 0x7fe   :  { %4770 = vmatpush.bf16.msra.mxu0 %v10844_v36  ;;  %4415 = vmatmul.bf16.vlgmr.msrb.gmra.mxu1 %v4223_v10  ;;  %v4226_v1 = vperm.slane %v4224_v0, 0  ;;  %v4227_v53 = vperm.slane %v4224_v0, 1  ;;  %v4228_v26 = vperm.slane %v4224_v0, 2  ;;  %v4229_v22 = vperm.slane %v4224_v0, 3 }
 0x7ff   :  { %4783 = vmatpush.bf16.msra.mxu1 %v10852_v3  ;;  %4428 = vmatmul.bf16.vlgmr.msrb.gmra.mxu3 %v4223_v10 }
 0x800   :  { %4441 = vmatmul.bf16.vlgmr.msrb.gmra.mxu2 %v4223_v10  ;;  %4796 = vmatpush.bf16.msra.mxu3 %v10860_v14 }
 0x801   :  { %4809 = vmatpush.bf16.msra.mxu2 %v10868_v31 }
 0x802   :  { %4771 = vmatpush.bf16.msra.mxu0 %v10843_v8 }
 0x803   :  { %4784 = vmatpush.bf16.msra.mxu1 %v10851_v2 }
 0x804   :  { %4797 = vmatpush.bf16.msra.mxu3 %v10859_v38 }
 0x805   :  { %4810 = vmatpush.bf16.msra.mxu2 %v10867_v58 }
 0x806   :  { %4772 = vmatpush.bf16.msra.mxu0 %v10842_v54 }
 0x807   :  { %4785 = vmatpush.bf16.msra.mxu1 %v10850_v56 }
 0x808   :  { %4798 = vmatpush.bf16.msra.mxu3 %v10858_v42 }
 0x809   :  { %4811 = vmatpush.bf16.msra.mxu2 %v10866_v41 }
 0x80a   :  { %4773 = vmatpush.bf16.msra.mxu0 %v10841_v21 }
 0x80b   :  { %4786 = vmatpush.bf16.msra.mxu1 %v10849_v40 }
 0x80c   :  { %4799 = vmatpush.bf16.msra.mxu3 %v10857_v45 }
 0x80d   :  { %4812 = vmatpush.bf16.msra.mxu2 %v10865_v11 }
 0x80e   :  { %4774 = vmatpush.bf16.msra.mxu0 %v10840_v43 }
 0x80f   :  { %4787 = vmatpush.bf16.msra.mxu1 %v10848_v44 }
 0x810   :  { %4800 = vmatpush.bf16.msra.mxu3 %v10856_v50 }
 0x811   :  { %4813 = vmatpush.bf16.msra.mxu2 %v10864_v35 }
 0x812   :  { %4775 = vmatpush.bf16.msra.mxu0 %v10839_v46 }
 0x813   :  { %4788 = vmatpush.bf16.msra.mxu1 %v10847_v47 }
 0x814   :  { %4801 = vmatpush.bf16.msra.mxu3 %v10855_v63 }
 0x815   :  { %4814 = vmatpush.bf16.msra.mxu2 %v10863_v39 }
 0x816   :  { %4776 = vmatpush.bf16.msra.mxu0 %v10838_v60 }
 0x817   :  { %4789 = vmatpush.bf16.msra.mxu1 %v10846_v62 }
 0x818   :  { %4802 = vmatpush.bf16.msra.mxu3 %v10854_v61 }
 0x819   :  { %4815 = vmatpush.bf16.msra.mxu2 %v10862_v5 }
 0x81a   :  { %4777 = vmatpush.bf16.msra.mxu0 %v10837_v7 }
 0x81b   :  { %4790 = vmatpush.bf16.msra.mxu1 %v10845_v9 }
 0x81c   :  { %4803 = vmatpush.bf16.msra.mxu3 %v10853_v49 }
 0x81d   :  { %4816 = vmatpush.bf16.msra.mxu2 %v10861_v15 }
 0x87a   :  { %v4403_v16 = vpop.f32.mrf.mxu0 }
 0x87b   :  { %v12856_v6 = vadd.f32 %v4403_v16, %v4226_v1  ;;  %v4416_v13 = vpop.f32.mrf.mxu1 }
 0x87c   :  { %v12858_v17 = vadd.f32 %v4416_v13, %v4227_v53 }
 0x87d   :  { %v4446_v18 = vsel %vm953_vm1, %v12856_v6, 0.0  ;;  %v4474_v4 = vmul.f32 %v12856_v6, %v12856_v6 }
 0x87e   :  { %v4447_v20 = vrot.slane %v4446_v18, 4  ;;  %v4453_v23 = vsel %vm953_vm1, %v12858_v17, 0.0  ;;  %v4475_v24 = vmul.f32 %v12858_v17, %v12858_v17 }
 0x87f   :  { %v4478_v55 = vsel %vm953_vm1, %v4474_v4, 0.0  ;;  %v4454_v27 = vrot.slane %v4453_v23, 4 }
 0x880   :  { %v4448_v28 = vadd.f32 %v4447_v20, %v4446_v18  ;;  %v4479_v25 = vrot.slane %v4478_v55, 4  ;;  %v4485_v59 = vsel %vm953_vm1, %v4475_v24, 0.0 }
 0x881   :  { %v4455_v51 = vadd.f32 %v4454_v27, %v4453_v23  ;;  %v4486_v33 = vrot.slane %v4485_v59, 4 }
 0x882   :  { %v4429_v37 = vpop.f32.mrf.mxu3  ;;  %v4449_v52 = vrot.slane %v4448_v28, 2  ;;  %v4480_v19 = vadd.f32 %v4479_v25, %v4478_v55  ;;  %v4405_v32 = vpop.f32.mrf.mxu0 }
 0x883   :  { %v12870_v34 = vadd.f32 %v4429_v37, %v4228_v26  ;;  %v4442_v57 = vpop.f32.mrf.mxu2  ;;  %v4456_v36 = vrot.slane %v4455_v51, 2  ;;  %v4487_v10 = vadd.f32 %v4486_v33, %v4485_v59  ;;  %v4418_v14 = vpop.f32.mrf.mxu1 }
 0x884   :  { %v12872_v3 = vadd.f32 %v4442_v57, %v4229_v22  ;;  %v4450_v8 = vadd.f32 %v4449_v52, %v4448_v28  ;;  %v4481_v31 = vrot.slane %v4480_v19, 2  ;;  %v10875_v14 = vld [vmem:[#allocation32 + $0x2c] sm:$0xf0] }
 0x885   :  { %v4460_v2 = vsel %vm953_vm1, %v12870_v34, 0.0  ;;  %v4476_v54 = vmul.f32 %v12870_v34, %v12870_v34  ;;  %v4457_v56 = vadd.f32 %v4456_v36, %v4455_v51  ;;  %v4488_v38 = vrot.slane %v4487_v10, 2 }
 0x886   :  { %v4461_v58 = vrot.slane %v4460_v2, 4  ;;  %v4467_v21 = vsel %vm953_vm1, %v12872_v3, 0.0  ;;  %v4477_v41 = vmul.f32 %v12872_v3, %v12872_v3  ;;  %v4451_v43 = vrot.slane %v4450_v8, 1 }
 0x887   :  { %v4492_v40 = vsel %vm953_vm1, %v4476_v54, 0.0  ;;  %v4468_v42 = vrot.slane %v4467_v21, 4  ;;  %v4482_v11 = vadd.f32 %v4481_v31, %v4480_v19  ;;  %v4458_v46 = vrot.slane %v4457_v56, 1  ;;  %v10873_v31 = vld [vmem:[#allocation32 + $0x24] sm:$0xf] }
 0x888   :  { %v4462_v44 = vadd.f32 %v4461_v58, %v4460_v2  ;;  %v4493_v45 = vrot.slane %v4492_v40, 4  ;;  %v4499_v50 = vsel %vm953_vm1, %v4477_v41, 0.0  ;;  %v4452_v35 = vadd.f32 %v4451_v43, %v4450_v8  ;;  %v9298_v2 = vld [vmem:[#allocation32 + $0x30] sm:$0xf0]  ;;  %v9304_v54 = vld [vmem:[#allocation32 + $0x28] sm:$0xf] }
 0x889   :  { %v4469_v47 = vadd.f32 %v4468_v42, %v4467_v21  ;;  %v4489_v60 = vadd.f32 %v4488_v38, %v4487_v10  ;;  %v4500_v39 = vrot.slane %v4499_v50, 4  ;;  %v4483_v9 = vrot.slane %v4482_v11, 1  ;;  %v9296_v10 = vld [vmem:[#allocation32 + $0x20] sm:$0xf]  ;;  %v10876_v38 = vld [vmem:[#allocation32 + $0x34] sm:$0xf0] }
 0x88a   :  { %v4463_v62 = vrot.slane %v4462_v44, 2  ;;  %v4494_v63 = vadd.f32 %v4493_v45, %v4492_v40  ;;  %v4431_v7 = vpop.f32.mrf.mxu3  ;;  %v4459_v49 = vadd.f32 %v4458_v46, %v4457_v56  ;;  %v9297_v8 = vor.u32 %v10875_v14, %v9296_v10  ;;  %v9280_v21 = vld [vmem:[#allocation32] sm:$0xf]  ;;  %v10871_v40 = vld [vmem:[#allocation32 + $0xc] sm:$0xf0] }
 0x88b   :  { %v4470_v61 = vrot.slane %v4469_v47, 2  ;;  %v4444_v5 = vpop.f32.mrf.mxu2  ;;  %v4490_v15 = vrot.slane %v4489_v60, 1  ;;  %v4501_v53 = vadd.f32 %v4500_v39, %v4499_v50  ;;  %v4484_v16 = vadd.f32 %v4483_v9, %v4482_v11  ;;  %v10869_v42 = vld [vmem:[#allocation32 + $0x4] sm:$0xf]  ;;  %v9282_v43 = vld [vmem:[#allocation32 + $0x10] sm:$0xf0] }
 0x88c   :  { %v4464_v0 = vadd.f32 %v4463_v62, %v4462_v44  ;;  %v4495_v1 = vrot.slane %v4494_v63, 2  ;;  %4881 = vmatpush.bf16.msrb.mxu0 %v9297_v8  ;;  %v9301_v56 = vor.u32 %v10873_v31, %v9298_v2  ;;  %v9305_v58 = vor.u32 %v10876_v38, %v9304_v54  ;;  %v9288_v44 = vld [vmem:[#allocation32 + $0x8] sm:$0xf]  ;;  %v10872_v45 = vld [vmem:[#allocation32 + $0x14] sm:$0xf0] }
 0x88d   :  { %v4471_v13 = vadd.f32 %v4470_v61, %v4469_v47  ;;  %v4491_v18 = vadd.f32 %v4490_v15, %v4489_v60  ;;  %v4502_v4 = vrot.slane %v4501_v53, 2  ;;  %v4506_v20 = vsel %vm13215_vm8, %v4452_v35, %v4484_v16  ;;  %v10874_v47 = vld [vmem:[#allocation32 + $0x2c] sm:$0xf]  ;;  %v9306_v50 = vld [vmem:[#allocation32 + $0x38] sm:$0xf0] }
 0x88e   :  { %v4465_v23 = vrot.slane %v4464_v0, 1  ;;  %v4496_v24 = vadd.f32 %v4495_v1, %v4494_v63  ;;  %v4510_v26 = vpack.c.bf16 %v4506_v20, %v4506_v20  ;;  %4894 = vmatpush.bf16.msrb.mxu1 %v9301_v56  ;;  %4907 = vmatpush.bf16.msrb.mxu3 %v9305_v58  ;;  %v9281_v41 = vor.u32 %v10871_v40, %v9280_v21  ;;  %v10870_v35 = vld [vmem:[#allocation32 + $0xc] sm:$0xf]  ;;  %v9290_v62 = vld [vmem:[#allocation32 + $0x18] sm:$0xf0] }
 0x88f   :  { %v4507_v55 = vsel %vm13216_vm9, %v4459_v49, %v4491_v18  ;;  %v4472_v28 = vrot.slane %v4471_v13, 1  ;;  %v4503_v25 = vadd.f32 %v4502_v4, %v4501_v53  ;;  %v9285_v11 = vor.u32 %v10869_v42, %v9282_v43 }
 0x890   :  { %v4511_v27 = vpack.c.bf16 %v4507_v55, %v4507_v55  ;;  %v4497_v22 = vrot.slane %v4496_v24, 1  ;;  %4778 = vmatmul.bf16.vlgmr.msra.gmra.mxu0 %v4510_v26  ;;  %v4466_v59 = vadd.f32 %v4465_v23, %v4464_v0  ;;  %v9289_v46 = vor.u32 %v10872_v45, %v9288_v44 }
 0x891   :  { %v4504_v33 = vrot.slane %v4503_v25, 1  ;;  %v4473_v52 = vadd.f32 %v4472_v28, %v4471_v13  ;;  %4882 = vmatpush.bf16.msrb.mxu0 %v9281_v41  ;;  %v9309_v60 = vor.u32 %v10874_v47, %v9306_v50  ;;  %v9293_v63 = vor.u32 %v10870_v35, %v9290_v62 }
 0x892   :  { %4791 = vmatmul.bf16.vlgmr.msra.gmra.mxu1 %v4511_v27  ;;  %v4498_v51 = vadd.f32 %v4497_v22, %v4496_v24  ;;  %4908 = vmatpush.bf16.msrb.mxu3 %v9289_v46 }
 0x893   :  { %v4505_v19 = vadd.f32 %v4504_v33, %v4503_v25  ;;  %4895 = vmatpush.bf16.msrb.mxu1 %v9285_v11 }
 0x894   :  { %v4508_v37 = vsel %vm13217_vm10, %v4466_v59, %v4498_v51 }
 0x895   :  { %v4512_v57 = vpack.c.bf16 %v4508_v37, %v4508_v37  ;;  %v4509_v32 = vsel %vm13218_vm11, %v4473_v52, %v4505_v19  ;;  %4920 = vmatpush.bf16.msra.mxu0 %v9309_v60 }
 0x896   :  { %v4513_v36 = vpack.c.bf16 %v4509_v32, %v4509_v32 }
 0x897   :  { %4804 = vmatmul.bf16.vlgmr.msra.gmra.mxu3 %v4512_v57 }
 0x898   :  { %4817 = vmatmul.bf16.vlgmr.msra.gmra.mxu2 %v4513_v36 }
 0x899   :  { %4921 = vmatpush.bf16.msra.mxu0 %v9293_v63 }
 0x90d   :  { %v4779_v39 = vpop.f32.mrf.mxu0 }
 0x90f   :  { %v4792_v7 = vpop.f32.mrf.mxu1 }
 0x910   :  { %v4793_v5 = vadd.f32 %v4792_v7, %v4779_v39 }
 0x915   :  { %v4781_v9 = vpop.f32.mrf.mxu0 }
 0x917   :  { %v4794_v61 = vpop.f32.mrf.mxu1 }
 0x91a   :  { %v4805_v49 = vpop.f32.mrf.mxu3 }
 0x91b   :  { %v4806_v15 = vadd.f32 %v4805_v49, %v4793_v5  ;;  %v4818_v0 = vpop.f32.mrf.mxu2 }
 0x91d   :  { %v4819_v1 = vadd.f32 %v4818_v0, %v4806_v15 }
 0x91f   :  { %v4822_v53 = vmul.f32 0.03125, %v4819_v1 }
 0x921   :  { %v4823_v16 = vpack.c.bf16 %v4822_v53, %v4822_v53 }
 0x922   :  { %v4807_v13 = vpop.f32.mrf.mxu3 }
 0x923   :  { %9310 = vmatmul.msk.bf16.vlgmr.msrb.gmra.mxu0 %vm714_vm0, %v4823_v16  ;;  %9311 = vmatmul.msk.bf16.vlgmr.msrb.gmra.mxu1 %vm714_vm0, %v4823_v16  ;;  %v4820_v18 = vpop.f32.mrf.mxu2 }
 0x924   :  { %9312 = vmatmul.msk.bf16.vlgmr.msrb.gmra.mxu3 %vm714_vm0, %v4823_v16 }
 0x933   :  { %9313 = vmatmul.msk.bf16.vlgmr.msra.gmra.mxu0 %vm714_vm0, %v4823_v16 }
 0x9a0   :  { %v12892_v4 = vpop.f32.mrf.mxu0  ;;  %v12894_v20 = vpop.f32.mrf.mxu1 }
 0x9a1   :  { %v4927_v23 = vmul.f32 %v12892_v4, %v12892_v4  ;;  %v4928_v24 = vmul.f32 %v12894_v20, %v12894_v20 }
 0x9a3   :  { %v4935_v26 = vrot.slane %v4927_v23, 7  ;;  %v4936_v55 = vrot.slane %v4928_v24, 7  ;;  %v5008_v23 = vperm.slane %v12892_v4, 0  ;;  %v5009_v24 = vperm.slane %v12894_v20, 0 }
 0x9a5   :  { %v4943_v27 = vsub.f32 %v12892_v4, %v4935_v26  ;;  %v4944_v22 = vsub.f32 %v12894_v20, %v4936_v55 }
 0x9a7   :  { %v4947_v28 = vmax.f32 %v4943_v27, 0.0  ;;  %v4948_v25 = vmax.f32 %v4944_v22, 0.0  ;;  %v12902_v59 = vpop.f32.mrf.mxu3  ;;  %v4951_v27 = vld [vmem:[%s13219_s24] sm:$0xf] }
 0x9a8   :  { %v4929_v51 = vmul.f32 %v12902_v59, %v12902_v59  ;;  %v4886_v33 = vpop.f32.mrf.mxu0  ;;  %v4899_v37 = vpop.f32.mrf.mxu1  ;;  %v5010_v26 = vperm.slane %v12902_v59, 0  ;;  %v5029_v22 = vld [vmem:[#allocation26] sm:$0xf] }
 0x9a9   :  { %v4952_v52 = vadd.f32 1e-05, %v4947_v28  ;;  %v4953_v19 = vadd.f32 1e-05, %v4948_v25  ;;  %v5012_v28 = vsub.f32 %v12856_v6, %v5008_v23  ;;  %v5032_v4 = vperm.slane %v5029_v22, 1 }
 0x9aa   :  { %v4937_v57 = vrot.slane %v4929_v51, 7  ;;  %v5013_v51 = vsub.f32 %v12858_v17, %v5009_v24  ;;  %v5014_v33 = vsub.f32 %v12870_v34, %v5010_v26  ;;  %v5034_v20 = vperm.slane %v5029_v22, 3 }
 0x9ab   :  { %11294 = vrsqrt.f32 %v4952_v52  ;;  %vm4962_vm14 = vweird.f32 %v4952_v52  ;;  %vm4972_vm3 = vweird.f32 %v4953_v19 }
 0x9ac   :  { %11296 = vrsqrt.f32 %v4953_v19  ;;  %v4945_v32 = vsub.f32 %v12902_v59, %v4937_v57  ;;  %v5033_v57 = vperm.slane %v5029_v22, 2 }
 0x9ae   :  { %v4949_v36 = vmax.f32 %v4945_v32, 0.0 }
 0x9af   :  { %v4912_v10 = vpop.f32.mrf.mxu3 }
 0x9b0   :  { %v4954_v14 = vadd.f32 1e-05, %v4949_v36  ;;  %v12907_v8 = vpop.f32.mrf.mxu0 }
 0x9b1   :  { %v11295_v31 = vpop.eup %11294  ;;  %v4930_v2 = vmul.f32 %v12907_v8, %v12907_v8  ;;  %v5011_v55 = vperm.slane %v12907_v8, 0 }
 0x9b2   :  { %v11297_v54 = vpop.eup %11296  ;;  %v4957_v56 = vmul.f32 %v11295_v31, %v4952_v52  ;;  %11298 = vrsqrt.f32 %v4954_v14  ;;  %vm4963_vm12 = vweird.f32 %v11295_v31  ;;  %vm4982_vm2 = vweird.f32 %v4954_v14 }
 0x9b3   :  { %v4967_v38 = vmul.f32 %v11297_v54, %v4953_v19  ;;  %v4938_v58 = vrot.slane %v4930_v2, 7  ;;  %vm4973_vm13 = vweird.f32 %v11297_v54  ;;  %vm4964_vm15 = vmor %vm4962_vm14, %vm4963_vm12  ;;  %v5015_v52 = vsub.f32 %v12872_v3, %v5011_v55 }
 0x9b4   :  { %v4958_v21 = vmul.f32 %v11295_v31, %v4957_v56  ;;  %vm4974_vm4 = vmor %vm4972_vm3, %vm4973_vm13  ;;  %v5031_v19 = vperm.slane %v5029_v22, 0 }
 0x9b5   :  { %v4968_v40 = vmul.f32 %v11297_v54, %v4967_v38  ;;  %v4946_v42 = vsub.f32 %v12907_v8, %v4938_v58 }
 0x9b6   :  { %v4959_v41 = vmul.f32 0.5, %v4958_v21 }
 0x9b7   :  { %v4969_v43 = vmul.f32 0.5, %v4968_v40  ;;  %v4950_v44 = vmax.f32 %v4946_v42, 0.0 }
 0x9b8   :  { %v11299_v45 = vpop.eup %11298  ;;  %v4960_v11 = vsub.f32 1.5, %v4959_v41  ;;  %v4925_v46 = vpop.f32.mrf.mxu0 }
 0x9b9   :  { %v4970_v47 = vsub.f32 1.5, %v4969_v43  ;;  %v4977_v50 = vmul.f32 %v11299_v45, %v4954_v14  ;;  %v4955_v35 = vadd.f32 1e-05, %v4950_v44  ;;  %vm4983_vm5 = vweird.f32 %v11299_v45 }
 0x9ba   :  { %v4961_v60 = vmul.f32 %v11295_v31, %v4960_v11  ;;  %vm4984_vm6 = vmor %vm4982_vm2, %vm4983_vm5 }
 0x9bb   :  { %v4971_v62 = vmul.f32 %v11297_v54, %v4970_v47  ;;  %v4978_v63 = vmul.f32 %v11299_v45, %v4977_v50  ;;  %11300 = vrsqrt.f32 %v4955_v35  ;;  %vm4992_vm8 = vweird.f32 %v4955_v35 }
 0x9bc   :  { %v4965_v39 = vsel %vm4964_vm15, %v11295_v31, %v4961_v60 }
 0x9bd   :  { %5000 = vst [vmem:[#allocation1] sm:$0xff] %v4965_v39  ;;  %v4975_v7 = vsel %vm4974_vm4, %v11297_v54, %v4971_v62  ;;  %v4979_v9 = vmul.f32 0.5, %v4978_v63 }
 0x9be   :  { %5001 = vst [vmem:[#allocation1 + $0x9] sm:$0xff] %v4975_v7 }
 0x9bf   :  { %v4980_v61 = vsub.f32 1.5, %v4979_v9 }
 0x9c1   :  { %v11301_v5 = vpop.eup %11300  ;;  %v4981_v49 = vmul.f32 %v11299_v45, %v4980_v61 }
 0x9c2   :  { %v4987_v15 = vmul.f32 %v11301_v5, %v4955_v35  ;;  %vm4993_vm7 = vweird.f32 %v11301_v5 }
 0x9c3   :  { %v4985_v0 = vsel %vm4984_vm6, %v11299_v45, %v4981_v49  ;;  %vm4994_vm9 = vmor %vm4992_vm8, %vm4993_vm7 }
 0x9c4   :  { %5002 = vst [vmem:[#allocation1 + $0x12] sm:$0xff] %v4985_v0  ;;  %v4988_v1 = vmul.f32 %v11301_v5, %v4987_v15 }
 0x9c6   :  { %v4989_v53 = vmul.f32 0.5, %v4988_v1 }
 0x9c8   :  { %v4990_v16 = vsub.f32 1.5, %v4989_v53 }
 0x9ca   :  { %v4991_v13 = vmul.f32 %v11301_v5, %v4990_v16 }
 0x9cc   :  { %v4995_v18 = vsel %vm4994_vm9, %v11301_v5, %v4991_v13 }
 0x9cd   :  { %5003 = vst [vmem:[#allocation1 + $0x1b] sm:$0xff] %v4995_v18 }
 0x9d4   :  { %v5005_v25 = vld [vmem:[#allocation1 + $0x1] ss:$9 sm:$0xff] }
 0x9d5   :  { %v5007_v37 = vmul.f32 %v5005_v25, %v4951_v27 }
 0x9d7   :  { %v5017_v32 = vperm.slane %v5007_v37, 0  ;;  %v5018_v59 = vperm.slane %v5007_v37, 1  ;;  %v5019_v36 = vperm.slane %v5007_v37, 2  ;;  %v5020_v10 = vperm.slane %v5007_v37, 3 }
 0x9d9   :  { %v5025_v14 = vmul.f32 %v5017_v32, %v5012_v28  ;;  %v5026_v8 = vmul.f32 %v5018_v59, %v5013_v51  ;;  %v5027_v31 = vmul.f32 %v5019_v36, %v5014_v33  ;;  %v5028_v6 = vmul.f32 %v5020_v10, %v5015_v52 }
 0x9db   :  { %v12921_v2 = vadd.f32 %v5031_v19, %v5025_v14  ;;  %v12923_v17 = vadd.f32 %v5032_v4, %v5026_v8  ;;  %v12925_v34 = vadd.f32 %v5033_v57, %v5027_v31  ;;  %v12927_v54 = vadd.f32 %v5034_v20, %v5028_v6 }
 0x9dd   :  { %v5043_v3 = vmax.f32 %v12921_v2, 0.0  ;;  %v5044_v56 = vmax.f32 %v12923_v17, 0.0  ;;  %v5045_v38 = vmax.f32 %v12925_v34, 0.0  ;;  %v5046_v58 = vmax.f32 %v12927_v54, 0.0 }
 0x9de   :  { %11842 = dma.done.wait [#allocation6 + $0x2], 16384 }
 0x9df   :  { %11843 = vsyncadd [#allocation6 + $0x2], 4294950912  ;;  %v9428_v21 = vld [vmem:[#allocation4 + $0xe0] sm:$0xf]  ;;  %v10907_v40 = vld [vmem:[#allocation4 + $0xec] sm:$0xf0]  ;;  %v12951_v34 = vpack.c.bf16 %v5046_v58, %v5046_v58 }
 0x9e0   :  { %v9556_v42 = vld [vmem:[#allocation4 + $0x1e0] sm:$0xf]  ;;  %v9429_v41 = vor.u32 %v10907_v40, %v9428_v21  ;;  %v10939_v43 = vld [vmem:[#allocation4 + $0x1ec] sm:$0xf0]  ;;  %v10893_v54 = vld [vmem:[#allocation4 + $0x84] sm:$0xf] }
 0x9e1   :  { %v9684_v44 = vld [vmem:[#allocation4 + $0x2e0] sm:$0xf]  ;;  %v10971_v45 = vld [vmem:[#allocation4 + $0x2ec] sm:$0xf0]  ;;  %v9557_v11 = vor.u32 %v10939_v43, %v9556_v42  ;;  %s13220_s8 = sld [smem:[#allocation66_spill]]  ;;  %vm13221_vm11 = vmmov %vm13217_vm10 }
 0x9e2   :  { %v9685_v46 = vor.u32 %v10971_v45, %v9684_v44  ;;  %v9812_v47 = vld [vmem:[#allocation4 + $0x3e0] sm:$0xf]  ;;  %v11003_v50 = vld [vmem:[#allocation4 + $0x3ec] sm:$0xf0]  ;;  %5831 = vmatpush.bf16.msra.mxu1 %v9429_v41  ;;  %vm13222_vm12 = vmmov %vm13217_vm10  ;;  %s13224_s19 = sld [smem:[#allocation67_spill]] }
 0x9e3   :  { %v9412_v35 = vld [vmem:[#allocation4 + $0xc0] sm:$0xf]  ;;  %v9813_v60 = vor.u32 %v11003_v50, %v9812_v47  ;;  %v10903_v62 = vld [vmem:[#allocation4 + $0xcc] sm:$0xf0]  ;;  %5844 = vmatpush.bf16.msrb.mxu2 %v9557_v11  ;;  %vm13223_vm13 = vmmov %vm13217_vm10  ;;  %s6716_s18 = sld [smem:[#allocation7]] }
 0x9e4   :  { %v9540_v63 = vld [vmem:[#allocation4 + $0x1c0] sm:$0xf]  ;;  %v10935_v39 = vld [vmem:[#allocation4 + $0x1cc] sm:$0xf0]  ;;  %5857 = vmatpush.bf16.msra.mxu3 %v9685_v46  ;;  %v9413_v7 = vor.u32 %v10903_v62, %v9412_v35  ;;  %s9994_s21 = sld [smem:[#allocation7 + $0x1]] }
 0x9e5   :  { %v9541_v9 = vor.u32 %v10935_v39, %v9540_v63  ;;  %v9668_v61 = vld [vmem:[#allocation4 + $0x2c0] sm:$0xf]  ;;  %v10967_v5 = vld [vmem:[#allocation4 + $0x2cc] sm:$0xf0]  ;;  %5870 = vmatpush.bf16.msrb.mxu0 %v9813_v60 }
 0x9e6   :  { %v9796_v49 = vld [vmem:[#allocation4 + $0x3c0] sm:$0xf]  ;;  %v9669_v15 = vor.u32 %v10967_v5, %v9668_v61  ;;  %v10999_v0 = vld [vmem:[#allocation4 + $0x3cc] sm:$0xf0]  ;;  %5832 = vmatpush.bf16.msra.mxu1 %v9413_v7 }
 0x9e7   :  { %v9396_v1 = vld [vmem:[#allocation4 + $0xa0] sm:$0xf]  ;;  %v10899_v53 = vld [vmem:[#allocation4 + $0xac] sm:$0xf0]  ;;  %v9797_v16 = vor.u32 %v10999_v0, %v9796_v49  ;;  %5845 = vmatpush.bf16.msrb.mxu2 %v9541_v9 }
 0x9e8   :  { %v9524_v13 = vld [vmem:[#allocation4 + $0x1a0] sm:$0xf]  ;;  %v10931_v18 = vld [vmem:[#allocation4 + $0x1ac] sm:$0xf0]  ;;  %v9397_v24 = vor.u32 %v10899_v53, %v9396_v1  ;;  %5858 = vmatpush.bf16.msra.mxu3 %v9669_v15 }
 0x9e9   :  { %v9652_v23 = vld [vmem:[#allocation4 + $0x2a0] sm:$0xf]  ;;  %v10963_v26 = vld [vmem:[#allocation4 + $0x2ac] sm:$0xf0]  ;;  %v9525_v22 = vor.u32 %v10931_v18, %v9524_v13  ;;  %5871 = vmatpush.bf16.msrb.mxu0 %v9797_v16 }
 0x9ea   :  { %v9780_v55 = vld [vmem:[#allocation4 + $0x3a0] sm:$0xf]  ;;  %v10995_v27 = vld [vmem:[#allocation4 + $0x3ac] sm:$0xf0]  ;;  %v9653_v28 = vor.u32 %v10963_v26, %v9652_v23  ;;  %5833 = vmatpush.bf16.msra.mxu1 %v9397_v24 }
 0x9eb   :  { %v9380_v25 = vld [vmem:[#allocation4 + $0x80] sm:$0xf]  ;;  %v10895_v51 = vld [vmem:[#allocation4 + $0x8c] sm:$0xf0]  ;;  %v9781_v37 = vor.u32 %v10995_v27, %v9780_v55  ;;  %5846 = vmatpush.bf16.msrb.mxu2 %v9525_v22 }
 0x9ec   :  { %v9508_v33 = vld [vmem:[#allocation4 + $0x180] sm:$0xf]  ;;  %v10927_v52 = vld [vmem:[#allocation4 + $0x18c] sm:$0xf0]  ;;  %v9381_v32 = vor.u32 %v10895_v51, %v9380_v25  ;;  %5859 = vmatpush.bf16.msra.mxu3 %v9653_v28 }
 0x9ed   :  { %v9636_v19 = vld [vmem:[#allocation4 + $0x280] sm:$0xf]  ;;  %v10959_v4 = vld [vmem:[#allocation4 + $0x28c] sm:$0xf0]  ;;  %v9509_v59 = vor.u32 %v10927_v52, %v9508_v33  ;;  %5872 = vmatpush.bf16.msrb.mxu0 %v9781_v37  ;;  %v10905_v37 = vld [vmem:[#allocation4 + $0xe4] sm:$0xf] }
 0x9ee   :  { %v9764_v57 = vld [vmem:[#allocation4 + $0x380] sm:$0xf]  ;;  %v10991_v20 = vld [vmem:[#allocation4 + $0x38c] sm:$0xf0]  ;;  %v9637_v36 = vor.u32 %v10959_v4, %v9636_v19  ;;  %5834 = vmatpush.bf16.msra.mxu1 %v9381_v32  ;;  %v9430_v52 = vld [vmem:[#allocation4 + $0xf0] sm:$0xf0] }
 0x9ef   :  { %v9364_v10 = vld [vmem:[#allocation4 + $0x60] sm:$0xf]  ;;  %v10891_v14 = vld [vmem:[#allocation4 + $0x6c] sm:$0xf0]  ;;  %v9765_v31 = vor.u32 %v10991_v20, %v9764_v57  ;;  %5847 = vmatpush.bf16.msrb.mxu2 %v9509_v59  ;;  %v10937_v19 = vld [vmem:[#allocation4 + $0x1e4] sm:$0xf] }
 0x9f0   :  { %v9492_v8 = vld [vmem:[#allocation4 + $0x160] sm:$0xf]  ;;  %v10923_v6 = vld [vmem:[#allocation4 + $0x16c] sm:$0xf0]  ;;  %v9365_v43 = vor.u32 %v10891_v14, %v9364_v10  ;;  %5860 = vmatpush.bf16.msra.mxu3 %v9637_v36  ;;  %v9558_v4 = vld [vmem:[#allocation4 + $0x1f0] sm:$0xf0] }
 0x9f1   :  { %v9620_v21 = vld [vmem:[#allocation4 + $0x260] sm:$0xf]  ;;  %v10955_v40 = vld [vmem:[#allocation4 + $0x26c] sm:$0xf0]  ;;  %v9493_v44 = vor.u32 %v10923_v6, %v9492_v8  ;;  %5873 = vmatpush.bf16.msrb.mxu0 %v9765_v31  ;;  %v10969_v57 = vld [vmem:[#allocation4 + $0x2e4] sm:$0xf]  ;;  %v9433_v6 = vor.u32 %v10905_v37, %v9430_v52 }
 0x9f2   :  { %v9748_v42 = vld [vmem:[#allocation4 + $0x360] sm:$0xf]  ;;  %v10987_v41 = vld [vmem:[#allocation4 + $0x36c] sm:$0xf0]  ;;  %v9621_v45 = vor.u32 %v10955_v40, %v9620_v21  ;;  %5835 = vmatpush.bf16.msra.mxu1 %v9365_v43  ;;  %v9686_v32 = vld [vmem:[#allocation4 + $0x2f0] sm:$0xf0]  ;;  %v9561_v21 = vor.u32 %v10937_v19, %v9558_v4 }
 0x9f3   :  { %v9348_v11 = vld [vmem:[#allocation4 + $0x40] sm:$0xf]  ;;  %v10887_v46 = vld [vmem:[#allocation4 + $0x4c] sm:$0xf0]  ;;  %v9749_v50 = vor.u32 %v10987_v41, %v9748_v42  ;;  %5848 = vmatpush.bf16.msrb.mxu2 %v9493_v44  ;;  %v11001_v8 = vld [vmem:[#allocation4 + $0x3e4] sm:$0xf]  ;;  %v9689_v42 = vor.u32 %v10969_v57, %v9686_v32 }
 0x9f4   :  { %v9476_v47 = vld [vmem:[#allocation4 + $0x140] sm:$0xf]  ;;  %v10919_v35 = vld [vmem:[#allocation4 + $0x14c] sm:$0xf0]  ;;  %v9349_v7 = vor.u32 %v10887_v46, %v9348_v11  ;;  %5861 = vmatpush.bf16.msra.mxu3 %v9621_v45  ;;  %v9814_v31 = vld [vmem:[#allocation4 + $0x3f0] sm:$0xf0] }
 0x9f5   :  { %v9604_v60 = vld [vmem:[#allocation4 + $0x240] sm:$0xf]  ;;  %v10951_v62 = vld [vmem:[#allocation4 + $0x24c] sm:$0xf0]  ;;  %v9477_v9 = vor.u32 %v10919_v35, %v9476_v47  ;;  %5874 = vmatpush.bf16.msrb.mxu0 %v9749_v50  ;;  %v10901_v40 = vld [vmem:[#allocation4 + $0xc4] sm:$0xf]  ;;  %v9817_v11 = vor.u32 %v11001_v8, %v9814_v31  ;;  %v12936_v50 = vpack.c.bf16 %v5044_v56, %v5044_v56 }
 0x9f6   :  { %v9732_v63 = vld [vmem:[#allocation4 + $0x340] sm:$0xf]  ;;  %v10983_v39 = vld [vmem:[#allocation4 + $0x34c] sm:$0xf0]  ;;  %v9605_v61 = vor.u32 %v10951_v62, %v9604_v60  ;;  %5836 = vmatpush.bf16.msra.mxu1 %v9349_v7  ;;  %v9414_v43 = vld [vmem:[#allocation4 + $0xd0] sm:$0xf0]  ;;  %v12941_v62 = vpack.c.bf16 %v5045_v38, %v5045_v38 }
 0x9f7   :  { %v9332_v5 = vld [vmem:[#allocation4 + $0x20] sm:$0xf]  ;;  %v10883_v49 = vld [vmem:[#allocation4 + $0x2c] sm:$0xf0]  ;;  %v9733_v0 = vor.u32 %v10983_v39, %v9732_v63  ;;  %5849 = vmatpush.bf16.msrb.mxu2 %v9477_v9  ;;  %v10933_v44 = vld [vmem:[#allocation4 + $0x1c4] sm:$0xf]  ;;  %v12946_v63 = vpack.c.bf16 %v5043_v3, %v5043_v3  ;;  %v9417_v17 = vor.u32 %v10901_v40, %v9414_v43 }
 0x9f8   :  { %v9460_v15 = vld [vmem:[#allocation4 + $0x120] sm:$0xf]  ;;  %v10915_v1 = vld [vmem:[#allocation4 + $0x12c] sm:$0xf0]  ;;  %v9333_v23 = vor.u32 %v10883_v49, %v9332_v5  ;;  %5862 = vmatpush.bf16.msra.mxu3 %v9605_v61  ;;  %v9542_v45 = vld [vmem:[#allocation4 + $0x1d0] sm:$0xf0] }
 0x9f9   :  { %v9588_v53 = vld [vmem:[#allocation4 + $0x220] sm:$0xf]  ;;  %v10947_v16 = vld [vmem:[#allocation4 + $0x22c] sm:$0xf0]  ;;  %v9461_v55 = vor.u32 %v10915_v1, %v9460_v15  ;;  %5875 = vmatpush.bf16.msrb.mxu0 %v9733_v0  ;;  %v10965_v46 = vld [vmem:[#allocation4 + $0x2c4] sm:$0xf]  ;;  %v9545_v39 = vor.u32 %v10933_v44, %v9542_v45 }
 0x9fa   :  { %v9716_v13 = vld [vmem:[#allocation4 + $0x320] sm:$0xf]  ;;  %v10979_v18 = vld [vmem:[#allocation4 + $0x32c] sm:$0xf0]  ;;  %v9589_v27 = vor.u32 %v10947_v16, %v9588_v53  ;;  %5837 = vmatpush.bf16.msra.mxu1 %v9333_v23  ;;  %v9670_v47 = vld [vmem:[#allocation4 + $0x2d0] sm:$0xf0] }
 0x9fb   :  { %v9316_v24 = vld [vmem:[#allocation4] sm:$0xf]  ;;  %v10879_v26 = vld [vmem:[#allocation4 + $0xc] sm:$0xf0]  ;;  %v9717_v51 = vor.u32 %v10979_v18, %v9716_v13  ;;  %5850 = vmatpush.bf16.msrb.mxu2 %v9461_v55  ;;  %v10997_v35 = vld [vmem:[#allocation4 + $0x3c4] sm:$0xf]  ;;  %v9673_v7 = vor.u32 %v10965_v46, %v9670_v47 }
 0x9fc   :  { %v9444_v22 = vld [vmem:[#allocation4 + $0x100] sm:$0xf]  ;;  %v10911_v28 = vld [vmem:[#allocation4 + $0x10c] sm:$0xf0]  ;;  %v9317_v20 = vor.u32 %v10879_v26, %v9316_v24  ;;  %5863 = vmatpush.bf16.msra.mxu3 %v9589_v27  ;;  %v9798_v60 = vld [vmem:[#allocation4 + $0x3d0] sm:$0xf0] }
 0x9fd   :  { %v9572_v25 = vld [vmem:[#allocation4 + $0x200] sm:$0xf]  ;;  %v10943_v33 = vld [vmem:[#allocation4 + $0x20c] sm:$0xf0]  ;;  %v9445_v10 = vor.u32 %v10911_v28, %v9444_v22  ;;  %5876 = vmatpush.bf16.msrb.mxu0 %v9717_v51  ;;  %v10897_v56 = vld [vmem:[#allocation4 + $0xa4] sm:$0xf]  ;;  %v9801_v2 = vor.u32 %v10997_v35, %v9798_v60 }
 0x9fe   :  { %v9700_v59 = vld [vmem:[#allocation4 + $0x300] sm:$0xf]  ;;  %v10975_v36 = vld [vmem:[#allocation4 + $0x30c] sm:$0xf0]  ;;  %v9573_v14 = vor.u32 %v10943_v33, %v9572_v25  ;;  %5838 = vmatpush.bf16.msra.mxu1 %v9317_v20  ;;  %v9398_v9 = vld [vmem:[#allocation4 + $0xb0] sm:$0xf0] }
 0x9ff   :  { %v9701_v41 = vor.u32 %v10975_v36, %v9700_v59  ;;  %5851 = vmatpush.bf16.msrb.mxu2 %v9445_v10  ;;  %v10929_v61 = vld [vmem:[#allocation4 + $0x1a4] sm:$0xf]  ;;  %v9526_v5 = vld [vmem:[#allocation4 + $0x1b0] sm:$0xf0]  ;;  %v9401_v0 = vor.u32 %v10897_v56, %v9398_v9 }
 0xa00   :  { %5864 = vmatpush.bf16.msra.mxu3 %v9573_v14  ;;  %v10961_v3 = vld [vmem:[#allocation4 + $0x2a4] sm:$0xf]  ;;  %v9654_v38 = vld [vmem:[#allocation4 + $0x2b0] sm:$0xf0]  ;;  %v9529_v1 = vor.u32 %v10929_v61, %v9526_v5 }
 0xa01   :  { %5877 = vmatpush.bf16.msrb.mxu0 %v9701_v41  ;;  %v10993_v49 = vld [vmem:[#allocation4 + $0x3a4] sm:$0xf]  ;;  %v9782_v15 = vld [vmem:[#allocation4 + $0x3b0] sm:$0xf0]  ;;  %5839 = vmatmul.bf16.vlgmr.msra.gmra.mxu1 %v12946_v63  ;;  %v9657_v58 = vor.u32 %v10961_v3, %v9654_v38 }
 0xa02   :  { %5883 = vmatpush.bf16.msrb.mxu1 %v9433_v6  ;;  %5852 = vmatmul.bf16.vlgmr.msrb.gmra.mxu2 %v12936_v50  ;;  %v9382_v53 = vld [vmem:[#allocation4 + $0x90] sm:$0xf0]  ;;  %v10925_v16 = vld [vmem:[#allocation4 + $0x184] sm:$0xf]  ;;  %v9785_v18 = vor.u32 %v10993_v49, %v9782_v15 }
 0xa03   :  { %5896 = vmatpush.bf16.msra.mxu2 %v9561_v21  ;;  %5865 = vmatmul.bf16.vlgmr.msra.gmra.mxu3 %v12941_v62  ;;  %v9510_v13 = vld [vmem:[#allocation4 + $0x190] sm:$0xf0]  ;;  %v10957_v23 = vld [vmem:[#allocation4 + $0x284] sm:$0xf]  ;;  %v9385_v27 = vor.u32 %v10893_v54, %v9382_v53  ;;  %v9436_v54 = vld [vmem:[#allocation4 + $0xe8] sm:$0xf] }
 0xa04   :  { %5909 = vmatpush.bf16.msrb.mxu3 %v9689_v42  ;;  %5878 = vmatmul.bf16.vlgmr.msrb.gmra.mxu0 %v12951_v34  ;;  %v9638_v24 = vld [vmem:[#allocation4 + $0x290] sm:$0xf0]  ;;  %v10989_v26 = vld [vmem:[#allocation4 + $0x384] sm:$0xf]  ;;  %v9513_v22 = vor.u32 %v10925_v16, %v9510_v13  ;;  %v9564_v53 = vld [vmem:[#allocation4 + $0x1e8] sm:$0xf] }
 0xa05   :  { %5922 = vmatpush.bf16.msra.mxu0 %v9817_v11  ;;  %v9766_v55 = vld [vmem:[#allocation4 + $0x390] sm:$0xf0]  ;;  %v10889_v28 = vld [vmem:[#allocation4 + $0x64] sm:$0xf]  ;;  %v9641_v25 = vor.u32 %v10957_v23, %v9638_v24  ;;  %v10940_v16 = vld [vmem:[#allocation4 + $0x1f4] sm:$0xf0] }
 0xa06   :  { %5884 = vmatpush.bf16.msrb.mxu1 %v9417_v17  ;;  %v9366_v51 = vld [vmem:[#allocation4 + $0x70] sm:$0xf0]  ;;  %v10921_v33 = vld [vmem:[#allocation4 + $0x164] sm:$0xf]  ;;  %v9769_v52 = vor.u32 %v10989_v26, %v9766_v55  ;;  %v9692_v13 = vld [vmem:[#allocation4 + $0x2e8] sm:$0xf] }
 0xa07   :  { %5897 = vmatpush.bf16.msra.mxu2 %v9545_v39  ;;  %v9494_v37 = vld [vmem:[#allocation4 + $0x170] sm:$0xf0]  ;;  %v10953_v19 = vld [vmem:[#allocation4 + $0x264] sm:$0xf]  ;;  %v9369_v32 = vor.u32 %v10889_v28, %v9366_v51  ;;  %v9820_v28 = vld [vmem:[#allocation4 + $0x3e8] sm:$0xf]  ;;  %v9565_v51 = vor.u32 %v10940_v16, %v9564_v53 }
 0xa08   :  { %5910 = vmatpush.bf16.msrb.mxu3 %v9673_v7  ;;  %v9622_v4 = vld [vmem:[#allocation4 + $0x270] sm:$0xf0]  ;;  %v10985_v57 = vld [vmem:[#allocation4 + $0x364] sm:$0xf]  ;;  %v9497_v59 = vor.u32 %v10921_v33, %v9494_v37  ;;  %v9420_v37 = vld [vmem:[#allocation4 + $0xc8] sm:$0xf] }
 0xa09   :  { %5923 = vmatpush.bf16.msra.mxu0 %v9801_v2  ;;  %v9750_v20 = vld [vmem:[#allocation4 + $0x370] sm:$0xf0]  ;;  %v10885_v36 = vld [vmem:[#allocation4 + $0x44] sm:$0xf]  ;;  %v9625_v10 = vor.u32 %v10953_v19, %v9622_v4  ;;  %v9548_v19 = vld [vmem:[#allocation4 + $0x1c8] sm:$0xf] }
 0xa0a   :  { %5885 = vmatpush.bf16.msrb.mxu1 %v9401_v0  ;;  %v9350_v14 = vld [vmem:[#allocation4 + $0x50] sm:$0xf0]  ;;  %v10917_v8 = vld [vmem:[#allocation4 + $0x144] sm:$0xf]  ;;  %v9753_v6 = vor.u32 %v10985_v57, %v9750_v20  ;;  %v10936_v57 = vld [vmem:[#allocation4 + $0x1d4] sm:$0xf0] }
 0xa0b   :  { %5898 = vmatpush.bf16.msra.mxu2 %v9529_v1  ;;  %v9478_v31 = vld [vmem:[#allocation4 + $0x150] sm:$0xf0]  ;;  %v10949_v21 = vld [vmem:[#allocation4 + $0x244] sm:$0xf]  ;;  %v9353_v43 = vor.u32 %v10885_v36, %v9350_v14  ;;  %v9676_v20 = vld [vmem:[#allocation4 + $0x2c8] sm:$0xf] }
 0xa0c   :  { %5911 = vmatpush.bf16.msrb.mxu3 %v9657_v58  ;;  %v9606_v40 = vld [vmem:[#allocation4 + $0x250] sm:$0xf0]  ;;  %v10981_v42 = vld [vmem:[#allocation4 + $0x344] sm:$0xf]  ;;  %v9481_v44 = vor.u32 %v10917_v8, %v9478_v31  ;;  %v10908_v58 = vld [vmem:[#allocation4 + $0xf4] sm:$0xf0]  ;;  %v9549_v8 = vor.u32 %v10936_v57, %v9548_v19 }
 0xa0d   :  { %5924 = vmatpush.bf16.msra.mxu0 %v9785_v18  ;;  %v9734_v41 = vld [vmem:[#allocation4 + $0x350] sm:$0xf0]  ;;  %v10881_v45 = vld [vmem:[#allocation4 + $0x24] sm:$0xf]  ;;  %v9609_v11 = vor.u32 %v10949_v21, %v9606_v40  ;;  %v10972_v18 = vld [vmem:[#allocation4 + $0x2f4] sm:$0xf0] }
 0xa0e   :  { %5886 = vmatpush.bf16.msrb.mxu1 %v9385_v27  ;;  %v9334_v46 = vld [vmem:[#allocation4 + $0x30] sm:$0xf0]  ;;  %v10913_v47 = vld [vmem:[#allocation4 + $0x124] sm:$0xf]  ;;  %v9737_v60 = vor.u32 %v10981_v42, %v9734_v41  ;;  %v9693_v33 = vor.u32 %v10972_v18, %v9692_v13  ;;  %v11000_v14 = vld [vmem:[#allocation4 + $0x3d4] sm:$0xf0] }
 0xa0f   :  { %5899 = vmatpush.bf16.msra.mxu2 %v9513_v22  ;;  %v9462_v35 = vld [vmem:[#allocation4 + $0x130] sm:$0xf0]  ;;  %v10945_v17 = vld [vmem:[#allocation4 + $0x224] sm:$0xf]  ;;  %v9337_v9 = vor.u32 %v10881_v45, %v9334_v46  ;;  %v9437_v22 = vor.u32 %v10908_v58, %v9436_v54  ;;  %v10900_v21 = vld [vmem:[#allocation4 + $0xb4] sm:$0xf0] }
 0xa10   :  { %5912 = vmatpush.bf16.msrb.mxu3 %v9641_v25  ;;  %v9590_v39 = vld [vmem:[#allocation4 + $0x230] sm:$0xf0]  ;;  %v10977_v56 = vld [vmem:[#allocation4 + $0x324] sm:$0xf]  ;;  %v9465_v61 = vor.u32 %v10913_v47, %v9462_v35  ;;  %v11004_v25 = vld [vmem:[#allocation4 + $0x3f4] sm:$0xf0] }
 0xa11   :  { %5925 = vmatpush.bf16.msra.mxu0 %v9769_v52  ;;  %v9718_v7 = vld [vmem:[#allocation4 + $0x330] sm:$0xf0]  ;;  %v10877_v5 = vld [vmem:[#allocation4 + $0x4] sm:$0xf]  ;;  %v9593_v38 = vor.u32 %v10945_v17, %v9590_v39  ;;  %v10904_v52 = vld [vmem:[#allocation4 + $0xd4] sm:$0xf0] }
 0xa12   :  { %5887 = vmatpush.bf16.msrb.mxu1 %v9369_v32  ;;  %v9318_v2 = vld [vmem:[#allocation4 + $0x10] sm:$0xf0]  ;;  %v10909_v3 = vld [vmem:[#allocation4 + $0x104] sm:$0xf]  ;;  %v9721_v1 = vor.u32 %v10977_v56, %v9718_v7  ;;  %v10968_v32 = vld [vmem:[#allocation4 + $0x2d4] sm:$0xf0]  ;;  %v9421_v36 = vor.u32 %v10904_v52, %v9420_v37 }
 0xa13   :  { %5900 = vmatpush.bf16.msra.mxu2 %v9497_v59  ;;  %v9446_v49 = vld [vmem:[#allocation4 + $0x110] sm:$0xf0]  ;;  %v10941_v15 = vld [vmem:[#allocation4 + $0x204] sm:$0xf]  ;;  %v9321_v23 = vor.u32 %v10877_v5, %v9318_v2  ;;  %v9821_v59 = vor.u32 %v11004_v25, %v9820_v28  ;;  %v9677_v31 = vor.u32 %v10968_v32, %v9676_v20  ;;  %v9532_v40 = vld [vmem:[#allocation4 + $0x1a8] sm:$0xf] }
 0xa14   :  { %5913 = vmatpush.bf16.msrb.mxu3 %v9625_v10  ;;  %v9574_v0 = vld [vmem:[#allocation4 + $0x210] sm:$0xf0]  ;;  %v9449_v24 = vor.u32 %v10909_v3, %v9446_v49  ;;  %v10973_v26 = vld [vmem:[#allocation4 + $0x304] sm:$0xf]  ;;  %v9804_v10 = vld [vmem:[#allocation4 + $0x3c8] sm:$0xf] }
 0xa15   :  { %5926 = vmatpush.bf16.msra.mxu0 %v9753_v6  ;;  %v9702_v55 = vld [vmem:[#allocation4 + $0x310] sm:$0xf0]  ;;  %v9577_v27 = vor.u32 %v10941_v15, %v9574_v0  ;;  %v9404_v6 = vld [vmem:[#allocation4 + $0xa8] sm:$0xf]  ;;  %v10932_v42 = vld [vmem:[#allocation4 + $0x1b4] sm:$0xf0] }
 0xa16   :  { %5888 = vmatpush.bf16.msrb.mxu1 %v9353_v43  ;;  %v9705_v4 = vor.u32 %v10973_v26, %v9702_v55  ;;  %v9660_v41 = vld [vmem:[#allocation4 + $0x2a8] sm:$0xf]  ;;  %v10964_v43 = vld [vmem:[#allocation4 + $0x2b4] sm:$0xf0]  ;;  %v9405_v45 = vor.u32 %v10900_v21, %v9404_v6  ;;  %v9533_v47 = vor.u32 %v10932_v42, %v9532_v40 }
 0xa17   :  { %5901 = vmatpush.bf16.msra.mxu2 %v9481_v44  ;;  %v9805_v44 = vor.u32 %v11000_v14, %v9804_v10  ;;  %v10996_v46 = vld [vmem:[#allocation4 + $0x3b4] sm:$0xf0]  ;;  %v9661_v35 = vor.u32 %v10964_v43, %v9660_v41  ;;  %v9516_v39 = vld [vmem:[#allocation4 + $0x188] sm:$0xf] }
 0xa18   :  { %5914 = vmatpush.bf16.msrb.mxu3 %v9609_v11  ;;  %v9788_v11 = vld [vmem:[#allocation4 + $0x3a8] sm:$0xf]  ;;  %v10896_v17 = vld [vmem:[#allocation4 + $0x94] sm:$0xf0] }
 0xa19   :  { %5927 = vmatpush.bf16.msra.mxu0 %v9737_v60  ;;  %v9388_v60 = vld [vmem:[#allocation4 + $0x88] sm:$0xf]  ;;  %v10928_v56 = vld [vmem:[#allocation4 + $0x194] sm:$0xf0] }
 0xa1a   :  { %5889 = vmatpush.bf16.msrb.mxu1 %v9337_v9  ;;  %v9644_v7 = vld [vmem:[#allocation4 + $0x288] sm:$0xf]  ;;  %v10960_v9 = vld [vmem:[#allocation4 + $0x294] sm:$0xf0]  ;;  %v9389_v5 = vor.u32 %v10896_v17, %v9388_v60  ;;  %v10938_v17 = vld [vmem:[#allocation4 + $0x1ec] sm:$0xf] }
 0xa1b   :  { %5902 = vmatpush.bf16.msra.mxu2 %v9465_v61  ;;  %v9789_v61 = vor.u32 %v10996_v46, %v9788_v11  ;;  %v9772_v2 = vld [vmem:[#allocation4 + $0x388] sm:$0xf]  ;;  %v10992_v3 = vld [vmem:[#allocation4 + $0x394] sm:$0xf0]  ;;  %v9645_v49 = vor.u32 %v10960_v9, %v9644_v7  ;;  %v9694_v9 = vld [vmem:[#allocation4 + $0x2f8] sm:$0xf0] }
 0xa1c   :  { %5915 = vmatpush.bf16.msrb.mxu3 %v9593_v38  ;;  %v9517_v38 = vor.u32 %v10928_v56, %v9516_v39  ;;  %v9372_v15 = vld [vmem:[#allocation4 + $0x68] sm:$0xf]  ;;  %v10892_v0 = vld [vmem:[#allocation4 + $0x74] sm:$0xf0]  ;;  %v9773_v16 = vor.u32 %v10992_v3, %v9772_v2  ;;  %v9566_v39 = vld [vmem:[#allocation4 + $0x1f8] sm:$0xf0] }
 0xa1d   :  { %5928 = vmatpush.bf16.msra.mxu0 %v9721_v1  ;;  %v9500_v1 = vld [vmem:[#allocation4 + $0x168] sm:$0xf]  ;;  %v10924_v54 = vld [vmem:[#allocation4 + $0x174] sm:$0xf0]  ;;  %v9373_v13 = vor.u32 %v10892_v0, %v9372_v15  ;;  %v10970_v56 = vld [vmem:[#allocation4 + $0x2ec] sm:$0xf]  ;;  %v9569_v0 = vor.u32 %v10938_v17, %v9566_v39 }
 0xa1e   :  { %5890 = vmatpush.bf16.msrb.mxu1 %v9321_v23  ;;  %v9628_v58 = vld [vmem:[#allocation4 + $0x268] sm:$0xf]  ;;  %v10956_v53 = vld [vmem:[#allocation4 + $0x274] sm:$0xf0]  ;;  %v10954_v17 = vld [vmem:[#allocation4 + $0x26c] sm:$0xf] }
 0xa1f   :  { %5903 = vmatpush.bf16.msra.mxu2 %v9449_v24  ;;  %v9756_v18 = vld [vmem:[#allocation4 + $0x368] sm:$0xf]  ;;  %v10988_v23 = vld [vmem:[#allocation4 + $0x374] sm:$0xf0]  ;;  %v9501_v24 = vor.u32 %v10924_v54, %v9500_v1  ;;  %v9629_v26 = vor.u32 %v10956_v53, %v9628_v58  ;;  %v10902_v1 = vld [vmem:[#allocation4 + $0xcc] sm:$0xf]  ;;  %v9697_v54 = vor.u32 %v10970_v56, %v9694_v9 }
 0xa20   :  { %5916 = vmatpush.bf16.msrb.mxu3 %v9577_v27  ;;  %v9356_v55 = vld [vmem:[#allocation4 + $0x48] sm:$0xf]  ;;  %v10888_v27 = vld [vmem:[#allocation4 + $0x54] sm:$0xf0]  ;;  %v9422_v53 = vld [vmem:[#allocation4 + $0xd8] sm:$0xf0] }
 0xa21   :  { %5929 = vmatpush.bf16.msra.mxu0 %v9705_v4  ;;  %5891 = vmatmul.bf16.vlgmr.msrb.gmra.mxu1 %v12946_v63  ;;  %v10920_v28 = vld [vmem:[#allocation4 + $0x154] sm:$0xf0]  ;;  %v9612_v25 = vld [vmem:[#allocation4 + $0x248] sm:$0xf]  ;;  %v9357_v37 = vor.u32 %v10888_v27, %v9356_v55  ;;  %v9806_v55 = vld [vmem:[#allocation4 + $0x3d8] sm:$0xf0]  ;;  %v9425_v27 = vor.u32 %v10902_v1, %v9422_v53 }
 0xa22   :  { %5935 = vmatpush.bf16.msra.mxu1 %v9437_v22  ;;  %5904 = vmatmul.bf16.vlgmr.msra.gmra.mxu2 %v12936_v50  ;;  %v9484_v22 = vld [vmem:[#allocation4 + $0x148] sm:$0xf]  ;;  %v10984_v19 = vld [vmem:[#allocation4 + $0x354] sm:$0xf0]  ;;  %v9630_v39 = vld [vmem:[#allocation4 + $0x278] sm:$0xf0] }
 0xa23   :  { %5948 = vmatpush.bf16.msrb.mxu2 %v9565_v51  ;;  %5917 = vmatmul.bf16.vlgmr.msrb.gmra.mxu3 %v12941_v62  ;;  %v10952_v51 = vld [vmem:[#allocation4 + $0x254] sm:$0xf0]  ;;  %v9740_v52 = vld [vmem:[#allocation4 + $0x348] sm:$0xf]  ;;  %v9485_v4 = vor.u32 %v10920_v28, %v9484_v22  ;;  %v10898_v28 = vld [vmem:[#allocation4 + $0xac] sm:$0xf] }
 0xa24   :  { %5961 = vmatpush.bf16.msra.mxu3 %v9693_v33  ;;  %5930 = vmatmul.bf16.vlgmr.msra.gmra.mxu0 %v12951_v34  ;;  %v9757_v33 = vor.u32 %v10988_v23, %v9756_v18  ;;  %v9613_v57 = vor.u32 %v10952_v51, %v9612_v25  ;;  %v9340_v20 = vld [vmem:[#allocation4 + $0x28] sm:$0xf]  ;;  %v10884_v32 = vld [vmem:[#allocation4 + $0x34] sm:$0xf0]  ;;  %v10966_v23 = vld [vmem:[#allocation4 + $0x2cc] sm:$0xf] }
 0xa25   :  { %5974 = vmatpush.bf16.msrb.mxu0 %v9821_v59  ;;  %v9468_v59 = vld [vmem:[#allocation4 + $0x128] sm:$0xf]  ;;  %v10948_v14 = vld [vmem:[#allocation4 + $0x234] sm:$0xf0]  ;;  %v9341_v6 = vor.u32 %v10884_v32, %v9340_v20  ;;  %v9406_v51 = vld [vmem:[#allocation4 + $0xb8] sm:$0xf0] }
 0xa26   :  { %5936 = vmatpush.bf16.msra.mxu1 %v9421_v36  ;;  %v10916_v36 = vld [vmem:[#allocation4 + $0x134] sm:$0xf0]  ;;  %v9596_v10 = vld [vmem:[#allocation4 + $0x228] sm:$0xf]  ;;  %v9790_v20 = vld [vmem:[#allocation4 + $0x3b8] sm:$0xf0]  ;;  %v9409_v32 = vor.u32 %v10898_v28, %v9406_v51 }
 0xa27   :  { %5949 = vmatpush.bf16.msrb.mxu2 %v9549_v8  ;;  %v9741_v8 = vor.u32 %v10984_v19, %v9740_v52  ;;  %v10980_v21 = vld [vmem:[#allocation4 + $0x334] sm:$0xf0]  ;;  %v9324_v40 = vld [vmem:[#allocation4 + $0x8] sm:$0xf]  ;;  %v9469_v41 = vor.u32 %v10916_v36, %v9468_v59  ;;  %v9597_v43 = vor.u32 %v10948_v14, %v9596_v10  ;;  %v10962_v19 = vld [vmem:[#allocation4 + $0x2ac] sm:$0xf] }
 0xa28   :  { %5962 = vmatpush.bf16.msra.mxu3 %v9677_v31  ;;  %v9724_v31 = vld [vmem:[#allocation4 + $0x328] sm:$0xf]  ;;  %v10880_v42 = vld [vmem:[#allocation4 + $0x14] sm:$0xf0]  ;;  %v10894_v36 = vld [vmem:[#allocation4 + $0x8c] sm:$0xf] }
 0xa29   :  { %5975 = vmatpush.bf16.msrb.mxu0 %v9805_v44  ;;  %v9452_v44 = vld [vmem:[#allocation4 + $0x108] sm:$0xf]  ;;  %v10944_v46 = vld [vmem:[#allocation4 + $0x214] sm:$0xf0]  ;;  %v9725_v60 = vor.u32 %v10980_v21, %v9724_v31  ;;  %v9325_v7 = vor.u32 %v10880_v42, %v9324_v40  ;;  %v9390_v14 = vld [vmem:[#allocation4 + $0x98] sm:$0xf0] }
 0xa2a   :  { %5937 = vmatpush.bf16.msra.mxu1 %v9405_v45  ;;  %v10912_v45 = vld [vmem:[#allocation4 + $0x114] sm:$0xf0]  ;;  %v9580_v11 = vld [vmem:[#allocation4 + $0x208] sm:$0xf]  ;;  %v9518_v31 = vld [vmem:[#allocation4 + $0x198] sm:$0xf0] }
 0xa2b   :  { %5950 = vmatpush.bf16.msrb.mxu2 %v9533_v47  ;;  %v10906_v47 = vld [vmem:[#allocation4 + $0xec] sm:$0xf]  ;;  %v9453_v2 = vor.u32 %v10912_v45, %v9452_v44  ;;  %v9581_v3 = vor.u32 %v10944_v46, %v9580_v11  ;;  %v9646_v40 = vld [vmem:[#allocation4 + $0x298] sm:$0xf0] }
 0xa2c   :  { %5963 = vmatpush.bf16.msra.mxu3 %v9661_v35  ;;  %v9438_v35 = vld [vmem:[#allocation4 + $0xf8] sm:$0xf0]  ;;  %v10958_v21 = vld [vmem:[#allocation4 + $0x28c] sm:$0xf] }
 0xa2d   :  { %5976 = vmatpush.bf16.msrb.mxu0 %v9789_v61  ;;  %v9708_v61 = vld [vmem:[#allocation4 + $0x308] sm:$0xf]  ;;  %v9441_v15 = vor.u32 %v10906_v47, %v9438_v35  ;;  %v10990_v42 = vld [vmem:[#allocation4 + $0x38c] sm:$0xf]  ;;  %v9649_v11 = vor.u32 %v10958_v21, %v9646_v40  ;;  %v9374_v46 = vld [vmem:[#allocation4 + $0x78] sm:$0xf0] }
 0xa2e   :  { %5938 = vmatpush.bf16.msra.mxu1 %v9389_v5  ;;  %v10976_v5 = vld [vmem:[#allocation4 + $0x314] sm:$0xf0]  ;;  %v10890_v45 = vld [vmem:[#allocation4 + $0x6c] sm:$0xf]  ;;  %v9502_v35 = vld [vmem:[#allocation4 + $0x178] sm:$0xf0] }
 0xa2f   :  { %5951 = vmatpush.bf16.msrb.mxu2 %v9517_v38  ;;  %v11002_v38 = vld [vmem:[#allocation4 + $0x3ec] sm:$0xf]  ;;  %v9709_v58 = vor.u32 %v10976_v5, %v9708_v61  ;;  %v9377_v9 = vor.u32 %v10890_v45, %v9374_v46  ;;  %v9614_v1 = vld [vmem:[#allocation4 + $0x258] sm:$0xf0]  ;;  %v12976_v45 = vld [vmem:[%s13220_s8] sm:$0xf] }
 0xa30   :  { %5964 = vmatpush.bf16.msra.mxu3 %v9645_v49  ;;  %v9822_v49 = vld [vmem:[#allocation4 + $0x3f8] sm:$0xf0]  ;;  %v10922_v47 = vld [vmem:[#allocation4 + $0x16c] sm:$0xf] }
 0xa31   :  { %5977 = vmatpush.bf16.msrb.mxu0 %v9773_v16  ;;  %v10934_v16 = vld [vmem:[#allocation4 + $0x1cc] sm:$0xf]  ;;  %v9825_v18 = vor.u32 %v11002_v38, %v9822_v49  ;;  %v9505_v61 = vor.u32 %v10922_v47, %v9502_v35  ;;  %v9486_v49 = vld [vmem:[#allocation4 + $0x158] sm:$0xf0]  ;;  %v11006_v47 = vld [vmem:[%s13209_s5 + $0x8] sm:$0xff] }
 0xa32   :  { %5939 = vmatpush.bf16.msra.mxu1 %v9373_v13  ;;  %v9550_v13 = vld [vmem:[#allocation4 + $0x1d8] sm:$0xf0]  ;;  %v10986_v56 = vld [vmem:[#allocation4 + $0x36c] sm:$0xf]  ;;  %v11018_v35 = vld [vmem:[%s13209_s5 + $0x68] sm:$0xff] }
 0xa33   :  { %5952 = vmatpush.bf16.msrb.mxu2 %v9501_v24  ;;  %v9678_v24 = vld [vmem:[#allocation4 + $0x2d8] sm:$0xf0]  ;;  %v9553_v22 = vor.u32 %v10934_v16, %v9550_v13  ;;  %v10886_v5 = vld [vmem:[#allocation4 + $0x4c] sm:$0xf] }
 0xa34   :  { %5965 = vmatpush.bf16.msra.mxu3 %v9629_v26  ;;  %v10998_v26 = vld [vmem:[#allocation4 + $0x3cc] sm:$0xf]  ;;  %v9681_v25 = vor.u32 %v10966_v23, %v9678_v24  ;;  %v9342_v23 = vld [vmem:[#allocation4 + $0x38] sm:$0xf0] }
 0xa35   :  { %5978 = vmatpush.bf16.msrb.mxu0 %v9757_v33  ;;  %v10930_v33 = vld [vmem:[#allocation4 + $0x1ac] sm:$0xf]  ;;  %v9809_v52 = vor.u32 %v10998_v26, %v9806_v55  ;;  %v9470_v26 = vld [vmem:[#allocation4 + $0x138] sm:$0xf0] }
 0xa36   :  { %5940 = vmatpush.bf16.msra.mxu1 %v9357_v37  ;;  %v9534_v37 = vld [vmem:[#allocation4 + $0x1b8] sm:$0xf0]  ;;  %v10918_v38 = vld [vmem:[#allocation4 + $0x14c] sm:$0xf] }
 0xa37   :  { %5953 = vmatpush.bf16.msrb.mxu2 %v9485_v4  ;;  %v9662_v4 = vld [vmem:[#allocation4 + $0x2b8] sm:$0xf0]  ;;  %v9537_v59 = vor.u32 %v10930_v33, %v9534_v37  ;;  %v9489_v16 = vor.u32 %v10918_v38, %v9486_v49  ;;  %v10882_v13 = vld [vmem:[#allocation4 + $0x2c] sm:$0xf]  ;;  %v11016_v49 = vld [vmem:[%s13209_s5 + $0x58] sm:$0xff] }
 0xa38   :  { %5966 = vmatpush.bf16.msra.mxu3 %v9613_v57  ;;  %v10994_v57 = vld [vmem:[#allocation4 + $0x3ac] sm:$0xf]  ;;  %v9665_v10 = vor.u32 %v10962_v19, %v9662_v4  ;;  %v9345_v51 = vor.u32 %v10882_v13, %v9342_v23  ;;  %v9326_v19 = vld [vmem:[#allocation4 + $0x18] sm:$0xf0] }
 0xa39   :  { %5979 = vmatpush.bf16.msrb.mxu0 %v9741_v8  ;;  %v10926_v8 = vld [vmem:[#allocation4 + $0x18c] sm:$0xf] }
 0xa3a   :  { %5941 = vmatpush.bf16.msra.mxu1 %v9341_v6  ;;  %v9793_v6 = vor.u32 %v10994_v57, %v9790_v20  ;;  %v9521_v44 = vor.u32 %v10926_v8, %v9518_v31  ;;  %v10914_v24 = vld [vmem:[#allocation4 + $0x12c] sm:$0xf]  ;;  %v9454_v57 = vld [vmem:[#allocation4 + $0x118] sm:$0xf0] }
 0xa3b   :  { %5954 = vmatpush.bf16.msrb.mxu2 %v9469_v41  ;;  %v9774_v41 = vld [vmem:[#allocation4 + $0x398] sm:$0xf0]  ;;  %v10978_v28 = vld [vmem:[#allocation4 + $0x32c] sm:$0xf]  ;;  %v9473_v33 = vor.u32 %v10914_v24, %v9470_v26  ;;  %v11014_v26 = vld [vmem:[%s13209_s5 + $0x48] sm:$0xff] }
 0xa3c   :  { %5967 = vmatpush.bf16.msra.mxu3 %v9597_v43  ;;  %v9393_v43 = vor.u32 %v10894_v36, %v9390_v14  ;;  %v10878_v37 = vld [vmem:[#allocation4 + $0xc] sm:$0xf] }
 0xa3d   :  { %5980 = vmatpush.bf16.msrb.mxu0 %v9725_v60  ;;  %v9777_v60 = vor.u32 %v10990_v42, %v9774_v41  ;;  %v10910_v4 = vld [vmem:[#allocation4 + $0x10c] sm:$0xf]  ;;  %v9329_v14 = vor.u32 %v10878_v37, %v9326_v19  ;;  %v11010_v42 = vld [vmem:[%s13209_s5 + $0x28] sm:$0xff]  ;;  %v11009_v41 = vld [vmem:[%s13209_s5 + $0x20] sm:$0xff] }
 0xa3e   :  { %5942 = vmatpush.bf16.msra.mxu1 %v9325_v7  ;;  %v9758_v7 = vld [vmem:[#allocation4 + $0x378] sm:$0xf0]  ;;  %v10974_v36 = vld [vmem:[#allocation4 + $0x30c] sm:$0xf]  ;;  %v9457_v8 = vor.u32 %v10910_v4, %v9454_v57  ;;  %v5184_v4 = vperm.slane %v12976_v45, 1 }
 0xa3f   :  { %5955 = vmatpush.bf16.msrb.mxu2 %v9453_v2  ;;  %v9633_v2 = vor.u32 %v10954_v17, %v9630_v39  ;;  %v11011_v40 = vld [vmem:[%s13209_s5 + $0x30] sm:$0xff] }
 0xa40   :  { %5968 = vmatpush.bf16.msra.mxu3 %v9581_v3  ;;  %v9358_v3 = vld [vmem:[#allocation4 + $0x58] sm:$0xf0]  ;;  %v11027_v19 = vld [vmem:[%s13209_s5 + $0xb0] sm:$0xff] }
 0xa41   :  { %5981 = vmatpush.bf16.msrb.mxu0 %v9709_v58  ;;  %5943 = vmatmul.bf16.vlgmr.msra.gmra.mxu1 %v12946_v63  ;;  %v9742_v58 = vld [vmem:[#allocation4 + $0x358] sm:$0xf0]  ;;  %v9361_v53 = vor.u32 %v10886_v5, %v9358_v3 }
 0xa42   :  { %5987 = vmatpush.bf16.msrb.mxu1 %v9441_v15  ;;  %5956 = vmatmul.bf16.vlgmr.msrb.gmra.mxu2 %v12936_v50  ;;  %v9761_v15 = vor.u32 %v10986_v56, %v9758_v7  ;;  %v11005_v56 = vld [vmem:[%s13209_s5] sm:$0xff] }
 0xa43   :  { %6000 = vmatpush.bf16.msra.mxu2 %v9569_v0  ;;  %5969 = vmatmul.bf16.vlgmr.msra.gmra.mxu3 %v12941_v62  ;;  %v10950_v0 = vld [vmem:[#allocation4 + $0x24c] sm:$0xf] }
 0xa44   :  { %6013 = vmatpush.bf16.msrb.mxu3 %v9697_v54  ;;  %5982 = vmatmul.bf16.vlgmr.msrb.gmra.mxu0 %v12951_v34  ;;  %v10982_v54 = vld [vmem:[#allocation4 + $0x34c] sm:$0xf] }
 0xa45   :  { %6026 = vmatpush.bf16.msra.mxu0 %v9825_v18  ;;  %v9617_v18 = vor.u32 %v10950_v0, %v9614_v1  ;;  %v9745_v55 = vor.u32 %v10982_v54, %v9742_v58 }
 0xa46   :  { %5988 = vmatpush.bf16.msrb.mxu1 %v9425_v27  ;;  %v10946_v27 = vld [vmem:[#allocation4 + $0x22c] sm:$0xf] }
 0xa47   :  { %6001 = vmatpush.bf16.msra.mxu2 %v9553_v22  ;;  %v9598_v22 = vld [vmem:[#allocation4 + $0x238] sm:$0xf0] }
 0xa48   :  { %6014 = vmatpush.bf16.msrb.mxu3 %v9681_v25  ;;  %v9726_v25 = vld [vmem:[#allocation4 + $0x338] sm:$0xf0] }
 0xa49   :  { %6027 = vmatpush.bf16.msra.mxu0 %v9809_v52  ;;  %v9601_v52 = vor.u32 %v10946_v27, %v9598_v22  ;;  %v9729_v20 = vor.u32 %v10978_v28, %v9726_v25  ;;  %v11013_v28 = vld [vmem:[%s13209_s5 + $0x40] sm:$0xff] }
 0xa4a   :  { %5989 = vmatpush.bf16.msrb.mxu1 %v9409_v32  ;;  %v10942_v32 = vld [vmem:[#allocation4 + $0x20c] sm:$0xf] }
 0xa4b   :  { %6002 = vmatpush.bf16.msra.mxu2 %v9537_v59  ;;  %v9582_v59 = vld [vmem:[#allocation4 + $0x218] sm:$0xf0] }
 0xa4c   :  { %6015 = vmatpush.bf16.msrb.mxu3 %v9665_v10  ;;  %v9710_v10 = vld [vmem:[#allocation4 + $0x318] sm:$0xf0]  ;;  %v9585_v31 = vor.u32 %v10942_v32, %v9582_v59  ;;  %v11026_v59 = vld [vmem:[%s13209_s5 + $0xa8] sm:$0xff] }
 0xa4d   :  { %6028 = vmatpush.bf16.msra.mxu0 %v9793_v6  ;;  %v11012_v6 = vld [vmem:[%s13209_s5 + $0x38] sm:$0xff]  ;;  %v9713_v21 = vor.u32 %v10974_v36, %v9710_v10 }
 0xa4e   :  { %5990 = vmatpush.bf16.msrb.mxu1 %v9393_v43  ;;  %v11020_v43 = vld [vmem:[%s13209_s5 + $0x78] sm:$0xff] }
 0xa4f   :  { %6003 = vmatpush.bf16.msra.mxu2 %v9521_v44  ;;  %v11008_v44 = vld [vmem:[%s13209_s5 + $0x18] sm:$0xff] }
 0xa50   :  { %6016 = vmatpush.bf16.msrb.mxu3 %v9649_v11 }
 0xa51   :  { %6029 = vmatpush.bf16.msra.mxu0 %v9777_v60 }
 0xa52   :  { %5991 = vmatpush.bf16.msrb.mxu1 %v9377_v9 }
 0xa53   :  { %6004 = vmatpush.bf16.msra.mxu2 %v9505_v61  ;;  %v11017_v61 = vld [vmem:[%s13209_s5 + $0x60] sm:$0xff] }
 0xa54   :  { %6017 = vmatpush.bf16.msrb.mxu3 %v9633_v2 }
 0xa55   :  { %6030 = vmatpush.bf16.msra.mxu0 %v9761_v15 }
 0xa56   :  { %5992 = vmatpush.bf16.msrb.mxu1 %v9361_v53 }
 0xa57   :  { %6005 = vmatpush.bf16.msra.mxu2 %v9489_v16  ;;  %v11015_v16 = vld [vmem:[%s13209_s5 + $0x50] sm:$0xff] }
 0xa58   :  { %6018 = vmatpush.bf16.msrb.mxu3 %v9617_v18 }
 0xa59   :  { %6031 = vmatpush.bf16.msra.mxu0 %v9745_v55  ;;  %v11028_v55 = vld [vmem:[%s13209_s5 + $0xb8] sm:$0xff] }
 0xa5a   :  { %5993 = vmatpush.bf16.msrb.mxu1 %v9345_v51 }
 0xa5b   :  { %6006 = vmatpush.bf16.msra.mxu2 %v9473_v33 }
 0xa5c   :  { %6019 = vmatpush.bf16.msrb.mxu3 %v9601_v52 }
 0xa5d   :  { %6032 = vmatpush.bf16.msra.mxu0 %v9729_v20 }
 0xa5e   :  { %5994 = vmatpush.bf16.msrb.mxu1 %v9329_v14 }
 0xa5f   :  { %6007 = vmatpush.bf16.msra.mxu2 %v9457_v8 }
 0xa60   :  { %6020 = vmatpush.bf16.msrb.mxu3 %v9585_v31  ;;  %v11025_v31 = vld [vmem:[%s13209_s5 + $0xa0] sm:$0xff] }
 0xa61   :  { %6033 = vmatpush.bf16.msra.mxu0 %v9713_v21  ;;  %5995 = vmatmul.bf16.vlgmr.msrb.gmra.mxu1 %v12946_v63 }
 0xa62   :  { %6363 = vmatpush.bf16.msra.mxu1 %v11012_v6  ;;  %6008 = vmatmul.bf16.vlgmr.msra.gmra.mxu2 %v12936_v50  ;;  %v11007_v50 = vld [vmem:[%s13209_s5 + $0x10] sm:$0xff] }
 0xa63   :  { %6021 = vmatmul.bf16.vlgmr.msrb.gmra.mxu3 %v12941_v62  ;;  %6376 = vmatpush.bf16.msrb.mxu2 %v11020_v43  ;;  %v5183_v62 = vperm.slane %v12976_v45, 0  ;;  %v11024_v43 = vld [vmem:[%s13209_s5 + $0x98] sm:$0xff] }
 0xa64   :  { %6034 = vmatmul.bf16.vlgmr.msra.gmra.mxu0 %v12951_v34  ;;  %v11019_v34 = vld [vmem:[%s13209_s5 + $0x70] sm:$0xff]  ;;  %6389 = vmatpush.bf16.msra.mxu3 %v11028_v55 }
 0xa66   :  { %6364 = vmatpush.bf16.msra.mxu1 %v11011_v40 }
 0xa67   :  { %6377 = vmatpush.bf16.msrb.mxu2 %v11019_v34 }
 0xa68   :  { %6390 = vmatpush.bf16.msra.mxu3 %v11027_v19 }
 0xa6a   :  { %6365 = vmatpush.bf16.msra.mxu1 %v11010_v42 }
 0xa6b   :  { %6378 = vmatpush.bf16.msrb.mxu2 %v11018_v35 }
 0xa6c   :  { %6391 = vmatpush.bf16.msra.mxu3 %v11026_v59 }
 0xa6e   :  { %6366 = vmatpush.bf16.msra.mxu1 %v11009_v41 }
 0xa6f   :  { %6379 = vmatpush.bf16.msrb.mxu2 %v11017_v61 }
 0xa70   :  { %6392 = vmatpush.bf16.msra.mxu3 %v11025_v31 }
 0xa72   :  { %6367 = vmatpush.bf16.msra.mxu1 %v11008_v44 }
 0xa73   :  { %6380 = vmatpush.bf16.msrb.mxu2 %v11016_v49 }
 0xa74   :  { %6393 = vmatpush.bf16.msra.mxu3 %v11024_v43  ;;  %v5186_v43 = vperm.slane %v12976_v45, 3 }
 0xa76   :  { %6368 = vmatpush.bf16.msra.mxu1 %v11007_v50 }
 0xa77   :  { %6381 = vmatpush.bf16.msrb.mxu2 %v11015_v16  ;;  %v11034_v16 = vld [vmem:[%s13209_s5 + $0xe8] sm:$0xff] }
 0xa7a   :  { %6369 = vmatpush.bf16.msra.mxu1 %v11006_v47 }
 0xa7b   :  { %6382 = vmatpush.bf16.msrb.mxu2 %v11014_v26 }
 0xa7e   :  { %v5840_v63 = vpop.f32.mrf.mxu1  ;;  %6370 = vmatpush.bf16.msra.mxu1 %v11005_v56 }
 0xa7f   :  { %v5841_v11 = vadd.f32 %v5840_v63, %v5183_v62  ;;  %6383 = vmatpush.bf16.msrb.mxu2 %v11013_v28  ;;  %v11032_v28 = vld [vmem:[%s13209_s5 + $0xd8] sm:$0xff] }
 0xa81   :  { %v5879_v46 = vpop.f32.mrf.mxu0 }
 0xa85   :  { %v5853_v60 = vpop.f32.mrf.mxu2 }
 0xa86   :  { %v5854_v17 = vadd.f32 %v5853_v60, %v5841_v11  ;;  %v5866_v39 = vpop.f32.mrf.mxu3  ;;  %v5842_v9 = vpop.f32.mrf.mxu1 }
 0xa87   :  { %v11021_v9 = vld [vmem:[%s13209_s5 + $0x80] sm:$0xff] }
 0xa88   :  { %v5867_v7 = vadd.f32 %v5866_v39, %v5854_v17  ;;  %v11022_v39 = vld [vmem:[%s13209_s5 + $0x88] sm:$0xff] }
 0xa89   :  { %v5881_v2 = vpop.f32.mrf.mxu0 }
 0xa8a   :  { %v12985_v5 = vadd.f32 %v5879_v46, %v5867_v7  ;;  %v11023_v46 = vld [vmem:[%s13209_s5 + $0x90] sm:$0xff] }
 0xa8b   :  { %6394 = vmatpush.bf16.msra.mxu3 %v11023_v46 }
 0xa8c   :  { %v6039_v3 = vsel %vm953_vm1, %v12985_v5, 0.0  ;;  %v6067_v38 = vmul.f32 %v12985_v5, %v12985_v5 }
 0xa8d   :  { %v6040_v15 = vrot.slane %v6039_v3, 4  ;;  %v5855_v0 = vpop.f32.mrf.mxu2 }
 0xa8e   :  { %v6071_v1 = vsel %vm953_vm1, %v6067_v38, 0.0  ;;  %v5868_v54 = vpop.f32.mrf.mxu3  ;;  %v11036_v38 = vld [vmem:[%s13209_s5 + $0xf8] sm:$0xff]  ;;  %v5185_v0 = vperm.slane %v12976_v45, 2 }
 0xa8f   :  { %v6041_v58 = vadd.f32 %v6040_v15, %v6039_v3  ;;  %v6072_v53 = vrot.slane %v6071_v1, 4  ;;  %6395 = vmatpush.bf16.msra.mxu3 %v11022_v39  ;;  %6402 = vmatpush.bf16.msrb.mxu0 %v11036_v38 }
 0xa91   :  { %v6042_v13 = vrot.slane %v6041_v58, 2  ;;  %v6073_v18 = vadd.f32 %v6072_v53, %v6071_v1  ;;  %v11035_v1 = vld [vmem:[%s13209_s5 + $0xf0] sm:$0xff] }
 0xa93   :  { %v6043_v23 = vadd.f32 %v6042_v13, %v6041_v58  ;;  %v6074_v24 = vrot.slane %v6073_v18, 2  ;;  %6396 = vmatpush.bf16.msra.mxu3 %v11021_v9  ;;  %6403 = vmatpush.bf16.msrb.mxu0 %v11035_v1 }
 0xa95   :  { %v6044_v27 = vrot.slane %v6043_v23, 1  ;;  %v6075_v22 = vadd.f32 %v6074_v24, %v6073_v18  ;;  %v11033_v24 = vld [vmem:[%s13209_s5 + $0xe0] sm:$0xff] }
 0xa97   :  { %v6076_v25 = vrot.slane %v6075_v22, 1  ;;  %v6045_v51 = vadd.f32 %v6044_v27, %v6043_v23  ;;  %6404 = vmatpush.bf16.msrb.mxu0 %v11034_v16 }
 0xa99   :  { %v6077_v33 = vadd.f32 %v6076_v25, %v6075_v22 }
 0xa9b   :  { %v6099_v37 = vsel %vm13217_vm10, %v6045_v51, %v6077_v33  ;;  %6405 = vmatpush.bf16.msrb.mxu0 %v11033_v24 }
 0xa9c   :  { %v6103_v52 = vpack.c.bf16 %v6099_v37, %v6099_v37 }
 0xa9e   :  { %6371 = vmatmul.bf16.vlgmr.msra.gmra.mxu1 %v6103_v52  ;;  %v5892_v57 = vpop.f32.mrf.mxu1 }
 0xa9f   :  { %v5893_v32 = vadd.f32 %v5892_v57, %v5184_v4  ;;  %6406 = vmatpush.bf16.msrb.mxu0 %v11032_v28  ;;  %v9974_v28 = vld [vmem:[#allocation32 + $0x30] sm:$0xf0] }
 0xaa1   :  { %v5931_v20 = vpop.f32.mrf.mxu0 }
 0xaa5   :  { %v5905_v36 = vpop.f32.mrf.mxu2 }
 0xaa6   :  { %v5906_v10 = vadd.f32 %v5905_v36, %v5893_v32  ;;  %v5918_v14 = vpop.f32.mrf.mxu3  ;;  %v5894_v21 = vpop.f32.mrf.mxu1  ;;  %v11030_v36 = vld [vmem:[%s13209_s5 + $0xc8] sm:$0xff] }
 0xaa7   :  { %v11029_v21 = vld [vmem:[%s13209_s5 + $0xc0] sm:$0xff] }
 0xaa8   :  { %v5919_v8 = vadd.f32 %v5918_v14, %v5906_v10 }
 0xaa9   :  { %v5933_v40 = vpop.f32.mrf.mxu0 }
 0xaaa   :  { %v13002_v6 = vadd.f32 %v5931_v20, %v5919_v8  ;;  %v11031_v20 = vld [vmem:[%s13209_s5 + $0xd0] sm:$0xff] }
 0xaab   :  { %6407 = vmatpush.bf16.msrb.mxu0 %v11031_v20  ;;  %v11042_v20 = vld [vmem:[#allocation32 + $0x2c] sm:$0xf] }
 0xaac   :  { %v6046_v42 = vsel %vm953_vm1, %v13002_v6, 0.0  ;;  %v6068_v41 = vmul.f32 %v13002_v6, %v13002_v6 }
 0xaad   :  { %v6047_v44 = vrot.slane %v6046_v42, 4  ;;  %v5907_v50 = vpop.f32.mrf.mxu2 }
 0xaae   :  { %v6078_v62 = vsel %vm953_vm1, %v6068_v41, 0.0  ;;  %v5920_v63 = vpop.f32.mrf.mxu3 }
 0xaaf   :  { %v6048_v34 = vadd.f32 %v6047_v44, %v6046_v42  ;;  %v6079_v11 = vrot.slane %v6078_v62, 4  ;;  %6408 = vmatpush.bf16.msrb.mxu0 %v11030_v36 }
 0xab1   :  { %v6049_v47 = vrot.slane %v6048_v34, 2  ;;  %v6080_v35 = vadd.f32 %v6079_v11, %v6078_v62 }
 0xab3   :  { %v6050_v60 = vadd.f32 %v6049_v47, %v6048_v34  ;;  %v6081_v17 = vrot.slane %v6080_v35, 2  ;;  %6409 = vmatpush.bf16.msrb.mxu0 %v11029_v21 }
 0xab5   :  { %v6051_v56 = vrot.slane %v6050_v60, 1  ;;  %v6082_v7 = vadd.f32 %v6081_v17, %v6080_v35 }
 0xab7   :  { %v6083_v61 = vrot.slane %v6082_v7, 1  ;;  %v6052_v2 = vadd.f32 %v6051_v56, %v6050_v60 }
 0xab9   :  { %v6084_v3 = vadd.f32 %v6083_v61, %v6082_v7 }
 0xabb   :  { %v6100_v49 = vsel %vm13221_vm11, %v6052_v2, %v6084_v3 }
 0xabc   :  { %v6104_v15 = vpack.c.bf16 %v6100_v49, %v6100_v49 }
 0xabe   :  { %6384 = vmatmul.bf16.vlgmr.msrb.gmra.mxu2 %v6104_v15  ;;  %v5944_v54 = vpop.f32.mrf.mxu1 }
 0xabf   :  { %v5945_v58 = vadd.f32 %v5944_v54, %v5185_v0 }
 0xac1   :  { %v5983_v53 = vpop.f32.mrf.mxu0 }
 0xac5   :  { %v5957_v13 = vpop.f32.mrf.mxu2 }
 0xac6   :  { %v5958_v18 = vadd.f32 %v5957_v13, %v5945_v58  ;;  %v5970_v23 = vpop.f32.mrf.mxu3  ;;  %v5946_v55 = vpop.f32.mrf.mxu1 }
 0xac8   :  { %v5971_v26 = vadd.f32 %v5970_v23, %v5958_v18 }
 0xac9   :  { %v5985_v22 = vpop.f32.mrf.mxu0 }
 0xaca   :  { %v13019_v27 = vadd.f32 %v5983_v53, %v5971_v26  ;;  %v11041_v22 = vld [vmem:[#allocation32 + $0x24] sm:$0xf] }
 0xacc   :  { %v6053_v25 = vsel %vm953_vm1, %v13019_v27, 0.0  ;;  %v6069_v51 = vmul.f32 %v13019_v27, %v13019_v27 }
 0xacd   :  { %v6054_v33 = vrot.slane %v6053_v25, 4  ;;  %v5959_v37 = vpop.f32.mrf.mxu2 }
 0xace   :  { %v6085_v52 = vsel %vm953_vm1, %v6069_v51, 0.0  ;;  %v5972_v19 = vpop.f32.mrf.mxu3  ;;  %v9977_v51 = vor.u32 %v11041_v22, %v9974_v28  ;;  %v9972_v37 = vld [vmem:[#allocation32 + $0x20] sm:$0xf] }
 0xacf   :  { %v6055_v4 = vadd.f32 %v6054_v33, %v6053_v25  ;;  %v6086_v57 = vrot.slane %v6085_v52, 4  ;;  %v9980_v25 = vld [vmem:[#allocation32 + $0x28] sm:$0xf]  ;;  %v11044_v33 = vld [vmem:[#allocation32 + $0x34] sm:$0xf0] }
 0xad0   :  { %6487 = vmatpush.bf16.msra.mxu2 %v9977_v51 }
 0xad1   :  { %v6056_v32 = vrot.slane %v6055_v4, 2  ;;  %v6087_v59 = vadd.f32 %v6086_v57, %v6085_v52  ;;  %v11043_v52 = vld [vmem:[#allocation32 + $0x2c] sm:$0xf0] }
 0xad2   :  { %v9973_v57 = vor.u32 %v11043_v52, %v9972_v37 }
 0xad3   :  { %v6057_v10 = vadd.f32 %v6056_v32, %v6055_v4  ;;  %v6088_v14 = vrot.slane %v6087_v59, 2  ;;  %v9981_v4 = vor.u32 %v11044_v33, %v9980_v25  ;;  %v9982_v32 = vld [vmem:[#allocation32 + $0x38] sm:$0xf0] }
 0xad4   :  { %v9985_v36 = vor.u32 %v11042_v20, %v9982_v32  ;;  %6474 = vmatpush.bf16.msrb.mxu1 %v9973_v57 }
 0xad5   :  { %v6058_v8 = vrot.slane %v6057_v10, 1  ;;  %v6089_v31 = vadd.f32 %v6088_v14, %v6087_v59  ;;  %v11037_v59 = vld [vmem:[#allocation32 + $0x4] sm:$0xf]  ;;  %v9964_v14 = vld [vmem:[#allocation32 + $0x8] sm:$0xf]  ;;  %6500 = vmatpush.bf16.msrb.mxu3 %v9981_v4 }
 0xad6   :  { %6513 = vmatpush.bf16.msra.mxu0 %v9985_v36 }
 0xad7   :  { %v6090_v40 = vrot.slane %v6089_v31, 1  ;;  %v6059_v42 = vadd.f32 %v6058_v8, %v6057_v10  ;;  %v9958_v10 = vld [vmem:[#allocation32 + $0x10] sm:$0xf0]  ;;  %v11040_v8 = vld [vmem:[#allocation32 + $0x14] sm:$0xf0] }
 0xad8   :  { %v9965_v21 = vor.u32 %v11040_v8, %v9964_v14 }
 0xad9   :  { %v6091_v41 = vadd.f32 %v6090_v40, %v6089_v31  ;;  %v9961_v31 = vor.u32 %v11037_v59, %v9958_v10  ;;  %v9956_v40 = vld [vmem:[#allocation32] sm:$0xf] }
 0xada   :  { %6501 = vmatpush.bf16.msrb.mxu3 %v9965_v21 }
 0xadb   :  { %v6101_v44 = vsel %vm13222_vm12, %v6059_v42, %v6091_v41  ;;  %6488 = vmatpush.bf16.msra.mxu2 %v9961_v31  ;;  %v11039_v42 = vld [vmem:[#allocation32 + $0xc] sm:$0xf0]  ;;  %v11038_v41 = vld [vmem:[#allocation32 + $0xc] sm:$0xf] }
 0xadc   :  { %v6105_v62 = vpack.c.bf16 %v6101_v44, %v6101_v44  ;;  %v9966_v44 = vld [vmem:[#allocation32 + $0x18] sm:$0xf0] }
 0xade   :  { %v5996_v50 = vpop.f32.mrf.mxu1  ;;  %6397 = vmatmul.bf16.vlgmr.msra.gmra.mxu3 %v6105_v62 }
 0xadf   :  { %v5997_v34 = vadd.f32 %v5996_v50, %v5186_v43  ;;  %v9957_v43 = vor.u32 %v11039_v42, %v9956_v40  ;;  %v9969_v50 = vor.u32 %v11038_v41, %v9966_v44 }
 0xae1   :  { %v6035_v63 = vpop.f32.mrf.mxu0  ;;  %6475 = vmatpush.bf16.msrb.mxu1 %v9957_v43  ;;  %6514 = vmatpush.bf16.msra.mxu0 %v9969_v50 }
 0xae5   :  { %v6009_v11 = vpop.f32.mrf.mxu2 }
 0xae6   :  { %v6010_v46 = vadd.f32 %v6009_v11, %v5997_v34  ;;  %v6022_v47 = vpop.f32.mrf.mxu3  ;;  %v5998_v35 = vpop.f32.mrf.mxu1 }
 0xae8   :  { %v6023_v60 = vadd.f32 %v6022_v47, %v6010_v46 }
 0xae9   :  { %v6037_v17 = vpop.f32.mrf.mxu0 }
 0xaea   :  { %v13032_v39 = vadd.f32 %v6035_v63, %v6023_v60 }
 0xaec   :  { %v6060_v56 = vsel %vm953_vm1, %v13032_v39, 0.0  ;;  %v6070_v45 = vmul.f32 %v13032_v39, %v13032_v39 }
 0xaed   :  { %v6061_v7 = vrot.slane %v6060_v56, 4  ;;  %v6011_v9 = vpop.f32.mrf.mxu2 }
 0xaee   :  { %v6092_v61 = vsel %vm953_vm1, %v6070_v45, 0.0  ;;  %v6024_v2 = vpop.f32.mrf.mxu3 }
 0xaef   :  { %v6062_v3 = vadd.f32 %v6061_v7, %v6060_v56  ;;  %v6093_v38 = vrot.slane %v6092_v61, 4 }
 0xaf1   :  { %v6063_v49 = vrot.slane %v6062_v3, 2  ;;  %v6094_v15 = vadd.f32 %v6093_v38, %v6092_v61 }
 0xaf3   :  { %v6064_v0 = vadd.f32 %v6063_v49, %v6062_v3  ;;  %v6095_v1 = vrot.slane %v6094_v15, 2 }
 0xaf5   :  { %v6096_v54 = vadd.f32 %v6095_v1, %v6094_v15  ;;  %v6065_v58 = vrot.slane %v6064_v0, 1 }
 0xaf7   :  { %v6097_v53 = vrot.slane %v6096_v54, 1  ;;  %v6066_v16 = vadd.f32 %v6065_v58, %v6064_v0 }
 0xaf9   :  { %v6098_v13 = vadd.f32 %v6097_v53, %v6096_v54 }
 0xafb   :  { %v6102_v18 = vsel %vm13223_vm13, %v6066_v16, %v6098_v13 }
 0xafc   :  { %v6106_v23 = vpack.c.bf16 %v6102_v18, %v6102_v18 }
 0xafe   :  { %6410 = vmatmul.bf16.vlgmr.msrb.gmra.mxu0 %v6106_v23 }
 0xb1b   :  { %v6372_v24 = vpop.f32.mrf.mxu1 }
 0xb23   :  { %v6374_v26 = vpop.f32.mrf.mxu1 }
 0xb41   :  { %v6385_v55 = vpop.f32.mrf.mxu2 }
 0xb42   :  { %v6386_v34 = vadd.f32 %v6385_v55, %v6372_v24 }
 0xb49   :  { %v6387_v19 = vpop.f32.mrf.mxu2 }
 0xb61   :  { %v6398_v62 = vpop.f32.mrf.mxu3 }
 0xb62   :  { %v6399_v11 = vadd.f32 %v6398_v62, %v6386_v34 }
 0xb69   :  { %v6400_v63 = vpop.f32.mrf.mxu3 }
 0xb7b   :  { %v6411_v46 = vpop.f32.mrf.mxu0 }
 0xb7c   :  { %v6412_v47 = vadd.f32 %v6411_v46, %v6399_v11 }
 0xb7e   :  { %v6415_v35 = vmul.f32 0.03125, %v6412_v47 }
 0xb80   :  { %v6416_v60 = vpack.c.bf16 %v6415_v35, %v6415_v35 }
 0xb82   :  { %9986 = vmatmul.msk.bf16.vlgmr.msrb.gmra.mxu1 %vm714_vm0, %v6416_v60  ;;  %9987 = vmatmul.msk.bf16.vlgmr.msra.gmra.mxu2 %vm714_vm0, %v6416_v60 }
 0xb83   :  { %9988 = vmatmul.msk.bf16.vlgmr.msrb.gmra.mxu3 %vm714_vm0, %v6416_v60  ;;  %9989 = vmatmul.msk.bf16.vlgmr.msra.gmra.mxu0 %vm714_vm0, %v6416_v60  ;;  %v6413_v17 = vpop.f32.mrf.mxu0 }
 0xbff   :  { %v13044_v56 = vpop.f32.mrf.mxu1 }
 0xc00   :  { %v6520_v45 = vmul.f32 %v13044_v56, %v13044_v56  ;;  %v13048_v7 = vpop.f32.mrf.mxu0 }
 0xc01   :  { %v6523_v9 = vmul.f32 %v13048_v7, %v13048_v7 }
 0xc02   :  { %v6528_v61 = vrot.slane %v6520_v45, 7  ;;  %v6601_v45 = vperm.slane %v13044_v56, 0 }
 0xc03   :  { %v6531_v2 = vrot.slane %v6523_v9, 7  ;;  %v6604_v9 = vperm.slane %v13048_v7, 0 }
 0xc04   :  { %v6536_v3 = vsub.f32 %v13044_v56, %v6528_v61 }
 0xc05   :  { %v6539_v38 = vsub.f32 %v13048_v7, %v6531_v2  ;;  %v13054_v49 = vpop.f32.mrf.mxu2 }
 0xc06   :  { %v6540_v15 = vmax.f32 %v6536_v3, 0.0  ;;  %v6521_v0 = vmul.f32 %v13054_v49, %v13054_v49  ;;  %v13058_v1 = vpop.f32.mrf.mxu3  ;;  %v6602_v61 = vperm.slane %v13054_v49, 0  ;;  %v6544_v3 = vld [vmem:[%s13224_s19] sm:$0xf] }
 0xc07   :  { %v6543_v54 = vmax.f32 %v6539_v38, 0.0  ;;  %v6522_v58 = vmul.f32 %v13058_v1, %v13058_v1  ;;  %v6479_v53 = vpop.f32.mrf.mxu1  ;;  %v6603_v2 = vperm.slane %v13058_v1, 0  ;;  %v6622_v38 = vld [vmem:[#allocation28] sm:$0xf] }
 0xc08   :  { %v6545_v16 = vadd.f32 1e-05, %v6540_v15  ;;  %v6529_v13 = vrot.slane %v6521_v0, 7  ;;  %v6518_v18 = vpop.f32.mrf.mxu0  ;;  %v6605_v15 = vsub.f32 %v12985_v5, %v6601_v45  ;;  %v6625_v56 = vperm.slane %v6622_v38, 1 }
 0xc09   :  { %v6548_v23 = vadd.f32 1e-05, %v6543_v54  ;;  %v6530_v24 = vrot.slane %v6522_v58, 7  ;;  %v6608_v54 = vsub.f32 %v13032_v39, %v6604_v9  ;;  %v6606_v58 = vsub.f32 %v13002_v6, %v6602_v61 }
 0xc0a   :  { %11302 = vrsqrt.f32 %v6545_v16  ;;  %v6537_v26 = vsub.f32 %v13054_v49, %v6529_v13  ;;  %vm6555_vm15 = vweird.f32 %v6545_v16  ;;  %v6624_v13 = vperm.slane %v6622_v38, 0 }
 0xc0b   :  { %11304 = vrsqrt.f32 %v6548_v23  ;;  %v6538_v55 = vsub.f32 %v13058_v1, %v6530_v24  ;;  %vm6585_vm4 = vweird.f32 %v6548_v23  ;;  %v6626_v18 = vperm.slane %v6622_v38, 2 }
 0xc0c   :  { %v6541_v22 = vmax.f32 %v6537_v26, 0.0  ;;  %v6627_v7 = vperm.slane %v6622_v38, 3 }
 0xc0d   :  { %v6542_v28 = vmax.f32 %v6538_v55, 0.0  ;;  %v6492_v25 = vpop.f32.mrf.mxu2 }
 0xc0e   :  { %v6546_v51 = vadd.f32 1e-05, %v6541_v22  ;;  %v6505_v33 = vpop.f32.mrf.mxu3 }
 0xc0f   :  { %v6547_v37 = vadd.f32 1e-05, %v6542_v28 }
 0xc10   :  { %v11303_v52 = vpop.eup %11302  ;;  %11306 = vrsqrt.f32 %v6546_v51  ;;  %vm6565_vm7 = vweird.f32 %v6546_v51 }
 0xc11   :  { %v11305_v19 = vpop.eup %11304  ;;  %v6550_v4 = vmul.f32 %v11303_v52, %v6545_v16  ;;  %11308 = vrsqrt.f32 %v6547_v37  ;;  %vm6556_vm0 = vweird.f32 %v11303_v52  ;;  %vm6575_vm9 = vweird.f32 %v6547_v37 }
 0xc12   :  { %v6580_v57 = vmul.f32 %v11305_v19, %v6548_v23  ;;  %vm6586_vm14 = vweird.f32 %v11305_v19  ;;  %vm6557_vm3 = vmor %vm6555_vm15, %vm6556_vm0  ;;  %v6607_v16 = vsub.f32 %v13019_v27, %v6603_v2 }
 0xc13   :  { %v6551_v20 = vmul.f32 %v11303_v52, %v6550_v4  ;;  %vm6587_vm5 = vmor %vm6585_vm4, %vm6586_vm14 }
 0xc14   :  { %v6581_v32 = vmul.f32 %v11305_v19, %v6580_v57 }
 0xc15   :  { %v6552_v59 = vmul.f32 0.5, %v6551_v20 }
 0xc16   :  { %v11307_v36 = vpop.eup %11306  ;;  %v6582_v10 = vmul.f32 0.5, %v6581_v32 }
 0xc17   :  { %v11309_v14 = vpop.eup %11308  ;;  %v6553_v8 = vsub.f32 1.5, %v6552_v59  ;;  %v6560_v31 = vmul.f32 %v11307_v36, %v6546_v51  ;;  %vm6566_vm2 = vweird.f32 %v11307_v36 }
 0xc18   :  { %v6583_v21 = vsub.f32 1.5, %v6582_v10  ;;  %v6570_v40 = vmul.f32 %v11309_v14, %v6547_v37  ;;  %vm6576_vm6 = vweird.f32 %v11309_v14  ;;  %vm6567_vm8 = vmor %vm6565_vm7, %vm6566_vm2  ;;  %v13087_v10 = vstv %s6716_s18 }
 0xc19   :  { %v6554_v42 = vmul.f32 %v11303_v52, %v6553_v8  ;;  %v6561_v41 = vmul.f32 %v11307_v36, %v6560_v31  ;;  %vm6577_vm10 = vmor %vm6575_vm9, %vm6576_vm6 }
 0xc1a   :  { %v6584_v43 = vmul.f32 %v11305_v19, %v6583_v21  ;;  %v6571_v44 = vmul.f32 %v11309_v14, %v6570_v40  ;;  %v13092_v21 = vmul.f32 %v13087_v10, %v12803_v48 }
 0xc1b   :  { %v6558_v50 = vsel %vm6557_vm3, %v11303_v52, %v6554_v42  ;;  %v6562_v62 = vmul.f32 0.5, %v6561_v41  ;;  %v6719_v41 = vmul.f32 %v13087_v10, %v12807_v29 }
 0xc1c   :  { %6593 = vst [vmem:[#allocation1] sm:$0xff] %v6558_v50  ;;  %v6588_v63 = vsel %vm6587_vm5, %v11305_v19, %v6584_v43  ;;  %v6572_v34 = vmul.f32 0.5, %v6571_v44  ;;  %v6723_v43 = vstv %s9994_s21 }
 0xc1d   :  { %6596 = vst [vmem:[#allocation1 + $0x1b] sm:$0xff] %v6588_v63  ;;  %v6563_v11 = vsub.f32 1.5, %v6562_v62 }
 0xc1e   :  { %v6573_v46 = vsub.f32 1.5, %v6572_v34 }
 0xc1f   :  { %v6564_v47 = vmul.f32 %v11307_v36, %v6563_v11 }
 0xc20   :  { %v6574_v35 = vmul.f32 %v11309_v14, %v6573_v46 }
 0xc21   :  { %v6568_v60 = vsel %vm6567_vm8, %v11307_v36, %v6564_v47 }
 0xc22   :  { %6594 = vst [vmem:[#allocation1 + $0x9] sm:$0xff] %v6568_v60  ;;  %v6578_v17 = vsel %vm6577_vm10, %v11309_v14, %v6574_v35 }
 0xc23   :  { %6595 = vst [vmem:[#allocation1 + $0x12] sm:$0xff] %v6578_v17 }
 0xc2a   :  { %v6598_v0 = vld [vmem:[#allocation1 + $0x1] ss:$9 sm:$0xff] }
 0xc2b   :  { %v6600_v53 = vmul.f32 %v6598_v0, %v6544_v3 }
 0xc2d   :  { %v6610_v23 = vperm.slane %v6600_v53, 0  ;;  %v6611_v49 = vperm.slane %v6600_v53, 1  ;;  %v6612_v24 = vperm.slane %v6600_v53, 2  ;;  %v6613_v1 = vperm.slane %v6600_v53, 3 }
 0xc2f   :  { %v6618_v26 = vmul.f32 %v6610_v23, %v6605_v15  ;;  %v6619_v55 = vmul.f32 %v6611_v49, %v6606_v58  ;;  %v6620_v22 = vmul.f32 %v6612_v24, %v6607_v16  ;;  %v6621_v5 = vmul.f32 %v6613_v1, %v6608_v54 }
 0xc31   :  { %v13073_v28 = vadd.f32 %v6624_v13, %v6618_v26  ;;  %v13075_v39 = vadd.f32 %v6625_v56, %v6619_v55  ;;  %v13077_v6 = vadd.f32 %v6626_v18, %v6620_v22  ;;  %v13079_v25 = vadd.f32 %v6627_v7, %v6621_v5 }
 0xc33   :  { %v9990_v27 = vmul.f32 -1.442695, %v13073_v28  ;;  %v9991_v51 = vmul.f32 -1.442695, %v13075_v39  ;;  %v9992_v33 = vmul.f32 -1.442695, %v13077_v6 }
 0xc34   :  { %v9993_v37 = vmul.f32 -1.442695, %v13079_v25 }
 0xc35   :  { %11310 = vpow2.f32 %v9990_v27  ;;  %v6720_v27 = vmul.f32 %v13087_v10, %v12810_v30 }
 0xc36   :  { %11312 = vpow2.f32 %v9991_v51 }
 0xc37   :  { %11314 = vpow2.f32 %v9992_v33 }
 0xc38   :  { %11316 = vpow2.f32 %v9993_v37 }
 0xc3b   :  { %v11311_v52 = vpop.eup %11310 }
 0xc3c   :  { %v11313_v19 = vpop.eup %11312  ;;  %v6648_v4 = vadd.f32 1.0, %v11311_v52 }
 0xc3d   :  { %v11315_v57 = vpop.eup %11314  ;;  %v6649_v20 = vadd.f32 1.0, %v11313_v19 }
 0xc3e   :  { %v11317_v32 = vpop.eup %11316  ;;  %v6650_v59 = vadd.f32 1.0, %v11315_v57  ;;  %11318 = vrcp.f32 %v6648_v4  ;;  %v6661_v14 = vand.u32 2147483647, %v6648_v4  ;;  %v6663_v8 = vand.u32 2147483648, %v6648_v4 }
 0xc3f   :  { %v13085_v36 = vadd.f32 1.0, %v11317_v32  ;;  %11320 = vrcp.f32 %v6649_v20  ;;  %vm6657_vm11 = vweird.f32 %v6648_v4  ;;  %vm6672_vm12 = vweird.f32 %v6649_v20 }
 0xc40   :  { %11322 = vrcp.f32 %v6650_v59  ;;  %v6676_v62 = vand.u32 2147483647, %v6649_v20  ;;  %v6678_v63 = vand.u32 2147483648, %v6649_v20  ;;  %vm13096_vm13 = vcmp.eq.f32.partialorder %v6661_v14, 8.507059e+37 }
 0xc41   :  { %11324 = vrcp.f32 %v13085_v36  ;;  %v6664_v46 = vor.u32 1.1754944e-38, %v6663_v8  ;;  %vm6687_vm0 = vweird.f32 %v6650_v59  ;;  %v6691_v60 = vand.u32 2147483647, %v6650_v59 }
 0xc42   :  { %v6693_v17 = vand.u32 2147483648, %v6650_v59  ;;  %vm13101_vm3 = vcmp.eq.f32.partialorder %v6676_v62, 8.507059e+37  ;;  %v6679_v3 = vor.u32 1.1754944e-38, %v6678_v63  ;;  %vm6702_vm2 = vweird.f32 %v13085_v36 }
 0xc43   :  { %v6706_v58 = vand.u32 2147483647, %v13085_v36  ;;  %v6708_v53 = vand.u32 2147483648, %v13085_v36  ;;  %vm6692_vm9 = vcmp.eq.f32.partialorder %v6691_v60, 8.507059e+37 }
 0xc44   :  { %v11319_v31 = vpop.eup %11318  ;;  %v6694_v23 = vor.u32 1.1754944e-38, %v6693_v17 }
 0xc45   :  { %v11321_v40 = vpop.eup %11320  ;;  %v6653_v42 = vmul.f32 %v11319_v31, %v6648_v4  ;;  %vm6658_vm14 = vweird.f32 %v11319_v31  ;;  %v6709_v22 = vor.u32 1.1754944e-38, %v6708_v53 }
 0xc46   :  { %v11323_v44 = vpop.eup %11322  ;;  %v6668_v50 = vmul.f32 %v11321_v40, %v6649_v20  ;;  %vm6673_vm15 = vweird.f32 %v11321_v40  ;;  %vm6659_vm5 = vmor %vm6657_vm11, %vm6658_vm14  ;;  %vm6707_vm11 = vcmp.eq.f32.partialorder %v6706_v58, 8.507059e+37 }
 0xc47   :  { %v6654_v34 = vsub.f32 1.0, %v6653_v42  ;;  %v6683_v48 = vmul.f32 %v11323_v44, %v6650_v59  ;;  %v11325_v47 = vpop.eup %11324  ;;  %vm6688_vm4 = vweird.f32 %v11323_v44  ;;  %vm6674_vm6 = vmor %vm6672_vm12, %vm6673_vm15 }
 0xc48   :  { %v6669_v35 = vsub.f32 1.0, %v6668_v50  ;;  %v6698_v9 = vmul.f32 %v11325_v47, %v13085_v36  ;;  %vm6703_vm7 = vweird.f32 %v11325_v47  ;;  %vm6689_vm8 = vmor %vm6687_vm0, %vm6688_vm4 }
 0xc49   :  { %v6655_v45 = vmul.f32 %v11319_v31, %v6654_v34  ;;  %v6684_v29 = vsub.f32 1.0, %v6683_v48  ;;  %vm6704_vm10 = vmor %vm6702_vm2, %vm6703_vm7 }
 0xc4a   :  { %v6670_v61 = vmul.f32 %v11321_v40, %v6669_v35  ;;  %v6699_v0 = vsub.f32 1.0, %v6698_v9 }
 0xc4b   :  { %v6656_v38 = vadd.f32 %v11319_v31, %v6655_v45  ;;  %v6685_v15 = vmul.f32 %v11323_v44, %v6684_v29 }
 0xc4c   :  { %v6671_v54 = vadd.f32 %v11321_v40, %v6670_v61  ;;  %v6700_v56 = vmul.f32 %v11325_v47, %v6699_v0 }
 0xc4d   :  { %v6660_v16 = vsel %vm6659_vm5, %v11319_v31, %v6656_v38  ;;  %v6686_v13 = vadd.f32 %v11323_v44, %v6685_v15 }
 0xc4e   :  { %v6665_v18 = vsel %vm13096_vm13, %v6664_v46, %v6660_v16  ;;  %v6675_v7 = vsel %vm6674_vm6, %v11321_v40, %v6671_v54  ;;  %v6701_v1 = vadd.f32 %v11325_v47, %v6700_v56 }
 0xc4f   :  { %v6680_v49 = vsel %vm13101_vm3, %v6679_v3, %v6675_v7  ;;  %v6690_v24 = vsel %vm6689_vm8, %v11323_v44, %v6686_v13  ;;  %v6712_v26 = vmul.f32 %v6665_v18, %v13073_v28  ;;  %v6721_v28 = vmul.f32 %v13087_v10, %v12813_v12 }
 0xc50   :  { %v6695_v55 = vsel %vm6692_vm9, %v6694_v23, %v6690_v24  ;;  %v6713_v5 = vmul.f32 %v6680_v49, %v13075_v39  ;;  %v6705_v51 = vsel %vm6704_vm10, %v11325_v47, %v6701_v1 }
 0xc51   :  { %v6714_v33 = vmul.f32 %v6695_v55, %v13077_v6  ;;  %v6724_v37 = vmul.f32 %v6723_v43, %v6712_v26  ;;  %v6710_v52 = vsel %vm6707_vm11, %v6709_v22, %v6705_v51 }
 0xc52   :  { %v6725_v19 = vmul.f32 %v6723_v43, %v6713_v5  ;;  %v6715_v4 = vmul.f32 %v6710_v52, %v13079_v25 }
 0xc53   :  { %v6726_v57 = vmul.f32 %v6723_v43, %v6714_v33  ;;  %v13126_v20 = vadd.f32 %v6724_v37, %v13092_v21 }
 0xc54   :  { %v13128_v39 = vadd.f32 %v6725_v19, %v6719_v41  ;;  %v6727_v32 = vmul.f32 %v6723_v43, %v6715_v4 }
 0xc55   :  { %v13130_v30 = vadd.f32 %v6726_v57, %v6720_v27 }
 0xc56   :  { %v13132_v59 = vadd.f32 %v6727_v32, %v6721_v28 }
 0xc57   :  { %11844 = dma.done.wait [#allocation6 + $0x3], 16384 }
 0xc58   :  { %11845 = vsyncadd [#allocation6 + $0x3], 4294950912  ;;  %v10109_v6 = vld [vmem:[#allocation5 + $0xe0] sm:$0xf]  ;;  %v11075_v36 = vld [vmem:[#allocation5 + $0xec] sm:$0xf0] }
 0xc59   :  { %v10237_v14 = vld [vmem:[#allocation5 + $0x1e0] sm:$0xf]  ;;  %v10110_v25 = vor.u32 %v11075_v36, %v10109_v6  ;;  %v11107_v8 = vld [vmem:[#allocation5 + $0x1ec] sm:$0xf0]  ;;  %vm7734_vm12 = vcmask 1043456  }
 0xc5a   :  { %v10365_v31 = vld [vmem:[#allocation5 + $0x2e0] sm:$0xf]  ;;  %v11139_v12 = vld [vmem:[#allocation5 + $0x2ec] sm:$0xf0]  ;;  %v10238_v10 = vor.u32 %v11107_v8, %v10237_v14 }
 0xc5b   :  { %v10366_v40 = vor.u32 %v11139_v12, %v10365_v31  ;;  %v10493_v21 = vld [vmem:[#allocation5 + $0x3e0] sm:$0xf]  ;;  %v11171_v42 = vld [vmem:[#allocation5 + $0x3ec] sm:$0xf0]  ;;  %7516 = vmatpush.bf16.msra.mxu1 %v10110_v25 }
 0xc5c   :  { %v10093_v41 = vld [vmem:[#allocation5 + $0xc0] sm:$0xf]  ;;  %v10494_v43 = vor.u32 %v11171_v42, %v10493_v21  ;;  %v11071_v44 = vld [vmem:[#allocation5 + $0xcc] sm:$0xf0]  ;;  %7529 = vmatpush.bf16.msrb.mxu2 %v10238_v10 }
 0xc5d   :  { %v10221_v50 = vld [vmem:[#allocation5 + $0x1c0] sm:$0xf]  ;;  %v11103_v62 = vld [vmem:[#allocation5 + $0x1cc] sm:$0xf0]  ;;  %7542 = vmatpush.bf16.msra.mxu3 %v10366_v40  ;;  %v10094_v63 = vor.u32 %v11071_v44, %v10093_v41 }
 0xc5e   :  { %v10222_v34 = vor.u32 %v11103_v62, %v10221_v50  ;;  %v10349_v11 = vld [vmem:[#allocation5 + $0x2c0] sm:$0xf]  ;;  %v11135_v46 = vld [vmem:[#allocation5 + $0x2cc] sm:$0xf0]  ;;  %7555 = vmatpush.bf16.msrb.mxu0 %v10494_v43 }
 0xc5f   :  { %v10477_v48 = vld [vmem:[#allocation5 + $0x3c0] sm:$0xf]  ;;  %v10350_v47 = vor.u32 %v11135_v46, %v10349_v11  ;;  %v11167_v35 = vld [vmem:[#allocation5 + $0x3cc] sm:$0xf0]  ;;  %7517 = vmatpush.bf16.msra.mxu1 %v10094_v63 }
 0xc60   :  { %v10077_v60 = vld [vmem:[#allocation5 + $0xa0] sm:$0xf]  ;;  %v11067_v17 = vld [vmem:[#allocation5 + $0xac] sm:$0xf0]  ;;  %v10478_v45 = vor.u32 %v11167_v35, %v10477_v48  ;;  %7530 = vmatpush.bf16.msrb.mxu2 %v10222_v34 }
 0xc61   :  { %v10205_v29 = vld [vmem:[#allocation5 + $0x1a0] sm:$0xf]  ;;  %v11099_v9 = vld [vmem:[#allocation5 + $0x1ac] sm:$0xf0]  ;;  %v10078_v2 = vor.u32 %v11067_v17, %v10077_v60  ;;  %7543 = vmatpush.bf16.msra.mxu3 %v10350_v47 }
 0xc62   :  { %v10333_v61 = vld [vmem:[#allocation5 + $0x2a0] sm:$0xf]  ;;  %v11131_v3 = vld [vmem:[#allocation5 + $0x2ac] sm:$0xf0]  ;;  %v10206_v0 = vor.u32 %v11099_v9, %v10205_v29  ;;  %7556 = vmatpush.bf16.msrb.mxu0 %v10478_v45 }
 0xc63   :  { %v10461_v38 = vld [vmem:[#allocation5 + $0x3a0] sm:$0xf]  ;;  %v11163_v15 = vld [vmem:[#allocation5 + $0x3ac] sm:$0xf0]  ;;  %v10334_v54 = vor.u32 %v11131_v3, %v10333_v61  ;;  %7518 = vmatpush.bf16.msra.mxu1 %v10078_v2 }
 0xc64   :  { %v10061_v58 = vld [vmem:[#allocation5 + $0x80] sm:$0xf]  ;;  %v11063_v53 = vld [vmem:[#allocation5 + $0x8c] sm:$0xf0]  ;;  %v10462_v13 = vor.u32 %v11163_v15, %v10461_v38  ;;  %7531 = vmatpush.bf16.msrb.mxu2 %v10206_v0  ;;  %v11073_v15 = vld [vmem:[#allocation5 + $0xe4] sm:$0xf] }
 0xc65   :  { %v10189_v16 = vld [vmem:[#allocation5 + $0x180] sm:$0xf]  ;;  %v11095_v56 = vld [vmem:[#allocation5 + $0x18c] sm:$0xf0]  ;;  %v10062_v24 = vor.u32 %v11063_v53, %v10061_v58  ;;  %7544 = vmatpush.bf16.msra.mxu3 %v10334_v54  ;;  %v10111_v0 = vld [vmem:[#allocation5 + $0xf0] sm:$0xf0] }
 0xc66   :  { %v10317_v18 = vld [vmem:[#allocation5 + $0x280] sm:$0xf]  ;;  %v11127_v7 = vld [vmem:[#allocation5 + $0x28c] sm:$0xf0]  ;;  %v10190_v1 = vor.u32 %v11095_v56, %v10189_v16  ;;  %7557 = vmatpush.bf16.msrb.mxu0 %v10462_v13  ;;  %v11105_v54 = vld [vmem:[#allocation5 + $0x1e4] sm:$0xf] }
 0xc67   :  { %v10445_v23 = vld [vmem:[#allocation5 + $0x380] sm:$0xf]  ;;  %v11159_v49 = vld [vmem:[#allocation5 + $0x38c] sm:$0xf0]  ;;  %v10318_v26 = vor.u32 %v11127_v7, %v10317_v18  ;;  %7519 = vmatpush.bf16.msra.mxu1 %v10062_v24  ;;  %v10239_v53 = vld [vmem:[#allocation5 + $0x1f0] sm:$0xf0]  ;;  %v10114_v24 = vor.u32 %v11073_v15, %v10111_v0 }
 0xc68   :  { %v10045_v55 = vld [vmem:[#allocation5 + $0x60] sm:$0xf]  ;;  %v11059_v22 = vld [vmem:[#allocation5 + $0x6c] sm:$0xf0]  ;;  %v10446_v27 = vor.u32 %v11159_v49, %v10445_v23  ;;  %7532 = vmatpush.bf16.msrb.mxu2 %v10190_v1  ;;  %v11137_v16 = vld [vmem:[#allocation5 + $0x2e4] sm:$0xf]  ;;  %v10242_v1 = vor.u32 %v11105_v54, %v10239_v53 }
 0xc69   :  { %v10173_v5 = vld [vmem:[#allocation5 + $0x160] sm:$0xf]  ;;  %v11091_v51 = vld [vmem:[#allocation5 + $0x16c] sm:$0xf0]  ;;  %v10046_v4 = vor.u32 %v11059_v22, %v10045_v55  ;;  %7545 = vmatpush.bf16.msra.mxu3 %v10318_v26  ;;  %v10367_v13 = vld [vmem:[#allocation5 + $0x2f0] sm:$0xf0] }
 0xc6a   :  { %v10301_v33 = vld [vmem:[#allocation5 + $0x260] sm:$0xf]  ;;  %v11123_v37 = vld [vmem:[#allocation5 + $0x26c] sm:$0xf0]  ;;  %v10174_v28 = vor.u32 %v11091_v51, %v10173_v5  ;;  %7558 = vmatpush.bf16.msrb.mxu0 %v10446_v27  ;;  %v11169_v7 = vld [vmem:[#allocation5 + $0x3e4] sm:$0xf]  ;;  %v10370_v26 = vor.u32 %v11137_v16, %v10367_v13 }
 0xc6b   :  { %v10429_v52 = vld [vmem:[#allocation5 + $0x360] sm:$0xf]  ;;  %v11155_v19 = vld [vmem:[#allocation5 + $0x36c] sm:$0xf0]  ;;  %v10302_v57 = vor.u32 %v11123_v37, %v10301_v33  ;;  %7520 = vmatpush.bf16.msra.mxu1 %v10046_v4  ;;  %v10495_v23 = vld [vmem:[#allocation5 + $0x3f0] sm:$0xf0] }
 0xc6c   :  { %v10029_v32 = vld [vmem:[#allocation5 + $0x40] sm:$0xf]  ;;  %v11055_v6 = vld [vmem:[#allocation5 + $0x4c] sm:$0xf0]  ;;  %v10430_v14 = vor.u32 %v11155_v19, %v10429_v52  ;;  %7533 = vmatpush.bf16.msrb.mxu2 %v10174_v28  ;;  %v11069_v55 = vld [vmem:[#allocation5 + $0xc4] sm:$0xf]  ;;  %v10498_v27 = vor.u32 %v11169_v7, %v10495_v23  ;;  %v13136_v52 = vpack.c.bf16 %v13128_v39, %v13128_v39  ;;  %v13140_v28 = vpack.c.bf16 %v13130_v30, %v13130_v30 }
 0xc6d   :  { %v10157_v36 = vld [vmem:[#allocation5 + $0x140] sm:$0xf]  ;;  %v11087_v25 = vld [vmem:[#allocation5 + $0x14c] sm:$0xf0]  ;;  %v10030_v40 = vor.u32 %v11055_v6, %v10029_v32  ;;  %7546 = vmatpush.bf16.msra.mxu3 %v10302_v57  ;;  %v10095_v22 = vld [vmem:[#allocation5 + $0xd0] sm:$0xf0]  ;;  %v13144_v57 = vpack.c.bf16 %v13126_v20, %v13126_v20  ;;  %v13148_v6 = vpack.c.bf16 %v13132_v59, %v13132_v59 }
 0xc6e   :  { %v10285_v8 = vld [vmem:[#allocation5 + $0x240] sm:$0xf]  ;;  %v11119_v31 = vld [vmem:[#allocation5 + $0x24c] sm:$0xf0]  ;;  %v10158_v21 = vor.u32 %v11087_v25, %v10157_v36  ;;  %7559 = vmatpush.bf16.msrb.mxu0 %v10430_v14  ;;  %v11101_v5 = vld [vmem:[#allocation5 + $0x1c4] sm:$0xf]  ;;  %v10098_v32 = vor.u32 %v11069_v55, %v10095_v22 }
 0xc6f   :  { %v10413_v12 = vld [vmem:[#allocation5 + $0x340] sm:$0xf]  ;;  %v11151_v10 = vld [vmem:[#allocation5 + $0x34c] sm:$0xf0]  ;;  %v10286_v42 = vor.u32 %v11119_v31, %v10285_v8  ;;  %7521 = vmatpush.bf16.msra.mxu1 %v10030_v40  ;;  %v10223_v51 = vld [vmem:[#allocation5 + $0x1d0] sm:$0xf0] }
 0xc70   :  { %v10013_v41 = vld [vmem:[#allocation5 + $0x20] sm:$0xf]  ;;  %v11051_v43 = vld [vmem:[#allocation5 + $0x2c] sm:$0xf0]  ;;  %v10414_v50 = vor.u32 %v11151_v10, %v10413_v12  ;;  %7534 = vmatpush.bf16.msrb.mxu2 %v10158_v21  ;;  %v11133_v33 = vld [vmem:[#allocation5 + $0x2c4] sm:$0xf]  ;;  %v10226_v39 = vor.u32 %v11101_v5, %v10223_v51 }
 0xc71   :  { %v10141_v44 = vld [vmem:[#allocation5 + $0x120] sm:$0xf]  ;;  %v11083_v62 = vld [vmem:[#allocation5 + $0x12c] sm:$0xf0]  ;;  %v10014_v48 = vor.u32 %v11051_v43, %v10013_v41  ;;  %7547 = vmatpush.bf16.msra.mxu3 %v10286_v42  ;;  %v10351_v37 = vld [vmem:[#allocation5 + $0x2d0] sm:$0xf0] }
 0xc72   :  { %v10269_v63 = vld [vmem:[#allocation5 + $0x220] sm:$0xf]  ;;  %v11115_v34 = vld [vmem:[#allocation5 + $0x22c] sm:$0xf0]  ;;  %v10142_v60 = vor.u32 %v11083_v62, %v10141_v44  ;;  %7560 = vmatpush.bf16.msrb.mxu0 %v10414_v50  ;;  %v11165_v19 = vld [vmem:[#allocation5 + $0x3c4] sm:$0xf]  ;;  %v10354_v36 = vor.u32 %v11133_v33, %v10351_v37 }
 0xc73   :  { %v10397_v11 = vld [vmem:[#allocation5 + $0x320] sm:$0xf]  ;;  %v11147_v46 = vld [vmem:[#allocation5 + $0x32c] sm:$0xf0]  ;;  %v10270_v17 = vor.u32 %v11115_v34, %v10269_v63  ;;  %7522 = vmatpush.bf16.msra.mxu1 %v10014_v48  ;;  %v10479_v4 = vld [vmem:[#allocation5 + $0x3d0] sm:$0xf0] }
 0xc74   :  { %v9997_v47 = vld [vmem:[#allocation5] sm:$0xf]  ;;  %v11047_v35 = vld [vmem:[#allocation5 + $0xc] sm:$0xf0]  ;;  %v10398_v61 = vor.u32 %v11147_v46, %v10397_v11  ;;  %7535 = vmatpush.bf16.msrb.mxu2 %v10142_v60  ;;  %v11065_v14 = vld [vmem:[#allocation5 + $0xa4] sm:$0xf]  ;;  %v10482_v30 = vor.u32 %v11165_v19, %v10479_v4 }
 0xc75   :  { %v10125_v45 = vld [vmem:[#allocation5 + $0x100] sm:$0xf]  ;;  %v11079_v29 = vld [vmem:[#allocation5 + $0x10c] sm:$0xf0]  ;;  %v9998_v58 = vor.u32 %v11047_v35, %v9997_v47  ;;  %7548 = vmatpush.bf16.msra.mxu3 %v10270_v17  ;;  %v10079_v25 = vld [vmem:[#allocation5 + $0xb0] sm:$0xf0] }
 0xc76   :  { %v10253_v9 = vld [vmem:[#allocation5 + $0x200] sm:$0xf]  ;;  %v11111_v2 = vld [vmem:[#allocation5 + $0x20c] sm:$0xf0]  ;;  %v10126_v56 = vor.u32 %v11079_v29, %v10125_v45  ;;  %7561 = vmatpush.bf16.msrb.mxu0 %v10398_v61  ;;  %v11097_v8 = vld [vmem:[#allocation5 + $0x1a4] sm:$0xf]  ;;  %v10082_v59 = vor.u32 %v11065_v14, %v10079_v25 }
 0xc77   :  { %v10381_v3 = vld [vmem:[#allocation5 + $0x300] sm:$0xf]  ;;  %v11143_v38 = vld [vmem:[#allocation5 + $0x30c] sm:$0xf0]  ;;  %v10254_v18 = vor.u32 %v11111_v2, %v10253_v9  ;;  %7523 = vmatpush.bf16.msra.mxu1 %v9998_v58  ;;  %v10207_v31 = vld [vmem:[#allocation5 + $0x1b0] sm:$0xf0] }
 0xc78   :  { %v10382_v49 = vor.u32 %v11143_v38, %v10381_v3  ;;  %7536 = vmatpush.bf16.msrb.mxu2 %v10126_v56  ;;  %v11129_v12 = vld [vmem:[#allocation5 + $0x2a4] sm:$0xf]  ;;  %v10335_v20 = vld [vmem:[#allocation5 + $0x2b0] sm:$0xf0]  ;;  %v10210_v21 = vor.u32 %v11097_v8, %v10207_v31 }
 0xc79   :  { %7549 = vmatpush.bf16.msra.mxu3 %v10254_v18  ;;  %v11161_v10 = vld [vmem:[#allocation5 + $0x3a4] sm:$0xf]  ;;  %v10463_v40 = vld [vmem:[#allocation5 + $0x3b0] sm:$0xf0]  ;;  %v10338_v42 = vor.u32 %v11129_v12, %v10335_v20 }
 0xc7a   :  { %7562 = vmatpush.bf16.msrb.mxu0 %v10382_v49  ;;  %7524 = vmatmul.bf16.vlgmr.msra.gmra.mxu1 %v13144_v57  ;;  %v11061_v41 = vld [vmem:[#allocation5 + $0x84] sm:$0xf]  ;;  %v10063_v43 = vld [vmem:[#allocation5 + $0x90] sm:$0xf0]  ;;  %v10466_v50 = vor.u32 %v11161_v10, %v10463_v40 }
 0xc7b   :  { %7568 = vmatpush.bf16.msrb.mxu1 %v10114_v24  ;;  %7537 = vmatmul.bf16.vlgmr.msrb.gmra.mxu2 %v13136_v52  ;;  %v11093_v44 = vld [vmem:[#allocation5 + $0x184] sm:$0xf]  ;;  %v10191_v62 = vld [vmem:[#allocation5 + $0x190] sm:$0xf0]  ;;  %v10066_v48 = vor.u32 %v11061_v41, %v10063_v43  ;;  %v11108_v43 = vld [vmem:[#allocation5 + $0x1f4] sm:$0xf0] }
 0xc7c   :  { %7581 = vmatpush.bf16.msra.mxu2 %v10242_v1  ;;  %7550 = vmatmul.bf16.vlgmr.msra.gmra.mxu3 %v13140_v28  ;;  %v11125_v63 = vld [vmem:[#allocation5 + $0x284] sm:$0xf]  ;;  %v10319_v34 = vld [vmem:[#allocation5 + $0x290] sm:$0xf0]  ;;  %v10194_v47 = vor.u32 %v11093_v44, %v10191_v62  ;;  %v10373_v44 = vld [vmem:[#allocation5 + $0x2e8] sm:$0xf] }
 0xc7d   :  { %7594 = vmatpush.bf16.msrb.mxu3 %v10370_v26  ;;  %7563 = vmatmul.bf16.vlgmr.msrb.gmra.mxu0 %v13148_v6  ;;  %v11157_v11 = vld [vmem:[#allocation5 + $0x384] sm:$0xf]  ;;  %v10447_v46 = vld [vmem:[#allocation5 + $0x390] sm:$0xf0]  ;;  %v10322_v35 = vor.u32 %v11125_v63, %v10319_v34  ;;  %v10501_v34 = vld [vmem:[#allocation5 + $0x3e8] sm:$0xf] }
 0xc7e   :  { %7607 = vmatpush.bf16.msra.mxu0 %v10498_v27  ;;  %v11057_v60 = vld [vmem:[#allocation5 + $0x64] sm:$0xf]  ;;  %v10047_v17 = vld [vmem:[#allocation5 + $0x70] sm:$0xf0]  ;;  %v10450_v29 = vor.u32 %v11157_v11, %v10447_v46  ;;  %v11172_v11 = vld [vmem:[#allocation5 + $0x3f4] sm:$0xf0] }
 0xc7f   :  { %7569 = vmatpush.bf16.msrb.mxu1 %v10098_v32  ;;  %v11089_v45 = vld [vmem:[#allocation5 + $0x164] sm:$0xf]  ;;  %v10175_v9 = vld [vmem:[#allocation5 + $0x170] sm:$0xf0]  ;;  %v10050_v15 = vor.u32 %v11057_v60, %v10047_v17  ;;  %v10101_v60 = vld [vmem:[#allocation5 + $0xc8] sm:$0xf] }
 0xc80   :  { %7582 = vmatpush.bf16.msra.mxu2 %v10226_v39  ;;  %v11121_v61 = vld [vmem:[#allocation5 + $0x264] sm:$0xf]  ;;  %v10303_v2 = vld [vmem:[#allocation5 + $0x270] sm:$0xf0]  ;;  %v10178_v0 = vor.u32 %v11089_v45, %v10175_v9  ;;  %v11072_v17 = vld [vmem:[#allocation5 + $0xd4] sm:$0xf0] }
 0xc81   :  { %7595 = vmatpush.bf16.msrb.mxu3 %v10354_v36  ;;  %v11153_v3 = vld [vmem:[#allocation5 + $0x364] sm:$0xf]  ;;  %v10431_v38 = vld [vmem:[#allocation5 + $0x370] sm:$0xf0]  ;;  %v10306_v54 = vor.u32 %v11121_v61, %v10303_v2  ;;  %v10229_v45 = vld [vmem:[#allocation5 + $0x1c8] sm:$0xf] }
 0xc82   :  { %7608 = vmatpush.bf16.msra.mxu0 %v10482_v30  ;;  %v11053_v58 = vld [vmem:[#allocation5 + $0x44] sm:$0xf]  ;;  %v10031_v53 = vld [vmem:[#allocation5 + $0x50] sm:$0xf0]  ;;  %v10434_v13 = vor.u32 %v11153_v3, %v10431_v38  ;;  %v11104_v9 = vld [vmem:[#allocation5 + $0x1d4] sm:$0xf0] }
 0xc83   :  { %7570 = vmatpush.bf16.msrb.mxu1 %v10082_v59  ;;  %v11085_v16 = vld [vmem:[#allocation5 + $0x144] sm:$0xf]  ;;  %v10159_v56 = vld [vmem:[#allocation5 + $0x150] sm:$0xf0]  ;;  %v10034_v24 = vor.u32 %v11053_v58, %v10031_v53  ;;  %v10117_v59 = vld [vmem:[#allocation5 + $0xe8] sm:$0xf] }
 0xc84   :  { %7583 = vmatpush.bf16.msra.mxu2 %v10210_v21  ;;  %v11117_v18 = vld [vmem:[#allocation5 + $0x244] sm:$0xf]  ;;  %v10287_v7 = vld [vmem:[#allocation5 + $0x250] sm:$0xf0]  ;;  %v10162_v1 = vor.u32 %v11085_v16, %v10159_v56  ;;  %v11076_v21 = vld [vmem:[#allocation5 + $0xf4] sm:$0xf0] }
 0xc85   :  { %7596 = vmatpush.bf16.msrb.mxu3 %v10338_v42  ;;  %v11149_v23 = vld [vmem:[#allocation5 + $0x344] sm:$0xf]  ;;  %v10415_v49 = vld [vmem:[#allocation5 + $0x350] sm:$0xf0]  ;;  %v10290_v26 = vor.u32 %v11117_v18, %v10287_v7  ;;  %v10245_v42 = vld [vmem:[#allocation5 + $0x1e8] sm:$0xf] }
 0xc86   :  { %7609 = vmatpush.bf16.msra.mxu0 %v10466_v50  ;;  %v11049_v55 = vld [vmem:[#allocation5 + $0x24] sm:$0xf]  ;;  %v10015_v22 = vld [vmem:[#allocation5 + $0x30] sm:$0xf0]  ;;  %v10418_v27 = vor.u32 %v11149_v23, %v10415_v49  ;;  %v11140_v50 = vld [vmem:[#allocation5 + $0x2f4] sm:$0xf0] }
 0xc87   :  { %7571 = vmatpush.bf16.msrb.mxu1 %v10066_v48  ;;  %v11081_v5 = vld [vmem:[#allocation5 + $0x124] sm:$0xf]  ;;  %v10143_v51 = vld [vmem:[#allocation5 + $0x130] sm:$0xf0]  ;;  %v10018_v32 = vor.u32 %v11049_v55, %v10015_v22  ;;  %v10118_v48 = vor.u32 %v11076_v21, %v10117_v59  ;;  %v10357_v61 = vld [vmem:[#allocation5 + $0x2c8] sm:$0xf] }
 0xc88   :  { %7584 = vmatpush.bf16.msra.mxu2 %v10194_v47  ;;  %v11113_v33 = vld [vmem:[#allocation5 + $0x224] sm:$0xf]  ;;  %v10271_v37 = vld [vmem:[#allocation5 + $0x230] sm:$0xf0]  ;;  %v10146_v14 = vor.u32 %v11081_v5, %v10143_v51  ;;  %v10246_v47 = vor.u32 %v11108_v43, %v10245_v42  ;;  %v11136_v2 = vld [vmem:[#allocation5 + $0x2d4] sm:$0xf0] }
 0xc89   :  { %7597 = vmatpush.bf16.msrb.mxu3 %v10322_v35  ;;  %v11145_v19 = vld [vmem:[#allocation5 + $0x324] sm:$0xf]  ;;  %v10399_v4 = vld [vmem:[#allocation5 + $0x330] sm:$0xf0]  ;;  %v10274_v25 = vor.u32 %v11113_v33, %v10271_v37  ;;  %v10374_v35 = vor.u32 %v11140_v50, %v10373_v44  ;;  %v10485_v3 = vld [vmem:[#allocation5 + $0x3c8] sm:$0xf] }
 0xc8a   :  { %7610 = vmatpush.bf16.msra.mxu0 %v10450_v29  ;;  %v11045_v39 = vld [vmem:[#allocation5 + $0x4] sm:$0xf]  ;;  %v9999_v36 = vld [vmem:[#allocation5 + $0x10] sm:$0xf0]  ;;  %v10402_v12 = vor.u32 %v11145_v19, %v10399_v4  ;;  %v10502_v29 = vor.u32 %v11172_v11, %v10501_v34  ;;  %v11168_v38 = vld [vmem:[#allocation5 + $0x3d4] sm:$0xf0] }
 0xc8b   :  { %7572 = vmatpush.bf16.msrb.mxu1 %v10050_v15  ;;  %v11077_v8 = vld [vmem:[#allocation5 + $0x104] sm:$0xf]  ;;  %v10127_v30 = vld [vmem:[#allocation5 + $0x110] sm:$0xf0]  ;;  %v10002_v41 = vor.u32 %v11045_v39, %v9999_v36  ;;  %v10102_v15 = vor.u32 %v11072_v17, %v10101_v60  ;;  %v10085_v58 = vld [vmem:[#allocation5 + $0xa8] sm:$0xf] }
 0xc8c   :  { %7585 = vmatpush.bf16.msra.mxu2 %v10178_v0  ;;  %v11109_v31 = vld [vmem:[#allocation5 + $0x204] sm:$0xf]  ;;  %v10255_v20 = vld [vmem:[#allocation5 + $0x210] sm:$0xf0]  ;;  %v10130_v62 = vor.u32 %v11077_v8, %v10127_v30  ;;  %v10230_v0 = vor.u32 %v11104_v9, %v10229_v45  ;;  %v11068_v53 = vld [vmem:[#allocation5 + $0xb4] sm:$0xf0] }
 0xc8d   :  { %7598 = vmatpush.bf16.msrb.mxu3 %v10306_v54  ;;  %v11141_v10 = vld [vmem:[#allocation5 + $0x304] sm:$0xf]  ;;  %v10383_v40 = vld [vmem:[#allocation5 + $0x310] sm:$0xf0]  ;;  %v10258_v63 = vor.u32 %v11109_v31, %v10255_v20  ;;  %v10358_v54 = vor.u32 %v11136_v2, %v10357_v61  ;;  %v10213_v16 = vld [vmem:[#allocation5 + $0x1a8] sm:$0xf] }
 0xc8e   :  { %7611 = vmatpush.bf16.msra.mxu0 %v10434_v13  ;;  %v10386_v46 = vor.u32 %v11141_v10, %v10383_v40  ;;  %v10486_v13 = vor.u32 %v11168_v38, %v10485_v3  ;;  %v11100_v56 = vld [vmem:[#allocation5 + $0x1b4] sm:$0xf0]  ;;  %v10341_v18 = vld [vmem:[#allocation5 + $0x2a8] sm:$0xf] }
 0xc8f   :  { %7573 = vmatpush.bf16.msrb.mxu1 %v10034_v24  ;;  %v11132_v7 = vld [vmem:[#allocation5 + $0x2b4] sm:$0xf0]  ;;  %v10469_v23 = vld [vmem:[#allocation5 + $0x3a8] sm:$0xf]  ;;  %v10086_v24 = vor.u32 %v11068_v53, %v10085_v58 }
 0xc90   :  { %7586 = vmatpush.bf16.msra.mxu2 %v10162_v1  ;;  %v11164_v49 = vld [vmem:[#allocation5 + $0x3b4] sm:$0xf0]  ;;  %v10214_v1 = vor.u32 %v11100_v56, %v10213_v16  ;;  %v10069_v55 = vld [vmem:[#allocation5 + $0x88] sm:$0xf] }
 0xc91   :  { %7599 = vmatpush.bf16.msrb.mxu3 %v10290_v26  ;;  %v10342_v26 = vor.u32 %v11132_v7, %v10341_v18  ;;  %v11064_v22 = vld [vmem:[#allocation5 + $0x94] sm:$0xf0]  ;;  %v10197_v5 = vld [vmem:[#allocation5 + $0x188] sm:$0xf] }
 0xc92   :  { %7612 = vmatpush.bf16.msra.mxu0 %v10418_v27  ;;  %v10470_v27 = vor.u32 %v11164_v49, %v10469_v23  ;;  %v11096_v51 = vld [vmem:[#allocation5 + $0x194] sm:$0xf0]  ;;  %v10325_v33 = vld [vmem:[#allocation5 + $0x288] sm:$0xf] }
 0xc93   :  { %7574 = vmatpush.bf16.msrb.mxu1 %v10018_v32  ;;  %v11128_v37 = vld [vmem:[#allocation5 + $0x294] sm:$0xf0]  ;;  %v10453_v19 = vld [vmem:[#allocation5 + $0x388] sm:$0xf]  ;;  %v10070_v32 = vor.u32 %v11064_v22, %v10069_v55  ;;  %v10198_v39 = vor.u32 %v11096_v51, %v10197_v5  ;;  %v10247_v22 = vld [vmem:[#allocation5 + $0x1f8] sm:$0xf0] }
 0xc94   :  { %7587 = vmatpush.bf16.msra.mxu2 %v10146_v14  ;;  %v11160_v4 = vld [vmem:[#allocation5 + $0x394] sm:$0xf0]  ;;  %v10326_v36 = vor.u32 %v11128_v37, %v10325_v33  ;;  %v10053_v14 = vld [vmem:[#allocation5 + $0x68] sm:$0xf]  ;;  %v11138_v5 = vld [vmem:[#allocation5 + $0x2ec] sm:$0xf] }
 0xc95   :  { %7600 = vmatpush.bf16.msrb.mxu3 %v10274_v25  ;;  %v11060_v25 = vld [vmem:[#allocation5 + $0x74] sm:$0xf0]  ;;  %v10181_v8 = vld [vmem:[#allocation5 + $0x168] sm:$0xf]  ;;  %v10454_v30 = vor.u32 %v11160_v4, %v10453_v19  ;;  %v11170_v37 = vld [vmem:[#allocation5 + $0x3ec] sm:$0xf] }
 0xc96   :  { %7613 = vmatpush.bf16.msra.mxu0 %v10402_v12  ;;  %v11092_v31 = vld [vmem:[#allocation5 + $0x174] sm:$0xf0]  ;;  %v10309_v12 = vld [vmem:[#allocation5 + $0x268] sm:$0xf]  ;;  %v10054_v59 = vor.u32 %v11060_v25, %v10053_v14  ;;  %v10503_v19 = vld [vmem:[#allocation5 + $0x3f8] sm:$0xf0] }
 0xc97   :  { %7575 = vmatpush.bf16.msrb.mxu1 %v10002_v41  ;;  %v11124_v20 = vld [vmem:[#allocation5 + $0x274] sm:$0xf0]  ;;  %v10437_v10 = vld [vmem:[#allocation5 + $0x368] sm:$0xf]  ;;  %v10182_v21 = vor.u32 %v11092_v31, %v10181_v8  ;;  %v11070_v14 = vld [vmem:[#allocation5 + $0xcc] sm:$0xf] }
 0xc98   :  { %7588 = vmatpush.bf16.msra.mxu2 %v10130_v62  ;;  %v11156_v40 = vld [vmem:[#allocation5 + $0x374] sm:$0xf0]  ;;  %v10310_v42 = vor.u32 %v11124_v20, %v10309_v12  ;;  %v10037_v41 = vld [vmem:[#allocation5 + $0x48] sm:$0xf]  ;;  %v10103_v25 = vld [vmem:[#allocation5 + $0xd8] sm:$0xf0] }
 0xc99   :  { %7601 = vmatpush.bf16.msrb.mxu3 %v10258_v63  ;;  %v11056_v43 = vld [vmem:[#allocation5 + $0x54] sm:$0xf0]  ;;  %v10165_v44 = vld [vmem:[#allocation5 + $0x148] sm:$0xf]  ;;  %v10438_v50 = vor.u32 %v11156_v40, %v10437_v10  ;;  %v11102_v8 = vld [vmem:[#allocation5 + $0x1cc] sm:$0xf] }
 0xc9a   :  { %7614 = vmatpush.bf16.msra.mxu0 %v10386_v46  ;;  %7576 = vmatmul.bf16.vlgmr.msrb.gmra.mxu1 %v13144_v57  ;;  %v11088_v62 = vld [vmem:[#allocation5 + $0x154] sm:$0xf0]  ;;  %v10293_v63 = vld [vmem:[#allocation5 + $0x248] sm:$0xf]  ;;  %v10231_v31 = vld [vmem:[#allocation5 + $0x1d8] sm:$0xf0] }
 0xc9b   :  { %7620 = vmatpush.bf16.msra.mxu1 %v10118_v48  ;;  %7589 = vmatmul.bf16.vlgmr.msra.gmra.mxu2 %v13136_v52  ;;  %v11120_v34 = vld [vmem:[#allocation5 + $0x254] sm:$0xf0]  ;;  %v10421_v11 = vld [vmem:[#allocation5 + $0x348] sm:$0xf]  ;;  %v10038_v48 = vor.u32 %v11056_v43, %v10037_v41  ;;  %v11134_v12 = vld [vmem:[#allocation5 + $0x2cc] sm:$0xf] }
 0xc9c   :  { %7633 = vmatpush.bf16.msrb.mxu2 %v10246_v47  ;;  %7602 = vmatmul.bf16.vlgmr.msrb.gmra.mxu3 %v13140_v28  ;;  %v11152_v46 = vld [vmem:[#allocation5 + $0x354] sm:$0xf0]  ;;  %v10166_v47 = vor.u32 %v11088_v62, %v10165_v44  ;;  %v10021_v60 = vld [vmem:[#allocation5 + $0x28] sm:$0xf]  ;;  %v10359_v20 = vld [vmem:[#allocation5 + $0x2d8] sm:$0xf0] }
 0xc9d   :  { %7646 = vmatpush.bf16.msra.mxu3 %v10374_v35  ;;  %7615 = vmatmul.bf16.vlgmr.msra.gmra.mxu0 %v13148_v6  ;;  %v10294_v35 = vor.u32 %v11120_v34, %v10293_v63  ;;  %v11052_v17 = vld [vmem:[#allocation5 + $0x34] sm:$0xf0]  ;;  %v10149_v45 = vld [vmem:[#allocation5 + $0x128] sm:$0xf]  ;;  %v11166_v10 = vld [vmem:[#allocation5 + $0x3cc] sm:$0xf] }
 0xc9e   :  { %7659 = vmatpush.bf16.msrb.mxu0 %v10502_v29  ;;  %v10422_v29 = vor.u32 %v11152_v46, %v10421_v11  ;;  %v11084_v9 = vld [vmem:[#allocation5 + $0x134] sm:$0xf0]  ;;  %v10277_v61 = vld [vmem:[#allocation5 + $0x228] sm:$0xf]  ;;  %v10487_v40 = vld [vmem:[#allocation5 + $0x3d8] sm:$0xf0] }
 0xc9f   :  { %7621 = vmatpush.bf16.msra.mxu1 %v10102_v15  ;;  %v11116_v2 = vld [vmem:[#allocation5 + $0x234] sm:$0xf0]  ;;  %v10405_v3 = vld [vmem:[#allocation5 + $0x328] sm:$0xf]  ;;  %v10022_v15 = vor.u32 %v11052_v17, %v10021_v60  ;;  %v10150_v58 = vor.u32 %v11084_v9, %v10149_v45  ;;  %v11066_v41 = vld [vmem:[#allocation5 + $0xac] sm:$0xf] }
 0xca0   :  { %7634 = vmatpush.bf16.msrb.mxu2 %v10230_v0  ;;  %v11148_v38 = vld [vmem:[#allocation5 + $0x334] sm:$0xf0]  ;;  %v10005_v0 = vld [vmem:[#allocation5 + $0x8] sm:$0xf]  ;;  %v10278_v53 = vor.u32 %v11116_v2, %v10277_v61  ;;  %v10087_v43 = vld [vmem:[#allocation5 + $0xb8] sm:$0xf0] }
 0xca1   :  { %7647 = vmatpush.bf16.msra.mxu3 %v10358_v54  ;;  %v11048_v54 = vld [vmem:[#allocation5 + $0x14] sm:$0xf0]  ;;  %v10133_v16 = vld [vmem:[#allocation5 + $0x108] sm:$0xf]  ;;  %v10406_v18 = vor.u32 %v11148_v38, %v10405_v3  ;;  %v11098_v44 = vld [vmem:[#allocation5 + $0x1ac] sm:$0xf] }
 0xca2   :  { %7660 = vmatpush.bf16.msrb.mxu0 %v10486_v13  ;;  %v11080_v13 = vld [vmem:[#allocation5 + $0x114] sm:$0xf0]  ;;  %v10261_v56 = vld [vmem:[#allocation5 + $0x208] sm:$0xf]  ;;  %v10006_v55 = vor.u32 %v11048_v54, %v10005_v0  ;;  %v10215_v62 = vld [vmem:[#allocation5 + $0x1b8] sm:$0xf0] }
 0xca3   :  { %7622 = vmatpush.bf16.msra.mxu1 %v10086_v24  ;;  %v11112_v7 = vld [vmem:[#allocation5 + $0x214] sm:$0xf0]  ;;  %v10389_v23 = vld [vmem:[#allocation5 + $0x308] sm:$0xf]  ;;  %v11074_v24 = vld [vmem:[#allocation5 + $0xec] sm:$0xf]  ;;  %v10134_v51 = vor.u32 %v11080_v13, %v10133_v16 }
 0xca4   :  { %7635 = vmatpush.bf16.msrb.mxu2 %v10214_v1  ;;  %v11144_v49 = vld [vmem:[#allocation5 + $0x314] sm:$0xf0]  ;;  %v10119_v1 = vld [vmem:[#allocation5 + $0xf8] sm:$0xf0]  ;;  %v10262_v33 = vor.u32 %v11112_v7, %v10261_v56  ;;  %v11130_v63 = vld [vmem:[#allocation5 + $0x2ac] sm:$0xf] }
 0xca5   :  { %7648 = vmatpush.bf16.msra.mxu3 %v10342_v26  ;;  %v11106_v26 = vld [vmem:[#allocation5 + $0x1ec] sm:$0xf]  ;;  %v10390_v4 = vor.u32 %v11144_v49, %v10389_v23  ;;  %v10343_v34 = vld [vmem:[#allocation5 + $0x2b8] sm:$0xf0] }
 0xca6   :  { %7661 = vmatpush.bf16.msrb.mxu0 %v10470_v27  ;;  %v10375_v27 = vld [vmem:[#allocation5 + $0x2f8] sm:$0xf0]  ;;  %v11162_v11 = vld [vmem:[#allocation5 + $0x3ac] sm:$0xf] }
 0xca7   :  { %7623 = vmatpush.bf16.msra.mxu1 %v10070_v32  ;;  %v10122_v32 = vor.u32 %v11074_v24, %v10119_v1  ;;  %v10471_v46 = vld [vmem:[#allocation5 + $0x3b8] sm:$0xf0]  ;;  %v11062_v60 = vld [vmem:[#allocation5 + $0x8c] sm:$0xf] }
 0xca8   :  { %7636 = vmatpush.bf16.msrb.mxu2 %v10198_v39  ;;  %v10250_v39 = vor.u32 %v11106_v26, %v10247_v22  ;;  %v10071_v17 = vld [vmem:[#allocation5 + $0x98] sm:$0xf0]  ;;  %v11094_v45 = vld [vmem:[#allocation5 + $0x18c] sm:$0xf] }
 0xca9   :  { %7649 = vmatpush.bf16.msra.mxu3 %v10326_v36  ;;  %v10378_v36 = vor.u32 %v11138_v5, %v10375_v27  ;;  %v10199_v9 = vld [vmem:[#allocation5 + $0x198] sm:$0xf0]  ;;  %v11126_v61 = vld [vmem:[#allocation5 + $0x28c] sm:$0xf] }
 0xcaa   :  { %7662 = vmatpush.bf16.msrb.mxu0 %v10454_v30  ;;  %v10506_v30 = vor.u32 %v11170_v37, %v10503_v19  ;;  %v10327_v2 = vld [vmem:[#allocation5 + $0x298] sm:$0xf0]  ;;  %v11158_v3 = vld [vmem:[#allocation5 + $0x38c] sm:$0xf]  ;;  %v10202_v0 = vor.u32 %v11094_v45, %v10199_v9 }
 0xcab   :  { %7624 = vmatpush.bf16.msra.mxu1 %v10054_v59  ;;  %v10106_v59 = vor.u32 %v11070_v14, %v10103_v25  ;;  %v10455_v38 = vld [vmem:[#allocation5 + $0x398] sm:$0xf0]  ;;  %v10330_v54 = vor.u32 %v11126_v61, %v10327_v2  ;;  %v11090_v16 = vld [vmem:[#allocation5 + $0x16c] sm:$0xf] }
 0xcac   :  { %7637 = vmatpush.bf16.msrb.mxu2 %v10182_v21  ;;  %v10234_v21 = vor.u32 %v11102_v8, %v10231_v31  ;;  %v10458_v13 = vor.u32 %v11158_v3, %v10455_v38  ;;  %v10183_v56 = vld [vmem:[#allocation5 + $0x178] sm:$0xf0]  ;;  %v11154_v23 = vld [vmem:[#allocation5 + $0x36c] sm:$0xf] }
 0xcad   :  { %7650 = vmatpush.bf16.msra.mxu3 %v10310_v42  ;;  %v10362_v42 = vor.u32 %v11134_v12, %v10359_v20  ;;  %v10311_v7 = vld [vmem:[#allocation5 + $0x278] sm:$0xf0]  ;;  %v10186_v1 = vor.u32 %v11090_v16, %v10183_v56  ;;  %v11086_v5 = vld [vmem:[#allocation5 + $0x14c] sm:$0xf] }
 0xcae   :  { %7663 = vmatpush.bf16.msrb.mxu0 %v10438_v50  ;;  %v10490_v50 = vor.u32 %v11166_v10, %v10487_v40  ;;  %v10439_v49 = vld [vmem:[#allocation5 + $0x378] sm:$0xf0]  ;;  %v11150_v19 = vld [vmem:[#allocation5 + $0x34c] sm:$0xf] }
 0xcaf   :  { %7625 = vmatpush.bf16.msra.mxu1 %v10038_v48  ;;  %v10090_v48 = vor.u32 %v11066_v41, %v10087_v43  ;;  %v10039_v22 = vld [vmem:[#allocation5 + $0x58] sm:$0xf0]  ;;  %v10442_v27 = vor.u32 %v11154_v23, %v10439_v49  ;;  %v11050_v14 = vld [vmem:[#allocation5 + $0x2c] sm:$0xf] }
 0xcb0   :  { %7638 = vmatpush.bf16.msrb.mxu2 %v10166_v47  ;;  %v10218_v47 = vor.u32 %v11098_v44, %v10215_v62  ;;  %v10295_v37 = vld [vmem:[#allocation5 + $0x258] sm:$0xf0]  ;;  %v11082_v8 = vld [vmem:[#allocation5 + $0x12c] sm:$0xf] }
 0xcb1   :  { %7651 = vmatpush.bf16.msra.mxu3 %v10294_v35  ;;  %v10346_v35 = vor.u32 %v11130_v63, %v10343_v34  ;;  %v10023_v25 = vld [vmem:[#allocation5 + $0x38] sm:$0xf0]  ;;  %v11114_v12 = vld [vmem:[#allocation5 + $0x22c] sm:$0xf] }
 0xcb2   :  { %7664 = vmatpush.bf16.msrb.mxu0 %v10422_v29  ;;  %v10474_v29 = vor.u32 %v11162_v11, %v10471_v46  ;;  %v10151_v31 = vld [vmem:[#allocation5 + $0x138] sm:$0xf0]  ;;  %v11146_v10 = vld [vmem:[#allocation5 + $0x32c] sm:$0xf] }
 0xcb3   :  { %7626 = vmatpush.bf16.msra.mxu1 %v10022_v15  ;;  %v10074_v15 = vor.u32 %v11062_v60, %v10071_v17  ;;  %v10279_v20 = vld [vmem:[#allocation5 + $0x238] sm:$0xf0]  ;;  %v11046_v41 = vld [vmem:[#allocation5 + $0xc] sm:$0xf] }
 0xcb4   :  { %7639 = vmatpush.bf16.msrb.mxu2 %v10150_v58  ;;  %v11058_v58 = vld [vmem:[#allocation5 + $0x6c] sm:$0xf]  ;;  %v10407_v40 = vld [vmem:[#allocation5 + $0x338] sm:$0xf0] }
 0xcb5   :  { %7652 = vmatpush.bf16.msra.mxu3 %v10278_v53  ;;  %v10055_v53 = vld [vmem:[#allocation5 + $0x78] sm:$0xf0]  ;;  %v11078_v44 = vld [vmem:[#allocation5 + $0x10c] sm:$0xf] }
 0xcb6   :  { %7665 = vmatpush.bf16.msrb.mxu0 %v10406_v18  ;;  %v11122_v18 = vld [vmem:[#allocation5 + $0x26c] sm:$0xf]  ;;  %v10058_v24 = vor.u32 %v11058_v58, %v10055_v53  ;;  %v10007_v43 = vld [vmem:[#allocation5 + $0x18] sm:$0xf0] }
 0xcb7   :  { %7627 = vmatpush.bf16.msra.mxu1 %v10006_v55  ;;  %v10314_v26 = vor.u32 %v11122_v18, %v10311_v7  ;;  %v11054_v55 = vld [vmem:[#allocation5 + $0x4c] sm:$0xf]  ;;  %v10135_v62 = vld [vmem:[#allocation5 + $0x118] sm:$0xf0] }
 0xcb8   :  { %7640 = vmatpush.bf16.msrb.mxu2 %v10134_v51  ;;  %v10167_v51 = vld [vmem:[#allocation5 + $0x158] sm:$0xf0]  ;;  %v11110_v63 = vld [vmem:[#allocation5 + $0x20c] sm:$0xf] }
 0xcb9   :  { %7653 = vmatpush.bf16.msra.mxu3 %v10262_v33  ;;  %v11118_v33 = vld [vmem:[#allocation5 + $0x24c] sm:$0xf]  ;;  %v10263_v34 = vld [vmem:[#allocation5 + $0x218] sm:$0xf0] }
 0xcba   :  { %7666 = vmatpush.bf16.msrb.mxu0 %v10390_v4  ;;  %7628 = vmatmul.bf16.vlgmr.msra.gmra.mxu1 %v13144_v57  ;;  %v10423_v4 = vld [vmem:[#allocation5 + $0x358] sm:$0xf0]  ;;  %v11142_v11 = vld [vmem:[#allocation5 + $0x30c] sm:$0xf] }
 0xcbb   :  { %7672 = vmatpush.bf16.msrb.mxu1 %v10122_v32  ;;  %7641 = vmatmul.bf16.vlgmr.msrb.gmra.mxu2 %v13136_v52  ;;  %v10042_v32 = vor.u32 %v11054_v55, %v10039_v22  ;;  %v10391_v46 = vld [vmem:[#allocation5 + $0x318] sm:$0xf0] }
 0xcbc   :  { %7685 = vmatpush.bf16.msra.mxu2 %v10250_v39  ;;  %7654 = vmatmul.bf16.vlgmr.msra.gmra.mxu3 %v13140_v28  ;;  %v10170_v39 = vor.u32 %v11086_v5, %v10167_v51  ;;  %v10394_v60 = vor.u32 %v11142_v11, %v10391_v46  ;;  %v6866_v17 = vld [vmem:[#allocation29] sm:$0xf] }
 0xcbd   :  { %7698 = vmatpush.bf16.msrb.mxu3 %v10378_v36  ;;  %7667 = vmatmul.bf16.vlgmr.msrb.gmra.mxu0 %v13148_v6  ;;  %v10298_v36 = vor.u32 %v11118_v33, %v10295_v37  ;;  %v6868_v45 = vperm.slane %v6866_v17, 0  ;;  %v6869_v16 = vperm.slane %v6866_v17, 1 }
 0xcbe   :  { %7711 = vmatpush.bf16.msra.mxu0 %v10506_v30  ;;  %v10426_v30 = vor.u32 %v11150_v19, %v10423_v4 }
 0xcbf   :  { %7673 = vmatpush.bf16.msrb.mxu1 %v10106_v59  ;;  %v10026_v59 = vor.u32 %v11050_v14, %v10023_v25  ;;  %v6871_v14 = vperm.slane %v6866_v17, 3 }
 0xcc0   :  { %7686 = vmatpush.bf16.msra.mxu2 %v10234_v21  ;;  %v10154_v21 = vor.u32 %v11082_v8, %v10151_v31 }
 0xcc1   :  { %7699 = vmatpush.bf16.msrb.mxu3 %v10362_v42  ;;  %v10282_v42 = vor.u32 %v11114_v12, %v10279_v20 }
 0xcc2   :  { %7712 = vmatpush.bf16.msra.mxu0 %v10490_v50  ;;  %v10410_v50 = vor.u32 %v11146_v10, %v10407_v40 }
 0xcc3   :  { %7674 = vmatpush.bf16.msrb.mxu1 %v10090_v48  ;;  %v10010_v48 = vor.u32 %v11046_v41, %v10007_v43 }
 0xcc4   :  { %7687 = vmatpush.bf16.msra.mxu2 %v10218_v47  ;;  %v10138_v47 = vor.u32 %v11078_v44, %v10135_v62 }
 0xcc5   :  { %7700 = vmatpush.bf16.msrb.mxu3 %v10346_v35  ;;  %v10266_v35 = vor.u32 %v11110_v63, %v10263_v34 }
 0xcc6   :  { %7713 = vmatpush.bf16.msra.mxu0 %v10474_v29 }
 0xcc7   :  { %7675 = vmatpush.bf16.msrb.mxu1 %v10074_v15 }
 0xcc8   :  { %7688 = vmatpush.bf16.msra.mxu2 %v10202_v0 }
 0xcc9   :  { %7701 = vmatpush.bf16.msrb.mxu3 %v10330_v54 }
 0xcca   :  { %7714 = vmatpush.bf16.msra.mxu0 %v10458_v13 }
 0xccb   :  { %7676 = vmatpush.bf16.msrb.mxu1 %v10058_v24 }
 0xccc   :  { %7689 = vmatpush.bf16.msra.mxu2 %v10186_v1 }
 0xccd   :  { %7702 = vmatpush.bf16.msrb.mxu3 %v10314_v26 }
 0xcce   :  { %7715 = vmatpush.bf16.msra.mxu0 %v10442_v27 }
 0xccf   :  { %7677 = vmatpush.bf16.msrb.mxu1 %v10042_v32 }
 0xcd0   :  { %7690 = vmatpush.bf16.msra.mxu2 %v10170_v39  ;;  %v6870_v39 = vperm.slane %v6866_v17, 2 }
 0xcd1   :  { %7703 = vmatpush.bf16.msrb.mxu3 %v10298_v36 }
 0xcd2   :  { %7716 = vmatpush.bf16.msra.mxu0 %v10426_v30 }
 0xcd3   :  { %7678 = vmatpush.bf16.msrb.mxu1 %v10026_v59 }
 0xcd4   :  { %7691 = vmatpush.bf16.msra.mxu2 %v10154_v21 }
 0xcd5   :  { %7704 = vmatpush.bf16.msrb.mxu3 %v10282_v42 }
 0xcd6   :  { %7717 = vmatpush.bf16.msra.mxu0 %v10410_v50 }
 0xcd7   :  { %7679 = vmatpush.bf16.msrb.mxu1 %v10010_v48 }
 0xcd8   :  { %7692 = vmatpush.bf16.msra.mxu2 %v10138_v47 }
 0xcd9   :  { %7705 = vmatpush.bf16.msrb.mxu3 %v10266_v35 }
 0xcda   :  { %7718 = vmatpush.bf16.msra.mxu0 %v10394_v60  ;;  %7680 = vmatmul.bf16.vlgmr.msrb.gmra.mxu1 %v13144_v57 }
 0xcdb   :  { %7693 = vmatmul.bf16.vlgmr.msra.gmra.mxu2 %v13136_v52 }
 0xcdc   :  { %7706 = vmatmul.bf16.vlgmr.msrb.gmra.mxu3 %v13140_v28 }
 0xcdd   :  { %7719 = vmatmul.bf16.vlgmr.msra.gmra.mxu0 %v13148_v6 }
 0xcf7   :  { %v7525_v29 = vpop.f32.mrf.mxu1 }
 0xcf8   :  { %v7526_v61 = vadd.f32 %v7525_v29, %v6868_v45 }
 0xcfa   :  { %v7564_v9 = vpop.f32.mrf.mxu0 }
 0xcfe   :  { %v7538_v2 = vpop.f32.mrf.mxu2 }
 0xcff   :  { %v7539_v3 = vadd.f32 %v7538_v2, %v7526_v61  ;;  %v7551_v38 = vpop.f32.mrf.mxu3  ;;  %v7527_v0 = vpop.f32.mrf.mxu1 }
 0xd01   :  { %v7552_v15 = vadd.f32 %v7551_v38, %v7539_v3 }
 0xd02   :  { %v7566_v54 = vpop.f32.mrf.mxu0 }
 0xd03   :  { %v7565_v58 = vadd.f32 %v7564_v9, %v7552_v15 }
 0xd06   :  { %v7540_v53 = vpop.f32.mrf.mxu2 }
 0xd07   :  { %v7553_v57 = vpop.f32.mrf.mxu3 }
 0xd17   :  { %v7577_v52 = vpop.f32.mrf.mxu1 }
 0xd18   :  { %v7578_v28 = vadd.f32 %v7577_v52, %v6869_v16 }
 0xd1a   :  { %v7616_v13 = vpop.f32.mrf.mxu0 }
 0xd1e   :  { %v7590_v56 = vpop.f32.mrf.mxu2 }
 0xd1f   :  { %v7591_v6 = vadd.f32 %v7590_v56, %v7578_v28  ;;  %v7603_v18 = vpop.f32.mrf.mxu3  ;;  %v7579_v23 = vpop.f32.mrf.mxu1 }
 0xd21   :  { %v7604_v7 = vadd.f32 %v7603_v18, %v7591_v6 }
 0xd22   :  { %v7618_v49 = vpop.f32.mrf.mxu0 }
 0xd23   :  { %v7617_v24 = vadd.f32 %v7616_v13, %v7604_v7 }
 0xd25   :  { %v7728_v1 = vrot.slane %v7617_v24, 6 }
 0xd26   :  { %v7592_v26 = vpop.f32.mrf.mxu2 }
 0xd27   :  { %v7731_v55 = vsel %vm953_vm1, %v7565_v58, %v7728_v1  ;;  %v7605_v22 = vpop.f32.mrf.mxu3  ;;  %vm7732_vm1 = vcmask 1045508  }
 0xd37   :  { %v7629_v5 = vpop.f32.mrf.mxu1 }
 0xd38   :  { %v7630_v36 = vadd.f32 %v7629_v5, %v6870_v39 }
 0xd3a   :  { %v7668_v27 = vpop.f32.mrf.mxu0 }
 0xd3e   :  { %v7642_v51 = vpop.f32.mrf.mxu2 }
 0xd3f   :  { %v7655_v33 = vpop.f32.mrf.mxu3  ;;  %v7631_v37 = vpop.f32.mrf.mxu1  ;;  %v7643_v8 = vadd.f32 %v7642_v51, %v7630_v36 }
 0xd41   :  { %v7656_v12 = vadd.f32 %v7655_v33, %v7643_v8 }
 0xd42   :  { %v7670_v19 = vpop.f32.mrf.mxu0 }
 0xd43   :  { %v7669_v21 = vadd.f32 %v7668_v27, %v7656_v12 }
 0xd45   :  { %v7729_v44 = vrot.slane %v7669_v21, 4 }
 0xd46   :  { %v7644_v4 = vpop.f32.mrf.mxu2 }
 0xd47   :  { %v7657_v32 = vpop.f32.mrf.mxu3 }
 0xd57   :  { %v7681_v25 = vpop.f32.mrf.mxu1 }
 0xd58   :  { %v7682_v31 = vadd.f32 %v7681_v25, %v6871_v14 }
 0xd5a   :  { %v7720_v30 = vpop.f32.mrf.mxu0 }
 0xd5e   :  { %v7694_v20 = vpop.f32.mrf.mxu2 }
 0xd5f   :  { %v7707_v10 = vpop.f32.mrf.mxu3  ;;  %v7695_v40 = vadd.f32 %v7694_v20, %v7682_v31  ;;  %v7683_v59 = vpop.f32.mrf.mxu1 }
 0xd61   :  { %v7708_v42 = vadd.f32 %v7707_v10, %v7695_v40 }
 0xd62   :  { %v7722_v41 = vpop.f32.mrf.mxu0 }
 0xd63   :  { %v7721_v43 = vadd.f32 %v7720_v30, %v7708_v42 }
 0xd65   :  { %v7730_v50 = vrot.slane %v7721_v43, 2 }
 0xd66   :  { %v7696_v62 = vpop.f32.mrf.mxu2 }
 0xd67   :  { %v7709_v63 = vpop.f32.mrf.mxu3  ;;  %v7733_v34 = vsel %vm7732_vm1, %v7729_v44, %v7730_v50 }
 0xd68   :  { %v7735_v11 = vsel %vm7734_vm12, %v7731_v55, %v7733_v34 }
 0xd69   :  { %7737 = vst [vmem:[%s12074_s27] sm:$0xff] %v7735_v11 }
 0xd6a   :  { %7742 = vsyncpa [#allocation8], 1 }
 0xd6b   :  { %7743 = vsyncpa [#allocation12], 1 }
 0xd6c   :  { %7744 = vsyncpa [#allocation15], 1 }
 0xd6d   :  { %7745 = vsyncpa [#allocation18], 1 }
 0xd6e   :  { %7746 = vsyncpa [#allocation21], 1 }
 0xd6f   :  { %7747 = vsyncpa [#allocation24], 1 }
 0xd70   :  { %7748 = vsyncpa [#allocation27], 1 }
 0xd71   :  { %7749 = vsyncpa [#allocation30], 1 }
 0xd72   :  { %7750 = vsyncpa [#allocation33], 1 }
 0xd73   :  { %7751 = vsyncpa [#allocation9], 1 }
 0xd74   :  { %7752 = vsyncmov [#allocation6] }
 0xd77   :  { %s7753_s30 = vpop.sfrf %7752 }
 0xd78   :  { %p10507_p7 = scmp.ne.s32.totalorder %s7753_s30, 0 }
 0xd7a   :  { %7757 = shalt.err (%p10507_p7)  }
 0xd7b   :  { %7759 = vsyncmov [#allocation6 + $0x1] }
 0xd7e   :  { %s7760_s28 = vpop.sfrf %7759 }
 0xd7f   :  { %p10508_p8 = scmp.ne.s32.totalorder %s7760_s28, 0 }
 0xd81   :  { %7764 = shalt.err (%p10508_p8)  }
 0xd82   :  { %7766 = vsyncmov [#allocation6 + $0x2] }
 0xd85   :  { %s7767_s27 = vpop.sfrf %7766 }
 0xd86   :  { %p10509_p9 = scmp.ne.s32.totalorder %s7767_s27, 0 }
 0xd88   :  { %7771 = shalt.err (%p10509_p9)  }
 0xd89   :  { %7773 = vsyncmov [#allocation6 + $0x3] }
 0xd8c   :  { %s7774_s1 = vpop.sfrf %7773 }
 0xd8d   :  { %p10510_p10 = scmp.ne.s32.totalorder %s7774_s1, 0 }
 0xd8f   :  { %7778 = shalt.err (%p10510_p10)  }

</bundles_post_ra>
